<compile_context>
chip_gen: v7x
topology: tpu7x:2x2x1
jax: 0.10.0
libtpu: 0.0.40
codegen_flags: <defaults>
</compile_context>

<pallas_src>
import jax
import jax.numpy as jnp
from jax.experimental import pallas as pl
from jax.experimental.pallas import tpu as pltpu

LRELU_SLOPE = 0.2
BN_EPS = 1e-5
_TILE_BYTES = 4 * 1024 * 1024     # per patch-block buffer (bf16), before double-buffering


def _round_up(x, m):
    return ((x + m - 1) // m) * m


# ----------------------------------------------------------------------------
# Pallas kernels
# ----------------------------------------------------------------------------
def _conv_mm_kernel(p_ref, w_ref, b_ref, o_ref):
    """(tile_rows, r*K) bf16 @ (r*K, r*Cout) bf16 -> f32, + bias, LeakyReLU(0.2)."""
    acc = jnp.dot(p_ref[...], w_ref[...], preferred_element_type=jnp.float32)
    y = acc + b_ref[...]
    o_ref[...] = jnp.where(y >= 0, y, LRELU_SLOPE * y)


def _head_kernel(x_ref, emb_ref, w_ref, o_ref):
    """o = x @ [fc | aux] with the label-embedding projection added to column 0."""
    x = x_ref[...]
    logits = jnp.dot(x.astype(jnp.bfloat16), w_ref[...],
                     preferred_element_type=jnp.float32)
    proj = jnp.sum(x * emb_ref[...], axis=1, keepdims=True)          # (n, 1), f32
    col = jax.lax.broadcasted_iota(jnp.int32, logits.shape, 1)
    o_ref[...] = logits + jnp.where(col == 0, proj, 0.0)


# ----------------------------------------------------------------------------
# JAX glue
# ----------------------------------------------------------------------------
def _extract_patches(x, ksize=5, stride=2, pad=2):
    """x: (N, H, W, C) -> patches (N, Ho, Wo, ksize*ksize*C); tap order (kh, kw, c)."""
    n, h, w, c = x.shape
    ho = (h + 2 * pad - ksize) // stride + 1
    wo = (w + 2 * pad - ksize) // stride + 1
    xp = jnp.pad(x, ((0, 0), (pad, pad), (pad, pad), (0, 0)))
    cols = []
    for kh in range(ksize):
        for kw in range(ksize):
            cols.append(
                xp[:, kh:kh + stride * (ho - 1) + 1:stride,
                      kw:kw + stride * (wo - 1) + 1:stride, :])
    return jnp.concatenate(cols, axis=-1), ho, wo


def conv_bn_lrelu(x, w_hwio, scale, bias):
    """x: (N,H,W,Cin) f32; w_hwio: (5,5,Cin,Cout); scale/bias: folded-BN affine."""
    n = x.shape[0]
    kh, kw, cin, cout = w_hwio.shape
    patches, ho, wo = _extract_patches(x.astype(jnp.bfloat16), ksize=kh)
    K = kh * kw * cin
    m = n * ho * wo

    # Lane packing: r consecutive conv-output rows share one 128-lane output row.
    r = 128 // cout if (cout < 128 and 128 % cout == 0) else 1
    row_align = 16 * r                       # bf16 sublane tile (16) x packing factor

    # M-tile: ~2 even grid steps (one per v7x TensorCore), VMEM-capped.
    vmem_rows = max(row_align, (_TILE_BYTES // (K * 2)) // row_align * row_align)
    tm = min(vmem_rows, _round_up(pl.cdiv(m, 2), row_align))
    tm = _round_up(tm, row_align)
    num_tiles = pl.cdiv(m, tm)
    if num_tiles > 1 and num_tiles % 2:
        num_tiles += 1                       # even grid -> both v7x cores busy
    mp = num_tiles * tm

    p2 = jnp.pad(patches.reshape(m, K), ((0, mp - m), (0, 0)))
    p_packed = p2.reshape(mp // r, r * K)    # lane-dense patch matrix

    # Fold BN scale into the weights; block-diagonal replication for packing.
    wf = w_hwio.reshape(K, cout) * scale[None, :]
    w_big = jnp.kron(jnp.eye(r, dtype=wf.dtype), wf).astype(jnp.bfloat16)
    b_big = jnp.tile(bias.astype(jnp.float32), r).reshape(1, r * cout)

    tile_rows = tm // r
    out = pl.pallas_call(
        _conv_mm_kernel,
        out_shape=jax.ShapeDtypeStruct((mp // r, r * cout), jnp.float32),
        grid=(num_tiles,),
        in_specs=[
            pl.BlockSpec((tile_rows, r * K), lambda i: (i, 0)),
            pl.BlockSpec((r * K, r * cout), lambda i: (0, 0)),
            pl.BlockSpec((1, r * cout), lambda i: (0, 0)),
        ],
        out_specs=pl.BlockSpec((tile_rows, r * cout), lambda i: (i, 0)),
        compiler_params=pltpu.CompilerParams(dimension_semantics=("parallel",)),
    )(p_packed, w_big, b_big)

    return out.reshape(mp, cout)[:m].reshape(n, ho, wo, cout)


def _bn_fold(bn_params):
    gamma, beta, mean, var = bn_params
    scale = gamma / jnp.sqrt(var + BN_EPS)
    return scale, beta - mean * scale


def init_params(key, input_channels=1, num_classes=7, d=4):
    ks = jax.random.split(key, 12)

    def conv_w(k, cin, cout):
        return jax.random.normal(k, (5, 5, cin, cout), jnp.float32) * 0.02

    def bn(k, c):
        k1, k2, k3 = jax.random.split(k, 3)
        gamma = 1.0 + 0.02 * jax.random.normal(k1, (c,), jnp.float32)
        beta = 0.02 * jax.random.normal(k2, (c,), jnp.float32)
        mean = 0.01 * jax.random.normal(k3, (c,), jnp.float32)
        var = jnp.ones((c,), jnp.float32)
        return gamma, beta, mean, var

    feat = 16 * d * 7 * 7
    return {
        "conv1_w": conv_w(ks[0], input_channels, d),
        "conv2_w": conv_w(ks[1], d, 2 * d),
        "conv3_w": conv_w(ks[2], 2 * d, 4 * d),
        "conv4_w": conv_w(ks[3], 4 * d, 8 * d),
        "conv5_w": conv_w(ks[4], 8 * d, 16 * d),
        "bn2": bn(ks[5], 2 * d),
        "bn3": bn(ks[6], 4 * d),
        "bn4": bn(ks[7], 8 * d),
        "bn5": bn(ks[8], 16 * d),
        "fc_w": jax.random.normal(ks[9], (feat, 1), jnp.float32) * 0.02,
        "aux_w": jax.random.normal(ks[10], (feat, num_classes), jnp.float32) * 0.02,
        "embed": jax.random.normal(ks[11], (num_classes, feat), jnp.float32) * 0.02,
    }


def _forward_impl(params, x_nchw, labels):
    # PyTorch NCHW input -> NHWC for the conv kernels (channels on the lane dim).
    x = jnp.transpose(x_nchw, (0, 2, 3, 1)).astype(jnp.float32)

    d_ = params["conv1_w"].shape[-1]
    x = conv_bn_lrelu(x, params["conv1_w"],
                      jnp.ones((d_,), jnp.float32), jnp.zeros((d_,), jnp.float32))
    for i in (2, 3, 4, 5):
        s, b = _bn_fold(params[f"bn{i}"])
        x = conv_bn_lrelu(x, params[f"conv{i}_w"], s, b)

    # Flatten in PyTorch NCHW order: x.view(N, -1) on (N, C, H, W).
    n = x.shape[0]
    x_flat = jnp.transpose(x, (0, 3, 1, 2)).reshape(n, -1)
    feat = x_flat.shape[1]
    num_classes = params["aux_w"].shape[1]
    label_emb = params["embed"][labels]

    # Single head matmul: [fc | aux] concatenated along the output dim.
    w_head = jnp.concatenate([params["fc_w"], params["aux_w"]],
                             axis=1).astype(jnp.bfloat16)

    head = pl.pallas_call(
        _head_kernel,
        out_shape=jax.ShapeDtypeStruct((n, 1 + num_classes), jnp.float32),
        grid=(1,),
        in_specs=[
            pl.BlockSpec((n, feat), lambda i: (0, 0)),
            pl.BlockSpec((n, feat), lambda i: (0, 0)),
            pl.BlockSpec((feat, 1 + num_classes), lambda i: (0, 0)),
        ],
        out_specs=pl.BlockSpec((n, 1 + num_classes), lambda i: (0, 0)),
        compiler_params=pltpu.CompilerParams(dimension_semantics=("arbitrary",)),
    )(x_flat, label_emb, w_head)

    final_logit = head[:, :1]
    class_logits = head[:, 1:]
    return final_logit, class_logits


forward = jax.jit(_forward_impl)


if __name__ == "__main__":
    key = jax.random.PRNGKey(0)
    k_param, k_x, k_lbl = jax.random.split(key, 3)

    input_channels, num_classes, d = 1, 7, 4   # small d; fc size = 16*d*7*7
    params = init_params(k_param, input_channels, num_classes, d)

    # Spatial 224 is forced by the module's fc = Linear(16*d*7*7, ...):
    # 224 -> 112 -> 56 -> 28 -> 14 -> 7 after five stride-2 convs.
    N, H, W = 2, 224, 224
    x = jax.random.normal(k_x, (N, input_channels, H, W), jnp.float32)
    labels = jax.random.randint(k_lbl, (N,), 0, num_classes)

    final_logit, class_logits = forward(params, x, labels)
    jax.block_until_ready((final_logit, class_logits))

    assert final_logit.shape == (N, 1)
    assert class_logits.shape == (N, num_classes)
    print("KERNEL_OK")
</pallas_src>

<mosaic_0001>
module attributes {stable_mosaic.version = 11 : i64} {
  func.func @_conv_mm_kernel(%arg0: i32, %arg1: memref<400x800xbf16, #tpu.memory_space<vmem>>, %arg2: memref<800x128xbf16, #tpu.memory_space<vmem>>, %arg3: memref<1x128xf32, #tpu.memory_space<vmem>>, %arg4: memref<400x128xf32, #tpu.memory_space<vmem>>) attributes {dimension_semantics = [#tpu.dimension_semantics<parallel>], iteration_bounds = array<i64: 2>, scalar_prefetch = 0 : i64, scratch_operands = 0 : i64, tpu.core_type = #tpu.core_type<tc>, window_params = [{transform_indices = @transform_0, window_bounds = array<i64: 400, 800>}, {pipeline_mode = #tpu.pipeline_mode<synchronous>, transform_indices = @transform_1, window_bounds = array<i64: 800, 128>}, {pipeline_mode = #tpu.pipeline_mode<synchronous>, transform_indices = @transform_2, window_bounds = array<i64: 1, 128>}, {transform_indices = @transform_3, window_bounds = array<i64: 400, 128>}]} {
    %c0 = arith.constant 0 : index
    %c0_0 = arith.constant 0 : index
    %0 = vector.load %arg1[%c0, %c0_0] : memref<400x800xbf16, #tpu.memory_space<vmem>>, vector<400x800xbf16>
    %c0_1 = arith.constant 0 : index
    %c0_2 = arith.constant 0 : index
    %1 = vector.load %arg2[%c0_1, %c0_2] : memref<800x128xbf16, #tpu.memory_space<vmem>>, vector<800x128xbf16>
    %cst = arith.constant dense<0.000000e+00> : vector<400x128xf32>
    %2 = tpu.matmul %0, %1, %cst {dimension_numbers = #tpu.dot_dimension_numbers<[1], [0], [0], [1], [0, 0, 1, 1], [], []>} : vector<400x800xbf16>, vector<800x128xbf16>, vector<400x128xf32> -> vector<400x128xf32>
    %c0_3 = arith.constant 0 : index
    %c0_4 = arith.constant 0 : index
    %3 = vector.load %arg3[%c0_3, %c0_4] : memref<1x128xf32, #tpu.memory_space<vmem>>, vector<1x128xf32>
    %4 = vector.broadcast %3 : vector<1x128xf32> to vector<400x128xf32>
    %5 = arith.addf %2, %4 : vector<400x128xf32>
    %cst_5 = arith.constant 0.000000e+00 : f32
    %6 = vector.broadcast %cst_5 : f32 to vector<400x128xf32>
    %7 = arith.cmpf oge, %5, %6 : vector<400x128xf32>
    %cst_6 = arith.constant 2.000000e-01 : f32
    %8 = vector.broadcast %cst_6 : f32 to vector<400x128xf32>
    %9 = arith.mulf %8, %5 : vector<400x128xf32>
    %10 = arith.select %7, %5, %9 : vector<400x128xi1>, vector<400x128xf32>
    %c0_7 = arith.constant 0 : index
    %c0_8 = arith.constant 0 : index
    %11 = vector.load %arg4[%c0_7, %c0_8] : memref<400x128xf32, #tpu.memory_space<vmem>>, vector<400x128xf32>
    tpu.vector_store %arg4[%c0_7, %c0_8], %10 {strides = array<i32>} : memref<400x128xf32, #tpu.memory_space<vmem>>, vector<400x128xf32>,
    return
  }
  func.func @transform_0(%arg0: i32) -> (i32, i32) {
    %c0_i32 = arith.constant 0 : i32
    %c0_i32_0 = arith.constant 0 : i32
    return %arg0, %c0_i32 : i32, i32
  }
  func.func @transform_1(%arg0: i32) -> (i32, i32) {
    %c0_i32 = arith.constant 0 : i32
    %c0_i32_0 = arith.constant 0 : i32
    %c0_i32_1 = arith.constant 0 : i32
    return %c0_i32, %c0_i32_0 : i32, i32
  }
  func.func @transform_2(%arg0: i32) -> (i32, i32) {
    %c0_i32 = arith.constant 0 : i32
    %c0_i32_0 = arith.constant 0 : i32
    %c0_i32_1 = arith.constant 0 : i32
    return %c0_i32, %c0_i32_0 : i32, i32
  }
  func.func @transform_3(%arg0: i32) -> (i32, i32) {
    %c0_i32 = arith.constant 0 : i32
    %c0_i32_0 = arith.constant 0 : i32
    return %arg0, %c0_i32 : i32, i32
  }
}

module attributes {stable_mosaic.version = 11 : i64} {
  func.func @_conv_mm_kernel(%arg0: i32, %arg1: memref<208x1600xbf16, #tpu.memory_space<vmem>>, %arg2: memref<1600x128xbf16, #tpu.memory_space<vmem>>, %arg3: memref<1x128xf32, #tpu.memory_space<vmem>>, %arg4: memref<208x128xf32, #tpu.memory_space<vmem>>) attributes {dimension_semantics = [#tpu.dimension_semantics<parallel>], iteration_bounds = array<i64: 2>, scalar_prefetch = 0 : i64, scratch_operands = 0 : i64, tpu.core_type = #tpu.core_type<tc>, window_params = [{transform_indices = @transform_0, window_bounds = array<i64: 208, 1600>}, {pipeline_mode = #tpu.pipeline_mode<synchronous>, transform_indices = @transform_1, window_bounds = array<i64: 1600, 128>}, {pipeline_mode = #tpu.pipeline_mode<synchronous>, transform_indices = @transform_2, window_bounds = array<i64: 1, 128>}, {transform_indices = @transform_3, window_bounds = array<i64: 208, 128>}]} {
    %c0 = arith.constant 0 : index
    %c0_0 = arith.constant 0 : index
    %0 = vector.load %arg1[%c0, %c0_0] : memref<208x1600xbf16, #tpu.memory_space<vmem>>, vector<208x1600xbf16>
    %c0_1 = arith.constant 0 : index
    %c0_2 = arith.constant 0 : index
    %1 = vector.load %arg2[%c0_1, %c0_2] : memref<1600x128xbf16, #tpu.memory_space<vmem>>, vector<1600x128xbf16>
    %cst = arith.constant dense<0.000000e+00> : vector<208x128xf32>
    %2 = tpu.matmul %0, %1, %cst {dimension_numbers = #tpu.dot_dimension_numbers<[1], [0], [0], [1], [0, 0, 1, 1], [], []>} : vector<208x1600xbf16>, vector<1600x128xbf16>, vector<208x128xf32> -> vector<208x128xf32>
    %c0_3 = arith.constant 0 : index
    %c0_4 = arith.constant 0 : index
    %3 = vector.load %arg3[%c0_3, %c0_4] : memref<1x128xf32, #tpu.memory_space<vmem>>, vector<1x128xf32>
    %4 = vector.broadcast %3 : vector<1x128xf32> to vector<208x128xf32>
    %5 = arith.addf %2, %4 : vector<208x128xf32>
    %cst_5 = arith.constant 0.000000e+00 : f32
    %6 = vector.broadcast %cst_5 : f32 to vector<208x128xf32>
    %7 = arith.cmpf oge, %5, %6 : vector<208x128xf32>
    %cst_6 = arith.constant 2.000000e-01 : f32
    %8 = vector.broadcast %cst_6 : f32 to vector<208x128xf32>
    %9 = arith.mulf %8, %5 : vector<208x128xf32>
    %10 = arith.select %7, %5, %9 : vector<208x128xi1>, vector<208x128xf32>
    %c0_7 = arith.constant 0 : index
    %c0_8 = arith.constant 0 : index
    %11 = vector.load %arg4[%c0_7, %c0_8] : memref<208x128xf32, #tpu.memory_space<vmem>>, vector<208x128xf32>
    tpu.vector_store %arg4[%c0_7, %c0_8], %10 {strides = array<i32>} : memref<208x128xf32, #tpu.memory_space<vmem>>, vector<208x128xf32>,
    return
  }
  func.func @transform_0(%arg0: i32) -> (i32, i32) {
    %c0_i32 = arith.constant 0 : i32
    %c0_i32_0 = arith.constant 0 : i32
    return %arg0, %c0_i32 : i32, i32
  }
  func.func @transform_1(%arg0: i32) -> (i32, i32) {
    %c0_i32 = arith.constant 0 : i32
    %c0_i32_0 = arith.constant 0 : i32
    %c0_i32_1 = arith.constant 0 : i32
    return %c0_i32, %c0_i32_0 : i32, i32
  }
  func.func @transform_2(%arg0: i32) -> (i32, i32) {
    %c0_i32 = arith.constant 0 : i32
    %c0_i32_0 = arith.constant 0 : i32
    %c0_i32_1 = arith.constant 0 : i32
    return %c0_i32, %c0_i32_0 : i32, i32
  }
  func.func @transform_3(%arg0: i32) -> (i32, i32) {
    %c0_i32 = arith.constant 0 : i32
    %c0_i32_0 = arith.constant 0 : i32
    return %arg0, %c0_i32 : i32, i32
  }
}

module attributes {stable_mosaic.version = 11 : i64} {
  func.func @_conv_mm_kernel(%arg0: i32, %arg1: memref<112x1600xbf16, #tpu.memory_space<vmem>>, %arg2: memref<1600x128xbf16, #tpu.memory_space<vmem>>, %arg3: memref<1x128xf32, #tpu.memory_space<vmem>>, %arg4: memref<112x128xf32, #tpu.memory_space<vmem>>) attributes {dimension_semantics = [#tpu.dimension_semantics<parallel>], iteration_bounds = array<i64: 2>, scalar_prefetch = 0 : i64, scratch_operands = 0 : i64, tpu.core_type = #tpu.core_type<tc>, window_params = [{transform_indices = @transform_0, window_bounds = array<i64: 112, 1600>}, {pipeline_mode = #tpu.pipeline_mode<synchronous>, transform_indices = @transform_1, window_bounds = array<i64: 1600, 128>}, {pipeline_mode = #tpu.pipeline_mode<synchronous>, transform_indices = @transform_2, window_bounds = array<i64: 1, 128>}, {transform_indices = @transform_3, window_bounds = array<i64: 112, 128>}]} {
    %c0 = arith.constant 0 : index
    %c0_0 = arith.constant 0 : index
    %0 = vector.load %arg1[%c0, %c0_0] : memref<112x1600xbf16, #tpu.memory_space<vmem>>, vector<112x1600xbf16>
    %c0_1 = arith.constant 0 : index
    %c0_2 = arith.constant 0 : index
    %1 = vector.load %arg2[%c0_1, %c0_2] : memref<1600x128xbf16, #tpu.memory_space<vmem>>, vector<1600x128xbf16>
    %cst = arith.constant dense<0.000000e+00> : vector<112x128xf32>
    %2 = tpu.matmul %0, %1, %cst {dimension_numbers = #tpu.dot_dimension_numbers<[1], [0], [0], [1], [0, 0, 1, 1], [], []>} : vector<112x1600xbf16>, vector<1600x128xbf16>, vector<112x128xf32> -> vector<112x128xf32>
    %c0_3 = arith.constant 0 : index
    %c0_4 = arith.constant 0 : index
    %3 = vector.load %arg3[%c0_3, %c0_4] : memref<1x128xf32, #tpu.memory_space<vmem>>, vector<1x128xf32>
    %4 = vector.broadcast %3 : vector<1x128xf32> to vector<112x128xf32>
    %5 = arith.addf %2, %4 : vector<112x128xf32>
    %cst_5 = arith.constant 0.000000e+00 : f32
    %6 = vector.broadcast %cst_5 : f32 to vector<112x128xf32>
    %7 = arith.cmpf oge, %5, %6 : vector<112x128xf32>
    %cst_6 = arith.constant 2.000000e-01 : f32
    %8 = vector.broadcast %cst_6 : f32 to vector<112x128xf32>
    %9 = arith.mulf %8, %5 : vector<112x128xf32>
    %10 = arith.select %7, %5, %9 : vector<112x128xi1>, vector<112x128xf32>
    %c0_7 = arith.constant 0 : index
    %c0_8 = arith.constant 0 : index
    %11 = vector.load %arg4[%c0_7, %c0_8] : memref<112x128xf32, #tpu.memory_space<vmem>>, vector<112x128xf32>
    tpu.vector_store %arg4[%c0_7, %c0_8], %10 {strides = array<i32>} : memref<112x128xf32, #tpu.memory_space<vmem>>, vector<112x128xf32>,
    return
  }
  func.func @transform_0(%arg0: i32) -> (i32, i32) {
    %c0_i32 = arith.constant 0 : i32
    %c0_i32_0 = arith.constant 0 : i32
    return %arg0, %c0_i32 : i32, i32
  }
  func.func @transform_1(%arg0: i32) -> (i32, i32) {
    %c0_i32 = arith.constant 0 : i32
    %c0_i32_0 = arith.constant 0 : i32
    %c0_i32_1 = arith.constant 0 : i32
    return %c0_i32, %c0_i32_0 : i32, i32
  }
  func.func @transform_2(%arg0: i32) -> (i32, i32) {
    %c0_i32 = arith.constant 0 : i32
    %c0_i32_0 = arith.constant 0 : i32
    %c0_i32_1 = arith.constant 0 : i32
    return %c0_i32, %c0_i32_0 : i32, i32
  }
  func.func @transform_3(%arg0: i32) -> (i32, i32) {
    %c0_i32 = arith.constant 0 : i32
    %c0_i32_0 = arith.constant 0 : i32
    return %arg0, %c0_i32 : i32, i32
  }
}

module attributes {stable_mosaic.version = 11 : i64} {
  func.func @_conv_mm_kernel(%arg0: i32, %arg1: memref<64x1600xbf16, #tpu.memory_space<vmem>>, %arg2: memref<1600x128xbf16, #tpu.memory_space<vmem>>, %arg3: memref<1x128xf32, #tpu.memory_space<vmem>>, %arg4: memref<64x128xf32, #tpu.memory_space<vmem>>) attributes {dimension_semantics = [#tpu.dimension_semantics<parallel>], iteration_bounds = array<i64: 2>, scalar_prefetch = 0 : i64, scratch_operands = 0 : i64, tpu.core_type = #tpu.core_type<tc>, window_params = [{transform_indices = @transform_0, window_bounds = array<i64: 64, 1600>}, {pipeline_mode = #tpu.pipeline_mode<synchronous>, transform_indices = @transform_1, window_bounds = array<i64: 1600, 128>}, {pipeline_mode = #tpu.pipeline_mode<synchronous>, transform_indices = @transform_2, window_bounds = array<i64: 1, 128>}, {transform_indices = @transform_3, window_bounds = array<i64: 64, 128>}]} {
    %c0 = arith.constant 0 : index
    %c0_0 = arith.constant 0 : index
    %0 = vector.load %arg1[%c0, %c0_0] : memref<64x1600xbf16, #tpu.memory_space<vmem>>, vector<64x1600xbf16>
    %c0_1 = arith.constant 0 : index
    %c0_2 = arith.constant 0 : index
    %1 = vector.load %arg2[%c0_1, %c0_2] : memref<1600x128xbf16, #tpu.memory_space<vmem>>, vector<1600x128xbf16>
    %cst = arith.constant dense<0.000000e+00> : vector<64x128xf32>
    %2 = tpu.matmul %0, %1, %cst {dimension_numbers = #tpu.dot_dimension_numbers<[1], [0], [0], [1], [0, 0, 1, 1], [], []>} : vector<64x1600xbf16>, vector<1600x128xbf16>, vector<64x128xf32> -> vector<64x128xf32>
    %c0_3 = arith.constant 0 : index
    %c0_4 = arith.constant 0 : index
    %3 = vector.load %arg3[%c0_3, %c0_4] : memref<1x128xf32, #tpu.memory_space<vmem>>, vector<1x128xf32>
    %4 = vector.broadcast %3 : vector<1x128xf32> to vector<64x128xf32>
    %5 = arith.addf %2, %4 : vector<64x128xf32>
    %cst_5 = arith.constant 0.000000e+00 : f32
    %6 = vector.broadcast %cst_5 : f32 to vector<64x128xf32>
    %7 = arith.cmpf oge, %5, %6 : vector<64x128xf32>
    %cst_6 = arith.constant 2.000000e-01 : f32
    %8 = vector.broadcast %cst_6 : f32 to vector<64x128xf32>
    %9 = arith.mulf %8, %5 : vector<64x128xf32>
    %10 = arith.select %7, %5, %9 : vector<64x128xi1>, vector<64x128xf32>
    %c0_7 = arith.constant 0 : index
    %c0_8 = arith.constant 0 : index
    %11 = vector.load %arg4[%c0_7, %c0_8] : memref<64x128xf32, #tpu.memory_space<vmem>>, vector<64x128xf32>
    tpu.vector_store %arg4[%c0_7, %c0_8], %10 {strides = array<i32>} : memref<64x128xf32, #tpu.memory_space<vmem>>, vector<64x128xf32>,
    return
  }
  func.func @transform_0(%arg0: i32) -> (i32, i32) {
    %c0_i32 = arith.constant 0 : i32
    %c0_i32_0 = arith.constant 0 : i32
    return %arg0, %c0_i32 : i32, i32
  }
  func.func @transform_1(%arg0: i32) -> (i32, i32) {
    %c0_i32 = arith.constant 0 : i32
    %c0_i32_0 = arith.constant 0 : i32
    %c0_i32_1 = arith.constant 0 : i32
    return %c0_i32, %c0_i32_0 : i32, i32
  }
  func.func @transform_2(%arg0: i32) -> (i32, i32) {
    %c0_i32 = arith.constant 0 : i32
    %c0_i32_0 = arith.constant 0 : i32
    %c0_i32_1 = arith.constant 0 : i32
    return %c0_i32, %c0_i32_0 : i32, i32
  }
  func.func @transform_3(%arg0: i32) -> (i32, i32) {
    %c0_i32 = arith.constant 0 : i32
    %c0_i32_0 = arith.constant 0 : i32
    return %arg0, %c0_i32 : i32, i32
  }
}

module attributes {stable_mosaic.version = 11 : i64} {
  func.func @_conv_mm_kernel(%arg0: i32, %arg1: memref<32x1600xbf16, #tpu.memory_space<vmem>>, %arg2: memref<1600x128xbf16, #tpu.memory_space<vmem>>, %arg3: memref<1x128xf32, #tpu.memory_space<vmem>>, %arg4: memref<32x128xf32, #tpu.memory_space<vmem>>) attributes {dimension_semantics = [#tpu.dimension_semantics<parallel>], iteration_bounds = array<i64: 2>, scalar_prefetch = 0 : i64, scratch_operands = 0 : i64, tpu.core_type = #tpu.core_type<tc>, window_params = [{transform_indices = @transform_0, window_bounds = array<i64: 32, 1600>}, {pipeline_mode = #tpu.pipeline_mode<synchronous>, transform_indices = @transform_1, window_bounds = array<i64: 1600, 128>}, {pipeline_mode = #tpu.pipeline_mode<synchronous>, transform_indices = @transform_2, window_bounds = array<i64: 1, 128>}, {transform_indices = @transform_3, window_bounds = array<i64: 32, 128>}]} {
    %c0 = arith.constant 0 : index
    %c0_0 = arith.constant 0 : index
    %0 = vector.load %arg1[%c0, %c0_0] : memref<32x1600xbf16, #tpu.memory_space<vmem>>, vector<32x1600xbf16>
    %c0_1 = arith.constant 0 : index
    %c0_2 = arith.constant 0 : index
    %1 = vector.load %arg2[%c0_1, %c0_2] : memref<1600x128xbf16, #tpu.memory_space<vmem>>, vector<1600x128xbf16>
    %cst = arith.constant dense<0.000000e+00> : vector<32x128xf32>
    %2 = tpu.matmul %0, %1, %cst {dimension_numbers = #tpu.dot_dimension_numbers<[1], [0], [0], [1], [0, 0, 1, 1], [], []>} : vector<32x1600xbf16>, vector<1600x128xbf16>, vector<32x128xf32> -> vector<32x128xf32>
    %c0_3 = arith.constant 0 : index
    %c0_4 = arith.constant 0 : index
    %3 = vector.load %arg3[%c0_3, %c0_4] : memref<1x128xf32, #tpu.memory_space<vmem>>, vector<1x128xf32>
    %4 = vector.broadcast %3 : vector<1x128xf32> to vector<32x128xf32>
    %5 = arith.addf %2, %4 : vector<32x128xf32>
    %cst_5 = arith.constant 0.000000e+00 : f32
    %6 = vector.broadcast %cst_5 : f32 to vector<32x128xf32>
    %7 = arith.cmpf oge, %5, %6 : vector<32x128xf32>
    %cst_6 = arith.constant 2.000000e-01 : f32
    %8 = vector.broadcast %cst_6 : f32 to vector<32x128xf32>
    %9 = arith.mulf %8, %5 : vector<32x128xf32>
    %10 = arith.select %7, %5, %9 : vector<32x128xi1>, vector<32x128xf32>
    %c0_7 = arith.constant 0 : index
    %c0_8 = arith.constant 0 : index
    %11 = vector.load %arg4[%c0_7, %c0_8] : memref<32x128xf32, #tpu.memory_space<vmem>>, vector<32x128xf32>
    tpu.vector_store %arg4[%c0_7, %c0_8], %10 {strides = array<i32>} : memref<32x128xf32, #tpu.memory_space<vmem>>, vector<32x128xf32>,
    return
  }
  func.func @transform_0(%arg0: i32) -> (i32, i32) {
    %c0_i32 = arith.constant 0 : i32
    %c0_i32_0 = arith.constant 0 : i32
    return %arg0, %c0_i32 : i32, i32
  }
  func.func @transform_1(%arg0: i32) -> (i32, i32) {
    %c0_i32 = arith.constant 0 : i32
    %c0_i32_0 = arith.constant 0 : i32
    %c0_i32_1 = arith.constant 0 : i32
    return %c0_i32, %c0_i32_0 : i32, i32
  }
  func.func @transform_2(%arg0: i32) -> (i32, i32) {
    %c0_i32 = arith.constant 0 : i32
    %c0_i32_0 = arith.constant 0 : i32
    %c0_i32_1 = arith.constant 0 : i32
    return %c0_i32, %c0_i32_0 : i32, i32
  }
  func.func @transform_3(%arg0: i32) -> (i32, i32) {
    %c0_i32 = arith.constant 0 : i32
    %c0_i32_0 = arith.constant 0 : i32
    return %arg0, %c0_i32 : i32, i32
  }
}

module attributes {stable_mosaic.version = 11 : i64} {
  func.func @_head_kernel(%arg0: i32, %arg1: memref<2x3136xf32, #tpu.memory_space<vmem>>, %arg2: memref<2x3136xf32, #tpu.memory_space<vmem>>, %arg3: memref<3136x8xbf16, #tpu.memory_space<vmem>>, %arg4: memref<2x8xf32, #tpu.memory_space<vmem>>) attributes {dimension_semantics = [#tpu.dimension_semantics<arbitrary>], iteration_bounds = array<i64: 1>, scalar_prefetch = 0 : i64, scratch_operands = 0 : i64, tpu.core_type = #tpu.core_type<tc>, window_params = [{pipeline_mode = #tpu.pipeline_mode<synchronous>, transform_indices = @transform_0, window_bounds = array<i64: 2, 3136>}, {pipeline_mode = #tpu.pipeline_mode<synchronous>, transform_indices = @transform_1, window_bounds = array<i64: 2, 3136>}, {pipeline_mode = #tpu.pipeline_mode<synchronous>, transform_indices = @transform_2, window_bounds = array<i64: 3136, 8>}, {pipeline_mode = #tpu.pipeline_mode<synchronous>, transform_indices = @transform_3, window_bounds = array<i64: 2, 8>}]} {
    %c0 = arith.constant 0 : index
    %c0_0 = arith.constant 0 : index
    %0 = vector.load %arg1[%c0, %c0_0] : memref<2x3136xf32, #tpu.memory_space<vmem>>, vector<2x3136xf32>
    %1 = arith.truncf %0 : vector<2x3136xf32> to vector<2x3136xbf16>
    %c0_1 = arith.constant 0 : index
    %c0_2 = arith.constant 0 : index
    %2 = vector.load %arg3[%c0_1, %c0_2] : memref<3136x8xbf16, #tpu.memory_space<vmem>>, vector<3136x8xbf16>
    %cst = arith.constant dense<0.000000e+00> : vector<2x8xf32>
    %3 = tpu.matmul %1, %2, %cst {dimension_numbers = #tpu.dot_dimension_numbers<[1], [0], [0], [1], [0, 0, 1, 1], [], []>} : vector<2x3136xbf16>, vector<3136x8xbf16>, vector<2x8xf32> -> vector<2x8xf32>
    %c0_3 = arith.constant 0 : index
    %c0_4 = arith.constant 0 : index
    %4 = vector.load %arg2[%c0_3, %c0_4] : memref<2x3136xf32, #tpu.memory_space<vmem>>, vector<2x3136xf32>
    %5 = arith.mulf %0, %4 : vector<2x3136xf32>
    %cst_5 = arith.constant dense<0.000000e+00> : vector<2xf32>
    %6 = vector.multi_reduction <add>, %5, %cst_5 [1] : vector<2x3136xf32> to vector<2xf32>
    %7 = vector.shape_cast %6 : vector<2xf32> to vector<2x1xf32>
    %8 = tpu.iota {dimensions = array<i32: 1>} : vector<2x8xi32>
    %c0_i32 = arith.constant 0 : i32
    %9 = vector.broadcast %c0_i32 : i32 to vector<2x8xi32>
    %10 = arith.cmpi eq, %8, %9 : vector<2x8xi32>
    %cst_6 = arith.constant 0.000000e+00 : f32
    %11 = vector.shape_cast %7 : vector<2x1xf32> to vector<2x1xf32>
    %12 = vector.broadcast %11 : vector<2x1xf32> to vector<2x8xf32>
    %13 = vector.broadcast %cst_6 : f32 to vector<2x8xf32>
    %14 = arith.select %10, %12, %13 : vector<2x8xi1>, vector<2x8xf32>
    %15 = arith.addf %3, %14 : vector<2x8xf32>
    %c0_7 = arith.constant 0 : index
    %c0_8 = arith.constant 0 : index
    %16 = vector.load %arg4[%c0_7, %c0_8] : memref<2x8xf32, #tpu.memory_space<vmem>>, vector<2x8xf32>
    tpu.vector_store %arg4[%c0_7, %c0_8], %15 {strides = array<i32>} : memref<2x8xf32, #tpu.memory_space<vmem>>, vector<2x8xf32>,
    return
  }
  func.func @transform_0(%arg0: i32) -> (i32, i32) {
    %c0_i32 = arith.constant 0 : i32
    %c0_i32_0 = arith.constant 0 : i32
    %c0_i32_1 = arith.constant 0 : i32
    return %c0_i32, %c0_i32_0 : i32, i32
  }
  func.func @transform_1(%arg0: i32) -> (i32, i32) {
    %c0_i32 = arith.constant 0 : i32
    %c0_i32_0 = arith.constant 0 : i32
    %c0_i32_1 = arith.constant 0 : i32
    return %c0_i32, %c0_i32_0 : i32, i32
  }
  func.func @transform_2(%arg0: i32) -> (i32, i32) {
    %c0_i32 = arith.constant 0 : i32
    %c0_i32_0 = arith.constant 0 : i32
    %c0_i32_1 = arith.constant 0 : i32
    return %c0_i32, %c0_i32_0 : i32, i32
  }
  func.func @transform_3(%arg0: i32) -> (i32, i32) {
    %c0_i32 = arith.constant 0 : i32
    %c0_i32_0 = arith.constant 0 : i32
    %c0_i32_1 = arith.constant 0 : i32
    return %c0_i32, %c0_i32_0 : i32, i32
  }
}

</mosaic_0001>

<bundles_post_ra>
// kernel: mul.4
= control target key start
LH: loop header
LB: loop body
LE: loop exit
PB: predicated region body
PF: predicated region fallthrough
CT: control target
= control target key end

     0   :  { %s43_s8 = smov 20   ;;  %s44_s13 = smov 10   ;;  %vm3_vm0 = vcmask 39936   ;;  %vm9_vm1 = vcmask 203936   ;;  %vm15_vm2 = vcmask 162936   ;;  %vm21_vm3 = vcmask 121936   ;;  %s75_s0 = inlined_call_operand.vmem [shape: f32[5,5,1,4], index: 0, kind: input, shape index: {}]   ;;  %s76_s1 = inlined_call_operand.vmem [shape: f32[25,4], index: 1, kind: output, shape index: {}]  }
   0x1   :  { %v35_v0 = vld [vmem:[%s75_s0 + $0x4] ss:$8 sm:$0xf]   ;;  %v37_v1 = vld [vmem:[%s75_s0 + $0x2] ss:$8 sm:$0xf]  }
   0x2   :  { %7 = vrot.lane.b32.xlu0 %v35_v0, %s43_s8  ;;  %v36_v2 = vld [vmem:[%s75_s0 + $0x3] ss:$8 sm:$0xf]   ;;  %19 = vrot.lane.b32.xlu1 %v37_v1, %s44_s13  ;;  %v38_v3 = vld [vmem:[%s75_s0 + $0x1] ss:$8 sm:$0xf]  }
   0x3   :  { %v2_v4 = vld [vmem:[%s75_s0] ss:$8 sm:$0xf]   ;;  %s45_s0 = smov 15   ;;  %s46_s18 = smov 5   ;;  %vm27_vm4 = vcmask 80936  }
   0x4   :  { %4 = vst.msk [vmem:[#allocation0] sm:$0xf] %vm3_vm0, %v2_v4  }
   0x6   :  { %13 = vrot.lane.b32.xlu0 %v36_v2, %s45_s0  ;;  %25 = vrot.lane.b32.xlu1 %v38_v3, %s46_s18 }
  0x74   :  { %v8_v5 = vpop.permute.xlu0 %7   ;;  %v20_v6 = vpop.permute.xlu1 %19  }
  0x75   :  { %10 = vst.msk [vmem:[#allocation0] sm:$0xf] %vm9_vm1, %v8_v5  }
  0x78   :  { %v14_v7 = vpop.permute.xlu0 %13   ;;  %v26_v8 = vpop.permute.xlu1 %25  }
  0x79   :  { %16 = vst.msk [vmem:[#allocation0] sm:$0xf] %vm15_vm2, %v14_v7  }
  0x7a   :  { %22 = vst.msk [vmem:[#allocation0] sm:$0xf] %vm21_vm3, %v20_v6  }
  0x7b   :  { %28 = vst.msk [vmem:[#allocation0] sm:$0xf] %vm27_vm4, %v26_v8  }
  0x82   :  { %v32_v9 = vld [vmem:[#allocation0] sm:$0xf] }
  0x83   :  { %34 = vst [vmem:[%s76_s1] sm:$0xf] %v32_v9 }

// kernel: tile.21
= control target key start
LH: loop header
LB: loop body
LE: loop exit
PB: predicated region body
PF: predicated region fallthrough
CT: control target
= control target key end

     0   :  { %s20_s0 = inlined_call_operand.<no memory space> [shape: f32[], index: 0, kind: input, shape index: {}]   ;;  %s21_s1 = inlined_call_operand.vmem [shape: f32[1,128], index: 1, kind: output, shape index: {}]  }
   0x1   :  { %v2_v0 = vstv %s20_s0 }
   0x2   :  { %3 = vst [vmem:[%s21_s1] sm:$0x1] %v2_v0 }

// kernel: _forward_impl.6
= control target key start
LH: loop header
LB: loop body
LE: loop exit
PB: predicated region body
PF: predicated region fallthrough
CT: control target
= control target key end

     0   :  { %s3958_s12 = smov 0   ;;  %s4540_s0 = inlined_call_operand.vmem [shape: bf16[800,800], index: 0, kind: input, shape index: {}]   ;;  %s4541_s1 = inlined_call_operand.vmem [shape: bf16[800,128], index: 1, kind: input, shape index: {}]   ;;  %s4542_s2 = inlined_call_operand.vmem [shape: f32[1,128], index: 2, kind: input, shape index: {}]   ;;  %s4543_s3 = inlined_call_operand.vmem [shape: f32[800,128], index: 3, kind: output, shape index: {}]  }
   0x1 LB: > { %s2924_s13 = sadd.s32 4294967295, %s3933_s12   ;;  %p2928_p0 = scmp.ge.s32.totalorder %s3933_s12, 1  ;;  %s3933_s12 = sphi %s3958_s12, %s13_s12  }
   0x2   : > { %p139_p1 = scmp.lt.s32.totalorder %s3933_s12, 3 }
   0x4   : > { %p140_p2 = pnand %p2928_p0, %p139_p1 }
   0x5   : > { %v3627_v0 = vld [vmem:[%s4541_s1] sm:$0xff] (!%p140_p2)   ;;  %v3935_v1 = vmov (!%p140_p2), 0   ;;  %v3629_v3 = vld [vmem:[%s4541_s1 + $0x8] sm:$0xff] (!%p140_p2)   ;;  %v3631_v5 = vld [vmem:[%s4541_s1 + $0x10] sm:$0xff] (!%p140_p2)   ;;  %s164_s5 = smul.u32 (!%p140_p2), 50, %s2924_s13  ;;  %v3936_v40 = vmov (!%p140_p2), 0.0  }
   0x6   : > { %143 = sbr.rel (%p140_p2) target bundleno = 684 (0x2ac), region = 32  ;;  %1736 = vmatprep.subr.bf16.mxu1 (!%p140_p2), %v3935_v1  ;;  %2202 = vmatprep.subr.bf16.mxu0 (!%p140_p2), %v3935_v1  ;;  %v3628_v2 = vld [vmem:[%s4541_s1 + $0x100] sm:$0xff] (!%p140_p2)   ;;  %v3630_v4 = vld [vmem:[%s4541_s1 + $0x108] sm:$0xff] (!%p140_p2)   ;;  %v3632_v6 = vld [vmem:[%s4541_s1 + $0x110] sm:$0xff] (!%p140_p2)   ;;  %vm3937_vm0 = vmmov (!%p140_p2), 0   ;;  %vm1660_vm1 = vcmask (!%p140_p2), 261120  }
   0x7   : > { %1737 = vmatpush1.bf16.msra.mxu1 (!%p140_p2), %v3627_v0  ;;  %2203 = vmatpush1.bf16.msra.mxu0 (!%p140_p2), %v3628_v2  ;;  %v3633_v7 = vld [vmem:[%s4541_s1 + $0x18] sm:$0xff] (!%p140_p2)   ;;  %v3635_v9 = vld [vmem:[%s4541_s1 + $0x20] sm:$0xff] (!%p140_p2)   ;;  %v3637_v11 = vld [vmem:[%s4541_s1 + $0x28] sm:$0xff] (!%p140_p2)   ;;  %p165_p3 = scmp.lt.s32.totalorder (!%p140_p2), %s164_s5, 99 }
   0x8   : > { %1738 = vmatprep.subr.bf16.mxu1 (!%p140_p2), %v3935_v1  ;;  %2204 = vmatprep.subr.bf16.mxu0 (!%p140_p2), %v3935_v1  ;;  %v3634_v8 = vld [vmem:[%s4541_s1 + $0x118] sm:$0xff] (!%p140_p2)   ;;  %v3636_v10 = vld [vmem:[%s4541_s1 + $0x120] sm:$0xff] (!%p140_p2)   ;;  %v3638_v12 = vld [vmem:[%s4541_s1 + $0x128] sm:$0xff] (!%p140_p2)  }
   0x9   : > { %v3639_v13 = vld [vmem:[%s4541_s1 + $0x30] sm:$0xff] (!%p140_p2)   ;;  %v3641_v15 = vld [vmem:[%s4541_s1 + $0x38] sm:$0xff] (!%p140_p2)   ;;  %v3643_v17 = vld [vmem:[%s4541_s1 + $0x40] sm:$0xff] (!%p140_p2)  }
   0xa   : > { %v3640_v14 = vld [vmem:[%s4541_s1 + $0x130] sm:$0xff] (!%p140_p2)   ;;  %v3642_v16 = vld [vmem:[%s4541_s1 + $0x138] sm:$0xff] (!%p140_p2)   ;;  %v3644_v18 = vld [vmem:[%s4541_s1 + $0x140] sm:$0xff] (!%p140_p2)  }
   0xb   : > { %1739 = vmatpush1.bf16.msra.mxu1 (!%p140_p2), %v3629_v3  ;;  %2205 = vmatpush1.bf16.msra.mxu0 (!%p140_p2), %v3630_v4  ;;  %v3645_v20 = vld [vmem:[%s4541_s1 + $0x48] sm:$0xff] (!%p140_p2)   ;;  %v3647_v23 = vld [vmem:[%s4541_s1 + $0x50] sm:$0xff] (!%p140_p2)   ;;  %v3649_v25 = vld [vmem:[%s4541_s1 + $0x58] sm:$0xff] (!%p140_p2)  }
   0xc   : > { %1740 = vmatprep.subr.bf16.mxu1 (!%p140_p2), %v3935_v1  ;;  %2206 = vmatprep.subr.bf16.mxu0 (!%p140_p2), %v3935_v1  ;;  %v3646_v22 = vld [vmem:[%s4541_s1 + $0x148] sm:$0xff] (!%p140_p2)   ;;  %v3648_v24 = vld [vmem:[%s4541_s1 + $0x150] sm:$0xff] (!%p140_p2)   ;;  %v3650_v26 = vld [vmem:[%s4541_s1 + $0x158] sm:$0xff] (!%p140_p2)  }
   0xd   : > { %s4545_s5 = smov (!%p165_p3, %s164_s5), 99  ;;  %v3651_v27 = vld [vmem:[%s4541_s1 + $0x60] sm:$0xff]   ;;  %v3653_v29 = vld [vmem:[%s4541_s1 + $0x68] sm:$0xff]   ;;  %v3655_v31 = vld [vmem:[%s4541_s1 + $0x70] sm:$0xff]  }
   0xe   : > { %s3615_s19 = smul.u32 28, %s4545_s5  ;;  %v3652_v28 = vld [vmem:[%s4541_s1 + $0x160] sm:$0xff]   ;;  %v3654_v30 = vld [vmem:[%s4541_s1 + $0x168] sm:$0xff]   ;;  %v3656_v32 = vld [vmem:[%s4541_s1 + $0x170] sm:$0xff]   ;;  %s2930_s22 = sshll.u32 %s4545_s5, 3 }
   0xf   : > { %1741 = vmatpush1.bf16.msra.mxu1 %v3631_v5  ;;  %2207 = vmatpush1.bf16.msra.mxu0 %v3632_v6  ;;  %v3657_v33 = vld [vmem:[%s4541_s1 + $0x78] sm:$0xff]   ;;  %v3665_v37 = vld [vmem:[%s4541_s1 + $0x80] sm:$0xff]   ;;  %v3673_v42 = vld [vmem:[%s4541_s1 + $0x88] sm:$0xff]   ;;  %s4437_s24 = scalar_lea.vmem %s4543_s3, %s2930_s22 }
  0x10   : > { %1742 = vmatprep.subr.bf16.mxu1 %v3935_v1  ;;  %2208 = vmatprep.subr.bf16.mxu0 %v3935_v1  ;;  %s4041_s26 = scalar_lea.vmem %s4540_s0, %s3615_s19  ;;  %v3658_v34 = vld [vmem:[%s4541_s1 + $0x178] sm:$0xff]   ;;  %v3666_v38 = vld [vmem:[%s4541_s1 + $0x180] sm:$0xff]   ;;  %v3686_v47 = vld [vmem:[%s4541_s1 + $0x90] sm:$0xff]  }
  0x11   : > { %v3661_v19 = vld [vmem:[%s4041_s26 + $0x4] ss:$28 sps:$4 sm:$0xff]   ;;  %v3664_v21 = vld [vmem:[%s4041_s26 + $0x14] ss:$28 sps:$4 sm:$0xff]   ;;  %v3667_v39 = vld [vmem:[%s4041_s26 + $0x3c] ss:$28 sps:$4 sm:$0xff]  }
  0x12   : > { %1768 = vmatprep.mubr.bf16.mxu1 %v3661_v19  ;;  %2234 = vmatprep.mubr.bf16.mxu0 %v3664_v21  ;;  %v3659_v35 = vld [vmem:[%s4041_s26] ss:$28 sps:$4 sm:$0xff]   ;;  %v3662_v36 = vld [vmem:[%s4041_s26 + $0x10] ss:$28 sps:$4 sm:$0xff]   ;;  %v3671_v43 = vld [vmem:[%s4041_s26 + $0x38] ss:$28 sps:$4 sm:$0xff]  }
  0x13   : > { %1743 = vmatpush1.bf16.msra.mxu1 %v3633_v7  ;;  %2209 = vmatpush1.bf16.msra.mxu0 %v3634_v8  ;;  %v3669_v41 = vld [vmem:[%s4041_s26 + $0x4c] ss:$28 sps:$4 sm:$0xff]   ;;  %v3674_v45 = vld [vmem:[%s4041_s26 + $0x74] ss:$28 sps:$4 sm:$0xff]   ;;  %v3676_v46 = vld [vmem:[%s4041_s26 + $0x84] ss:$28 sps:$4 sm:$0xff]  }
  0x14   : > { %1744 = vmatprep.subr.bf16.mxu1 %v3935_v1  ;;  %2210 = vmatprep.subr.bf16.mxu0 %v3935_v1  ;;  %v3672_v44 = vld [vmem:[%s4041_s26 + $0x48] ss:$28 sps:$4 sm:$0xff]   ;;  %v3678_v48 = vld [vmem:[%s4041_s26 + $0x70] ss:$28 sps:$4 sm:$0xff]   ;;  %v3695_v49 = vld [vmem:[%s4541_s1 + $0x98] sm:$0xff]  }
  0x15   : > { %v3679_v50 = vld [vmem:[%s4041_s26 + $0x80] ss:$28 sps:$4 sm:$0xff]   ;;  %v3680_v51 = vld [vmem:[%s4041_s26 + $0xac] ss:$28 sps:$4 sm:$0xff]   ;;  %v3685_v57 = vld [vmem:[%s4041_s26 + $0xb8] ss:$28 sps:$4 sm:$0xff]  }
  0x16   : > { %v3682_v52 = vld [vmem:[%s4041_s26 + $0xbc] ss:$28 sps:$4 sm:$0xff]   ;;  %v3706_v53 = vld [vmem:[%s4541_s1 + $0xa0] sm:$0xff]   ;;  %v3751_v54 = vld [vmem:[%s4541_s1 + $0x188] sm:$0xff]  }
  0x17   : > { %1745 = vmatpush1.bf16.msra.mxu1 %v3635_v9  ;;  %2211 = vmatpush1.bf16.msra.mxu0 %v3636_v10  ;;  %v3718_v55 = vld [vmem:[%s4541_s1 + $0xa8] sm:$0xff]   ;;  %v3687_v58 = vld [vmem:[%s4041_s26 + $0xe4] ss:$28 sps:$4 sm:$0xff]   ;;  %v3689_v59 = vld [vmem:[%s4041_s26 + $0xf4] ss:$28 sps:$4 sm:$0xff]  }
  0x18   : > { %1746 = vmatprep.subr.bf16.mxu1 %v3935_v1  ;;  %2212 = vmatprep.subr.bf16.mxu0 %v3935_v1  ;;  %v3684_v56 = vld [vmem:[%s4041_s26 + $0xa8] ss:$28 sps:$4 sm:$0xff]   ;;  %v3726_v60 = vld [vmem:[%s4541_s1 + $0xb0] sm:$0xff]   ;;  %v3739_v61 = vld [vmem:[%s4541_s1 + $0xb8] sm:$0xff]  }
  0x19   : > { %v3691_v62 = vld [vmem:[%s4041_s26 + $0xe0] ss:$28 sps:$4 sm:$0xff]   ;;  %v3692_v63 = vld [vmem:[%s4041_s26 + $0xf0] ss:$28 sps:$4 sm:$0xff]   ;;  %v3698_v5 = vld [vmem:[%s4041_s26 + $0x118] ss:$28 sps:$4 sm:$0xff]  }
  0x1a   : > { %v3693_v0 = vld [vmem:[%s4041_s26 + $0x11c] ss:$28 sps:$4 sm:$0xff]   ;;  %v3696_v2 = vld [vmem:[%s4041_s26 + $0x12c] ss:$28 sps:$4 sm:$0xff]   ;;  %v3746_v3 = vld [vmem:[%s4541_s1 + $0xc0] sm:$0xff]  }
  0x1b   : > { %1747 = vmatpush1.bf16.msra.mxu1 %v3637_v11  ;;  %2213 = vmatpush1.bf16.msra.mxu0 %v3638_v12  ;;  %v3760_v4 = vld [vmem:[%s4541_s1 + $0xc8] sm:$0xff]   ;;  %v3700_v7 = vld [vmem:[%s4041_s26 + $0x154] ss:$28 sps:$4 sm:$0xff]   ;;  %v3702_v8 = vld [vmem:[%s4041_s26 + $0x164] ss:$28 sps:$4 sm:$0xff]  }
  0x1c   : > { %1748 = vmatprep.subr.bf16.mxu1 %v3935_v1  ;;  %2214 = vmatprep.subr.bf16.mxu0 %v3935_v1  ;;  %v3699_v6 = vld [vmem:[%s4041_s26 + $0x128] ss:$28 sps:$4 sm:$0xff]   ;;  %v3767_v9 = vld [vmem:[%s4541_s1 + $0xd0] sm:$0xff]   ;;  %v3780_v11 = vld [vmem:[%s4541_s1 + $0xd8] sm:$0xff]  }
  0x1d   : > { %v3704_v10 = vld [vmem:[%s4041_s26 + $0x150] ss:$28 sps:$4 sm:$0xff]   ;;  %v3705_v12 = vld [vmem:[%s4041_s26 + $0x160] ss:$28 sps:$4 sm:$0xff]  }
  0x1e   : > { %v3713_v19 = vld [vmem:[%s4041_s26 + $0x1c4] ss:$28 sps:$4 sm:$0xff]   ;;  %v3812_v21 = vld [vmem:[%s4541_s1 + $0xf0] sm:$0xff]  }
  0x1f   : > { %1749 = vmatpush1.bf16.msra.mxu1 %v3639_v13  ;;  %2215 = vmatpush1.bf16.msra.mxu0 %v3640_v14  ;;  %v3707_v13 = vld [vmem:[%s4041_s26 + $0x18c] ss:$28 sps:$4 sm:$0xff]   ;;  %v3709_v14 = vld [vmem:[%s4041_s26 + $0x19c] ss:$28 sps:$4 sm:$0xff]  }
  0x20   : > { %1750 = vmatprep.subr.bf16.mxu1 %v3935_v1  ;;  %2216 = vmatprep.subr.bf16.mxu0 %v3935_v1 }
  0x23   : > { %1751 = vmatpush1.bf16.msra.mxu1 %v3641_v15  ;;  %2217 = vmatpush1.bf16.msra.mxu0 %v3642_v16  ;;  %v3789_v15 = vld [vmem:[%s4541_s1 + $0xe0] sm:$0xff]  }
  0x24   : > { %1752 = vmatprep.subr.bf16.mxu1 %v3935_v1  ;;  %2218 = vmatprep.subr.bf16.mxu0 %v3935_v1  ;;  %v3711_v16 = vld [vmem:[%s4041_s26 + $0x188] ss:$28 sps:$4 sm:$0xff]  }
  0x27   : > { %1753 = vmatpush1.bf16.msra.mxu1 %v3643_v17  ;;  %2219 = vmatpush1.bf16.msra.mxu0 %v3644_v18  ;;  %v3800_v17 = vld [vmem:[%s4541_s1 + $0xe8] sm:$0xff]   ;;  %v3712_v18 = vld [vmem:[%s4041_s26 + $0x198] ss:$28 sps:$4 sm:$0xff]  }
  0x28   : > { %1754 = vmatprep.subr.bf16.mxu1 %v3935_v1  ;;  %2220 = vmatprep.subr.bf16.mxu0 %v3935_v1 }
  0x2b   : > { %1755 = vmatpush1.bf16.msra.mxu1 %v3645_v20  ;;  %2221 = vmatpush1.bf16.msra.mxu0 %v3646_v22  ;;  %v3715_v20 = vld [vmem:[%s4041_s26 + $0x1d4] ss:$28 sps:$4 sm:$0xff]   ;;  %v3717_v22 = vld [vmem:[%s4041_s26 + $0x1c0] ss:$28 sps:$4 sm:$0xff]  }
  0x2c   : > { %1756 = vmatprep.subr.bf16.mxu1 %v3935_v1  ;;  %2222 = vmatprep.subr.bf16.mxu0 %v3935_v1 }
  0x2f   : > { %1757 = vmatpush1.bf16.msra.mxu1 %v3647_v23  ;;  %2223 = vmatpush1.bf16.msra.mxu0 %v3648_v24  ;;  %v3820_v23 = vld [vmem:[%s4541_s1 + $0xf8] sm:$0xff]   ;;  %v3719_v24 = vld [vmem:[%s4041_s26 + $0x1d0] ss:$28 sps:$4 sm:$0xff]  }
  0x30   : > { %1758 = vmatprep.subr.bf16.mxu1 %v3935_v1  ;;  %2224 = vmatprep.subr.bf16.mxu0 %v3935_v1 }
  0x33   : > { %1759 = vmatpush1.bf16.msra.mxu1 %v3649_v25  ;;  %2225 = vmatpush1.bf16.msra.mxu0 %v3650_v26  ;;  %v3720_v25 = vld [vmem:[%s4041_s26 + $0x1fc] ss:$28 sps:$4 sm:$0xff]   ;;  %v3722_v26 = vld [vmem:[%s4041_s26 + $0x20c] ss:$28 sps:$4 sm:$0xff]  }
  0x34   : > { %1760 = vmatprep.subr.bf16.mxu1 %v3935_v1  ;;  %2226 = vmatprep.subr.bf16.mxu0 %v3935_v1 }
  0x37   : > { %1761 = vmatpush1.bf16.msra.mxu1 %v3651_v27  ;;  %2227 = vmatpush1.bf16.msra.mxu0 %v3652_v28  ;;  %v3724_v27 = vld [vmem:[%s4041_s26 + $0x1f8] ss:$28 sps:$4 sm:$0xff]   ;;  %v3725_v28 = vld [vmem:[%s4041_s26 + $0x208] ss:$28 sps:$4 sm:$0xff]  }
  0x38   : > { %1762 = vmatprep.subr.bf16.mxu1 %v3935_v1  ;;  %2228 = vmatprep.subr.bf16.mxu0 %v3935_v1 }
  0x3b   : > { %1763 = vmatpush1.bf16.msra.mxu1 %v3653_v29  ;;  %2229 = vmatpush1.bf16.msra.mxu0 %v3654_v30  ;;  %v3727_v29 = vld [vmem:[%s4041_s26 + $0x234] ss:$28 sps:$4 sm:$0xff]   ;;  %v3729_v30 = vld [vmem:[%s4041_s26 + $0x244] ss:$28 sps:$4 sm:$0xff]  }
  0x3c   : > { %1764 = vmatprep.subr.bf16.mxu1 %v3935_v1  ;;  %2230 = vmatprep.subr.bf16.mxu0 %v3935_v1 }
  0x3f   : > { %1765 = vmatpush1.bf16.msra.mxu1 %v3655_v31  ;;  %2231 = vmatpush1.bf16.msra.mxu0 %v3656_v32  ;;  %v3732_v31 = vld [vmem:[%s4041_s26 + $0x240] ss:$28 sps:$4 sm:$0xff]   ;;  %v3733_v32 = vld [vmem:[%s4041_s26 + $0x26c] ss:$28 sps:$4 sm:$0xff]  }
  0x40   : > { %1766 = vmatprep.subr.bf16.mxu1 %v3935_v1  ;;  %2232 = vmatprep.subr.bf16.mxu0 %v3935_v1 }
  0x43   : > { %1767 = vmatpush1.bf16.msra.mxu1 %v3657_v33  ;;  %2233 = vmatpush1.bf16.msra.mxu0 %v3658_v34  ;;  %v3735_v33 = vld [vmem:[%s4041_s26 + $0x27c] ss:$28 sps:$4 sm:$0xff]   ;;  %v3737_v34 = vld [vmem:[%s4041_s26 + $0x268] ss:$28 sps:$4 sm:$0xff]  }
  0x44   : > { %1969 = vmatprep.subr.bf16.mxu1 %v3935_v1  ;;  %3211 = vmatprep.subr.bf16.mxu0 %v3936_v40 }
  0x46   : > { %1769 = vmatmul.mubr.bf16.vlgmr.msra.gmra.mrb[0].mxu1 %v3659_v35  ;;  %2235 = vmatmul.mubr.bf16.vlgmr.msra.gmra.mrb[0].mxu0 %v3662_v36  ;;  %v3738_v35 = vld [vmem:[%s4041_s26 + $0x278] ss:$28 sps:$4 sm:$0xff]   ;;  %v3740_v36 = vld [vmem:[%s4041_s26 + $0x2a4] ss:$28 sps:$4 sm:$0xff]  }
  0x47   : > { %1970 = vmatpush1.bf16.msra.mxu1 %v3665_v37  ;;  %3212 = vmatpush3.bf16.msra.mxu0 %v3666_v38  ;;  %v3742_v37 = vld [vmem:[%s4041_s26 + $0x2b4] ss:$28 sps:$4 sm:$0xff]   ;;  %v3744_v38 = vld [vmem:[%s4041_s26 + $0x2a0] ss:$28 sps:$4 sm:$0xff]  }
  0x48   : > { %1776 = vmatprep.mubr.bf16.mxu1 %v3667_v39  ;;  %2242 = vmatprep.mubr.bf16.mxu0 %v3669_v41  ;;  %v3745_v39 = vld [vmem:[%s4041_s26 + $0x2b0] ss:$28 sps:$4 sm:$0xff]   ;;  %v3747_v41 = vld [vmem:[%s4041_s26 + $0x2dc] ss:$28 sps:$4 sm:$0xff]  }
  0x49   : > { %1971 = vmatprep.subr.bf16.mxu1 %v3935_v1  ;;  %3213 = vmatprep.subr.bf16.mxu0 %v3936_v40 }
  0x4b   : > { %1972 = vmatpush1.bf16.msra.mxu1 %v3673_v42  ;;  %3214 = vmatpush3.bf16.msra.mxu0 %v3751_v54  ;;  %v3749_v42 = vld [vmem:[%s4041_s26 + $0x2ec] ss:$28 sps:$4 sm:$0xff]   ;;  %v3770_v54 = vld [vmem:[%s4041_s26 + $0x394] ss:$28 sps:$4 sm:$0xff]  }
  0x4c   : > { %1973 = vmatprep.subr.bf16.mxu1 %v3935_v1 }
  0x4e   : > { %1777 = vmatmul.mubr.bf16.gmra.mrb[4].mxu1 %v3671_v43  ;;  %2243 = vmatmul.mubr.bf16.gmra.mrb[4].mxu0 %v3672_v44  ;;  %v3752_v43 = vld [vmem:[%s4041_s26 + $0x2d8] ss:$28 sps:$4 sm:$0xff]   ;;  %v3753_v44 = vld [vmem:[%s4041_s26 + $0x2e8] ss:$28 sps:$4 sm:$0xff]  }
  0x4f   : > { %1784 = vmatprep.mubr.bf16.mxu1 %v3674_v45  ;;  %2250 = vmatprep.mubr.bf16.mxu0 %v3676_v46  ;;  %v3754_v45 = vld [vmem:[%s4041_s26 + $0x314] ss:$28 sps:$4 sm:$0xff]   ;;  %v3756_v46 = vld [vmem:[%s4041_s26 + $0x324] ss:$28 sps:$4 sm:$0xff]  }
  0x50   : > { %1974 = vmatpush1.bf16.msra.mxu1 %v3686_v47  ;;  %v3758_v47 = vld [vmem:[%s4041_s26 + $0x310] ss:$28 sps:$4 sm:$0xff]  }
  0x51   : > { %1975 = vmatprep.subr.bf16.mxu1 %v3935_v1 }
  0x54   : > { %1976 = vmatpush1.bf16.msra.mxu1 %v3695_v49  ;;  %v3761_v49 = vld [vmem:[%s4041_s26 + $0x34c] ss:$28 sps:$4 sm:$0xff]  }
  0x55   : > { %1977 = vmatprep.subr.bf16.mxu1 %v3935_v1 }
  0x56   : > { %1785 = vmatmul.mubr.bf16.gmra.mrb[8].mxu1 %v3678_v48  ;;  %2251 = vmatmul.mubr.bf16.gmra.mrb[8].mxu0 %v3679_v50  ;;  %v3759_v48 = vld [vmem:[%s4041_s26 + $0x320] ss:$28 sps:$4 sm:$0xff]  }
  0x57   : > { %1792 = vmatprep.mubr.bf16.mxu1 %v3680_v51  ;;  %2258 = vmatprep.mubr.bf16.mxu0 %v3682_v52  ;;  %v3763_v50 = vld [vmem:[%s4041_s26 + $0x35c] ss:$28 sps:$4 sm:$0xff]   ;;  %v3765_v51 = vld [vmem:[%s4041_s26 + $0x348] ss:$28 sps:$4 sm:$0xff]  }
  0x58   : > { %1978 = vmatpush1.bf16.msra.mxu1 %v3706_v53  ;;  %v3766_v52 = vld [vmem:[%s4041_s26 + $0x358] ss:$28 sps:$4 sm:$0xff]   ;;  %v3768_v53 = vld [vmem:[%s4041_s26 + $0x384] ss:$28 sps:$4 sm:$0xff]  }
  0x59   : > { %1979 = vmatprep.subr.bf16.mxu1 %v3935_v1 }
  0x5c   : > { %1980 = vmatpush1.bf16.msra.mxu1 %v3718_v55  ;;  %v3772_v55 = vld [vmem:[%s4041_s26 + $0x380] ss:$28 sps:$4 sm:$0xff]  }
  0x5d   : > { %1981 = vmatprep.subr.bf16.mxu1 %v3935_v1 }
  0x5e   : > { %1793 = vmatmul.mubr.bf16.gmra.mrb[12].mxu1 %v3684_v56  ;;  %2259 = vmatmul.mubr.bf16.gmra.mrb[12].mxu0 %v3685_v57  ;;  %v3773_v56 = vld [vmem:[%s4041_s26 + $0x390] ss:$28 sps:$4 sm:$0xff]   ;;  %v3774_v57 = vld [vmem:[%s4041_s26 + $0x3bc] ss:$28 sps:$4 sm:$0xff]  }
  0x5f   : > { %1800 = vmatprep.mubr.bf16.mxu1 %v3687_v58  ;;  %2266 = vmatprep.mubr.bf16.mxu0 %v3689_v59  ;;  %v3776_v58 = vld [vmem:[%s4041_s26 + $0x3cc] ss:$28 sps:$4 sm:$0xff]   ;;  %v3778_v59 = vld [vmem:[%s4041_s26 + $0x3b8] ss:$28 sps:$4 sm:$0xff]  }
  0x60   : > { %1982 = vmatpush1.bf16.msra.mxu1 %v3726_v60  ;;  %v3779_v60 = vld [vmem:[%s4041_s26 + $0x3c8] ss:$28 sps:$4 sm:$0xff]  }
  0x61   : > { %1983 = vmatprep.subr.bf16.mxu1 %v3935_v1 }
  0x64   : > { %1984 = vmatpush1.bf16.msra.mxu1 %v3739_v61  ;;  %v3781_v61 = vld [vmem:[%s4041_s26 + $0x3f4] ss:$28 sps:$4 sm:$0xff]  }
  0x65   : > { %1985 = vmatprep.subr.bf16.mxu1 %v3935_v1 }
  0x66   : > { %1801 = vmatmul.mubr.bf16.gmra.mrb[16].mxu1 %v3691_v62  ;;  %2267 = vmatmul.mubr.bf16.gmra.mrb[16].mxu0 %v3692_v63  ;;  %v3783_v62 = vld [vmem:[%s4041_s26 + $0x404] ss:$28 sps:$4 sm:$0xff]   ;;  %v3785_v63 = vld [vmem:[%s4041_s26 + $0x3f0] ss:$28 sps:$4 sm:$0xff]  }
  0x67   : > { %1808 = vmatprep.mubr.bf16.mxu1 %v3693_v0  ;;  %2274 = vmatprep.mubr.bf16.mxu0 %v3696_v2  ;;  %v3786_v0 = vld [vmem:[%s4041_s26 + $0x400] ss:$28 sps:$4 sm:$0xff]   ;;  %v3787_v2 = vld [vmem:[%s4041_s26 + $0x42c] ss:$28 sps:$4 sm:$0xff]  }
  0x68   : > { %1986 = vmatpush1.bf16.msra.mxu1 %v3746_v3  ;;  %v3790_v3 = vld [vmem:[%s4041_s26 + $0x43c] ss:$28 sps:$4 sm:$0xff]  }
  0x69   : > { %1987 = vmatprep.subr.bf16.mxu1 %v3935_v1 }
  0x6c   : > { %1988 = vmatpush1.bf16.msra.mxu1 %v3760_v4  ;;  %v3792_v4 = vld [vmem:[%s4041_s26 + $0x428] ss:$28 sps:$4 sm:$0xff]  }
  0x6d   : > { %1989 = vmatprep.subr.bf16.mxu1 %v3935_v1 }
  0x6e   : > { %1809 = vmatmul.mubr.bf16.gmra.mrb[20].mxu1 %v3698_v5  ;;  %2275 = vmatmul.mubr.bf16.gmra.mrb[20].mxu0 %v3699_v6  ;;  %v3793_v5 = vld [vmem:[%s4041_s26 + $0x438] ss:$28 sps:$4 sm:$0xff]   ;;  %v3794_v6 = vld [vmem:[%s4041_s26 + $0x464] ss:$28 sps:$4 sm:$0xff]  }
  0x6f   : > { %1816 = vmatprep.mubr.bf16.mxu1 %v3700_v7  ;;  %2282 = vmatprep.mubr.bf16.mxu0 %v3702_v8  ;;  %v3796_v7 = vld [vmem:[%s4041_s26 + $0x474] ss:$28 sps:$4 sm:$0xff]   ;;  %v3798_v8 = vld [vmem:[%s4041_s26 + $0x460] ss:$28 sps:$4 sm:$0xff]  }
  0x70   : > { %1990 = vmatpush1.bf16.msra.mxu1 %v3767_v9  ;;  %v3799_v9 = vld [vmem:[%s4041_s26 + $0x470] ss:$28 sps:$4 sm:$0xff]  }
  0x71   : > { %1991 = vmatprep.subr.bf16.mxu1 %v3935_v1 }
  0x74   : > { %1992 = vmatpush1.bf16.msra.mxu1 %v3780_v11  ;;  %v3803_v11 = vld [vmem:[%s4041_s26 + $0x4ac] ss:$28 sps:$4 sm:$0xff]  }
  0x75   : > { %1993 = vmatprep.subr.bf16.mxu1 %v3935_v1 }
  0x76   : > { %1817 = vmatmul.mubr.bf16.gmra.mrb[24].mxu1 %v3704_v10  ;;  %2283 = vmatmul.mubr.bf16.gmra.mrb[24].mxu0 %v3705_v12  ;;  %v3801_v10 = vld [vmem:[%s4041_s26 + $0x49c] ss:$28 sps:$4 sm:$0xff]  }
  0x77   : > { %1824 = vmatprep.mubr.bf16.mxu1 %v3707_v13  ;;  %2290 = vmatprep.mubr.bf16.mxu0 %v3709_v14  ;;  %v3805_v12 = vld [vmem:[%s4041_s26 + $0x498] ss:$28 sps:$4 sm:$0xff]   ;;  %v3806_v13 = vld [vmem:[%s4041_s26 + $0x4a8] ss:$28 sps:$4 sm:$0xff]  }
  0x78   : > { %1994 = vmatpush1.bf16.msra.mxu1 %v3789_v15  ;;  %v3807_v14 = vld [vmem:[%s4041_s26 + $0x4d4] ss:$28 sps:$4 sm:$0xff]   ;;  %v3809_v15 = vld [vmem:[%s4041_s26 + $0x4e4] ss:$28 sps:$4 sm:$0xff]  }
  0x79   : > { %1995 = vmatprep.subr.bf16.mxu1 %v3935_v1 }
  0x7c   : > { %1996 = vmatpush1.bf16.msra.mxu1 %v3800_v17  ;;  %v3813_v17 = vld [vmem:[%s4041_s26 + $0x4e0] ss:$28 sps:$4 sm:$0xff]  }
  0x7d   : > { %1997 = vmatprep.subr.bf16.mxu1 %v3935_v1 }
  0x7e   : > { %1825 = vmatmul.mubr.bf16.gmra.mrb[28].mxu1 %v3711_v16  ;;  %2291 = vmatmul.mubr.bf16.gmra.mrb[28].mxu0 %v3712_v18  ;;  %v3811_v16 = vld [vmem:[%s4041_s26 + $0x4d0] ss:$28 sps:$4 sm:$0xff]  }
  0x7f   : > { %1832 = vmatprep.mubr.bf16.mxu1 %v3713_v19  ;;  %2298 = vmatprep.mubr.bf16.mxu0 %v3715_v20  ;;  %v3814_v18 = vld [vmem:[%s4041_s26 + $0x50c] ss:$28 sps:$4 sm:$0xff]   ;;  %v3816_v19 = vld [vmem:[%s4041_s26 + $0x51c] ss:$28 sps:$4 sm:$0xff]  }
  0x80   : > { %1998 = vmatpush1.bf16.msra.mxu1 %v3812_v21  ;;  %v3818_v20 = vld [vmem:[%s4041_s26 + $0x508] ss:$28 sps:$4 sm:$0xff]   ;;  %v3819_v21 = vld [vmem:[%s4041_s26 + $0x518] ss:$28 sps:$4 sm:$0xff]  }
  0x81   : > { %1999 = vmatprep.subr.bf16.mxu1 %v3935_v1  ;;  %v3731_v1 = vld [vmem:[%s4041_s26 + $0x230] ss:$28 sps:$4 sm:$0xff]  }
  0x84   : > { %2000 = vmatpush1.bf16.msra.mxu1 %v3820_v23  ;;  %v3823_v23 = vld [vmem:[%s4041_s26 + $0x554] ss:$28 sps:$4 sm:$0xff]  }
  0x86   : > { %1833 = vmatmul.mubr.bf16.gmra.mrb[32].mxu1 %v3717_v22  ;;  %2299 = vmatmul.mubr.bf16.gmra.mrb[32].mxu0 %v3719_v24  ;;  %v3821_v22 = vld [vmem:[%s4041_s26 + $0x544] ss:$28 sps:$4 sm:$0xff]  }
  0x87   : > { %1840 = vmatprep.mubr.bf16.mxu1 %v3720_v25  ;;  %2306 = vmatprep.mubr.bf16.mxu0 %v3722_v26  ;;  %v3825_v24 = vld [vmem:[%s4041_s26 + $0x540] ss:$28 sps:$4 sm:$0xff]   ;;  %v3826_v25 = vld [vmem:[%s4041_s26 + $0x550] ss:$28 sps:$4 sm:$0xff]  }
  0x88   : > { %v3829_v26 = vld [vmem:[%s4041_s26 + $0xc] ss:$28 sps:$4 sm:$0xff]  }
  0x8e   : > { %1841 = vmatmul.mubr.bf16.gmra.mrb[36].mxu1 %v3724_v27  ;;  %2307 = vmatmul.mubr.bf16.gmra.mrb[36].mxu0 %v3725_v28  ;;  %v3827_v27 = vld [vmem:[%s4041_s26 + $0x8] ss:$28 sps:$4 sm:$0xff]   ;;  %v3830_v28 = vld [vmem:[%s4041_s26 + $0x18] ss:$28 sps:$4 sm:$0xff]  }
  0x8f   : > { %1848 = vmatprep.mubr.bf16.mxu1 %v3727_v29  ;;  %2314 = vmatprep.mubr.bf16.mxu0 %v3729_v30  ;;  %v3831_v29 = vld [vmem:[%s4041_s26 + $0x44] ss:$28 sps:$4 sm:$0xff]  }
  0x90   : > { %v3833_v30 = vld [vmem:[%s4041_s26 + $0x40] ss:$28 sps:$4 sm:$0xff]  }
  0x96   : > { %1849 = vmatmul.mubr.bf16.gmra.mrb[40].mxu1 %v3731_v1  ;;  %2315 = vmatmul.mubr.bf16.gmra.mrb[40].mxu0 %v3732_v31  ;;  %v3834_v1 = vld [vmem:[%s4041_s26 + $0x50] ss:$28 sps:$4 sm:$0xff]   ;;  %v3835_v31 = vld [vmem:[%s4041_s26 + $0x7c] ss:$28 sps:$4 sm:$0xff]  }
  0x97   : > { %1856 = vmatprep.mubr.bf16.mxu1 %v3733_v32  ;;  %2322 = vmatprep.mubr.bf16.mxu0 %v3735_v33  ;;  %v3837_v32 = vld [vmem:[%s4041_s26 + $0x78] ss:$28 sps:$4 sm:$0xff]   ;;  %v3838_v33 = vld [vmem:[%s4041_s26 + $0x88] ss:$28 sps:$4 sm:$0xff]  }
  0x9e   : > { %1857 = vmatmul.mubr.bf16.gmra.mrb[44].mxu1 %v3737_v34  ;;  %2323 = vmatmul.mubr.bf16.gmra.mrb[44].mxu0 %v3738_v35  ;;  %v3839_v34 = vld [vmem:[%s4041_s26 + $0xb4] ss:$28 sps:$4 sm:$0xff]  }
  0x9f   : > { %1864 = vmatprep.mubr.bf16.mxu1 %v3740_v36  ;;  %2330 = vmatprep.mubr.bf16.mxu0 %v3742_v37  ;;  %v3841_v35 = vld [vmem:[%s4041_s26 + $0xb0] ss:$28 sps:$4 sm:$0xff]   ;;  %v3842_v36 = vld [vmem:[%s4041_s26 + $0xc0] ss:$28 sps:$4 sm:$0xff]  }
  0xa0   : > { %v3843_v37 = vld [vmem:[%s4041_s26 + $0xec] ss:$28 sps:$4 sm:$0xff]  }
  0xa6   : > { %1865 = vmatmul.mubr.bf16.gmra.mrb[48].mxu1 %v3744_v38  ;;  %2331 = vmatmul.mubr.bf16.gmra.mrb[48].mxu0 %v3745_v39  ;;  %v3845_v38 = vld [vmem:[%s4041_s26 + $0xe8] ss:$28 sps:$4 sm:$0xff]   ;;  %v3846_v39 = vld [vmem:[%s4041_s26 + $0xf8] ss:$28 sps:$4 sm:$0xff]  }
  0xa7   : > { %1872 = vmatprep.mubr.bf16.mxu1 %v3747_v41  ;;  %2338 = vmatprep.mubr.bf16.mxu0 %v3749_v42  ;;  %v3847_v41 = vld [vmem:[%s4041_s26 + $0x124] ss:$28 sps:$4 sm:$0xff]  }
  0xa8   : > { %v3849_v42 = vld [vmem:[%s4041_s26 + $0x120] ss:$28 sps:$4 sm:$0xff]  }
  0xae   : > { %1873 = vmatmul.mubr.bf16.gmra.mrb[52].mxu1 %v3752_v43  ;;  %2339 = vmatmul.mubr.bf16.gmra.mrb[52].mxu0 %v3753_v44  ;;  %v3850_v43 = vld [vmem:[%s4041_s26 + $0x130] ss:$28 sps:$4 sm:$0xff]   ;;  %v3851_v44 = vld [vmem:[%s4041_s26 + $0x15c] ss:$28 sps:$4 sm:$0xff]  }
  0xaf   : > { %1880 = vmatprep.mubr.bf16.mxu1 %v3754_v45  ;;  %2346 = vmatprep.mubr.bf16.mxu0 %v3756_v46  ;;  %v3853_v45 = vld [vmem:[%s4041_s26 + $0x158] ss:$28 sps:$4 sm:$0xff]   ;;  %v3854_v46 = vld [vmem:[%s4041_s26 + $0x168] ss:$28 sps:$4 sm:$0xff]  }
  0xb6   : > { %1881 = vmatmul.mubr.bf16.gmra.mrb[56].mxu1 %v3758_v47  ;;  %2347 = vmatmul.mubr.bf16.gmra.mrb[56].mxu0 %v3759_v48  ;;  %v3855_v47 = vld [vmem:[%s4041_s26 + $0x194] ss:$28 sps:$4 sm:$0xff]  }
  0xb7   : > { %1888 = vmatprep.mubr.bf16.mxu1 %v3761_v49  ;;  %2354 = vmatprep.mubr.bf16.mxu0 %v3763_v50  ;;  %v3857_v48 = vld [vmem:[%s4041_s26 + $0x190] ss:$28 sps:$4 sm:$0xff]   ;;  %v3858_v49 = vld [vmem:[%s4041_s26 + $0x1a0] ss:$28 sps:$4 sm:$0xff]  }
  0xb8   : > { %v3859_v50 = vld [vmem:[%s4041_s26 + $0x1cc] ss:$28 sps:$4 sm:$0xff]  }
  0xbe   : > { %1889 = vmatmul.mubr.bf16.gmra.mrb[60].mxu1 %v3765_v51  ;;  %2355 = vmatmul.mubr.bf16.gmra.mrb[60].mxu0 %v3766_v52  ;;  %v3861_v51 = vld [vmem:[%s4041_s26 + $0x1c8] ss:$28 sps:$4 sm:$0xff]   ;;  %v3862_v52 = vld [vmem:[%s4041_s26 + $0x1d8] ss:$28 sps:$4 sm:$0xff]  }
  0xbf   : > { %1896 = vmatprep.mubr.bf16.mxu1 %v3768_v53  ;;  %2362 = vmatprep.mubr.bf16.mxu0 %v3770_v54  ;;  %v3863_v53 = vld [vmem:[%s4041_s26 + $0x204] ss:$28 sps:$4 sm:$0xff]  }
  0xc0   : > { %v3865_v54 = vld [vmem:[%s4041_s26 + $0x200] ss:$28 sps:$4 sm:$0xff]  }
  0xc6   : > { %1897 = vmatmul.mubr.bf16.gmra.mrb[64].mxu1 %v3772_v55  ;;  %2363 = vmatmul.mubr.bf16.gmra.mrb[64].mxu0 %v3773_v56  ;;  %v3866_v55 = vld [vmem:[%s4041_s26 + $0x210] ss:$28 sps:$4 sm:$0xff]   ;;  %v3867_v56 = vld [vmem:[%s4041_s26 + $0x23c] ss:$28 sps:$4 sm:$0xff]  }
  0xc7   : > { %1904 = vmatprep.mubr.bf16.mxu1 %v3774_v57  ;;  %2370 = vmatprep.mubr.bf16.mxu0 %v3776_v58  ;;  %v3869_v57 = vld [vmem:[%s4041_s26 + $0x238] ss:$28 sps:$4 sm:$0xff]   ;;  %v3870_v58 = vld [vmem:[%s4041_s26 + $0x248] ss:$28 sps:$4 sm:$0xff]  }
  0xce   : > { %1905 = vmatmul.mubr.bf16.gmra.mrb[68].mxu1 %v3778_v59  ;;  %2371 = vmatmul.mubr.bf16.gmra.mrb[68].mxu0 %v3779_v60  ;;  %v3871_v59 = vld [vmem:[%s4041_s26 + $0x274] ss:$28 sps:$4 sm:$0xff]  }
  0xcf   : > { %1912 = vmatprep.mubr.bf16.mxu1 %v3781_v61  ;;  %2378 = vmatprep.mubr.bf16.mxu0 %v3783_v62  ;;  %v3873_v60 = vld [vmem:[%s4041_s26 + $0x270] ss:$28 sps:$4 sm:$0xff]   ;;  %v3874_v61 = vld [vmem:[%s4041_s26 + $0x280] ss:$28 sps:$4 sm:$0xff]  }
  0xd0   : > { %v3875_v62 = vld [vmem:[%s4041_s26 + $0x2ac] ss:$28 sps:$4 sm:$0xff]  }
  0xd6   : > { %1913 = vmatmul.mubr.bf16.gmra.mrb[72].mxu1 %v3785_v63  ;;  %2379 = vmatmul.mubr.bf16.gmra.mrb[72].mxu0 %v3786_v0  ;;  %v3877_v63 = vld [vmem:[%s4041_s26 + $0x2a8] ss:$28 sps:$4 sm:$0xff]   ;;  %v3878_v0 = vld [vmem:[%s4041_s26 + $0x2b8] ss:$28 sps:$4 sm:$0xff]  }
  0xd7   : > { %1920 = vmatprep.mubr.bf16.mxu1 %v3787_v2  ;;  %2386 = vmatprep.mubr.bf16.mxu0 %v3790_v3  ;;  %v3879_v2 = vld [vmem:[%s4041_s26 + $0x2e4] ss:$28 sps:$4 sm:$0xff]  }
  0xd8   : > { %v3881_v3 = vld [vmem:[%s4041_s26 + $0x2e0] ss:$28 sps:$4 sm:$0xff]  }
  0xde   : > { %1921 = vmatmul.mubr.bf16.gmra.mrb[76].mxu1 %v3792_v4  ;;  %2387 = vmatmul.mubr.bf16.gmra.mrb[76].mxu0 %v3793_v5  ;;  %v3882_v4 = vld [vmem:[%s4041_s26 + $0x2f0] ss:$28 sps:$4 sm:$0xff]   ;;  %v3883_v5 = vld [vmem:[%s4041_s26 + $0x31c] ss:$28 sps:$4 sm:$0xff]  }
  0xdf   : > { %1928 = vmatprep.mubr.bf16.mxu1 %v3794_v6  ;;  %2394 = vmatprep.mubr.bf16.mxu0 %v3796_v7  ;;  %v3885_v6 = vld [vmem:[%s4041_s26 + $0x318] ss:$28 sps:$4 sm:$0xff]   ;;  %v3886_v7 = vld [vmem:[%s4041_s26 + $0x328] ss:$28 sps:$4 sm:$0xff]  }
  0xe6   : > { %1929 = vmatmul.mubr.bf16.gmra.mrb[80].mxu1 %v3798_v8  ;;  %2395 = vmatmul.mubr.bf16.gmra.mrb[80].mxu0 %v3799_v9  ;;  %v3887_v8 = vld [vmem:[%s4041_s26 + $0x354] ss:$28 sps:$4 sm:$0xff]  }
  0xe7   : > { %1936 = vmatprep.mubr.bf16.mxu1 %v3801_v10  ;;  %2402 = vmatprep.mubr.bf16.mxu0 %v3803_v11  ;;  %v3889_v9 = vld [vmem:[%s4041_s26 + $0x350] ss:$28 sps:$4 sm:$0xff]   ;;  %v3890_v10 = vld [vmem:[%s4041_s26 + $0x360] ss:$28 sps:$4 sm:$0xff]  }
  0xe8   : > { %v3891_v11 = vld [vmem:[%s4041_s26 + $0x38c] ss:$28 sps:$4 sm:$0xff]  }
  0xee   : > { %1937 = vmatmul.mubr.bf16.gmra.mrb[84].mxu1 %v3805_v12  ;;  %2403 = vmatmul.mubr.bf16.gmra.mrb[84].mxu0 %v3806_v13  ;;  %v3893_v12 = vld [vmem:[%s4041_s26 + $0x388] ss:$28 sps:$4 sm:$0xff]   ;;  %v3894_v13 = vld [vmem:[%s4041_s26 + $0x398] ss:$28 sps:$4 sm:$0xff]  }
  0xef   : > { %1944 = vmatprep.mubr.bf16.mxu1 %v3807_v14  ;;  %2410 = vmatprep.mubr.bf16.mxu0 %v3809_v15  ;;  %v3895_v14 = vld [vmem:[%s4041_s26 + $0x3c4] ss:$28 sps:$4 sm:$0xff]  }
  0xf0   : > { %v3897_v15 = vld [vmem:[%s4041_s26 + $0x3c0] ss:$28 sps:$4 sm:$0xff]  }
  0xf6   : > { %1945 = vmatmul.mubr.bf16.gmra.mrb[88].mxu1 %v3811_v16  ;;  %2411 = vmatmul.mubr.bf16.gmra.mrb[88].mxu0 %v3813_v17  ;;  %v3898_v16 = vld [vmem:[%s4041_s26 + $0x3d0] ss:$28 sps:$4 sm:$0xff]   ;;  %v3899_v17 = vld [vmem:[%s4041_s26 + $0x3fc] ss:$28 sps:$4 sm:$0xff]  }
  0xf7   : > { %1952 = vmatprep.mubr.bf16.mxu1 %v3814_v18  ;;  %2418 = vmatprep.mubr.bf16.mxu0 %v3816_v19  ;;  %v3901_v18 = vld [vmem:[%s4041_s26 + $0x3f8] ss:$28 sps:$4 sm:$0xff]   ;;  %v3902_v19 = vld [vmem:[%s4041_s26 + $0x408] ss:$28 sps:$4 sm:$0xff]  }
  0xfe   : > { %1953 = vmatmul.mubr.bf16.gmra.mrb[92].mxu1 %v3818_v20  ;;  %2419 = vmatmul.mubr.bf16.gmra.mrb[92].mxu0 %v3819_v21  ;;  %v3903_v20 = vld [vmem:[%s4041_s26 + $0x434] ss:$28 sps:$4 sm:$0xff]  }
  0xff   : > { %1960 = vmatprep.mubr.bf16.mxu1 %v3821_v22  ;;  %2426 = vmatprep.mubr.bf16.mxu0 %v3823_v23  ;;  %v3905_v21 = vld [vmem:[%s4041_s26 + $0x430] ss:$28 sps:$4 sm:$0xff]   ;;  %v3906_v22 = vld [vmem:[%s4041_s26 + $0x440] ss:$28 sps:$4 sm:$0xff]  }
 0x100   : > { %v3907_v23 = vld [vmem:[%s4041_s26 + $0x46c] ss:$28 sps:$4 sm:$0xff]  }
 0x106   : > { %1961 = vmatmul.mubr.bf16.gmra.mrb[96].mxu1 %v3825_v24  ;;  %2427 = vmatmul.mubr.bf16.gmra.mrb[96].mxu0 %v3826_v25  ;;  %v3909_v24 = vld [vmem:[%s4041_s26 + $0x468] ss:$28 sps:$4 sm:$0xff]   ;;  %v3910_v25 = vld [vmem:[%s4041_s26 + $0x478] ss:$28 sps:$4 sm:$0xff]  }
 0x107   : > { %2001 = vmatprep.mubr.bf16.mxu1 %v3829_v26  ;;  %3215 = vmatprep.mubr.msk.bf16.mxu0 %vm3937_vm0, %v3936_v40  ;;  %v3911_v26 = vld [vmem:[%s4041_s26 + $0x4a4] ss:$28 sps:$4 sm:$0xff]  }
 0x10e   : > { %2002 = vmatmul.mubr.bf16.vlgmr.msra.gmra.mrb[0].mxu1 %v3827_v27  ;;  %3216 = vmatmul.mubr.msk.bf16.vlgmr.msra.gmra.mrb[0].mxu0 %vm1660_vm1, %v3830_v28  ;;  %v3913_v27 = vld [vmem:[%s4041_s26 + $0x4a0] ss:$28 sps:$4 sm:$0xff]   ;;  %v3914_v28 = vld [vmem:[%s4041_s26 + $0x4b0] ss:$28 sps:$4 sm:$0xff]  }
 0x10f   : > { %2009 = vmatprep.mubr.bf16.mxu1 %v3831_v29  ;;  %3219 = vmatprep.mubr.msk.bf16.mxu0 %vm3937_vm0, %v3936_v40  ;;  %v3915_v29 = vld [vmem:[%s4041_s26 + $0x4dc] ss:$28 sps:$4 sm:$0xff]  }
 0x116   : > { %2010 = vmatmul.mubr.bf16.gmra.mrb[4].mxu1 %v3833_v30  ;;  %3220 = vmatmul.mubr.msk.bf16.gmra.mrb[4].mxu0 %vm1660_vm1, %v3834_v1  ;;  %v3917_v30 = vld [vmem:[%s4041_s26 + $0x4d8] ss:$28 sps:$4 sm:$0xff]   ;;  %v3918_v1 = vld [vmem:[%s4041_s26 + $0x4e8] ss:$28 sps:$4 sm:$0xff]  }
 0x117   : > { %2017 = vmatprep.mubr.bf16.mxu1 %v3835_v31  ;;  %3223 = vmatprep.mubr.msk.bf16.mxu0 %vm3937_vm0, %v3936_v40  ;;  %v3919_v31 = vld [vmem:[%s4041_s26 + $0x514] ss:$28 sps:$4 sm:$0xff]  }
 0x11e   : > { %2018 = vmatmul.mubr.bf16.gmra.mrb[8].mxu1 %v3837_v32  ;;  %3224 = vmatmul.mubr.msk.bf16.gmra.mrb[8].mxu0 %vm1660_vm1, %v3838_v33  ;;  %v3921_v32 = vld [vmem:[%s4041_s26 + $0x510] ss:$28 sps:$4 sm:$0xff]   ;;  %v3922_v33 = vld [vmem:[%s4041_s26 + $0x520] ss:$28 sps:$4 sm:$0xff]  }
 0x11f   : > { %2025 = vmatprep.mubr.bf16.mxu1 %v3839_v34  ;;  %3227 = vmatprep.mubr.msk.bf16.mxu0 %vm3937_vm0, %v3936_v40  ;;  %v3923_v34 = vld [vmem:[%s4041_s26 + $0x54c] ss:$28 sps:$4 sm:$0xff]  }
 0x126   : > { %2026 = vmatmul.mubr.bf16.gmra.mrb[12].mxu1 %v3841_v35  ;;  %3228 = vmatmul.mubr.msk.bf16.gmra.mrb[12].mxu0 %vm1660_vm1, %v3842_v36  ;;  %v3925_v35 = vld [vmem:[%s4041_s26 + $0x548] ss:$28 sps:$4 sm:$0xff]   ;;  %v3926_v36 = vld [vmem:[%s4041_s26 + $0x558] ss:$28 sps:$4 sm:$0xff]  }
 0x127   : > { %2033 = vmatprep.mubr.bf16.mxu1 %v3843_v37  ;;  %3231 = vmatprep.mubr.msk.bf16.mxu0 %vm3937_vm0, %v3936_v40  ;;  %v4429_v37 = vld [vmem:[%s4542_s2] ss:$0 sm:$0xff] }
 0x12e   : > { %2034 = vmatmul.mubr.bf16.gmra.mrb[16].mxu1 %v3845_v38  ;;  %3232 = vmatmul.mubr.msk.bf16.gmra.mrb[16].mxu0 %vm1660_vm1, %v3846_v39 }
 0x12f   : > { %2041 = vmatprep.mubr.bf16.mxu1 %v3847_v41  ;;  %3235 = vmatprep.mubr.msk.bf16.mxu0 %vm3937_vm0, %v3936_v40 }
 0x136   : > { %2042 = vmatmul.mubr.bf16.gmra.mrb[20].mxu1 %v3849_v42  ;;  %3236 = vmatmul.mubr.msk.bf16.gmra.mrb[20].mxu0 %vm1660_vm1, %v3850_v43 }
 0x137   : > { %2049 = vmatprep.mubr.bf16.mxu1 %v3851_v44  ;;  %3239 = vmatprep.mubr.msk.bf16.mxu0 %vm3937_vm0, %v3936_v40 }
 0x13e   : > { %2050 = vmatmul.mubr.bf16.gmra.mrb[24].mxu1 %v3853_v45  ;;  %3240 = vmatmul.mubr.msk.bf16.gmra.mrb[24].mxu0 %vm1660_vm1, %v3854_v46 }
 0x13f   : > { %2057 = vmatprep.mubr.bf16.mxu1 %v3855_v47  ;;  %3243 = vmatprep.mubr.msk.bf16.mxu0 %vm3937_vm0, %v3936_v40 }
 0x146   : > { %2058 = vmatmul.mubr.bf16.gmra.mrb[28].mxu1 %v3857_v48  ;;  %3244 = vmatmul.mubr.msk.bf16.gmra.mrb[28].mxu0 %vm1660_vm1, %v3858_v49 }
 0x147   : > { %2065 = vmatprep.mubr.bf16.mxu1 %v3859_v50  ;;  %3247 = vmatprep.mubr.msk.bf16.mxu0 %vm3937_vm0, %v3936_v40 }
 0x14e   : > { %2066 = vmatmul.mubr.bf16.gmra.mrb[32].mxu1 %v3861_v51  ;;  %3248 = vmatmul.mubr.msk.bf16.gmra.mrb[32].mxu0 %vm1660_vm1, %v3862_v52 }
 0x14f   : > { %2073 = vmatprep.mubr.bf16.mxu1 %v3863_v53  ;;  %3251 = vmatprep.mubr.msk.bf16.mxu0 %vm3937_vm0, %v3936_v40 }
 0x156   : > { %2074 = vmatmul.mubr.bf16.gmra.mrb[36].mxu1 %v3865_v54  ;;  %3252 = vmatmul.mubr.msk.bf16.gmra.mrb[36].mxu0 %vm1660_vm1, %v3866_v55 }
 0x157   : > { %2081 = vmatprep.mubr.bf16.mxu1 %v3867_v56  ;;  %3255 = vmatprep.mubr.msk.bf16.mxu0 %vm3937_vm0, %v3936_v40 }
 0x15e   : > { %2082 = vmatmul.mubr.bf16.gmra.mrb[40].mxu1 %v3869_v57  ;;  %3256 = vmatmul.mubr.msk.bf16.gmra.mrb[40].mxu0 %vm1660_vm1, %v3870_v58 }
 0x15f   : > { %2089 = vmatprep.mubr.bf16.mxu1 %v3871_v59  ;;  %3259 = vmatprep.mubr.msk.bf16.mxu0 %vm3937_vm0, %v3936_v40 }
 0x166   : > { %2090 = vmatmul.mubr.bf16.gmra.mrb[44].mxu1 %v3873_v60  ;;  %3260 = vmatmul.mubr.msk.bf16.gmra.mrb[44].mxu0 %vm1660_vm1, %v3874_v61 }
 0x167   : > { %2097 = vmatprep.mubr.bf16.mxu1 %v3875_v62  ;;  %3263 = vmatprep.mubr.msk.bf16.mxu0 %vm3937_vm0, %v3936_v40 }
 0x16e   : > { %2098 = vmatmul.mubr.bf16.gmra.mrb[48].mxu1 %v3877_v63  ;;  %3264 = vmatmul.mubr.msk.bf16.gmra.mrb[48].mxu0 %vm1660_vm1, %v3878_v0 }
 0x16f   : > { %2105 = vmatprep.mubr.bf16.mxu1 %v3879_v2  ;;  %3267 = vmatprep.mubr.msk.bf16.mxu0 %vm3937_vm0, %v3936_v40 }
 0x176   : > { %2106 = vmatmul.mubr.bf16.gmra.mrb[52].mxu1 %v3881_v3  ;;  %3268 = vmatmul.mubr.msk.bf16.gmra.mrb[52].mxu0 %vm1660_vm1, %v3882_v4 }
 0x177   : > { %2113 = vmatprep.mubr.bf16.mxu1 %v3883_v5  ;;  %3271 = vmatprep.mubr.msk.bf16.mxu0 %vm3937_vm0, %v3936_v40 }
 0x17e   : > { %2114 = vmatmul.mubr.bf16.gmra.mrb[56].mxu1 %v3885_v6  ;;  %3272 = vmatmul.mubr.msk.bf16.gmra.mrb[56].mxu0 %vm1660_vm1, %v3886_v7 }
 0x17f   : > { %2121 = vmatprep.mubr.bf16.mxu1 %v3887_v8  ;;  %3275 = vmatprep.mubr.msk.bf16.mxu0 %vm3937_vm0, %v3936_v40 }
 0x186   : > { %2122 = vmatmul.mubr.bf16.gmra.mrb[60].mxu1 %v3889_v9  ;;  %3276 = vmatmul.mubr.msk.bf16.gmra.mrb[60].mxu0 %vm1660_vm1, %v3890_v10 }
 0x187   : > { %2129 = vmatprep.mubr.bf16.mxu1 %v3891_v11  ;;  %3279 = vmatprep.mubr.msk.bf16.mxu0 %vm3937_vm0, %v3936_v40 }
 0x18e   : > { %2130 = vmatmul.mubr.bf16.gmra.mrb[64].mxu1 %v3893_v12  ;;  %3280 = vmatmul.mubr.msk.bf16.gmra.mrb[64].mxu0 %vm1660_vm1, %v3894_v13 }
 0x18f   : > { %2137 = vmatprep.mubr.bf16.mxu1 %v3895_v14  ;;  %3283 = vmatprep.mubr.msk.bf16.mxu0 %vm3937_vm0, %v3936_v40 }
 0x196   : > { %2138 = vmatmul.mubr.bf16.gmra.mrb[68].mxu1 %v3897_v15  ;;  %3284 = vmatmul.mubr.msk.bf16.gmra.mrb[68].mxu0 %vm1660_vm1, %v3898_v16 }
 0x197   : > { %2145 = vmatprep.mubr.bf16.mxu1 %v3899_v17  ;;  %3287 = vmatprep.mubr.msk.bf16.mxu0 %vm3937_vm0, %v3936_v40 }
 0x19e   : > { %2146 = vmatmul.mubr.bf16.gmra.mrb[72].mxu1 %v3901_v18  ;;  %3288 = vmatmul.mubr.msk.bf16.gmra.mrb[72].mxu0 %vm1660_vm1, %v3902_v19 }
 0x19f   : > { %2153 = vmatprep.mubr.bf16.mxu1 %v3903_v20  ;;  %3291 = vmatprep.mubr.msk.bf16.mxu0 %vm3937_vm0, %v3936_v40 }
 0x1a6   : > { %2154 = vmatmul.mubr.bf16.gmra.mrb[76].mxu1 %v3905_v21  ;;  %3292 = vmatmul.mubr.msk.bf16.gmra.mrb[76].mxu0 %vm1660_vm1, %v3906_v22 }
 0x1a7   : > { %2161 = vmatprep.mubr.bf16.mxu1 %v3907_v23  ;;  %3295 = vmatprep.mubr.msk.bf16.mxu0 %vm3937_vm0, %v3936_v40 }
 0x1ae   : > { %2162 = vmatmul.mubr.bf16.gmra.mrb[80].mxu1 %v3909_v24  ;;  %3296 = vmatmul.mubr.msk.bf16.gmra.mrb[80].mxu0 %vm1660_vm1, %v3910_v25 }
 0x1af   : > { %2169 = vmatprep.mubr.bf16.mxu1 %v3911_v26  ;;  %3299 = vmatprep.mubr.msk.bf16.mxu0 %vm3937_vm0, %v3936_v40 }
 0x1b6   : > { %2170 = vmatmul.mubr.bf16.gmra.mrb[84].mxu1 %v3913_v27  ;;  %3300 = vmatmul.mubr.msk.bf16.gmra.mrb[84].mxu0 %vm1660_vm1, %v3914_v28 }
 0x1b7   : > { %2177 = vmatprep.mubr.bf16.mxu1 %v3915_v29  ;;  %3303 = vmatprep.mubr.msk.bf16.mxu0 %vm3937_vm0, %v3936_v40 }
 0x1be   : > { %2178 = vmatmul.mubr.bf16.gmra.mrb[88].mxu1 %v3917_v30  ;;  %3304 = vmatmul.mubr.msk.bf16.gmra.mrb[88].mxu0 %vm1660_vm1, %v3918_v1 }
 0x1bf   : > { %2185 = vmatprep.mubr.bf16.mxu1 %v3919_v31  ;;  %3307 = vmatprep.mubr.msk.bf16.mxu0 %vm3937_vm0, %v3936_v40 }
 0x1c6   : > { %2186 = vmatmul.mubr.bf16.gmra.mrb[92].mxu1 %v3921_v32  ;;  %3308 = vmatmul.mubr.msk.bf16.gmra.mrb[92].mxu0 %vm1660_vm1, %v3922_v33 }
 0x1c7   : > { %2193 = vmatprep.mubr.bf16.mxu1 %v3923_v34  ;;  %3311 = vmatprep.mubr.msk.bf16.mxu0 %vm3937_vm0, %v3936_v40 }
 0x1ce   : > { %2194 = vmatmul.mubr.bf16.gmra.mrb[96].mxu1 %v3925_v35  ;;  %3312 = vmatmul.mubr.msk.bf16.gmra.mrb[96].mxu0 %vm1660_vm1, %v3926_v36 }
 0x1e1   : > { %v2003_v38 = vpop.f32.mrb[0].mxu1  ;;  %v2469_v41 = vpop.f32.mrb[0].mxu0 }
 0x1e2   : > { %v3315_v39 = vadd.f32 %v4429_v37, %v2003_v38  ;;  %v2005_v42 = vpop.f32.mrb[1].mxu1  ;;  %v3217_v43 = vpop.f32.mrb[1].mxu0 }
 0x1e3   : > { %v2006_v44 = vpop.f32.mrb[2].mxu1  ;;  %v2472_v46 = vpop.f32.mrb[2].mxu0 }
 0x1e4   : > { %v3316_v45 = vadd.f32 %v3315_v39, %v2469_v41  ;;  %v3317_v40 = vadd.f32 %v4429_v37, %v2006_v44  ;;  %v2008_v47 = vpop.f32.mrb[3].mxu1  ;;  %v3218_v48 = vpop.f32.mrb[3].mxu0 }
 0x1e6   : > { %vm2668_vm2 = vcmp.ge.f32.partialorder %v3316_v45, 0.0  ;;  %v2718_v49 = vmul.f32 0.2, %v3316_v45  ;;  %v3318_v50 = vadd.f32 %v3317_v40, %v2472_v46 }
 0x1e8   : > { %v2768_v51 = vsel %vm2668_vm2, %v3316_v45, %v2718_v49  ;;  %vm2669_vm3 = vcmp.ge.f32.partialorder %v3318_v50, 0.0  ;;  %v2719_v52 = vmul.f32 0.2, %v3318_v50 }
 0x1e9   : > { %2818 = vst [vmem:[%s4437_s24] sm:$0xff] %v2768_v51  ;;  %v2011_v53 = vpop.f32.mrb[4].mxu1  ;;  %v2477_v56 = vpop.f32.mrb[4].mxu0 }
 0x1ea   : > { %v2769_v54 = vsel %vm2669_vm3, %v3318_v50, %v2719_v52  ;;  %v3319_v55 = vadd.f32 %v4429_v37, %v2011_v53  ;;  %v2013_v57 = vpop.f32.mrb[5].mxu1  ;;  %v3221_v58 = vpop.f32.mrb[5].mxu0 }
 0x1eb   : > { %2819 = vst [vmem:[%s4437_s24 + $0x8] sm:$0xff] %v2769_v54  ;;  %v2014_v59 = vpop.f32.mrb[6].mxu1  ;;  %v2480_v62 = vpop.f32.mrb[6].mxu0 }
 0x1ec   : > { %v3320_v60 = vadd.f32 %v3319_v55, %v2477_v56  ;;  %v3321_v61 = vadd.f32 %v4429_v37, %v2014_v59  ;;  %v2016_v63 = vpop.f32.mrb[7].mxu1  ;;  %v3222_v0 = vpop.f32.mrb[7].mxu0 }
 0x1ee   : > { %vm2670_vm4 = vcmp.ge.f32.partialorder %v3320_v60, 0.0  ;;  %v2720_v2 = vmul.f32 0.2, %v3320_v60  ;;  %v3322_v3 = vadd.f32 %v3321_v61, %v2480_v62 }
 0x1f0   : > { %v2770_v4 = vsel %vm2670_vm4, %v3320_v60, %v2720_v2  ;;  %vm2671_vm5 = vcmp.ge.f32.partialorder %v3322_v3, 0.0  ;;  %v2721_v5 = vmul.f32 0.2, %v3322_v3 }
 0x1f1   : > { %2820 = vst [vmem:[%s4437_s24 + $0x10] sm:$0xff] %v2770_v4  ;;  %v2019_v6 = vpop.f32.mrb[8].mxu1  ;;  %v2485_v9 = vpop.f32.mrb[8].mxu0 }
 0x1f2   : > { %v2771_v7 = vsel %vm2671_vm5, %v3322_v3, %v2721_v5  ;;  %v3323_v8 = vadd.f32 %v4429_v37, %v2019_v6  ;;  %v2021_v10 = vpop.f32.mrb[9].mxu1  ;;  %v3225_v11 = vpop.f32.mrb[9].mxu0 }
 0x1f3   : > { %2821 = vst [vmem:[%s4437_s24 + $0x18] sm:$0xff] %v2771_v7  ;;  %v2022_v12 = vpop.f32.mrb[10].mxu1  ;;  %v2488_v15 = vpop.f32.mrb[10].mxu0 }
 0x1f4   : > { %v3324_v13 = vadd.f32 %v3323_v8, %v2485_v9  ;;  %v3325_v14 = vadd.f32 %v4429_v37, %v2022_v12  ;;  %v2024_v16 = vpop.f32.mrb[11].mxu1  ;;  %v3226_v17 = vpop.f32.mrb[11].mxu0 }
 0x1f6   : > { %vm2672_vm6 = vcmp.ge.f32.partialorder %v3324_v13, 0.0  ;;  %v2722_v18 = vmul.f32 0.2, %v3324_v13  ;;  %v3326_v19 = vadd.f32 %v3325_v14, %v2488_v15 }
 0x1f8   : > { %v2772_v20 = vsel %vm2672_vm6, %v3324_v13, %v2722_v18  ;;  %vm2673_vm7 = vcmp.ge.f32.partialorder %v3326_v19, 0.0  ;;  %v2723_v21 = vmul.f32 0.2, %v3326_v19 }
 0x1f9   : > { %2822 = vst [vmem:[%s4437_s24 + $0x20] sm:$0xff] %v2772_v20  ;;  %v2027_v22 = vpop.f32.mrb[12].mxu1  ;;  %v2493_v25 = vpop.f32.mrb[12].mxu0 }
 0x1fa   : > { %v2773_v23 = vsel %vm2673_vm7, %v3326_v19, %v2723_v21  ;;  %v3327_v24 = vadd.f32 %v4429_v37, %v2027_v22  ;;  %v2029_v26 = vpop.f32.mrb[13].mxu1  ;;  %v3229_v27 = vpop.f32.mrb[13].mxu0 }
 0x1fb   : > { %2823 = vst [vmem:[%s4437_s24 + $0x28] sm:$0xff] %v2773_v23  ;;  %v2030_v28 = vpop.f32.mrb[14].mxu1  ;;  %v2496_v1 = vpop.f32.mrb[14].mxu0 }
 0x1fc   : > { %v3328_v29 = vadd.f32 %v3327_v24, %v2493_v25  ;;  %v3329_v30 = vadd.f32 %v4429_v37, %v2030_v28  ;;  %v2032_v31 = vpop.f32.mrb[15].mxu1  ;;  %v3230_v32 = vpop.f32.mrb[15].mxu0 }
 0x1fe   : > { %vm2674_vm8 = vcmp.ge.f32.partialorder %v3328_v29, 0.0  ;;  %v2724_v33 = vmul.f32 0.2, %v3328_v29  ;;  %v3330_v34 = vadd.f32 %v3329_v30, %v2496_v1 }
 0x200   : > { %v2774_v35 = vsel %vm2674_vm8, %v3328_v29, %v2724_v33  ;;  %vm2675_vm9 = vcmp.ge.f32.partialorder %v3330_v34, 0.0  ;;  %v2725_v36 = vmul.f32 0.2, %v3330_v34 }
 0x201   : > { %2824 = vst [vmem:[%s4437_s24 + $0x30] sm:$0xff] %v2774_v35  ;;  %v2035_v38 = vpop.f32.mrb[16].mxu1  ;;  %v2501_v42 = vpop.f32.mrb[16].mxu0 }
 0x202   : > { %v2775_v39 = vsel %vm2675_vm9, %v3330_v34, %v2725_v36  ;;  %v3331_v41 = vadd.f32 %v4429_v37, %v2035_v38  ;;  %v2037_v43 = vpop.f32.mrb[17].mxu1  ;;  %v3233_v44 = vpop.f32.mrb[17].mxu0 }
 0x203   : > { %2825 = vst [vmem:[%s4437_s24 + $0x38] sm:$0xff] %v2775_v39  ;;  %v2038_v45 = vpop.f32.mrb[18].mxu1  ;;  %v2504_v47 = vpop.f32.mrb[18].mxu0 }
 0x204   : > { %v3332_v40 = vadd.f32 %v3331_v41, %v2501_v42  ;;  %v3333_v46 = vadd.f32 %v4429_v37, %v2038_v45  ;;  %v2040_v48 = vpop.f32.mrb[19].mxu1  ;;  %v3234_v49 = vpop.f32.mrb[19].mxu0 }
 0x206   : > { %vm2676_vm10 = vcmp.ge.f32.partialorder %v3332_v40, 0.0  ;;  %v2726_v50 = vmul.f32 0.2, %v3332_v40  ;;  %v3334_v51 = vadd.f32 %v3333_v46, %v2504_v47 }
 0x208   : > { %v2776_v52 = vsel %vm2676_vm10, %v3332_v40, %v2726_v50  ;;  %vm2677_vm11 = vcmp.ge.f32.partialorder %v3334_v51, 0.0  ;;  %v2727_v53 = vmul.f32 0.2, %v3334_v51 }
 0x209   : > { %2826 = vst [vmem:[%s4437_s24 + $0x40] sm:$0xff] %v2776_v52  ;;  %v2043_v54 = vpop.f32.mrb[20].mxu1  ;;  %v2509_v57 = vpop.f32.mrb[20].mxu0 }
 0x20a   : > { %v2777_v55 = vsel %vm2677_vm11, %v3334_v51, %v2727_v53  ;;  %v3335_v56 = vadd.f32 %v4429_v37, %v2043_v54  ;;  %v2045_v58 = vpop.f32.mrb[21].mxu1  ;;  %v3237_v59 = vpop.f32.mrb[21].mxu0 }
 0x20b   : > { %2827 = vst [vmem:[%s4437_s24 + $0x48] sm:$0xff] %v2777_v55  ;;  %v2046_v60 = vpop.f32.mrb[22].mxu1  ;;  %v2512_v63 = vpop.f32.mrb[22].mxu0 }
 0x20c   : > { %v3336_v61 = vadd.f32 %v3335_v56, %v2509_v57  ;;  %v3337_v62 = vadd.f32 %v4429_v37, %v2046_v60  ;;  %v2048_v0 = vpop.f32.mrb[23].mxu1  ;;  %v3238_v2 = vpop.f32.mrb[23].mxu0 }
 0x20e   : > { %vm2678_vm12 = vcmp.ge.f32.partialorder %v3336_v61, 0.0  ;;  %v2728_v3 = vmul.f32 0.2, %v3336_v61  ;;  %v3338_v4 = vadd.f32 %v3337_v62, %v2512_v63 }
 0x210   : > { %v2778_v5 = vsel %vm2678_vm12, %v3336_v61, %v2728_v3  ;;  %vm2679_vm13 = vcmp.ge.f32.partialorder %v3338_v4, 0.0  ;;  %v2729_v6 = vmul.f32 0.2, %v3338_v4 }
 0x211   : > { %2828 = vst [vmem:[%s4437_s24 + $0x50] sm:$0xff] %v2778_v5  ;;  %v2051_v7 = vpop.f32.mrb[24].mxu1  ;;  %v2517_v10 = vpop.f32.mrb[24].mxu0 }
 0x212   : > { %v2779_v8 = vsel %vm2679_vm13, %v3338_v4, %v2729_v6  ;;  %v3339_v9 = vadd.f32 %v4429_v37, %v2051_v7  ;;  %v2053_v11 = vpop.f32.mrb[25].mxu1  ;;  %v3241_v12 = vpop.f32.mrb[25].mxu0 }
 0x213   : > { %2829 = vst [vmem:[%s4437_s24 + $0x58] sm:$0xff] %v2779_v8  ;;  %v2054_v13 = vpop.f32.mrb[26].mxu1  ;;  %v2520_v16 = vpop.f32.mrb[26].mxu0 }
 0x214   : > { %v3340_v14 = vadd.f32 %v3339_v9, %v2517_v10  ;;  %v3341_v15 = vadd.f32 %v4429_v37, %v2054_v13  ;;  %v2056_v17 = vpop.f32.mrb[27].mxu1  ;;  %v3242_v18 = vpop.f32.mrb[27].mxu0 }
 0x216   : > { %vm2680_vm14 = vcmp.ge.f32.partialorder %v3340_v14, 0.0  ;;  %v2730_v19 = vmul.f32 0.2, %v3340_v14  ;;  %v3342_v20 = vadd.f32 %v3341_v15, %v2520_v16 }
 0x218   : > { %v2780_v21 = vsel %vm2680_vm14, %v3340_v14, %v2730_v19  ;;  %vm2681_vm15 = vcmp.ge.f32.partialorder %v3342_v20, 0.0  ;;  %v2731_v22 = vmul.f32 0.2, %v3342_v20 }
 0x219   : > { %2830 = vst [vmem:[%s4437_s24 + $0x60] sm:$0xff] %v2780_v21  ;;  %v2059_v23 = vpop.f32.mrb[28].mxu1  ;;  %v2525_v26 = vpop.f32.mrb[28].mxu0 }
 0x21a   : > { %v2781_v24 = vsel %vm2681_vm15, %v3342_v20, %v2731_v22  ;;  %v3343_v25 = vadd.f32 %v4429_v37, %v2059_v23  ;;  %v2061_v27 = vpop.f32.mrb[29].mxu1  ;;  %v3245_v28 = vpop.f32.mrb[29].mxu0 }
 0x21b   : > { %2831 = vst [vmem:[%s4437_s24 + $0x68] sm:$0xff] %v2781_v24  ;;  %v2062_v29 = vpop.f32.mrb[30].mxu1  ;;  %v2528_v31 = vpop.f32.mrb[30].mxu0 }
 0x21c   : > { %v3344_v30 = vadd.f32 %v3343_v25, %v2525_v26  ;;  %v3345_v1 = vadd.f32 %v4429_v37, %v2062_v29  ;;  %v2064_v32 = vpop.f32.mrb[31].mxu1  ;;  %v3246_v33 = vpop.f32.mrb[31].mxu0 }
 0x21e   : > { %vm2682_vm0 = vcmp.ge.f32.partialorder %v3344_v30, 0.0  ;;  %v2732_v34 = vmul.f32 0.2, %v3344_v30  ;;  %v3346_v35 = vadd.f32 %v3345_v1, %v2528_v31 }
 0x220   : > { %v2782_v36 = vsel %vm2682_vm0, %v3344_v30, %v2732_v34  ;;  %vm2683_vm1 = vcmp.ge.f32.partialorder %v3346_v35, 0.0  ;;  %v2733_v38 = vmul.f32 0.2, %v3346_v35 }
 0x221   : > { %2832 = vst [vmem:[%s4437_s24 + $0x70] sm:$0xff] %v2782_v36  ;;  %v2067_v39 = vpop.f32.mrb[32].mxu1  ;;  %v2533_v43 = vpop.f32.mrb[32].mxu0 }
 0x222   : > { %v2783_v41 = vsel %vm2683_vm1, %v3346_v35, %v2733_v38  ;;  %v3347_v42 = vadd.f32 %v4429_v37, %v2067_v39  ;;  %v2069_v44 = vpop.f32.mrb[33].mxu1  ;;  %v3249_v45 = vpop.f32.mrb[33].mxu0 }
 0x223   : > { %2833 = vst [vmem:[%s4437_s24 + $0x78] sm:$0xff] %v2783_v41  ;;  %v2070_v40 = vpop.f32.mrb[34].mxu1  ;;  %v2536_v48 = vpop.f32.mrb[34].mxu0 }
 0x224   : > { %v3348_v46 = vadd.f32 %v3347_v42, %v2533_v43  ;;  %v3349_v47 = vadd.f32 %v4429_v37, %v2070_v40  ;;  %v2072_v49 = vpop.f32.mrb[35].mxu1  ;;  %v3250_v50 = vpop.f32.mrb[35].mxu0 }
 0x226   : > { %vm2684_vm2 = vcmp.ge.f32.partialorder %v3348_v46, 0.0  ;;  %v2734_v51 = vmul.f32 0.2, %v3348_v46  ;;  %v3350_v52 = vadd.f32 %v3349_v47, %v2536_v48 }
 0x228   : > { %v2784_v53 = vsel %vm2684_vm2, %v3348_v46, %v2734_v51  ;;  %vm2685_vm3 = vcmp.ge.f32.partialorder %v3350_v52, 0.0  ;;  %v2735_v54 = vmul.f32 0.2, %v3350_v52 }
 0x229   : > { %2834 = vst [vmem:[%s4437_s24 + $0x80] sm:$0xff] %v2784_v53  ;;  %v2075_v55 = vpop.f32.mrb[36].mxu1  ;;  %v2541_v58 = vpop.f32.mrb[36].mxu0 }
 0x22a   : > { %v2785_v56 = vsel %vm2685_vm3, %v3350_v52, %v2735_v54  ;;  %v3351_v57 = vadd.f32 %v4429_v37, %v2075_v55  ;;  %v2077_v59 = vpop.f32.mrb[37].mxu1  ;;  %v3253_v60 = vpop.f32.mrb[37].mxu0 }
 0x22b   : > { %2835 = vst [vmem:[%s4437_s24 + $0x88] sm:$0xff] %v2785_v56  ;;  %v2078_v61 = vpop.f32.mrb[38].mxu1  ;;  %v2544_v0 = vpop.f32.mrb[38].mxu0 }
 0x22c   : > { %v3352_v62 = vadd.f32 %v3351_v57, %v2541_v58  ;;  %v3353_v63 = vadd.f32 %v4429_v37, %v2078_v61  ;;  %v2080_v2 = vpop.f32.mrb[39].mxu1  ;;  %v3254_v3 = vpop.f32.mrb[39].mxu0 }
 0x22e   : > { %vm2686_vm4 = vcmp.ge.f32.partialorder %v3352_v62, 0.0  ;;  %v2736_v4 = vmul.f32 0.2, %v3352_v62  ;;  %v3354_v5 = vadd.f32 %v3353_v63, %v2544_v0 }
 0x230   : > { %v2786_v6 = vsel %vm2686_vm4, %v3352_v62, %v2736_v4  ;;  %vm2687_vm5 = vcmp.ge.f32.partialorder %v3354_v5, 0.0  ;;  %v2737_v7 = vmul.f32 0.2, %v3354_v5 }
 0x231   : > { %2836 = vst [vmem:[%s4437_s24 + $0x90] sm:$0xff] %v2786_v6  ;;  %v2083_v8 = vpop.f32.mrb[40].mxu1  ;;  %v2549_v11 = vpop.f32.mrb[40].mxu0 }
 0x232   : > { %v2787_v9 = vsel %vm2687_vm5, %v3354_v5, %v2737_v7  ;;  %v3355_v10 = vadd.f32 %v4429_v37, %v2083_v8  ;;  %v2085_v12 = vpop.f32.mrb[41].mxu1  ;;  %v3257_v13 = vpop.f32.mrb[41].mxu0 }
 0x233   : > { %2837 = vst [vmem:[%s4437_s24 + $0x98] sm:$0xff] %v2787_v9  ;;  %v2086_v14 = vpop.f32.mrb[42].mxu1  ;;  %v2552_v17 = vpop.f32.mrb[42].mxu0 }
 0x234   : > { %v3356_v15 = vadd.f32 %v3355_v10, %v2549_v11  ;;  %v3357_v16 = vadd.f32 %v4429_v37, %v2086_v14  ;;  %v2088_v18 = vpop.f32.mrb[43].mxu1  ;;  %v3258_v19 = vpop.f32.mrb[43].mxu0 }
 0x236   : > { %vm2688_vm6 = vcmp.ge.f32.partialorder %v3356_v15, 0.0  ;;  %v2738_v20 = vmul.f32 0.2, %v3356_v15  ;;  %v3358_v21 = vadd.f32 %v3357_v16, %v2552_v17 }
 0x238   : > { %v2788_v22 = vsel %vm2688_vm6, %v3356_v15, %v2738_v20  ;;  %vm2689_vm7 = vcmp.ge.f32.partialorder %v3358_v21, 0.0  ;;  %v2739_v23 = vmul.f32 0.2, %v3358_v21 }
 0x239   : > { %2838 = vst [vmem:[%s4437_s24 + $0xa0] sm:$0xff] %v2788_v22  ;;  %v2091_v24 = vpop.f32.mrb[44].mxu1  ;;  %v2557_v27 = vpop.f32.mrb[44].mxu0 }
 0x23a   : > { %v2789_v25 = vsel %vm2689_vm7, %v3358_v21, %v2739_v23  ;;  %v3359_v26 = vadd.f32 %v4429_v37, %v2091_v24  ;;  %v2093_v28 = vpop.f32.mrb[45].mxu1  ;;  %v3261_v29 = vpop.f32.mrb[45].mxu0 }
 0x23b   : > { %2839 = vst [vmem:[%s4437_s24 + $0xa8] sm:$0xff] %v2789_v25  ;;  %v2094_v30 = vpop.f32.mrb[46].mxu1  ;;  %v2560_v32 = vpop.f32.mrb[46].mxu0 }
 0x23c   : > { %v3360_v1 = vadd.f32 %v3359_v26, %v2557_v27  ;;  %v3361_v31 = vadd.f32 %v4429_v37, %v2094_v30  ;;  %v2096_v33 = vpop.f32.mrb[47].mxu1  ;;  %v3262_v34 = vpop.f32.mrb[47].mxu0 }
 0x23e   : > { %vm2690_vm8 = vcmp.ge.f32.partialorder %v3360_v1, 0.0  ;;  %v2740_v35 = vmul.f32 0.2, %v3360_v1  ;;  %v3362_v36 = vadd.f32 %v3361_v31, %v2560_v32 }
 0x240   : > { %v2790_v38 = vsel %vm2690_vm8, %v3360_v1, %v2740_v35  ;;  %vm2691_vm9 = vcmp.ge.f32.partialorder %v3362_v36, 0.0  ;;  %v2741_v39 = vmul.f32 0.2, %v3362_v36 }
 0x241   : > { %2840 = vst [vmem:[%s4437_s24 + $0xb0] sm:$0xff] %v2790_v38  ;;  %v2099_v41 = vpop.f32.mrb[48].mxu1  ;;  %v2565_v44 = vpop.f32.mrb[48].mxu0 }
 0x242   : > { %v2791_v42 = vsel %vm2691_vm9, %v3362_v36, %v2741_v39  ;;  %v3363_v43 = vadd.f32 %v4429_v37, %v2099_v41  ;;  %v2101_v45 = vpop.f32.mrb[49].mxu1  ;;  %v3265_v40 = vpop.f32.mrb[49].mxu0 }
 0x243   : > { %2841 = vst [vmem:[%s4437_s24 + $0xb8] sm:$0xff] %v2791_v42  ;;  %v2102_v46 = vpop.f32.mrb[50].mxu1  ;;  %v2568_v49 = vpop.f32.mrb[50].mxu0 }
 0x244   : > { %v3364_v47 = vadd.f32 %v3363_v43, %v2565_v44  ;;  %v3365_v48 = vadd.f32 %v4429_v37, %v2102_v46  ;;  %v2104_v50 = vpop.f32.mrb[51].mxu1  ;;  %v3266_v51 = vpop.f32.mrb[51].mxu0 }
 0x246   : > { %vm2692_vm10 = vcmp.ge.f32.partialorder %v3364_v47, 0.0  ;;  %v2742_v52 = vmul.f32 0.2, %v3364_v47  ;;  %v3366_v53 = vadd.f32 %v3365_v48, %v2568_v49 }
 0x248   : > { %v2792_v54 = vsel %vm2692_vm10, %v3364_v47, %v2742_v52  ;;  %vm2693_vm11 = vcmp.ge.f32.partialorder %v3366_v53, 0.0  ;;  %v2743_v55 = vmul.f32 0.2, %v3366_v53 }
 0x249   : > { %2842 = vst [vmem:[%s4437_s24 + $0xc0] sm:$0xff] %v2792_v54  ;;  %v2107_v56 = vpop.f32.mrb[52].mxu1  ;;  %v2573_v59 = vpop.f32.mrb[52].mxu0 }
 0x24a   : > { %v2793_v57 = vsel %vm2693_vm11, %v3366_v53, %v2743_v55  ;;  %v3367_v58 = vadd.f32 %v4429_v37, %v2107_v56  ;;  %v2109_v60 = vpop.f32.mrb[53].mxu1  ;;  %v3269_v61 = vpop.f32.mrb[53].mxu0 }
 0x24b   : > { %2843 = vst [vmem:[%s4437_s24 + $0xc8] sm:$0xff] %v2793_v57  ;;  %v2110_v62 = vpop.f32.mrb[54].mxu1  ;;  %v2576_v2 = vpop.f32.mrb[54].mxu0 }
 0x24c   : > { %v3368_v63 = vadd.f32 %v3367_v58, %v2573_v59  ;;  %v3369_v0 = vadd.f32 %v4429_v37, %v2110_v62  ;;  %v2112_v3 = vpop.f32.mrb[55].mxu1  ;;  %v3270_v4 = vpop.f32.mrb[55].mxu0 }
 0x24e   : > { %vm2694_vm12 = vcmp.ge.f32.partialorder %v3368_v63, 0.0  ;;  %v2744_v5 = vmul.f32 0.2, %v3368_v63  ;;  %v3370_v6 = vadd.f32 %v3369_v0, %v2576_v2 }
 0x250   : > { %v2794_v7 = vsel %vm2694_vm12, %v3368_v63, %v2744_v5  ;;  %vm2695_vm13 = vcmp.ge.f32.partialorder %v3370_v6, 0.0  ;;  %v2745_v8 = vmul.f32 0.2, %v3370_v6 }
 0x251   : > { %2844 = vst [vmem:[%s4437_s24 + $0xd0] sm:$0xff] %v2794_v7  ;;  %v2115_v9 = vpop.f32.mrb[56].mxu1  ;;  %v2581_v12 = vpop.f32.mrb[56].mxu0 }
 0x252   : > { %v2795_v10 = vsel %vm2695_vm13, %v3370_v6, %v2745_v8  ;;  %v3371_v11 = vadd.f32 %v4429_v37, %v2115_v9  ;;  %v2117_v13 = vpop.f32.mrb[57].mxu1  ;;  %v3273_v14 = vpop.f32.mrb[57].mxu0 }
 0x253   : > { %2845 = vst [vmem:[%s4437_s24 + $0xd8] sm:$0xff] %v2795_v10  ;;  %v2118_v15 = vpop.f32.mrb[58].mxu1  ;;  %v2584_v18 = vpop.f32.mrb[58].mxu0 }
 0x254   : > { %v3372_v16 = vadd.f32 %v3371_v11, %v2581_v12  ;;  %v3373_v17 = vadd.f32 %v4429_v37, %v2118_v15  ;;  %v2120_v19 = vpop.f32.mrb[59].mxu1  ;;  %v3274_v20 = vpop.f32.mrb[59].mxu0 }
 0x256   : > { %vm2696_vm14 = vcmp.ge.f32.partialorder %v3372_v16, 0.0  ;;  %v2746_v21 = vmul.f32 0.2, %v3372_v16  ;;  %v3374_v22 = vadd.f32 %v3373_v17, %v2584_v18 }
 0x258   : > { %v2796_v23 = vsel %vm2696_vm14, %v3372_v16, %v2746_v21  ;;  %vm2697_vm15 = vcmp.ge.f32.partialorder %v3374_v22, 0.0  ;;  %v2747_v24 = vmul.f32 0.2, %v3374_v22 }
 0x259   : > { %2846 = vst [vmem:[%s4437_s24 + $0xe0] sm:$0xff] %v2796_v23  ;;  %v2123_v25 = vpop.f32.mrb[60].mxu1  ;;  %v2589_v28 = vpop.f32.mrb[60].mxu0 }
 0x25a   : > { %v2797_v26 = vsel %vm2697_vm15, %v3374_v22, %v2747_v24  ;;  %v3375_v27 = vadd.f32 %v4429_v37, %v2123_v25  ;;  %v2125_v29 = vpop.f32.mrb[61].mxu1  ;;  %v3277_v30 = vpop.f32.mrb[61].mxu0 }
 0x25b   : > { %2847 = vst [vmem:[%s4437_s24 + $0xe8] sm:$0xff] %v2797_v26  ;;  %v2126_v1 = vpop.f32.mrb[62].mxu1  ;;  %v2592_v33 = vpop.f32.mrb[62].mxu0 }
 0x25c   : > { %v3376_v31 = vadd.f32 %v3375_v27, %v2589_v28  ;;  %v3377_v32 = vadd.f32 %v4429_v37, %v2126_v1  ;;  %v2128_v34 = vpop.f32.mrb[63].mxu1  ;;  %v3278_v35 = vpop.f32.mrb[63].mxu0 }
 0x25e   : > { %vm2698_vm0 = vcmp.ge.f32.partialorder %v3376_v31, 0.0  ;;  %v2748_v36 = vmul.f32 0.2, %v3376_v31  ;;  %v3378_v38 = vadd.f32 %v3377_v32, %v2592_v33 }
 0x260   : > { %v2798_v39 = vsel %vm2698_vm0, %v3376_v31, %v2748_v36  ;;  %vm2699_vm1 = vcmp.ge.f32.partialorder %v3378_v38, 0.0  ;;  %v2749_v41 = vmul.f32 0.2, %v3378_v38 }
 0x261   : > { %2848 = vst [vmem:[%s4437_s24 + $0xf0] sm:$0xff] %v2798_v39  ;;  %v2131_v42 = vpop.f32.mrb[64].mxu1  ;;  %v2597_v45 = vpop.f32.mrb[64].mxu0 }
 0x262   : > { %v2799_v43 = vsel %vm2699_vm1, %v3378_v38, %v2749_v41  ;;  %v3379_v44 = vadd.f32 %v4429_v37, %v2131_v42  ;;  %v2133_v40 = vpop.f32.mrb[65].mxu1  ;;  %v3281_v46 = vpop.f32.mrb[65].mxu0 }
 0x263   : > { %2849 = vst [vmem:[%s4437_s24 + $0xf8] sm:$0xff] %v2799_v43  ;;  %v2134_v47 = vpop.f32.mrb[66].mxu1  ;;  %v2600_v50 = vpop.f32.mrb[66].mxu0 }
 0x264   : > { %v3380_v48 = vadd.f32 %v3379_v44, %v2597_v45  ;;  %v3381_v49 = vadd.f32 %v4429_v37, %v2134_v47  ;;  %v2136_v51 = vpop.f32.mrb[67].mxu1  ;;  %v3282_v52 = vpop.f32.mrb[67].mxu0 }
 0x266   : > { %vm2700_vm2 = vcmp.ge.f32.partialorder %v3380_v48, 0.0  ;;  %v2750_v53 = vmul.f32 0.2, %v3380_v48  ;;  %v3382_v54 = vadd.f32 %v3381_v49, %v2600_v50 }
 0x268   : > { %v2800_v55 = vsel %vm2700_vm2, %v3380_v48, %v2750_v53  ;;  %vm2701_vm3 = vcmp.ge.f32.partialorder %v3382_v54, 0.0  ;;  %v2751_v56 = vmul.f32 0.2, %v3382_v54 }
 0x269   : > { %2850 = vst [vmem:[%s4437_s24 + $0x100] sm:$0xff] %v2800_v55  ;;  %v2139_v57 = vpop.f32.mrb[68].mxu1  ;;  %v2605_v60 = vpop.f32.mrb[68].mxu0 }
 0x26a   : > { %v2801_v58 = vsel %vm2701_vm3, %v3382_v54, %v2751_v56  ;;  %v3383_v59 = vadd.f32 %v4429_v37, %v2139_v57  ;;  %v2141_v61 = vpop.f32.mrb[69].mxu1  ;;  %v3285_v62 = vpop.f32.mrb[69].mxu0 }
 0x26b   : > { %2851 = vst [vmem:[%s4437_s24 + $0x108] sm:$0xff] %v2801_v58  ;;  %v2142_v63 = vpop.f32.mrb[70].mxu1  ;;  %v2608_v3 = vpop.f32.mrb[70].mxu0 }
 0x26c   : > { %v3384_v0 = vadd.f32 %v3383_v59, %v2605_v60  ;;  %v3385_v2 = vadd.f32 %v4429_v37, %v2142_v63  ;;  %v2144_v4 = vpop.f32.mrb[71].mxu1  ;;  %v3286_v5 = vpop.f32.mrb[71].mxu0 }
 0x26e   : > { %vm2702_vm4 = vcmp.ge.f32.partialorder %v3384_v0, 0.0  ;;  %v2752_v6 = vmul.f32 0.2, %v3384_v0  ;;  %v3386_v7 = vadd.f32 %v3385_v2, %v2608_v3 }
 0x270   : > { %v2802_v8 = vsel %vm2702_vm4, %v3384_v0, %v2752_v6  ;;  %vm2703_vm5 = vcmp.ge.f32.partialorder %v3386_v7, 0.0  ;;  %v2753_v9 = vmul.f32 0.2, %v3386_v7 }
 0x271   : > { %2852 = vst [vmem:[%s4437_s24 + $0x110] sm:$0xff] %v2802_v8  ;;  %v2147_v10 = vpop.f32.mrb[72].mxu1  ;;  %v2613_v13 = vpop.f32.mrb[72].mxu0 }
 0x272   : > { %v2803_v11 = vsel %vm2703_vm5, %v3386_v7, %v2753_v9  ;;  %v3387_v12 = vadd.f32 %v4429_v37, %v2147_v10  ;;  %v2149_v14 = vpop.f32.mrb[73].mxu1  ;;  %v3289_v15 = vpop.f32.mrb[73].mxu0 }
 0x273   : > { %2853 = vst [vmem:[%s4437_s24 + $0x118] sm:$0xff] %v2803_v11  ;;  %v2150_v16 = vpop.f32.mrb[74].mxu1  ;;  %v2616_v19 = vpop.f32.mrb[74].mxu0 }
 0x274   : > { %v3388_v17 = vadd.f32 %v3387_v12, %v2613_v13  ;;  %v3389_v18 = vadd.f32 %v4429_v37, %v2150_v16  ;;  %v2152_v20 = vpop.f32.mrb[75].mxu1  ;;  %v3290_v21 = vpop.f32.mrb[75].mxu0 }
 0x276   : > { %vm2704_vm6 = vcmp.ge.f32.partialorder %v3388_v17, 0.0  ;;  %v2754_v22 = vmul.f32 0.2, %v3388_v17  ;;  %v3390_v23 = vadd.f32 %v3389_v18, %v2616_v19 }
 0x278   : > { %v2804_v24 = vsel %vm2704_vm6, %v3388_v17, %v2754_v22  ;;  %vm2705_vm7 = vcmp.ge.f32.partialorder %v3390_v23, 0.0  ;;  %v2755_v25 = vmul.f32 0.2, %v3390_v23 }
 0x279   : > { %2854 = vst [vmem:[%s4437_s24 + $0x120] sm:$0xff] %v2804_v24  ;;  %v2155_v26 = vpop.f32.mrb[76].mxu1  ;;  %v2621_v29 = vpop.f32.mrb[76].mxu0 }
 0x27a   : > { %v2805_v27 = vsel %vm2705_vm7, %v3390_v23, %v2755_v25  ;;  %v3391_v28 = vadd.f32 %v4429_v37, %v2155_v26  ;;  %v2157_v30 = vpop.f32.mrb[77].mxu1  ;;  %v3293_v1 = vpop.f32.mrb[77].mxu0 }
 0x27b   : > { %2855 = vst [vmem:[%s4437_s24 + $0x128] sm:$0xff] %v2805_v27  ;;  %v2158_v31 = vpop.f32.mrb[78].mxu1  ;;  %v2624_v34 = vpop.f32.mrb[78].mxu0 }
 0x27c   : > { %v3392_v32 = vadd.f32 %v3391_v28, %v2621_v29  ;;  %v3393_v33 = vadd.f32 %v4429_v37, %v2158_v31  ;;  %v2160_v35 = vpop.f32.mrb[79].mxu1  ;;  %v3294_v36 = vpop.f32.mrb[79].mxu0 }
 0x27e   : > { %vm2706_vm8 = vcmp.ge.f32.partialorder %v3392_v32, 0.0  ;;  %v2756_v38 = vmul.f32 0.2, %v3392_v32  ;;  %v3394_v39 = vadd.f32 %v3393_v33, %v2624_v34 }
 0x280   : > { %v2806_v41 = vsel %vm2706_vm8, %v3392_v32, %v2756_v38  ;;  %vm2707_vm9 = vcmp.ge.f32.partialorder %v3394_v39, 0.0  ;;  %v2757_v42 = vmul.f32 0.2, %v3394_v39 }
 0x281   : > { %2856 = vst [vmem:[%s4437_s24 + $0x130] sm:$0xff] %v2806_v41  ;;  %v2163_v43 = vpop.f32.mrb[80].mxu1  ;;  %v2629_v40 = vpop.f32.mrb[80].mxu0 }
 0x282   : > { %v2807_v44 = vsel %vm2707_vm9, %v3394_v39, %v2757_v42  ;;  %v3395_v45 = vadd.f32 %v4429_v37, %v2163_v43  ;;  %v2165_v46 = vpop.f32.mrb[81].mxu1  ;;  %v3297_v47 = vpop.f32.mrb[81].mxu0 }
 0x283   : > { %2857 = vst [vmem:[%s4437_s24 + $0x138] sm:$0xff] %v2807_v44  ;;  %v2166_v48 = vpop.f32.mrb[82].mxu1  ;;  %v2632_v51 = vpop.f32.mrb[82].mxu0 }
 0x284   : > { %v3396_v49 = vadd.f32 %v3395_v45, %v2629_v40  ;;  %v3397_v50 = vadd.f32 %v4429_v37, %v2166_v48  ;;  %v2168_v52 = vpop.f32.mrb[83].mxu1  ;;  %v3298_v53 = vpop.f32.mrb[83].mxu0 }
 0x286   : > { %vm2708_vm10 = vcmp.ge.f32.partialorder %v3396_v49, 0.0  ;;  %v2758_v54 = vmul.f32 0.2, %v3396_v49  ;;  %v3398_v55 = vadd.f32 %v3397_v50, %v2632_v51 }
 0x288   : > { %v2808_v56 = vsel %vm2708_vm10, %v3396_v49, %v2758_v54  ;;  %vm2709_vm11 = vcmp.ge.f32.partialorder %v3398_v55, 0.0  ;;  %v2759_v57 = vmul.f32 0.2, %v3398_v55 }
 0x289   : > { %2858 = vst [vmem:[%s4437_s24 + $0x140] sm:$0xff] %v2808_v56  ;;  %v2171_v58 = vpop.f32.mrb[84].mxu1  ;;  %v2637_v61 = vpop.f32.mrb[84].mxu0 }
 0x28a   : > { %v2809_v59 = vsel %vm2709_vm11, %v3398_v55, %v2759_v57  ;;  %v3399_v60 = vadd.f32 %v4429_v37, %v2171_v58  ;;  %v2173_v62 = vpop.f32.mrb[85].mxu1  ;;  %v3301_v63 = vpop.f32.mrb[85].mxu0 }
 0x28b   : > { %2859 = vst [vmem:[%s4437_s24 + $0x148] sm:$0xff] %v2809_v59  ;;  %v2174_v0 = vpop.f32.mrb[86].mxu1  ;;  %v2640_v4 = vpop.f32.mrb[86].mxu0 }
 0x28c   : > { %v3400_v2 = vadd.f32 %v3399_v60, %v2637_v61  ;;  %v3401_v3 = vadd.f32 %v4429_v37, %v2174_v0  ;;  %v2176_v5 = vpop.f32.mrb[87].mxu1  ;;  %v3302_v6 = vpop.f32.mrb[87].mxu0 }
 0x28e   : > { %vm2710_vm12 = vcmp.ge.f32.partialorder %v3400_v2, 0.0  ;;  %v2760_v7 = vmul.f32 0.2, %v3400_v2  ;;  %v3402_v8 = vadd.f32 %v3401_v3, %v2640_v4 }
 0x290   : > { %v2810_v9 = vsel %vm2710_vm12, %v3400_v2, %v2760_v7  ;;  %vm2711_vm13 = vcmp.ge.f32.partialorder %v3402_v8, 0.0  ;;  %v2761_v10 = vmul.f32 0.2, %v3402_v8 }
 0x291   : > { %2860 = vst [vmem:[%s4437_s24 + $0x150] sm:$0xff] %v2810_v9  ;;  %v2179_v11 = vpop.f32.mrb[88].mxu1  ;;  %v2645_v14 = vpop.f32.mrb[88].mxu0 }
 0x292   : > { %v2811_v12 = vsel %vm2711_vm13, %v3402_v8, %v2761_v10  ;;  %v3403_v13 = vadd.f32 %v4429_v37, %v2179_v11  ;;  %v2181_v15 = vpop.f32.mrb[89].mxu1  ;;  %v3305_v16 = vpop.f32.mrb[89].mxu0 }
 0x293   : > { %2861 = vst [vmem:[%s4437_s24 + $0x158] sm:$0xff] %v2811_v12  ;;  %v2182_v17 = vpop.f32.mrb[90].mxu1  ;;  %v2648_v20 = vpop.f32.mrb[90].mxu0 }
 0x294   : > { %v3404_v18 = vadd.f32 %v3403_v13, %v2645_v14  ;;  %v3405_v19 = vadd.f32 %v4429_v37, %v2182_v17  ;;  %v2184_v21 = vpop.f32.mrb[91].mxu1  ;;  %v3306_v22 = vpop.f32.mrb[91].mxu0 }
 0x296   : > { %vm2712_vm14 = vcmp.ge.f32.partialorder %v3404_v18, 0.0  ;;  %v2762_v23 = vmul.f32 0.2, %v3404_v18  ;;  %v3406_v24 = vadd.f32 %v3405_v19, %v2648_v20 }
 0x298   : > { %v2812_v25 = vsel %vm2712_vm14, %v3404_v18, %v2762_v23  ;;  %vm2713_vm15 = vcmp.ge.f32.partialorder %v3406_v24, 0.0  ;;  %v2763_v26 = vmul.f32 0.2, %v3406_v24 }
 0x299   : > { %2862 = vst [vmem:[%s4437_s24 + $0x160] sm:$0xff] %v2812_v25  ;;  %v2187_v27 = vpop.f32.mrb[92].mxu1  ;;  %v2653_v30 = vpop.f32.mrb[92].mxu0 }
 0x29a   : > { %v2813_v28 = vsel %vm2713_vm15, %v3406_v24, %v2763_v26  ;;  %v3407_v29 = vadd.f32 %v4429_v37, %v2187_v27  ;;  %v2189_v1 = vpop.f32.mrb[93].mxu1  ;;  %v3309_v31 = vpop.f32.mrb[93].mxu0 }
 0x29b   : > { %2863 = vst [vmem:[%s4437_s24 + $0x168] sm:$0xff] %v2813_v28  ;;  %v2190_v32 = vpop.f32.mrb[94].mxu1  ;;  %v2656_v35 = vpop.f32.mrb[94].mxu0 }
 0x29c   : > { %v3408_v33 = vadd.f32 %v3407_v29, %v2653_v30  ;;  %v3409_v34 = vadd.f32 %v4429_v37, %v2190_v32  ;;  %v2192_v36 = vpop.f32.mrb[95].mxu1  ;;  %v3310_v38 = vpop.f32.mrb[95].mxu0 }
 0x29e   : > { %vm2714_vm0 = vcmp.ge.f32.partialorder %v3408_v33, 0.0  ;;  %v2764_v39 = vmul.f32 0.2, %v3408_v33  ;;  %v3410_v41 = vadd.f32 %v3409_v34, %v2656_v35 }
 0x2a0   : > { %v2814_v42 = vsel %vm2714_vm0, %v3408_v33, %v2764_v39  ;;  %vm2715_vm1 = vcmp.ge.f32.partialorder %v3410_v41, 0.0  ;;  %v2765_v43 = vmul.f32 0.2, %v3410_v41 }
 0x2a1   : > { %2864 = vst [vmem:[%s4437_s24 + $0x170] sm:$0xff] %v2814_v42  ;;  %v2195_v44 = vpop.f32.mrb[96].mxu1  ;;  %v2661_v46 = vpop.f32.mrb[96].mxu0 }
 0x2a2   : > { %v2815_v45 = vsel %vm2715_vm1, %v3410_v41, %v2765_v43  ;;  %v3411_v40 = vadd.f32 %v4429_v37, %v2195_v44  ;;  %v2197_v47 = vpop.f32.mrb[97].mxu1  ;;  %v3313_v48 = vpop.f32.mrb[97].mxu0 }
 0x2a3   : > { %2865 = vst [vmem:[%s4437_s24 + $0x178] sm:$0xff] %v2815_v45  ;;  %v2198_v49 = vpop.f32.mrb[98].mxu1  ;;  %v2664_v52 = vpop.f32.mrb[98].mxu0 }
 0x2a4   : > { %v3412_v50 = vadd.f32 %v3411_v40, %v2661_v46  ;;  %v3413_v51 = vadd.f32 %v4429_v37, %v2198_v49  ;;  %v2200_v53 = vpop.f32.mrb[99].mxu1  ;;  %v3314_v54 = vpop.f32.mrb[99].mxu0 }
 0x2a6   : > { %vm2716_vm2 = vcmp.ge.f32.partialorder %v3412_v50, 0.0  ;;  %v2766_v55 = vmul.f32 0.2, %v3412_v50  ;;  %v3414_v56 = vadd.f32 %v3413_v51, %v2664_v52 }
 0x2a8   : > { %v2816_v57 = vsel %vm2716_vm2, %v3412_v50, %v2766_v55  ;;  %vm2717_vm3 = vcmp.ge.f32.partialorder %v3414_v56, 0.0  ;;  %v2767_v58 = vmul.f32 0.2, %v3414_v56 }
 0x2a9   : > { %2866 = vst [vmem:[%s4437_s24 + $0x180] sm:$0xff] %v2816_v57 }
 0x2aa   : > { %v2817_v59 = vsel %vm2717_vm3, %v3414_v56, %v2767_v58 }
 0x2ab   : > { %2867 = vst [vmem:[%s4437_s24 + $0x188] sm:$0xff] %v2817_v59 }
 0x2ac PF: > { %s13_s12 = sadd.s32 1, %s3933_s12  }
 0x2ad   : > { %p10_p4 = scmp.ge.s32.totalorder %s13_s12, 4  }
 0x2af   :  { %12 = sbr.rel (!%p10_p4) target bundleno = 1 (0x1), region = 62 }

// kernel: tile.25
= control target key start
LH: loop header
LB: loop body
LE: loop exit
PB: predicated region body
PF: predicated region fallthrough
CT: control target
= control target key end

     0   :  { %s28_s0 = inlined_call_operand.vmem [shape: f32[8], index: 0, kind: input, shape index: {}]   ;;  %s29_s1 = inlined_call_operand.vmem [shape: f32[16,8], index: 1, kind: output, shape index: {}]  }
   0x1   :  { %v4_v0 = vld [vmem:[%s28_s0] ss:$0 sm:$0xff] }
   0x2   :  { %5 = vst [vmem:[%s29_s1] sm:$0xff] %v4_v0  ;;  %8 = vst [vmem:[%s29_s1 + $0x8] sm:$0xff] %v4_v0 }

// kernel: tile.26
= control target key start
LH: loop header
LB: loop body
LE: loop exit
PB: predicated region body
PF: predicated region fallthrough
CT: control target
= control target key end

     0   :  { %s131_s10 = smov 120   ;;  %s132_s11 = smov 104   ;;  %vm3_vm0 = vcmask 64512   ;;  %vm9_vm1 = vcmask 1048512   ;;  %vm15_vm2 = vcmask 982912   ;;  %vm21_vm3 = vcmask 917312   ;;  %s207_s0 = inlined_call_operand.vmem [shape: f32[16,8], index: 0, kind: input, shape index: {}]   ;;  %s208_s1 = inlined_call_operand.vmem [shape: f32[1,128], index: 1, kind: output, shape index: {}]  }
   0x1   :  { %v101_v0 = vld [vmem:[%s207_s0 + $0xf] sm:$0x1]   ;;  %v103_v1 = vld [vmem:[%s207_s0 + $0xd] sm:$0x1]   ;;  %v102_v2 = vld [vmem:[%s207_s0 + $0xe] sm:$0x1]  }
   0x2   :  { %7 = vrot.lane.b32.xlu0 %v101_v0, %s131_s10  ;;  %19 = vrot.lane.b32.xlu1 %v103_v1, %s132_s11  ;;  %v104_v3 = vld [vmem:[%s207_s0 + $0xc] sm:$0x1]   ;;  %s133_s16 = smov 112   ;;  %s134_s17 = smov 96   ;;  %v105_v4 = vld [vmem:[%s207_s0 + $0xb] sm:$0x1]  }
   0x3   :  { %v106_v5 = vld [vmem:[%s207_s0 + $0xa] sm:$0x1]   ;;  %v2_v6 = vld [vmem:[%s207_s0] sm:$0x1]   ;;  %s135_s24 = smov 88   ;;  %s136_s25 = smov 80  }
   0x4   :  { %4 = vst.msk [vmem:[#allocation0] sm:$0x1] %vm3_vm0, %v2_v6   ;;  %v107_v7 = vld [vmem:[%s207_s0 + $0x9] sm:$0x1]   ;;  %v108_v8 = vld [vmem:[%s207_s0 + $0x8] sm:$0x1]  }
   0x5   :  { %s137_s30 = smov 72   ;;  %s138_s2 = smov 64   ;;  %v109_v9 = vld [vmem:[%s207_s0 + $0x7] sm:$0x1]   ;;  %v110_v10 = vld [vmem:[%s207_s0 + $0x6] sm:$0x1]  }
   0x6   :  { %13 = vrot.lane.b32.xlu0 %v102_v2, %s133_s16  ;;  %25 = vrot.lane.b32.xlu1 %v104_v3, %s134_s17  ;;  %s139_s7 = smov 56   ;;  %s140_s8 = smov 48   ;;  %v111_v11 = vld [vmem:[%s207_s0 + $0x5] sm:$0x1]   ;;  %v112_v12 = vld [vmem:[%s207_s0 + $0x4] sm:$0x1]  }
   0x7   :  { %s141_s13 = smov 40   ;;  %s142_s14 = smov 32   ;;  %v113_v13 = vld [vmem:[%s207_s0 + $0x3] sm:$0x1]   ;;  %v114_v14 = vld [vmem:[%s207_s0 + $0x2] sm:$0x1]  }
   0x8   :  { %s143_s19 = smov 24   ;;  %s144_s20 = smov 16   ;;  %v115_v15 = vld [vmem:[%s207_s0 + $0x1] sm:$0x1]   ;;  %vm27_vm4 = vcmask 851712   ;;  %vm33_vm5 = vcmask 786112  }
   0x9   :  { %s145_s0 = smov 8   ;;  %vm39_vm6 = vcmask 720512   ;;  %vm45_vm7 = vcmask 654912   ;;  %vm51_vm8 = vcmask 589312   ;;  %vm57_vm9 = vcmask 523712  }
   0xa   :  { %31 = vrot.lane.b32.xlu0 %v105_v4, %s135_s24  ;;  %37 = vrot.lane.b32.xlu1 %v106_v5, %s136_s25  ;;  %vm63_vm10 = vcmask 458112   ;;  %vm69_vm11 = vcmask 392512   ;;  %vm75_vm12 = vcmask 326912   ;;  %vm81_vm13 = vcmask 261312  }
   0xb   :  { %vm87_vm14 = vcmask 195712   ;;  %vm93_vm15 = vcmask 130112  }
   0xe   :  { %43 = vrot.lane.b32.xlu0 %v107_v7, %s137_s30  ;;  %49 = vrot.lane.b32.xlu1 %v108_v8, %s138_s2 }
  0x12   :  { %55 = vrot.lane.b32.xlu0 %v109_v9, %s139_s7  ;;  %61 = vrot.lane.b32.xlu1 %v110_v10, %s140_s8 }
  0x16   :  { %67 = vrot.lane.b32.xlu0 %v111_v11, %s141_s13  ;;  %73 = vrot.lane.b32.xlu1 %v112_v12, %s142_s14 }
  0x1a   :  { %79 = vrot.lane.b32.xlu0 %v113_v13, %s143_s19  ;;  %85 = vrot.lane.b32.xlu1 %v114_v14, %s144_s20 }
  0x1e   :  { %91 = vrot.lane.b32.xlu0 %v115_v15, %s145_s0 }
  0x74   :  { %v8_v16 = vpop.permute.xlu0 %7   ;;  %v20_v17 = vpop.permute.xlu1 %19  }
  0x75   :  { %10 = vst.msk [vmem:[#allocation0] sm:$0x1] %vm9_vm1, %v8_v16  }
  0x78   :  { %v14_v18 = vpop.permute.xlu0 %13   ;;  %v26_v19 = vpop.permute.xlu1 %25  }
  0x79   :  { %16 = vst.msk [vmem:[#allocation0] sm:$0x1] %vm15_vm2, %v14_v18  }
  0x7a   :  { %22 = vst.msk [vmem:[#allocation0] sm:$0x1] %vm21_vm3, %v20_v17  }
  0x7b   :  { %28 = vst.msk [vmem:[#allocation0] sm:$0x1] %vm27_vm4, %v26_v19  }
  0x7c   :  { %v32_v20 = vpop.permute.xlu0 %31   ;;  %v38_v21 = vpop.permute.xlu1 %37  }
  0x7d   :  { %34 = vst.msk [vmem:[#allocation0] sm:$0x1] %vm33_vm5, %v32_v20  }
  0x7e   :  { %40 = vst.msk [vmem:[#allocation0] sm:$0x1] %vm39_vm6, %v38_v21  }
  0x80   :  { %v44_v22 = vpop.permute.xlu0 %43   ;;  %v50_v23 = vpop.permute.xlu1 %49  }
  0x81   :  { %46 = vst.msk [vmem:[#allocation0] sm:$0x1] %vm45_vm7, %v44_v22  }
  0x82   :  { %52 = vst.msk [vmem:[#allocation0] sm:$0x1] %vm51_vm8, %v50_v23  }
  0x84   :  { %v56_v24 = vpop.permute.xlu0 %55   ;;  %v62_v25 = vpop.permute.xlu1 %61  }
  0x85   :  { %58 = vst.msk [vmem:[#allocation0] sm:$0x1] %vm57_vm9, %v56_v24  }
  0x86   :  { %64 = vst.msk [vmem:[#allocation0] sm:$0x1] %vm63_vm10, %v62_v25  }
  0x88   :  { %v68_v26 = vpop.permute.xlu0 %67   ;;  %v74_v27 = vpop.permute.xlu1 %73  }
  0x89   :  { %70 = vst.msk [vmem:[#allocation0] sm:$0x1] %vm69_vm11, %v68_v26  }
  0x8a   :  { %76 = vst.msk [vmem:[#allocation0] sm:$0x1] %vm75_vm12, %v74_v27  }
  0x8c   :  { %v80_v28 = vpop.permute.xlu0 %79   ;;  %v86_v29 = vpop.permute.xlu1 %85  }
  0x8d   :  { %82 = vst.msk [vmem:[#allocation0] sm:$0x1] %vm81_vm13, %v80_v28  }
  0x8e   :  { %88 = vst.msk [vmem:[#allocation0] sm:$0x1] %vm87_vm14, %v86_v29  }
  0x90   :  { %v92_v30 = vpop.permute.xlu0 %91  }
  0x91   :  { %94 = vst.msk [vmem:[#allocation0] sm:$0x1] %vm93_vm15, %v92_v30  }
  0x98   :  { %v98_v31 = vld [vmem:[#allocation0] sm:$0x1] }
  0x99   :  { %100 = vst [vmem:[%s208_s1] sm:$0x1] %v98_v31 }

// kernel: _forward_impl.7
= control target key start
LH: loop header
LB: loop body
LE: loop exit
PB: predicated region body
PF: predicated region fallthrough
CT: control target
= control target key end

     0   :  { %s4508_s12 = smov 0   ;;  %s5336_s0 = inlined_call_operand.vmem [shape: bf16[416,1600], index: 0, kind: input, shape index: {}]   ;;  %s5337_s1 = inlined_call_operand.vmem [shape: bf16[1600,128], index: 1, kind: input, shape index: {}]   ;;  %s5338_s2 = inlined_call_operand.vmem [shape: f32[1,128], index: 2, kind: input, shape index: {}]   ;;  %s5339_s3 = inlined_call_operand.vmem [shape: f32[416,128], index: 3, kind: output, shape index: {}]  }
   0x1 LB: > { %s3171_s13 = sadd.s32 4294967295, %s4484_s12   ;;  %p3175_p0 = scmp.ge.s32.totalorder %s4484_s12, 1  ;;  %s4484_s12 = sphi %s4508_s12, %s13_s12  }
   0x2   : > { %p139_p1 = scmp.lt.s32.totalorder %s4484_s12, 3 }
   0x4   : > { %p140_p2 = pnand %p3175_p0, %p139_p1 }
   0x5   : > { %v4131_v0 = vld [vmem:[%s5337_s1 + $0x40] sm:$0xff] (!%p140_p2)   ;;  %s164_s16 = smul.u32 (!%p140_p2), 26, %s3171_s13  ;;  %v4133_v2 = vld [vmem:[%s5337_s1 + $0x48] sm:$0xff] (!%p140_p2)   ;;  %v4135_v4 = vld [vmem:[%s5337_s1 + $0x50] sm:$0xff] (!%p140_p2)   ;;  %vm4487_vm0 = vmmov (!%p140_p2), 0   ;;  %vm2012_vm1 = vcmask (!%p140_p2), 523264  }
   0x6   : > { %143 = sbr.rel (%p140_p2) target bundleno = 618 (0x26a), region = 32  ;;  %v4132_v1 = vld [vmem:[%s5337_s1] sm:$0xff] (!%p140_p2)   ;;  %3463 = vmatprep.subr.bf16.mxu0 (!%p140_p2), %v4131_v0  ;;  %4104 = vmatprep.subr.bf16.mxu1 (!%p140_p2), %v4131_v0  ;;  %v4134_v3 = vld [vmem:[%s5337_s1 + $0x8] sm:$0xff] (!%p140_p2)   ;;  %v4136_v5 = vld [vmem:[%s5337_s1 + $0x10] sm:$0xff] (!%p140_p2)  }
   0x7   : > { %p165_p3 = scmp.lt.s32.totalorder (!%p140_p2), %s164_s16, 51  ;;  %3464 = vmatpush3.bf16.msra.mxu0 (!%p140_p2), %v4132_v1  ;;  %4112 = vmatpush3.bf16.msra.mxu1 (!%p140_p2), %v4132_v1  ;;  %v4137_v6 = vld [vmem:[%s5337_s1 + $0x58] sm:$0xff] (!%p140_p2)   ;;  %v4139_v8 = vld [vmem:[%s5337_s1 + $0x60] sm:$0xff] (!%p140_p2)   ;;  %v4141_v10 = vld [vmem:[%s5337_s1 + $0x68] sm:$0xff] (!%p140_p2)  }
   0x8   : > { %3465 = vmatprep.subr.bf16.mxu0 (!%p140_p2), %v4133_v2  ;;  %4105 = vmatprep.subr.bf16.mxu1 (!%p140_p2), %v4133_v2  ;;  %v4138_v7 = vld [vmem:[%s5337_s1 + $0x18] sm:$0xff] (!%p140_p2)   ;;  %v4140_v9 = vld [vmem:[%s5337_s1 + $0x20] sm:$0xff] (!%p140_p2)   ;;  %v4142_v13 = vld [vmem:[%s5337_s1 + $0x28] sm:$0xff] (!%p140_p2)  }
   0x9   : > { %v4143_v14 = vld [vmem:[%s5337_s1 + $0x70] sm:$0xff] (!%p140_p2)   ;;  %v4145_v16 = vld [vmem:[%s5337_s1 + $0x78] sm:$0xff] (!%p140_p2)   ;;  %v4153_v18 = vld [vmem:[%s5337_s1 + $0x140] sm:$0xff] (!%p140_p2)  }
   0xa   : > { %v4144_v15 = vld [vmem:[%s5337_s1 + $0x30] sm:$0xff] (!%p140_p2)   ;;  %v4146_v17 = vld [vmem:[%s5337_s1 + $0x38] sm:$0xff] (!%p140_p2)   ;;  %v4155_v21 = vld [vmem:[%s5337_s1 + $0xc0] sm:$0xff] (!%p140_p2)  }
   0xb   : > { %3466 = vmatpush3.bf16.msra.mxu0 (!%p140_p2), %v4134_v3  ;;  %4113 = vmatpush3.bf16.msra.mxu1 (!%p140_p2), %v4134_v3  ;;  %v4154_v22 = vld [vmem:[%s5337_s1 + $0x100] sm:$0xff] (!%p140_p2)   ;;  %v4161_v26 = vld [vmem:[%s5337_s1 + $0x148] sm:$0xff] (!%p140_p2)   ;;  %v4167_v30 = vld [vmem:[%s5337_s1 + $0x150] sm:$0xff] (!%p140_p2)  }
   0xc   : > { %3467 = vmatprep.subr.bf16.mxu0 (!%p140_p2), %v4135_v4  ;;  %4106 = vmatprep.subr.bf16.mxu1 (!%p140_p2), %v4135_v4  ;;  %v4156_v23 = vld [vmem:[%s5337_s1 + $0x80] sm:$0xff] (!%p140_p2)   ;;  %v4165_v27 = vld [vmem:[%s5337_s1 + $0xc8] sm:$0xff] (!%p140_p2)   ;;  %v4172_v33 = vld [vmem:[%s5337_s1 + $0xd0] sm:$0xff] (!%p140_p2)  }
   0xd   : > { %s5341_s16 = smov (!%p165_p3, %s164_s16), 51  ;;  %v4164_v28 = vld [vmem:[%s5337_s1 + $0x108] sm:$0xff]   ;;  %v4173_v36 = vld [vmem:[%s5337_s1 + $0x110] sm:$0xff]   ;;  %v4177_v38 = vld [vmem:[%s5337_s1 + $0xd8] sm:$0xff]  }
   0xe   : > { %s4120_s29 = smul.u32 52, %s5341_s16  ;;  %v4166_v29 = vld [vmem:[%s5337_s1 + $0x88] sm:$0xff]   ;;  %v4176_v37 = vld [vmem:[%s5337_s1 + $0x90] sm:$0xff]   ;;  %v4178_v39 = vld [vmem:[%s5337_s1 + $0x158] sm:$0xff]  }
   0xf   : > { %3468 = vmatpush3.bf16.msra.mxu0 %v4136_v5  ;;  %4114 = vmatpush3.bf16.msra.mxu1 %v4136_v5  ;;  %v4179_v40 = vld [vmem:[%s5337_s1 + $0x98] sm:$0xff]   ;;  %v4187_v44 = vld [vmem:[%s5337_s1 + $0xe0] sm:$0xff]   ;;  %v4197_v50 = vld [vmem:[%s5337_s1 + $0xe8] sm:$0xff]  }
  0x10   : > { %3469 = vmatprep.subr.bf16.mxu0 %v4137_v6  ;;  %4107 = vmatprep.subr.bf16.mxu1 %v4137_v6  ;;  %s4549_s9 = scalar_lea.vmem %s5336_s0, %s4120_s29  ;;  %v4180_v41 = vld [vmem:[%s5337_s1 + $0x118] sm:$0xff]   ;;  %v4189_v45 = vld [vmem:[%s5337_s1 + $0x160] sm:$0xff]   ;;  %v4198_v51 = vld [vmem:[%s5337_s1 + $0xa8] sm:$0xff]  }
  0x11   : > { %v4149_v11 = vld [vmem:[%s4549_s9 + $0x4] ss:$52 sps:$4 sm:$0xff]   ;;  %v4152_v12 = vld [vmem:[%s4549_s9 + $0x2dc] ss:$52 sps:$4 sm:$0xff]   ;;  %v4147_v19 = vld [vmem:[%s4549_s9] ss:$52 sps:$4 sm:$0xff]  }
  0x12   : > { %2084 = vmatprep.mubr.bf16.mxu0 %v4149_v11  ;;  %2140 = vmatprep.mubr.bf16.mxu1 %v4152_v12  ;;  %v4150_v20 = vld [vmem:[%s4549_s9 + $0x2d8] ss:$52 sps:$4 sm:$0xff]   ;;  %v4162_v31 = vld [vmem:[%s4549_s9 + $0x68] ss:$52 sps:$4 sm:$0xff]   ;;  %v4163_v32 = vld [vmem:[%s4549_s9 + $0x340] ss:$52 sps:$4 sm:$0xff]  }
  0x13   : > { %3470 = vmatpush3.bf16.msra.mxu0 %v4138_v7  ;;  %4115 = vmatpush3.bf16.msra.mxu1 %v4138_v7  ;;  %v4157_v24 = vld [vmem:[%s4549_s9 + $0x6c] ss:$52 sps:$4 sm:$0xff]   ;;  %v4159_v25 = vld [vmem:[%s4549_s9 + $0x344] ss:$52 sps:$4 sm:$0xff]   ;;  %v4168_v34 = vld [vmem:[%s4549_s9 + $0xd4] ss:$52 sps:$4 sm:$0xff]  }
  0x14   : > { %3471 = vmatprep.subr.bf16.mxu0 %v4139_v8  ;;  %4108 = vmatprep.subr.bf16.mxu1 %v4139_v8  ;;  %v4170_v35 = vld [vmem:[%s4549_s9 + $0x3ac] ss:$52 sps:$4 sm:$0xff]   ;;  %v4174_v42 = vld [vmem:[%s4549_s9 + $0xd0] ss:$52 sps:$4 sm:$0xff]   ;;  %v4175_v43 = vld [vmem:[%s4549_s9 + $0x3a8] ss:$52 sps:$4 sm:$0xff]  }
  0x15   : > { %v4181_v46 = vld [vmem:[%s4549_s9 + $0x13c] ss:$52 sps:$4 sm:$0xff]   ;;  %v4183_v47 = vld [vmem:[%s4549_s9 + $0x414] ss:$52 sps:$4 sm:$0xff]   ;;  %v4188_v48 = vld [vmem:[%s5337_s1 + $0xa0] sm:$0xff]  }
  0x16   : > { %v4190_v49 = vld [vmem:[%s5337_s1 + $0x120] sm:$0xff]   ;;  %v4185_v52 = vld [vmem:[%s4549_s9 + $0x138] ss:$52 sps:$4 sm:$0xff]   ;;  %v4193_v57 = vld [vmem:[%s4549_s9 + $0x47c] ss:$52 sps:$4 sm:$0xff]  }
  0x17   : > { %3472 = vmatpush3.bf16.msra.mxu0 %v4140_v9  ;;  %4116 = vmatpush3.bf16.msra.mxu1 %v4140_v9  ;;  %v4186_v53 = vld [vmem:[%s4549_s9 + $0x410] ss:$52 sps:$4 sm:$0xff]   ;;  %v4199_v54 = vld [vmem:[%s5337_s1 + $0x168] sm:$0xff]   ;;  %v4195_v62 = vld [vmem:[%s4549_s9 + $0x1a0] ss:$52 sps:$4 sm:$0xff]  }
  0x18   : > { %3473 = vmatprep.subr.bf16.mxu0 %v4141_v10  ;;  %4109 = vmatprep.subr.bf16.mxu1 %v4141_v10  ;;  %v4200_v55 = vld [vmem:[%s5337_s1 + $0x128] sm:$0xff]   ;;  %v4191_v56 = vld [vmem:[%s4549_s9 + $0x1a4] ss:$52 sps:$4 sm:$0xff]   ;;  %v4205_v58 = vld [vmem:[%s5337_s1 + $0xf0] sm:$0xff]  }
  0x19   : > { %v4208_v59 = vld [vmem:[%s5337_s1 + $0xb0] sm:$0xff]   ;;  %v4196_v63 = vld [vmem:[%s4549_s9 + $0x478] ss:$52 sps:$4 sm:$0xff]   ;;  %v4221_v6 = vld [vmem:[%s5337_s1 + $0x1c0] sm:$0xff]  }
  0x1a   : > { %v4209_v60 = vld [vmem:[%s5337_s1 + $0x170] sm:$0xff]   ;;  %v4211_v0 = vld [vmem:[%s5337_s1 + $0xf8] sm:$0xff]   ;;  %v4201_v2 = vld [vmem:[%s4549_s9 + $0x20c] ss:$52 sps:$4 sm:$0xff]  }
  0x1b   : > { %3474 = vmatpush3.bf16.msra.mxu0 %v4142_v13  ;;  %4117 = vmatpush3.bf16.msra.mxu1 %v4142_v13  ;;  %v4210_v61 = vld [vmem:[%s5337_s1 + $0x130] sm:$0xff]   ;;  %v4212_v1 = vld [vmem:[%s5337_s1 + $0xb8] sm:$0xff]   ;;  %v4217_v10 = vld [vmem:[%s4549_s9 + $0xc] ss:$52 sps:$4 sm:$0xff]  }
  0x1c   : > { %3475 = vmatprep.subr.bf16.mxu0 %v4143_v14  ;;  %4110 = vmatprep.subr.bf16.mxu1 %v4143_v14  ;;  %v4203_v3 = vld [vmem:[%s4549_s9 + $0x4e4] ss:$52 sps:$4 sm:$0xff]   ;;  %v4206_v7 = vld [vmem:[%s4549_s9 + $0x208] ss:$52 sps:$4 sm:$0xff]   ;;  %v4207_v8 = vld [vmem:[%s4549_s9 + $0x4e0] ss:$52 sps:$4 sm:$0xff]  }
  0x1d   : > { %v4219_v4 = vld [vmem:[%s5337_s1 + $0x178] sm:$0xff]   ;;  %v4213_v9 = vld [vmem:[%s4549_s9 + $0x274] ss:$52 sps:$4 sm:$0xff]   ;;  %v4229_v11 = vld [vmem:[%s5337_s1 + $0x240] sm:$0xff]  }
  0x1e   : > { %v4220_v5 = vld [vmem:[%s5337_s1 + $0x138] sm:$0xff]   ;;  %v4218_v13 = vld [vmem:[%s4549_s9 + $0x270] ss:$52 sps:$4 sm:$0xff]  }
  0x1f   : > { %3476 = vmatpush3.bf16.msra.mxu0 %v4144_v15  ;;  %4118 = vmatpush3.bf16.msra.mxu1 %v4144_v15  ;;  %v4215_v12 = vld [vmem:[%s4549_s9 + $0x8] ss:$52 sps:$4 sm:$0xff]   ;;  %v4222_v14 = vld [vmem:[%s5337_s1 + $0x180] sm:$0xff]  }
  0x20   : > { %3477 = vmatprep.subr.bf16.mxu0 %v4145_v16  ;;  %4111 = vmatprep.subr.bf16.mxu1 %v4145_v16  ;;  %v4223_v15 = vld [vmem:[%s4549_s9 + $0x74] ss:$52 sps:$4 sm:$0xff]  }
  0x21   : > { %v4227_v16 = vld [vmem:[%s4549_s9 + $0x14] ss:$52 sps:$4 sm:$0xff]  }
  0x23   : > { %3478 = vmatpush3.bf16.msra.mxu0 %v4146_v17  ;;  %4119 = vmatpush3.bf16.msra.mxu1 %v4146_v17  ;;  %v4237_v17 = vld [vmem:[%s5337_s1 + $0x1c8] sm:$0xff]  }
  0x24   : > { %3651 = vmatprep.subr.bf16.mxu0 %v4153_v18  ;;  %3557 = vmatprep.subr.bf16.mxu1 %v4155_v21  ;;  %v4238_v18 = vld [vmem:[%s5337_s1 + $0x188] sm:$0xff]   ;;  %v4228_v21 = vld [vmem:[%s4549_s9 + $0x70] ss:$52 sps:$4 sm:$0xff]  }
  0x26   : > { %2085 = vmatmul.mubr.bf16.vlgmr.msra.gmra.mrb[0].mxu0 %v4147_v19  ;;  %2141 = vmatmul.mubr.bf16.vlgmr.msra.gmra.mrb[0].mxu1 %v4150_v20  ;;  %v4225_v19 = vld [vmem:[%s4549_s9 + $0x10] ss:$52 sps:$4 sm:$0xff]  }
  0x27   : > { %3652 = vmatpush3.bf16.msra.mxu0 %v4154_v22  ;;  %3558 = vmatpush3.bf16.msra.mxu1 %v4156_v23  ;;  %v4247_v20 = vld [vmem:[%s5337_s1 + $0x1d0] sm:$0xff]   ;;  %v4230_v22 = vld [vmem:[%s5337_s1 + $0x200] sm:$0xff]  }
  0x28   : > { %2092 = vmatprep.mubr.bf16.mxu0 %v4157_v24  ;;  %2148 = vmatprep.mubr.bf16.mxu1 %v4159_v25  ;;  %v4231_v23 = vld [vmem:[%s4549_s9 + $0xdc] ss:$52 sps:$4 sm:$0xff]   ;;  %v4239_v25 = vld [vmem:[%s5337_s1 + $0x248] sm:$0xff]  }
  0x29   : > { %3653 = vmatprep.subr.bf16.mxu0 %v4161_v26  ;;  %3559 = vmatprep.subr.bf16.mxu1 %v4165_v27  ;;  %v4233_v24 = vld [vmem:[%s4549_s9 + $0x7c] ss:$52 sps:$4 sm:$0xff]   ;;  %v4240_v27 = vld [vmem:[%s5337_s1 + $0x208] sm:$0xff]  }
  0x2a   : > { %v4248_v26 = vld [vmem:[%s5337_s1 + $0x190] sm:$0xff]  }
  0x2b   : > { %3654 = vmatpush3.bf16.msra.mxu0 %v4164_v28  ;;  %3560 = vmatpush3.bf16.msra.mxu1 %v4166_v29  ;;  %v4255_v28 = vld [vmem:[%s5337_s1 + $0x250] sm:$0xff]   ;;  %v4235_v29 = vld [vmem:[%s4549_s9 + $0xd8] ss:$52 sps:$4 sm:$0xff]  }
  0x2c   : > { %3655 = vmatprep.subr.bf16.mxu0 %v4167_v30  ;;  %3561 = vmatprep.subr.bf16.mxu1 %v4172_v33  ;;  %v4236_v30 = vld [vmem:[%s4549_s9 + $0x78] ss:$52 sps:$4 sm:$0xff]  }
  0x2d   : > { %v4241_v33 = vld [vmem:[%s4549_s9 + $0x144] ss:$52 sps:$4 sm:$0xff]  }
  0x2e   : > { %2093 = vmatmul.mubr.bf16.gmra.mrb[4].mxu0 %v4162_v31  ;;  %2149 = vmatmul.mubr.bf16.gmra.mrb[4].mxu1 %v4163_v32  ;;  %v4263_v31 = vld [vmem:[%s5337_s1 + $0x1d8] sm:$0xff]  }
  0x2f   : > { %2100 = vmatprep.mubr.bf16.mxu0 %v4168_v34  ;;  %2156 = vmatprep.mubr.bf16.mxu1 %v4170_v35  ;;  %v4264_v32 = vld [vmem:[%s5337_s1 + $0x198] sm:$0xff]   ;;  %v4256_v35 = vld [vmem:[%s5337_s1 + $0x210] sm:$0xff]  }
  0x30   : > { %3656 = vmatpush3.bf16.msra.mxu0 %v4173_v36  ;;  %3562 = vmatpush3.bf16.msra.mxu1 %v4176_v37  ;;  %v4243_v34 = vld [vmem:[%s4549_s9 + $0xe4] ss:$52 sps:$4 sm:$0xff]   ;;  %v4245_v37 = vld [vmem:[%s4549_s9 + $0x140] ss:$52 sps:$4 sm:$0xff]  }
  0x31   : > { %3563 = vmatprep.subr.bf16.mxu1 %v4177_v38  ;;  %3657 = vmatprep.subr.bf16.mxu0 %v4178_v39  ;;  %v4269_v36 = vld [vmem:[%s5337_s1 + $0x258] sm:$0xff]   ;;  %v4246_v38 = vld [vmem:[%s4549_s9 + $0xe0] ss:$52 sps:$4 sm:$0xff]  }
  0x32   : > { %v4272_v39 = vld [vmem:[%s5337_s1 + $0x218] sm:$0xff]  }
  0x34   : > { %3564 = vmatpush3.bf16.msra.mxu1 %v4179_v40  ;;  %3658 = vmatpush3.bf16.msra.mxu0 %v4180_v41  ;;  %v4249_v40 = vld [vmem:[%s4549_s9 + $0x1ac] ss:$52 sps:$4 sm:$0xff]  }
  0x35   : > { %3565 = vmatprep.subr.bf16.mxu1 %v4187_v44  ;;  %3659 = vmatprep.subr.bf16.mxu0 %v4189_v45  ;;  %v4277_v41 = vld [vmem:[%s5337_s1 + $0x1e0] sm:$0xff]  }
  0x36   : > { %2101 = vmatmul.mubr.bf16.gmra.mrb[8].mxu0 %v4174_v42  ;;  %2157 = vmatmul.mubr.bf16.gmra.mrb[8].mxu1 %v4175_v43  ;;  %v4251_v42 = vld [vmem:[%s4549_s9 + $0x14c] ss:$52 sps:$4 sm:$0xff]  }
  0x37   : > { %2108 = vmatprep.mubr.bf16.mxu0 %v4181_v46  ;;  %2164 = vmatprep.mubr.bf16.mxu1 %v4183_v47  ;;  %v4280_v43 = vld [vmem:[%s5337_s1 + $0x1a0] sm:$0xff]   ;;  %v4253_v46 = vld [vmem:[%s4549_s9 + $0x1a8] ss:$52 sps:$4 sm:$0xff]  }
  0x38   : > { %3566 = vmatpush3.bf16.msra.mxu1 %v4188_v48  ;;  %3660 = vmatpush3.bf16.msra.mxu0 %v4190_v49  ;;  %v4281_v44 = vld [vmem:[%s5337_s1 + $0x260] sm:$0xff]   ;;  %v4254_v47 = vld [vmem:[%s4549_s9 + $0x148] ss:$52 sps:$4 sm:$0xff]  }
  0x39   : > { %3567 = vmatprep.subr.bf16.mxu1 %v4197_v50  ;;  %3661 = vmatprep.subr.bf16.mxu0 %v4199_v54  ;;  %v4282_v45 = vld [vmem:[%s5337_s1 + $0x220] sm:$0xff]   ;;  %v4289_v48 = vld [vmem:[%s5337_s1 + $0x1e8] sm:$0xff]  }
  0x3a   : > { %v4290_v49 = vld [vmem:[%s5337_s1 + $0x1a8] sm:$0xff]   ;;  %v4261_v54 = vld [vmem:[%s4549_s9 + $0x210] ss:$52 sps:$4 sm:$0xff]  }
  0x3b   : > { %v4257_v50 = vld [vmem:[%s4549_s9 + $0x214] ss:$52 sps:$4 sm:$0xff]  }
  0x3c   : > { %3568 = vmatpush3.bf16.msra.mxu1 %v4198_v51  ;;  %3662 = vmatpush3.bf16.msra.mxu0 %v4200_v55  ;;  %v4259_v51 = vld [vmem:[%s4549_s9 + $0x1b4] ss:$52 sps:$4 sm:$0xff]   ;;  %v4262_v55 = vld [vmem:[%s4549_s9 + $0x1b0] ss:$52 sps:$4 sm:$0xff]  }
  0x3d   : > { %3569 = vmatprep.subr.bf16.mxu1 %v4205_v58  ;;  %3663 = vmatprep.subr.bf16.mxu0 %v4209_v60  ;;  %v4305_v58 = vld [vmem:[%s5337_s1 + $0x1f0] sm:$0xff]  }
  0x3e   : > { %2109 = vmatmul.mubr.bf16.gmra.mrb[12].mxu0 %v4185_v52  ;;  %2165 = vmatmul.mubr.bf16.gmra.mrb[12].mxu1 %v4186_v53  ;;  %v4297_v52 = vld [vmem:[%s5337_s1 + $0x268] sm:$0xff]   ;;  %v4307_v60 = vld [vmem:[%s5337_s1 + $0x270] sm:$0xff]  }
  0x3f   : > { %2116 = vmatprep.mubr.bf16.mxu0 %v4191_v56  ;;  %2172 = vmatprep.mubr.bf16.mxu1 %v4193_v57  ;;  %v4298_v53 = vld [vmem:[%s5337_s1 + $0x228] sm:$0xff]   ;;  %v4265_v56 = vld [vmem:[%s4549_s9 + $0x27c] ss:$52 sps:$4 sm:$0xff]  }
  0x40   : > { %3570 = vmatpush3.bf16.msra.mxu1 %v4208_v59  ;;  %3664 = vmatpush3.bf16.msra.mxu0 %v4210_v61  ;;  %v4267_v57 = vld [vmem:[%s4549_s9 + $0x21c] ss:$52 sps:$4 sm:$0xff]  }
  0x41   : > { %3571 = vmatprep.subr.bf16.mxu1 %v4211_v0  ;;  %3665 = vmatprep.subr.bf16.mxu0 %v4219_v4  ;;  %v4306_v59 = vld [vmem:[%s5337_s1 + $0x1b0] sm:$0xff]   ;;  %v4315_v0 = vld [vmem:[%s5337_s1 + $0x1f8] sm:$0xff]  }
  0x42   : > { %v4312_v61 = vld [vmem:[%s5337_s1 + $0x230] sm:$0xff]   ;;  %v4323_v4 = vld [vmem:[%s5337_s1 + $0x278] sm:$0xff]  }
  0x44   : > { %3572 = vmatpush3.bf16.msra.mxu1 %v4212_v1  ;;  %3666 = vmatpush3.bf16.msra.mxu0 %v4220_v5  ;;  %v4273_v1 = vld [vmem:[%s4549_s9 + $0x2e4] ss:$52 sps:$4 sm:$0xff]  }
  0x45   : > { %3745 = vmatprep.subr.bf16.mxu1 %v4221_v6  ;;  %3839 = vmatprep.subr.bf16.mxu0 %v4229_v11  ;;  %v4324_v5 = vld [vmem:[%s5337_s1 + $0x238] sm:$0xff]   ;;  %v4278_v6 = vld [vmem:[%s4549_s9 + $0x2e0] ss:$52 sps:$4 sm:$0xff]  }
  0x46   : > { %2117 = vmatmul.mubr.bf16.gmra.mrb[16].mxu0 %v4195_v62  ;;  %2173 = vmatmul.mubr.bf16.gmra.mrb[16].mxu1 %v4196_v63  ;;  %v4270_v62 = vld [vmem:[%s4549_s9 + $0x278] ss:$52 sps:$4 sm:$0xff]  }
  0x47   : > { %2124 = vmatprep.mubr.bf16.mxu0 %v4201_v2  ;;  %2180 = vmatprep.mubr.bf16.mxu1 %v4203_v3  ;;  %v4271_v63 = vld [vmem:[%s4549_s9 + $0x218] ss:$52 sps:$4 sm:$0xff]  }
  0x48   : > { %v4275_v2 = vld [vmem:[%s4549_s9 + $0x284] ss:$52 sps:$4 sm:$0xff]   ;;  %v4285_v11 = vld [vmem:[%s4549_s9 + $0x2ec] ss:$52 sps:$4 sm:$0xff]  }
  0x49   : > { %v4320_v3 = vld [vmem:[%s5337_s1 + $0x1b8] sm:$0xff]  }
  0x4e   : > { %2125 = vmatmul.mubr.bf16.gmra.mrb[20].mxu0 %v4206_v7  ;;  %2181 = vmatmul.mubr.bf16.gmra.mrb[20].mxu1 %v4207_v8  ;;  %v4279_v7 = vld [vmem:[%s4549_s9 + $0x280] ss:$52 sps:$4 sm:$0xff]  }
  0x4f   : > { %2132 = vmatprep.mubr.bf16.mxu0 %v4213_v9  ;;  %2221 = vmatprep.mubr.bf16.mxu1 %v4217_v10  ;;  %v4283_v8 = vld [vmem:[%s4549_s9 + $0x34c] ss:$52 sps:$4 sm:$0xff]   ;;  %v4486_v10 = vmov 0.0  }
  0x50   : > { %v4331_v9 = vld [vmem:[%s5337_s1 + $0x2c0] sm:$0xff]  }
  0x56   : > { %2133 = vmatmul.mubr.bf16.gmra.mrb[24].mxu0 %v4218_v13  ;;  %2222 = vmatmul.mubr.bf16.vlgmr.msra.gmra.mrb[24].mxu1 %v4215_v12  ;;  %v4287_v12 = vld [vmem:[%s4549_s9 + $0x348] ss:$52 sps:$4 sm:$0xff]  }
  0x57   : > { %3746 = vmatpush3.bf16.msra.mxu1 %v4222_v14  ;;  %2229 = vmatprep.mubr.bf16.mxu1 %v4223_v15  ;;  %v4288_v13 = vld [vmem:[%s4549_s9 + $0x2e8] ss:$52 sps:$4 sm:$0xff]  }
  0x58   : > { %2358 = vmatprep.mubr.bf16.mxu0 %v4227_v16  ;;  %3747 = vmatprep.subr.bf16.mxu1 %v4237_v17  ;;  %v4291_v14 = vld [vmem:[%s4549_s9 + $0x3b4] ss:$52 sps:$4 sm:$0xff]   ;;  %v4295_v16 = vld [vmem:[%s4549_s9 + $0x3b0] ss:$52 sps:$4 sm:$0xff]  }
  0x59   : > { %v4293_v15 = vld [vmem:[%s4549_s9 + $0x354] ss:$52 sps:$4 sm:$0xff]   ;;  %v4296_v17 = vld [vmem:[%s4549_s9 + $0x350] ss:$52 sps:$4 sm:$0xff]  }
  0x5b   : > { %3748 = vmatpush3.bf16.msra.mxu1 %v4238_v18  ;;  %v4299_v18 = vld [vmem:[%s4549_s9 + $0x41c] ss:$52 sps:$4 sm:$0xff]  }
  0x5c   : > { %3749 = vmatprep.subr.bf16.mxu1 %v4247_v20  ;;  %v4303_v20 = vld [vmem:[%s4549_s9 + $0x418] ss:$52 sps:$4 sm:$0xff]  }
  0x5e   : > { %2230 = vmatmul.mubr.bf16.gmra.mrb[28].mxu1 %v4228_v21  ;;  %2359 = vmatmul.mubr.bf16.vlgmr.msra.gmra.mrb[28].mxu0 %v4225_v19  ;;  %v4301_v19 = vld [vmem:[%s4549_s9 + $0x3bc] ss:$52 sps:$4 sm:$0xff]   ;;  %v4304_v21 = vld [vmem:[%s4549_s9 + $0x3b8] ss:$52 sps:$4 sm:$0xff]  }
  0x5f   : > { %3840 = vmatpush3.bf16.msra.mxu0 %v4230_v22  ;;  %2237 = vmatprep.mubr.bf16.mxu1 %v4231_v23  ;;  %v4308_v22 = vld [vmem:[%s4549_s9 + $0x484] ss:$52 sps:$4 sm:$0xff]  }
  0x60   : > { %2366 = vmatprep.mubr.bf16.mxu0 %v4233_v24  ;;  %3841 = vmatprep.subr.bf16.mxu0 %v4239_v25  ;;  %v4310_v23 = vld [vmem:[%s4549_s9 + $0x424] ss:$52 sps:$4 sm:$0xff]   ;;  %v4313_v24 = vld [vmem:[%s4549_s9 + $0x480] ss:$52 sps:$4 sm:$0xff]  }
  0x61   : > { %3750 = vmatpush3.bf16.msra.mxu1 %v4248_v26  ;;  %v4314_v25 = vld [vmem:[%s4549_s9 + $0x420] ss:$52 sps:$4 sm:$0xff]  }
  0x62   : > { %3751 = vmatprep.subr.bf16.mxu1 %v4263_v31  ;;  %v4316_v26 = vld [vmem:[%s4549_s9 + $0x4ec] ss:$52 sps:$4 sm:$0xff]   ;;  %v4329_v31 = vld [vmem:[%s4549_s9 + $0x1c] ss:$52 sps:$4 sm:$0xff]  }
  0x63   : > { %3842 = vmatpush3.bf16.msra.mxu0 %v4240_v27  ;;  %v4318_v27 = vld [vmem:[%s4549_s9 + $0x48c] ss:$52 sps:$4 sm:$0xff]  }
  0x64   : > { %3843 = vmatprep.subr.bf16.mxu0 %v4255_v28  ;;  %v4321_v28 = vld [vmem:[%s4549_s9 + $0x4e8] ss:$52 sps:$4 sm:$0xff]  }
  0x65   : > { %3752 = vmatpush3.bf16.msra.mxu1 %v4264_v32  ;;  %v4327_v32 = vld [vmem:[%s4549_s9 + $0x18] ss:$52 sps:$4 sm:$0xff]  }
  0x66   : > { %2238 = vmatmul.mubr.bf16.gmra.mrb[32].mxu1 %v4235_v29  ;;  %2367 = vmatmul.mubr.bf16.gmra.mrb[32].mxu0 %v4236_v30  ;;  %v4322_v29 = vld [vmem:[%s4549_s9 + $0x488] ss:$52 sps:$4 sm:$0xff]  }
  0x67   : > { %2245 = vmatprep.mubr.bf16.mxu1 %v4241_v33  ;;  %2374 = vmatprep.mubr.bf16.mxu0 %v4243_v34  ;;  %v4325_v30 = vld [vmem:[%s4549_s9 + $0x4f4] ss:$52 sps:$4 sm:$0xff]   ;;  %v4330_v33 = vld [vmem:[%s4549_s9 + $0x4f0] ss:$52 sps:$4 sm:$0xff]  }
  0x68   : > { %3844 = vmatpush3.bf16.msra.mxu0 %v4256_v35  ;;  %3753 = vmatprep.subr.bf16.mxu1 %v4277_v41  ;;  %v4332_v34 = vld [vmem:[%s5337_s1 + $0x280] sm:$0xff]  }
  0x69   : > { %3845 = vmatprep.subr.bf16.mxu0 %v4269_v36  ;;  %3754 = vmatpush3.bf16.msra.mxu1 %v4280_v43  ;;  %v4333_v35 = vld [vmem:[%s4549_s9 + $0x84] ss:$52 sps:$4 sm:$0xff]   ;;  %v4338_v41 = vld [vmem:[%s4549_s9 + $0x80] ss:$52 sps:$4 sm:$0xff]  }
  0x6a   : > { %3755 = vmatprep.subr.bf16.mxu1 %v4289_v48  ;;  %v4337_v36 = vld [vmem:[%s4549_s9 + $0x24] ss:$52 sps:$4 sm:$0xff]   ;;  %v4340_v43 = vld [vmem:[%s4549_s9 + $0xec] ss:$52 sps:$4 sm:$0xff]   ;;  %v4344_v48 = vld [vmem:[%s4549_s9 + $0xe8] ss:$52 sps:$4 sm:$0xff]  }
  0x6c   : > { %3846 = vmatpush3.bf16.msra.mxu0 %v4272_v39  ;;  %v4354_v39 = vld [vmem:[%s5337_s1 + $0x2d0] sm:$0xff]  }
  0x6d   : > { %3847 = vmatprep.subr.bf16.mxu0 %v4281_v44  ;;  %3756 = vmatpush3.bf16.msra.mxu1 %v4290_v49  ;;  %v4342_v44 = vld [vmem:[%s4549_s9 + $0x8c] ss:$52 sps:$4 sm:$0xff]   ;;  %v4345_v49 = vld [vmem:[%s4549_s9 + $0x88] ss:$52 sps:$4 sm:$0xff]  }
  0x6e   : > { %2246 = vmatmul.mubr.bf16.gmra.mrb[36].mxu1 %v4245_v37  ;;  %2375 = vmatmul.mubr.bf16.gmra.mrb[36].mxu0 %v4246_v38  ;;  %v4346_v37 = vld [vmem:[%s5337_s1 + $0x2c8] sm:$0xff]  }
  0x6f   : > { %2253 = vmatprep.mubr.bf16.mxu1 %v4249_v40  ;;  %2382 = vmatprep.mubr.bf16.mxu0 %v4251_v42  ;;  %v4347_v38 = vld [vmem:[%s5337_s1 + $0x288] sm:$0xff]   ;;  %v4335_v40 = vld [vmem:[%s4549_s9 + $0x20] ss:$52 sps:$4 sm:$0xff]  }
  0x70   : > { %3848 = vmatpush3.bf16.msra.mxu0 %v4282_v45  ;;  %3757 = vmatprep.subr.bf16.mxu1 %v4305_v58  ;;  %v4339_v42 = vld [vmem:[%s5337_s1 + $0x300] sm:$0xff]   ;;  %v4355_v45 = vld [vmem:[%s5337_s1 + $0x290] sm:$0xff]   ;;  %v4412_v58 = vld [vmem:[%s5337_s1 + $0x318] sm:$0xff]  }
  0x71   : > { %3849 = vmatprep.subr.bf16.mxu0 %v4297_v52  ;;  %3758 = vmatpush3.bf16.msra.mxu1 %v4306_v59  ;;  %v4350_v52 = vld [vmem:[%s4549_s9 + $0xf4] ss:$52 sps:$4 sm:$0xff]  }
  0x72   : > { %3759 = vmatprep.subr.bf16.mxu1 %v4315_v0  ;;  %v4406_v59 = vld [vmem:[%s5337_s1 + $0x2f0] sm:$0xff]  }
  0x73   : > { %v4407_v0 = vld [vmem:[%s5337_s1 + $0x2b0] sm:$0xff]  }
  0x74   : > { %3850 = vmatpush3.bf16.msra.mxu0 %v4298_v53  ;;  %v4381_v53 = vld [vmem:[%s5337_s1 + $0x2e0] sm:$0xff]  }
  0x75   : > { %3851 = vmatprep.subr.bf16.mxu0 %v4307_v60  ;;  %3760 = vmatpush3.bf16.msra.mxu1 %v4320_v3  ;;  %v4352_v60 = vld [vmem:[%s4549_s9 + $0x150] ss:$52 sps:$4 sm:$0xff]   ;;  %v4360_v3 = vld [vmem:[%s4549_s9 + $0x1b8] ss:$52 sps:$4 sm:$0xff]  }
  0x76   : > { %2254 = vmatmul.mubr.bf16.gmra.mrb[40].mxu1 %v4253_v46  ;;  %2383 = vmatmul.mubr.bf16.gmra.mrb[40].mxu0 %v4254_v47  ;;  %v4369_v46 = vld [vmem:[%s5337_s1 + $0x2d8] sm:$0xff]   ;;  %v4362_v47 = vld [vmem:[%s5337_s1 + $0x308] sm:$0xff]  }
  0x77   : > { %2261 = vmatprep.mubr.bf16.mxu1 %v4257_v50  ;;  %2390 = vmatprep.mubr.bf16.mxu0 %v4259_v51  ;;  %v4370_v50 = vld [vmem:[%s5337_s1 + $0x298] sm:$0xff]   ;;  %v4348_v51 = vld [vmem:[%s4549_s9 + $0x154] ss:$52 sps:$4 sm:$0xff]  }
  0x78   : > { %3852 = vmatpush3.bf16.msra.mxu0 %v4312_v61  ;;  %3933 = vmatprep.subr.bf16.mxu1 %v4331_v9  ;;  %v4353_v61 = vld [vmem:[%s4549_s9 + $0xf0] ss:$52 sps:$4 sm:$0xff]   ;;  %v4371_v9 = vld [vmem:[%s4549_s9 + $0x28c] ss:$52 sps:$4 sm:$0xff]  }
  0x79   : > { %3853 = vmatprep.subr.bf16.mxu0 %v4323_v4  ;;  %v4361_v4 = vld [vmem:[%s4549_s9 + $0x158] ss:$52 sps:$4 sm:$0xff]  }
  0x7c   : > { %3854 = vmatpush3.bf16.msra.mxu0 %v4324_v5  ;;  %v4363_v5 = vld [vmem:[%s4549_s9 + $0x224] ss:$52 sps:$4 sm:$0xff]  }
  0x7d   : > { %4044 = vmatprep.subr.bf16.mxu0 %v4486_v10 }
  0x7e   : > { %2262 = vmatmul.mubr.bf16.gmra.mrb[44].mxu1 %v4261_v54  ;;  %2391 = vmatmul.mubr.bf16.gmra.mrb[44].mxu0 %v4262_v55  ;;  %v4384_v54 = vld [vmem:[%s5337_s1 + $0x2a0] sm:$0xff]   ;;  %v4385_v55 = vld [vmem:[%s5337_s1 + $0x310] sm:$0xff]  }
  0x7f   : > { %2269 = vmatprep.mubr.bf16.mxu1 %v4265_v56  ;;  %2398 = vmatprep.mubr.bf16.mxu0 %v4267_v57  ;;  %v4392_v56 = vld [vmem:[%s5337_s1 + $0x2e8] sm:$0xff]  }
  0x80   : > { %v4393_v57 = vld [vmem:[%s5337_s1 + $0x2a8] sm:$0xff]  }
  0x86   : > { %2270 = vmatmul.mubr.bf16.gmra.mrb[48].mxu1 %v4270_v62  ;;  %2399 = vmatmul.mubr.bf16.gmra.mrb[48].mxu0 %v4271_v63  ;;  %v4356_v62 = vld [vmem:[%s4549_s9 + $0x1bc] ss:$52 sps:$4 sm:$0xff]  }
  0x87   : > { %2277 = vmatprep.mubr.bf16.mxu1 %v4273_v1  ;;  %2406 = vmatprep.mubr.bf16.mxu0 %v4275_v2  ;;  %v4358_v63 = vld [vmem:[%s4549_s9 + $0x15c] ss:$52 sps:$4 sm:$0xff]  }
  0x88   : > { %v4415_v1 = vld [vmem:[%s5337_s1 + $0x2f8] sm:$0xff]  }
  0x89   : > { %v4420_v2 = vld [vmem:[%s5337_s1 + $0x2b8] sm:$0xff]  }
  0x8e   : > { %2278 = vmatmul.mubr.bf16.gmra.mrb[52].mxu1 %v4278_v6  ;;  %2407 = vmatmul.mubr.bf16.gmra.mrb[52].mxu0 %v4279_v7  ;;  %v4365_v6 = vld [vmem:[%s4549_s9 + $0x1c4] ss:$52 sps:$4 sm:$0xff]   ;;  %v4367_v7 = vld [vmem:[%s4549_s9 + $0x220] ss:$52 sps:$4 sm:$0xff]  }
  0x8f   : > { %2285 = vmatprep.mubr.bf16.mxu1 %v4283_v8  ;;  %2414 = vmatprep.mubr.bf16.mxu0 %v4285_v11  ;;  %v4368_v8 = vld [vmem:[%s4549_s9 + $0x1c0] ss:$52 sps:$4 sm:$0xff]  }
  0x90   : > { %v4373_v11 = vld [vmem:[%s4549_s9 + $0x22c] ss:$52 sps:$4 sm:$0xff]  }
  0x96   : > { %2286 = vmatmul.mubr.bf16.gmra.mrb[56].mxu1 %v4287_v12  ;;  %2415 = vmatmul.mubr.bf16.gmra.mrb[56].mxu0 %v4288_v13  ;;  %v4375_v12 = vld [vmem:[%s4549_s9 + $0x288] ss:$52 sps:$4 sm:$0xff]  }
  0x97   : > { %2293 = vmatprep.mubr.bf16.mxu1 %v4291_v14  ;;  %2422 = vmatprep.mubr.bf16.mxu0 %v4293_v15  ;;  %v4376_v13 = vld [vmem:[%s4549_s9 + $0x228] ss:$52 sps:$4 sm:$0xff]  }
  0x98   : > { %v4377_v14 = vld [vmem:[%s4549_s9 + $0x2f4] ss:$52 sps:$4 sm:$0xff]  }
  0x99   : > { %v4379_v15 = vld [vmem:[%s4549_s9 + $0x294] ss:$52 sps:$4 sm:$0xff]  }
  0x9e   : > { %2294 = vmatmul.mubr.bf16.gmra.mrb[60].mxu1 %v4295_v16  ;;  %2423 = vmatmul.mubr.bf16.gmra.mrb[60].mxu0 %v4296_v17  ;;  %v4382_v16 = vld [vmem:[%s4549_s9 + $0x2f0] ss:$52 sps:$4 sm:$0xff]  }
  0x9f   : > { %2301 = vmatprep.mubr.bf16.mxu1 %v4299_v18  ;;  %2430 = vmatprep.mubr.bf16.mxu0 %v4301_v19  ;;  %v4383_v17 = vld [vmem:[%s4549_s9 + $0x290] ss:$52 sps:$4 sm:$0xff]  }
  0xa0   : > { %v4386_v18 = vld [vmem:[%s4549_s9 + $0x35c] ss:$52 sps:$4 sm:$0xff]  }
  0xa1   : > { %v4388_v19 = vld [vmem:[%s4549_s9 + $0x2fc] ss:$52 sps:$4 sm:$0xff]  }
  0xa6   : > { %2302 = vmatmul.mubr.bf16.gmra.mrb[64].mxu1 %v4303_v20  ;;  %2431 = vmatmul.mubr.bf16.gmra.mrb[64].mxu0 %v4304_v21 }
  0xa7   : > { %2309 = vmatprep.mubr.bf16.mxu1 %v4308_v22  ;;  %2438 = vmatprep.mubr.bf16.mxu0 %v4310_v23 }
  0xae   : > { %2310 = vmatmul.mubr.bf16.gmra.mrb[68].mxu1 %v4313_v24  ;;  %2439 = vmatmul.mubr.bf16.gmra.mrb[68].mxu0 %v4314_v25  ;;  %v4390_v24 = vld [vmem:[%s4549_s9 + $0x358] ss:$52 sps:$4 sm:$0xff]  }
  0xaf   : > { %2317 = vmatprep.mubr.bf16.mxu1 %v4316_v26  ;;  %2446 = vmatprep.mubr.bf16.mxu0 %v4318_v27  ;;  %v4391_v25 = vld [vmem:[%s4549_s9 + $0x2f8] ss:$52 sps:$4 sm:$0xff]  }
  0xb6   : > { %2318 = vmatmul.mubr.bf16.gmra.mrb[72].mxu1 %v4321_v28  ;;  %2447 = vmatmul.mubr.bf16.gmra.mrb[72].mxu0 %v4322_v29 }
  0xb7   : > { %2454 = vmatprep.mubr.bf16.mxu0 %v4325_v30  ;;  %2495 = vmatprep.mubr.bf16.mxu1 %v4329_v31  ;;  %v4394_v30 = vld [vmem:[%s4549_s9 + $0x3c4] ss:$52 sps:$4 sm:$0xff]  }
  0xb8   : > { %v4396_v31 = vld [vmem:[%s4549_s9 + $0x364] ss:$52 sps:$4 sm:$0xff]  }
  0xbe   : > { %2455 = vmatmul.mubr.bf16.gmra.mrb[76].mxu0 %v4330_v33  ;;  %2496 = vmatmul.mubr.bf16.vlgmr.msra.gmra.mrb[76].mxu1 %v4327_v32 }
  0xbf   : > { %3934 = vmatpush3.bf16.msra.mxu1 %v4332_v34  ;;  %2503 = vmatprep.mubr.bf16.mxu1 %v4333_v35 }
  0xc0   : > { %2632 = vmatprep.mubr.bf16.mxu0 %v4337_v36  ;;  %3935 = vmatprep.subr.bf16.mxu1 %v4346_v37 }
  0xc3   : > { %3936 = vmatpush3.bf16.msra.mxu1 %v4347_v38 }
  0xc4   : > { %3937 = vmatprep.subr.bf16.mxu1 %v4354_v39 }
  0xc6   : > { %2504 = vmatmul.mubr.bf16.gmra.mrb[80].mxu1 %v4338_v41  ;;  %2633 = vmatmul.mubr.bf16.vlgmr.msra.gmra.mrb[80].mxu0 %v4335_v40  ;;  %v4398_v40 = vld [vmem:[%s4549_s9 + $0x3c0] ss:$52 sps:$4 sm:$0xff]  }
  0xc7   : > { %4045 = vmatpush3.bf16.msra.mxu0 %v4339_v42  ;;  %2511 = vmatprep.mubr.bf16.mxu1 %v4340_v43  ;;  %v4399_v41 = vld [vmem:[%s4549_s9 + $0x360] ss:$52 sps:$4 sm:$0xff]  }
  0xc8   : > { %2640 = vmatprep.mubr.bf16.mxu0 %v4342_v44  ;;  %3938 = vmatpush3.bf16.msra.mxu1 %v4355_v45 }
  0xc9   : > { %4046 = vmatprep.subr.bf16.mxu0 %v4486_v10  ;;  %3939 = vmatprep.subr.bf16.mxu1 %v4369_v46  ;;  %v4400_v46 = vld [vmem:[%s4549_s9 + $0x42c] ss:$52 sps:$4 sm:$0xff]  }
  0xcb   : > { %4047 = vmatpush3.bf16.msra.mxu0 %v4362_v47  ;;  %v4402_v47 = vld [vmem:[%s4549_s9 + $0x3cc] ss:$52 sps:$4 sm:$0xff]  }
  0xcc   : > { %3940 = vmatpush3.bf16.msra.mxu1 %v4370_v50  ;;  %4048 = vmatprep.subr.bf16.mxu0 %v4486_v10 }
  0xcd   : > { %3941 = vmatprep.subr.bf16.mxu1 %v4381_v53 }
  0xce   : > { %2512 = vmatmul.mubr.bf16.gmra.mrb[84].mxu1 %v4344_v48  ;;  %2641 = vmatmul.mubr.bf16.gmra.mrb[84].mxu0 %v4345_v49  ;;  %v4959_v48 = vld [vmem:[%s5338_s2] ss:$0 sm:$0xff] }
  0xcf   : > { %2519 = vmatprep.mubr.bf16.mxu1 %v4348_v51  ;;  %2648 = vmatprep.mubr.bf16.mxu0 %v4350_v52 }
  0xd0   : > { %3942 = vmatpush3.bf16.msra.mxu1 %v4384_v54  ;;  %4049 = vmatpush3.bf16.msra.mxu0 %v4385_v55 }
  0xd1   : > { %3943 = vmatprep.subr.bf16.mxu1 %v4392_v56  ;;  %4050 = vmatprep.subr.bf16.mxu0 %v4486_v10 }
  0xd4   : > { %3944 = vmatpush3.bf16.msra.mxu1 %v4393_v57  ;;  %4051 = vmatpush3.bf16.msra.mxu0 %v4412_v58 }
  0xd5   : > { %3945 = vmatprep.subr.bf16.mxu1 %v4406_v59  ;;  %v4404_v59 = vld [vmem:[%s4549_s9 + $0x428] ss:$52 sps:$4 sm:$0xff]  }
  0xd6   : > { %2520 = vmatmul.mubr.bf16.gmra.mrb[88].mxu1 %v4352_v60  ;;  %2649 = vmatmul.mubr.bf16.gmra.mrb[88].mxu0 %v4353_v61  ;;  %v4405_v60 = vld [vmem:[%s4549_s9 + $0x3c8] ss:$52 sps:$4 sm:$0xff]  }
  0xd7   : > { %2527 = vmatprep.mubr.bf16.mxu1 %v4356_v62  ;;  %2656 = vmatprep.mubr.bf16.mxu0 %v4358_v63 }
  0xd8   : > { %3946 = vmatpush3.bf16.msra.mxu1 %v4407_v0 }
  0xd9   : > { %3947 = vmatprep.subr.bf16.mxu1 %v4415_v1  ;;  %v4408_v1 = vld [vmem:[%s4549_s9 + $0x494] ss:$52 sps:$4 sm:$0xff]  }
  0xdc   : > { %3948 = vmatpush3.bf16.msra.mxu1 %v4420_v2  ;;  %v4410_v2 = vld [vmem:[%s4549_s9 + $0x434] ss:$52 sps:$4 sm:$0xff]  }
  0xde   : > { %2528 = vmatmul.mubr.bf16.gmra.mrb[92].mxu1 %v4360_v3  ;;  %2657 = vmatmul.mubr.bf16.gmra.mrb[92].mxu0 %v4361_v4 }
  0xdf   : > { %2535 = vmatprep.mubr.bf16.mxu1 %v4363_v5  ;;  %2664 = vmatprep.mubr.bf16.mxu0 %v4365_v6 }
  0xe6   : > { %2536 = vmatmul.mubr.bf16.gmra.mrb[96].mxu1 %v4367_v7  ;;  %2665 = vmatmul.mubr.bf16.gmra.mrb[96].mxu0 %v4368_v8 }
  0xe7   : > { %2543 = vmatprep.mubr.bf16.mxu1 %v4371_v9  ;;  %2672 = vmatprep.mubr.bf16.mxu0 %v4373_v11 }
  0xee   : > { %2544 = vmatmul.mubr.bf16.gmra.mrb[100].mxu1 %v4375_v12  ;;  %2673 = vmatmul.mubr.bf16.gmra.mrb[100].mxu0 %v4376_v13 }
  0xef   : > { %2551 = vmatprep.mubr.bf16.mxu1 %v4377_v14  ;;  %2680 = vmatprep.mubr.bf16.mxu0 %v4379_v15  ;;  %v4413_v14 = vld [vmem:[%s4549_s9 + $0x490] ss:$52 sps:$4 sm:$0xff]  }
  0xf0   : > { %v4414_v15 = vld [vmem:[%s4549_s9 + $0x430] ss:$52 sps:$4 sm:$0xff]  }
  0xf6   : > { %2552 = vmatmul.mubr.bf16.gmra.mrb[104].mxu1 %v4382_v16  ;;  %2681 = vmatmul.mubr.bf16.gmra.mrb[104].mxu0 %v4383_v17 }
  0xf7   : > { %2559 = vmatprep.mubr.bf16.mxu1 %v4386_v18  ;;  %2688 = vmatprep.mubr.bf16.mxu0 %v4388_v19 }
  0xf9   : > { %v3479_v20 = vpop.f32.mrb[0].mxu0  ;;  %v3521_v21 = vpop.f32.mrb[0].mxu1 }
  0xfa   : > { %v3480_v22 = vpop.f32.mrb[1].mxu0  ;;  %v3522_v23 = vpop.f32.mrb[1].mxu1 }
  0xfb   : > { %v4940_v26 = vadd.f32 %v3480_v22, %v3479_v20  ;;  %v3482_v27 = vpop.f32.mrb[2].mxu0  ;;  %v4942_v28 = vadd.f32 %v3522_v23, %v3521_v21  ;;  %v3524_v29 = vpop.f32.mrb[2].mxu1  ;;  %v4416_v20 = vld [vmem:[%s4549_s9 + $0x4fc] ss:$52 sps:$4 sm:$0xff]  }
  0xfc   : > { %v3483_v32 = vpop.f32.mrb[3].mxu0  ;;  %v3525_v33 = vpop.f32.mrb[3].mxu1  ;;  %v4418_v21 = vld [vmem:[%s4549_s9 + $0x49c] ss:$52 sps:$4 sm:$0xff]  }
  0xfd   : > { %v4946_v34 = vadd.f32 %v3483_v32, %v3482_v27  ;;  %v4948_v35 = vadd.f32 %v3525_v33, %v3524_v29 }
  0xfe   : > { %2560 = vmatmul.mubr.bf16.gmra.mrb[108].mxu1 %v4390_v24  ;;  %2689 = vmatmul.mubr.bf16.gmra.mrb[108].mxu0 %v4391_v25 }
  0xff   : > { %2567 = vmatprep.mubr.bf16.mxu1 %v4394_v30  ;;  %2696 = vmatprep.mubr.bf16.mxu0 %v4396_v31 }
 0x101   : > { %v3485_v36 = vpop.f32.mrb[4].mxu0  ;;  %v3527_v37 = vpop.f32.mrb[4].mxu1 }
 0x102   : > { %v3486_v38 = vpop.f32.mrb[5].mxu0  ;;  %v3528_v39 = vpop.f32.mrb[5].mxu1 }
 0x103   : > { %v4952_v42 = vadd.f32 %v3486_v38, %v3485_v36  ;;  %v3488_v43 = vpop.f32.mrb[6].mxu0  ;;  %v3529_v44 = vadd.f32 %v3528_v39, %v3527_v37  ;;  %v3530_v45 = vpop.f32.mrb[6].mxu1  ;;  %v4421_v36 = vld [vmem:[%s4549_s9 + $0x4f8] ss:$52 sps:$4 sm:$0xff]  }
 0x104   : > { %v3489_v49 = vpop.f32.mrb[7].mxu0  ;;  %v3531_v50 = vpop.f32.mrb[7].mxu1  ;;  %v4422_v37 = vld [vmem:[%s4549_s9 + $0x498] ss:$52 sps:$4 sm:$0xff]  }
 0x105   : > { %v4962_v51 = vadd.f32 %v3529_v44, %v4959_v48  ;;  %v4964_v52 = vadd.f32 %v3489_v49, %v3488_v43  ;;  %v3532_v53 = vadd.f32 %v3531_v50, %v3530_v45  ;;  %v4423_v43 = vld [vmem:[%s4549_s9 + $0x504] ss:$52 sps:$4 sm:$0xff]   ;;  %v4427_v44 = vld [vmem:[%s4549_s9 + $0x2c] ss:$52 sps:$4 sm:$0xff]  }
 0x106   : > { %2568 = vmatmul.mubr.bf16.gmra.mrb[112].mxu1 %v4398_v40  ;;  %2697 = vmatmul.mubr.bf16.gmra.mrb[112].mxu0 %v4399_v41 }
 0x107   : > { %v4967_v54 = vadd.f32 %v3532_v53, %v4959_v48  ;;  %2575 = vmatprep.mubr.bf16.mxu1 %v4400_v46  ;;  %2704 = vmatprep.mubr.bf16.mxu0 %v4402_v47 }
 0x109   : > { %v3491_v55 = vpop.f32.mrb[8].mxu0  ;;  %v3533_v56 = vpop.f32.mrb[8].mxu1 }
 0x10a   : > { %v3492_v57 = vpop.f32.mrb[9].mxu0  ;;  %v3534_v58 = vpop.f32.mrb[9].mxu1 }
 0x10b   : > { %v4971_v61 = vadd.f32 %v3492_v57, %v3491_v55  ;;  %v3494_v62 = vpop.f32.mrb[10].mxu0  ;;  %v3535_v63 = vadd.f32 %v3534_v58, %v3533_v56  ;;  %v3536_v0 = vpop.f32.mrb[10].mxu1 }
 0x10c   : > { %v3495_v3 = vpop.f32.mrb[11].mxu0  ;;  %v3537_v4 = vpop.f32.mrb[11].mxu1 }
 0x10d   : > { %v4976_v5 = vadd.f32 %v3535_v63, %v4959_v48  ;;  %v4978_v6 = vadd.f32 %v3495_v3, %v3494_v62  ;;  %v3538_v7 = vadd.f32 %v3537_v4, %v3536_v0 }
 0x10e   : > { %2576 = vmatmul.mubr.bf16.gmra.mrb[116].mxu1 %v4404_v59  ;;  %2705 = vmatmul.mubr.bf16.gmra.mrb[116].mxu0 %v4405_v60  ;;  %v4425_v59 = vld [vmem:[%s4549_s9 + $0x28] ss:$52 sps:$4 sm:$0xff]   ;;  %v4428_v60 = vld [vmem:[%s4549_s9 + $0x500] ss:$52 sps:$4 sm:$0xff]  }
 0x10f   : > { %v4981_v8 = vadd.f32 %v3538_v7, %v4959_v48  ;;  %2583 = vmatprep.mubr.bf16.mxu1 %v4408_v1  ;;  %2712 = vmatprep.mubr.bf16.mxu0 %v4410_v2  ;;  %v4429_v2 = vld [vmem:[%s4549_s9 + $0x94] ss:$52 sps:$4 sm:$0xff]  }
 0x111   : > { %v3497_v9 = vpop.f32.mrb[12].mxu0  ;;  %v3539_v11 = vpop.f32.mrb[12].mxu1 }
 0x112   : > { %v3498_v12 = vpop.f32.mrb[13].mxu0  ;;  %v3540_v13 = vpop.f32.mrb[13].mxu1 }
 0x113   : > { %v4985_v16 = vadd.f32 %v3498_v12, %v3497_v9  ;;  %v3500_v17 = vpop.f32.mrb[14].mxu0  ;;  %v3541_v18 = vadd.f32 %v3540_v13, %v3539_v11  ;;  %v3542_v19 = vpop.f32.mrb[14].mxu1 }
 0x114   : > { %v3501_v22 = vpop.f32.mrb[15].mxu0  ;;  %v3543_v23 = vpop.f32.mrb[15].mxu1 }
 0x115   : > { %v4990_v24 = vadd.f32 %v3541_v18, %v4959_v48  ;;  %v4992_v25 = vadd.f32 %v3501_v22, %v3500_v17  ;;  %v3544_v27 = vadd.f32 %v3543_v23, %v3542_v19  ;;  %v4431_v18 = vld [vmem:[%s4549_s9 + $0x90] ss:$52 sps:$4 sm:$0xff]  }
 0x116   : > { %2584 = vmatmul.mubr.bf16.gmra.mrb[120].mxu1 %v4413_v14  ;;  %2713 = vmatmul.mubr.bf16.gmra.mrb[120].mxu0 %v4414_v15  ;;  %v4432_v19 = vld [vmem:[%s4549_s9 + $0x30] ss:$52 sps:$4 sm:$0xff]  }
 0x117   : > { %v4995_v29 = vadd.f32 %v3544_v27, %v4959_v48  ;;  %2591 = vmatprep.mubr.bf16.mxu1 %v4416_v20  ;;  %2720 = vmatprep.mubr.bf16.mxu0 %v4418_v21  ;;  %v2087_v20 = vadd.f32 %v4940_v26, %v4959_v48 }
 0x119   : > { %v3503_v30 = vpop.f32.mrb[16].mxu0  ;;  %v3545_v31 = vpop.f32.mrb[16].mxu1 }
 0x11a   : > { %v3504_v32 = vpop.f32.mrb[17].mxu0  ;;  %v3546_v33 = vpop.f32.mrb[17].mxu1 }
 0x11b   : > { %v4999_v38 = vadd.f32 %v3504_v32, %v3503_v30  ;;  %v3506_v39 = vpop.f32.mrb[18].mxu0  ;;  %v3547_v40 = vadd.f32 %v3546_v33, %v3545_v31  ;;  %v3548_v41 = vpop.f32.mrb[18].mxu1  ;;  %v4433_v30 = vld [vmem:[%s4549_s9 + $0xfc] ss:$52 sps:$4 sm:$0xff]   ;;  %v2090_v33 = vadd.f32 %v4946_v34, %v4959_v48  ;;  %v2095_v34 = vadd.f32 %v4952_v42, %v4959_v48 }
 0x11c   : > { %v3507_v45 = vpop.f32.mrb[19].mxu0  ;;  %v3549_v46 = vpop.f32.mrb[19].mxu1 }
 0x11d   : > { %v5004_v47 = vadd.f32 %v3547_v40, %v4959_v48  ;;  %v5006_v49 = vadd.f32 %v3507_v45, %v3506_v39  ;;  %v3550_v50 = vadd.f32 %v3549_v46, %v3548_v41  ;;  %v4435_v45 = vld [vmem:[%s4549_s9 + $0xf8] ss:$52 sps:$4 sm:$0xff]  }
 0x11e   : > { %2592 = vmatmul.mubr.bf16.gmra.mrb[124].mxu1 %v4421_v36  ;;  %2721 = vmatmul.mubr.bf16.gmra.mrb[124].mxu0 %v4422_v37  ;;  %v4436_v46 = vld [vmem:[%s4549_s9 + $0x98] ss:$52 sps:$4 sm:$0xff]  }
 0x11f   : > { %v5009_v53 = vadd.f32 %v3550_v50, %v4959_v48  ;;  %2728 = vmatprep.mubr.bf16.mxu0 %v4423_v43  ;;  %2769 = vmatprep.mubr.bf16.mxu1 %v4427_v44 }
 0x121   : > { %v3509_v55 = vpop.f32.mrb[20].mxu0  ;;  %v3551_v56 = vpop.f32.mrb[20].mxu1 }
 0x122   : > { %v3510_v57 = vpop.f32.mrb[21].mxu0  ;;  %v3552_v58 = vpop.f32.mrb[21].mxu1 }
 0x123   : > { %v5013_v62 = vadd.f32 %v3510_v57, %v3509_v55  ;;  %v3512_v63 = vpop.f32.mrb[22].mxu0  ;;  %v3553_v0 = vadd.f32 %v3552_v58, %v3551_v56  ;;  %v3554_v1 = vpop.f32.mrb[22].mxu1  ;;  %v4437_v58 = vld [vmem:[%s4549_s9 + $0x164] ss:$52 sps:$4 sm:$0xff]  }
 0x124   : > { %v3513_v3 = vpop.f32.mrb[23].mxu0  ;;  %v3555_v4 = vpop.f32.mrb[23].mxu1 }
 0x125   : > { %v5017_v7 = vadd.f32 %v3553_v0, %v4959_v48  ;;  %v5019_v9 = vadd.f32 %v3513_v3, %v3512_v63  ;;  %v3556_v11 = vadd.f32 %v3555_v4, %v3554_v1 }
 0x126   : > { %2729 = vmatmul.mubr.bf16.gmra.mrb[128].mxu0 %v4428_v60  ;;  %2770 = vmatmul.mubr.bf16.vlgmr.msra.gmra.mrb[128].mxu1 %v4425_v59  ;;  %v2098_v59 = vadd.f32 %v4964_v52, %v4959_v48 }
 0x127   : > { %v5022_v12 = vadd.f32 %v3556_v11, %v4959_v48  ;;  %2777 = vmatprep.mubr.bf16.mxu1 %v4429_v2  ;;  %4052 = vmatprep.mubr.msk.bf16.mxu0 %vm4487_vm0, %v4486_v10 }
 0x129   : > { %v3515_v13 = vpop.f32.mrb[24].mxu0  ;;  %v3573_v14 = vpop.f32.mrb[24].mxu1 }
 0x12a   : > { %v3516_v15 = vpop.f32.mrb[25].mxu0  ;;  %v3574_v17 = vpop.f32.mrb[25].mxu1 }
 0x12b   : > { %v5030_v21 = vadd.f32 %v3516_v15, %v3515_v13  ;;  %v3575_v22 = vadd.f32 %v3574_v17, %v3573_v14  ;;  %v3518_v23 = vpop.f32.mrb[26].mxu0  ;;  %v3576_v27 = vpop.f32.mrb[26].mxu1  ;;  %v4439_v15 = vld [vmem:[%s4549_s9 + $0x160] ss:$52 sps:$4 sm:$0xff]  }
 0x12c   : > { %v3519_v31 = vpop.f32.mrb[27].mxu0  ;;  %v3577_v32 = vpop.f32.mrb[27].mxu1  ;;  %v4440_v17 = vld [vmem:[%s4549_s9 + $0x100] ss:$52 sps:$4 sm:$0xff]  }
 0x12d   : > { %v2224_v36 = vadd.f32 %v3575_v22, %v2087_v20  ;;  %v5035_v37 = vadd.f32 %v3519_v31, %v3518_v23  ;;  %v3578_v39 = vadd.f32 %v3577_v32, %v3576_v27  ;;  %v4441_v27 = vld [vmem:[%s4549_s9 + $0x1cc] ss:$52 sps:$4 sm:$0xff]  }
 0x12e   : > { %2778 = vmatmul.mubr.bf16.gmra.mrb[132].mxu1 %v4431_v18  ;;  %4053 = vmatmul.mubr.msk.bf16.vlgmr.msra.gmra.mrb[132].mxu0 %vm2012_vm1, %v4432_v19  ;;  %v2103_v18 = vadd.f32 %v4971_v61, %v4959_v48 }
 0x12f   : > { %v2227_v26 = vadd.f32 %v3578_v39, %v2090_v33  ;;  %2785 = vmatprep.mubr.bf16.mxu1 %v4433_v30  ;;  %4056 = vmatprep.mubr.msk.bf16.mxu0 %vm4487_vm0, %v4486_v10  ;;  %v2106_v30 = vadd.f32 %v4978_v6, %v4959_v48 }
 0x131   : > { %v3579_v40 = vpop.f32.mrb[28].mxu1  ;;  %v3667_v41 = vpop.f32.mrb[28].mxu0 }
 0x132   : > { %v3580_v43 = vpop.f32.mrb[29].mxu1  ;;  %v3668_v44 = vpop.f32.mrb[29].mxu0 }
 0x133   : > { %v3581_v50 = vadd.f32 %v3580_v43, %v3579_v40  ;;  %v3669_v55 = vadd.f32 %v3668_v44, %v3667_v41  ;;  %v3582_v56 = vpop.f32.mrb[30].mxu1  ;;  %v3670_v57 = vpop.f32.mrb[30].mxu0 }
 0x134   : > { %v3583_v60 = vpop.f32.mrb[31].mxu1  ;;  %v3671_v63 = vpop.f32.mrb[31].mxu0 }
 0x135   : > { %v2232_v0 = vadd.f32 %v3581_v50, %v2095_v34  ;;  %v5047_v1 = vadd.f32 %v3669_v55, %v2224_v36  ;;  %v3584_v2 = vadd.f32 %v3583_v60, %v3582_v56  ;;  %v3672_v3 = vadd.f32 %v3671_v63, %v3670_v57 }
 0x136   : > { %2786 = vmatmul.mubr.bf16.gmra.mrb[136].mxu1 %v4435_v45  ;;  %4057 = vmatmul.mubr.msk.bf16.gmra.mrb[136].mxu0 %vm2012_vm1, %v4436_v46  ;;  %v4443_v45 = vld [vmem:[%s4549_s9 + $0x1c8] ss:$52 sps:$4 sm:$0xff]   ;;  %v2111_v34 = vadd.f32 %v4985_v16, %v4959_v48 }
 0x137   : > { %v2235_v42 = vadd.f32 %v3584_v2, %v2098_v59  ;;  %v5050_v4 = vadd.f32 %v3672_v3, %v2227_v26  ;;  %2793 = vmatprep.mubr.bf16.mxu1 %v4437_v58  ;;  %4060 = vmatprep.mubr.msk.bf16.mxu0 %vm4487_vm0, %v4486_v10  ;;  %v4444_v46 = vld [vmem:[%s4549_s9 + $0x168] ss:$52 sps:$4 sm:$0xff]   ;;  %v2114_v59 = vadd.f32 %v4992_v25, %v4959_v48 }
 0x138   : > { %v4445_v58 = vld [vmem:[%s4549_s9 + $0x234] ss:$52 sps:$4 sm:$0xff]  }
 0x139   : > { %v3585_v52 = vpop.f32.mrb[32].mxu1  ;;  %v3673_v11 = vpop.f32.mrb[32].mxu0 }
 0x13a   : > { %v3586_v13 = vpop.f32.mrb[33].mxu1  ;;  %v3674_v14 = vpop.f32.mrb[33].mxu0 }
 0x13b   : > { %v3587_v19 = vadd.f32 %v3586_v13, %v3585_v52  ;;  %v3675_v20 = vadd.f32 %v3674_v14, %v3673_v11  ;;  %v3588_v22 = vpop.f32.mrb[34].mxu1  ;;  %v3676_v23 = vpop.f32.mrb[34].mxu0 }
 0x13c   : > { %v3589_v31 = vpop.f32.mrb[35].mxu1  ;;  %v3677_v32 = vpop.f32.mrb[35].mxu0 }
 0x13d   : > { %v2240_v33 = vadd.f32 %v3587_v19, %v2103_v18  ;;  %v5061_v36 = vadd.f32 %v3675_v20, %v2232_v0  ;;  %v3590_v39 = vadd.f32 %v3589_v31, %v3588_v22  ;;  %v3678_v26 = vadd.f32 %v3677_v32, %v3676_v23 }
 0x13e   : > { %2794 = vmatmul.mubr.bf16.gmra.mrb[140].mxu1 %v4439_v15  ;;  %4061 = vmatmul.mubr.msk.bf16.gmra.mrb[140].mxu0 %vm2012_vm1, %v4440_v17  ;;  %v4447_v15 = vld [vmem:[%s4549_s9 + $0x230] ss:$52 sps:$4 sm:$0xff]   ;;  %v2119_v18 = vadd.f32 %v4999_v38, %v4959_v48 }
 0x13f   : > { %v2243_v61 = vadd.f32 %v3590_v39, %v2106_v30  ;;  %v5064_v40 = vadd.f32 %v3678_v26, %v2235_v42  ;;  %2801 = vmatprep.mubr.bf16.mxu1 %v4441_v27  ;;  %4064 = vmatprep.mubr.msk.bf16.mxu0 %vm4487_vm0, %v4486_v10  ;;  %v4448_v17 = vld [vmem:[%s4549_s9 + $0x1d0] ss:$52 sps:$4 sm:$0xff]   ;;  %v2122_v30 = vadd.f32 %v5006_v49, %v4959_v48 }
 0x140   : > { %v4449_v27 = vld [vmem:[%s4549_s9 + $0x29c] ss:$52 sps:$4 sm:$0xff]  }
 0x141   : > { %v3591_v6 = vpop.f32.mrb[36].mxu1  ;;  %v3679_v41 = vpop.f32.mrb[36].mxu0 }
 0x142   : > { %v3592_v43 = vpop.f32.mrb[37].mxu1  ;;  %v3680_v44 = vpop.f32.mrb[37].mxu0 }
 0x143   : > { %v3593_v50 = vadd.f32 %v3592_v43, %v3591_v6  ;;  %v3681_v55 = vadd.f32 %v3680_v44, %v3679_v41  ;;  %v3594_v56 = vpop.f32.mrb[38].mxu1  ;;  %v3682_v57 = vpop.f32.mrb[38].mxu0 }
 0x144   : > { %v3595_v60 = vpop.f32.mrb[39].mxu1  ;;  %v3683_v63 = vpop.f32.mrb[39].mxu0 }
 0x145   : > { %v2248_v0 = vadd.f32 %v3593_v50, %v2111_v34  ;;  %v5075_v2 = vadd.f32 %v3681_v55, %v2240_v33  ;;  %v3596_v3 = vadd.f32 %v3595_v60, %v3594_v56  ;;  %v3684_v42 = vadd.f32 %v3683_v63, %v3682_v57 }
 0x146   : > { %2802 = vmatmul.mubr.bf16.gmra.mrb[144].mxu1 %v4443_v45  ;;  %4065 = vmatmul.mubr.msk.bf16.gmra.mrb[144].mxu0 %vm2012_vm1, %v4444_v46  ;;  %v4451_v45 = vld [vmem:[%s4549_s9 + $0x298] ss:$52 sps:$4 sm:$0xff]   ;;  %v2127_v34 = vadd.f32 %v5013_v62, %v4959_v48 }
 0x147   : > { %v2251_v16 = vadd.f32 %v3596_v3, %v2114_v59  ;;  %v5078_v52 = vadd.f32 %v3684_v42, %v2243_v61  ;;  %2809 = vmatprep.mubr.bf16.mxu1 %v4445_v58  ;;  %4068 = vmatprep.mubr.msk.bf16.mxu0 %vm4487_vm0, %v4486_v10  ;;  %v4452_v46 = vld [vmem:[%s4549_s9 + $0x238] ss:$52 sps:$4 sm:$0xff]   ;;  %v2130_v59 = vadd.f32 %v5019_v9, %v4959_v48 }
 0x148   : > { %v4453_v58 = vld [vmem:[%s4549_s9 + $0x304] ss:$52 sps:$4 sm:$0xff]  }
 0x149   : > { %v3597_v25 = vpop.f32.mrb[40].mxu1  ;;  %v3685_v11 = vpop.f32.mrb[40].mxu0 }
 0x14a   : > { %v3598_v13 = vpop.f32.mrb[41].mxu1  ;;  %v3686_v14 = vpop.f32.mrb[41].mxu0 }
 0x14b   : > { %v3599_v19 = vadd.f32 %v3598_v13, %v3597_v25  ;;  %v3687_v20 = vadd.f32 %v3686_v14, %v3685_v11  ;;  %v3600_v22 = vpop.f32.mrb[42].mxu1  ;;  %v3688_v23 = vpop.f32.mrb[42].mxu0 }
 0x14c   : > { %v3601_v31 = vpop.f32.mrb[43].mxu1  ;;  %v3689_v32 = vpop.f32.mrb[43].mxu0 }
 0x14d   : > { %v2256_v33 = vadd.f32 %v3599_v19, %v2119_v18  ;;  %v5089_v39 = vadd.f32 %v3687_v20, %v2248_v0  ;;  %v3602_v26 = vadd.f32 %v3601_v31, %v3600_v22  ;;  %v3690_v61 = vadd.f32 %v3689_v32, %v3688_v23 }
 0x14e   : > { %2810 = vmatmul.mubr.bf16.gmra.mrb[148].mxu1 %v4447_v15  ;;  %4069 = vmatmul.mubr.msk.bf16.gmra.mrb[148].mxu0 %vm2012_vm1, %v4448_v17  ;;  %v4455_v15 = vld [vmem:[%s4549_s9 + $0x300] ss:$52 sps:$4 sm:$0xff]   ;;  %v2135_v18 = vadd.f32 %v5030_v21, %v4959_v48 }
 0x14f   : > { %v2259_v38 = vadd.f32 %v3602_v26, %v2122_v30  ;;  %v5092_v6 = vadd.f32 %v3690_v61, %v2251_v16  ;;  %2817 = vmatprep.mubr.bf16.mxu1 %v4449_v27  ;;  %4072 = vmatprep.mubr.msk.bf16.mxu0 %vm4487_vm0, %v4486_v10  ;;  %v4456_v17 = vld [vmem:[%s4549_s9 + $0x2a0] ss:$52 sps:$4 sm:$0xff]   ;;  %v2138_v30 = vadd.f32 %v5035_v37, %v4959_v48 }
 0x150   : > { %v4457_v27 = vld [vmem:[%s4549_s9 + $0x36c] ss:$52 sps:$4 sm:$0xff]  }
 0x151   : > { %v3603_v49 = vpop.f32.mrb[44].mxu1  ;;  %v3691_v41 = vpop.f32.mrb[44].mxu0 }
 0x152   : > { %v3604_v43 = vpop.f32.mrb[45].mxu1  ;;  %v3692_v44 = vpop.f32.mrb[45].mxu0 }
 0x153   : > { %v3605_v50 = vadd.f32 %v3604_v43, %v3603_v49  ;;  %v3693_v55 = vadd.f32 %v3692_v44, %v3691_v41  ;;  %v3606_v56 = vpop.f32.mrb[46].mxu1  ;;  %v3694_v57 = vpop.f32.mrb[46].mxu0 }
 0x154   : > { %v3607_v60 = vpop.f32.mrb[47].mxu1  ;;  %v3695_v63 = vpop.f32.mrb[47].mxu0 }
 0x155   : > { %v2264_v0 = vadd.f32 %v3605_v50, %v2127_v34  ;;  %v5103_v3 = vadd.f32 %v3693_v55, %v2256_v33  ;;  %v3608_v42 = vadd.f32 %v3607_v60, %v3606_v56  ;;  %v3696_v16 = vadd.f32 %v3695_v63, %v3694_v57 }
 0x156   : > { %2818 = vmatmul.mubr.bf16.gmra.mrb[152].mxu1 %v4451_v45  ;;  %4073 = vmatmul.mubr.msk.bf16.gmra.mrb[152].mxu0 %vm2012_vm1, %v4452_v46  ;;  %v4459_v45 = vld [vmem:[%s4549_s9 + $0x368] ss:$52 sps:$4 sm:$0xff]   ;;  %v2143_v34 = vadd.f32 %v4942_v28, %v4959_v48 }
 0x157   : > { %v2267_v62 = vadd.f32 %v3608_v42, %v2130_v59  ;;  %v5106_v25 = vadd.f32 %v3696_v16, %v2259_v38  ;;  %2825 = vmatprep.mubr.bf16.mxu1 %v4453_v58  ;;  %4076 = vmatprep.mubr.msk.bf16.mxu0 %vm4487_vm0, %v4486_v10  ;;  %v4460_v46 = vld [vmem:[%s4549_s9 + $0x308] ss:$52 sps:$4 sm:$0xff]   ;;  %v2146_v59 = vadd.f32 %v4948_v35, %v4959_v48 }
 0x158   : > { %v4461_v58 = vld [vmem:[%s4549_s9 + $0x3d4] ss:$52 sps:$4 sm:$0xff]  }
 0x159   : > { %v3609_v9 = vpop.f32.mrb[48].mxu1  ;;  %v3697_v11 = vpop.f32.mrb[48].mxu0 }
 0x15a   : > { %v3610_v13 = vpop.f32.mrb[49].mxu1  ;;  %v3698_v14 = vpop.f32.mrb[49].mxu0 }
 0x15b   : > { %v3611_v19 = vadd.f32 %v3610_v13, %v3609_v9  ;;  %v3699_v20 = vadd.f32 %v3698_v14, %v3697_v11  ;;  %v3612_v22 = vpop.f32.mrb[50].mxu1  ;;  %v3700_v23 = vpop.f32.mrb[50].mxu0  ;;  %v4463_v14 = vld [vmem:[%s4549_s9 + $0x3d0] ss:$52 sps:$4 sm:$0xff]  }
 0x15c   : > { %v3613_v31 = vpop.f32.mrb[51].mxu1  ;;  %v3701_v32 = vpop.f32.mrb[51].mxu0 }
 0x15d   : > { %v2272_v33 = vadd.f32 %v3611_v19, %v2135_v18  ;;  %v5117_v26 = vadd.f32 %v3699_v20, %v2264_v0  ;;  %v3614_v61 = vadd.f32 %v3613_v31, %v3612_v22  ;;  %v3702_v38 = vadd.f32 %v3701_v32, %v3700_v23  ;;  %v4465_v22 = vld [vmem:[%s4549_s9 + $0x43c] ss:$52 sps:$4 sm:$0xff]  }
 0x15e   : > { %2826 = vmatmul.mubr.bf16.gmra.mrb[156].mxu1 %v4455_v15  ;;  %4077 = vmatmul.mubr.msk.bf16.gmra.mrb[156].mxu0 %vm2012_vm1, %v4456_v17  ;;  %v4464_v15 = vld [vmem:[%s4549_s9 + $0x370] ss:$52 sps:$4 sm:$0xff]  }
 0x15f   : > { %v2275_v21 = vadd.f32 %v3614_v61, %v2138_v30  ;;  %v5120_v49 = vadd.f32 %v3702_v38, %v2267_v62  ;;  %2833 = vmatprep.mubr.bf16.mxu1 %v4457_v27  ;;  %4080 = vmatprep.mubr.msk.bf16.mxu0 %vm4487_vm0, %v4486_v10 }
 0x161   : > { %v3615_v37 = vpop.f32.mrb[52].mxu1  ;;  %v3703_v41 = vpop.f32.mrb[52].mxu0 }
 0x162   : > { %v3616_v43 = vpop.f32.mrb[53].mxu1  ;;  %v3704_v44 = vpop.f32.mrb[53].mxu0 }
 0x163   : > { %v3617_v50 = vadd.f32 %v3616_v43, %v3615_v37  ;;  %v3705_v55 = vadd.f32 %v3704_v44, %v3703_v41  ;;  %v3618_v56 = vpop.f32.mrb[54].mxu1  ;;  %v3706_v57 = vpop.f32.mrb[54].mxu0  ;;  %v4467_v43 = vld [vmem:[%s4549_s9 + $0x438] ss:$52 sps:$4 sm:$0xff]  }
 0x164   : > { %v3619_v60 = vpop.f32.mrb[55].mxu1  ;;  %v3707_v63 = vpop.f32.mrb[55].mxu0  ;;  %v4468_v44 = vld [vmem:[%s4549_s9 + $0x3d8] ss:$52 sps:$4 sm:$0xff]  }
 0x165   : > { %v2280_v0 = vadd.f32 %v3617_v50, %v2143_v34  ;;  %v5131_v42 = vadd.f32 %v3705_v55, %v2272_v33  ;;  %v3620_v16 = vadd.f32 %v3619_v60, %v3618_v56  ;;  %v3708_v62 = vadd.f32 %v3707_v63, %v3706_v57  ;;  %v4469_v55 = vld [vmem:[%s4549_s9 + $0x4a4] ss:$52 sps:$4 sm:$0xff]  }
 0x166   : > { %2834 = vmatmul.mubr.bf16.gmra.mrb[160].mxu1 %v4459_v45  ;;  %4081 = vmatmul.mubr.msk.bf16.gmra.mrb[160].mxu0 %vm2012_vm1, %v4460_v46 }
 0x167   : > { %v2283_v28 = vadd.f32 %v3620_v16, %v2146_v59  ;;  %v5134_v9 = vadd.f32 %v3708_v62, %v2275_v21  ;;  %2841 = vmatprep.mubr.bf16.mxu1 %v4461_v58  ;;  %4084 = vmatprep.mubr.msk.bf16.mxu0 %vm4487_vm0, %v4486_v10 }
 0x169   : > { %v3621_v35 = vpop.f32.mrb[56].mxu1  ;;  %v3709_v48 = vpop.f32.mrb[56].mxu0 }
 0x16a   : > { %v3622_v11 = vpop.f32.mrb[57].mxu1  ;;  %v3710_v13 = vpop.f32.mrb[57].mxu0 }
 0x16b   : > { %v3623_v17 = vadd.f32 %v3622_v11, %v3621_v35  ;;  %v3711_v18 = vadd.f32 %v3710_v13, %v3709_v48  ;;  %v3624_v19 = vpop.f32.mrb[58].mxu1  ;;  %v3712_v20 = vpop.f32.mrb[58].mxu0  ;;  %v4471_v35 = vld [vmem:[%s4549_s9 + $0x4a0] ss:$52 sps:$4 sm:$0xff]  }
 0x16c   : > { %v3625_v23 = vpop.f32.mrb[59].mxu1  ;;  %v3713_v27 = vpop.f32.mrb[59].mxu0  ;;  %v4472_v48 = vld [vmem:[%s4549_s9 + $0x440] ss:$52 sps:$4 sm:$0xff]  }
 0x16d   : > { %v2288_v30 = vadd.f32 %v3623_v17, %v4962_v51  ;;  %v5142_v31 = vadd.f32 %v3711_v18, %v2280_v0  ;;  %v3626_v32 = vadd.f32 %v3625_v23, %v3624_v19  ;;  %v3714_v33 = vadd.f32 %v3713_v27, %v3712_v20  ;;  %v4473_v17 = vld [vmem:[%s4549_s9 + $0x50c] ss:$52 sps:$4 sm:$0xff]  }
 0x16e   : > { %2842 = vmatmul.mubr.bf16.gmra.mrb[164].mxu1 %v4463_v14  ;;  %4085 = vmatmul.mubr.msk.bf16.gmra.mrb[164].mxu0 %vm2012_vm1, %v4464_v15 }
 0x16f   : > { %v2291_v61 = vadd.f32 %v3626_v32, %v4967_v54  ;;  %v5146_v38 = vadd.f32 %v3714_v33, %v2283_v28  ;;  %2849 = vmatprep.mubr.bf16.mxu1 %v4465_v22  ;;  %4088 = vmatprep.mubr.msk.bf16.mxu0 %vm4487_vm0, %v4486_v10 }
 0x171   : > { %v3627_v21 = vpop.f32.mrb[60].mxu1  ;;  %v3715_v37 = vpop.f32.mrb[60].mxu0 }
 0x172   : > { %v3628_v41 = vpop.f32.mrb[61].mxu1  ;;  %v3716_v51 = vpop.f32.mrb[61].mxu0 }
 0x173   : > { %v3629_v45 = vadd.f32 %v3628_v41, %v3627_v21  ;;  %v3717_v46 = vadd.f32 %v3716_v51, %v3715_v37  ;;  %v3630_v34 = vpop.f32.mrb[62].mxu1  ;;  %v3718_v50 = vpop.f32.mrb[62].mxu0  ;;  %v4476_v37 = vld [vmem:[%s4549_s9 + $0x4a8] ss:$52 sps:$4 sm:$0xff]  }
 0x174   : > { %v3631_v56 = vpop.f32.mrb[63].mxu1  ;;  %v3719_v54 = vpop.f32.mrb[63].mxu0 }
 0x175   : > { %v2296_v57 = vadd.f32 %v3629_v45, %v4976_v5  ;;  %v5154_v58 = vadd.f32 %v3717_v46, %v2288_v30  ;;  %v3632_v59 = vadd.f32 %v3631_v56, %v3630_v34  ;;  %v3720_v60 = vadd.f32 %v3719_v54, %v3718_v50 }
 0x176   : > { %2850 = vmatmul.mubr.bf16.gmra.mrb[168].mxu1 %v4467_v43  ;;  %4089 = vmatmul.mubr.msk.bf16.gmra.mrb[168].mxu0 %vm2012_vm1, %v4468_v44 }
 0x177   : > { %v2299_v63 = vadd.f32 %v3632_v59, %v4981_v8  ;;  %v5158_v0 = vadd.f32 %v3720_v60, %v2291_v61  ;;  %2857 = vmatprep.mubr.bf16.mxu1 %v4469_v55  ;;  %4092 = vmatprep.mubr.msk.bf16.mxu0 %vm4487_vm0, %v4486_v10 }
 0x179   : > { %v3633_v16 = vpop.f32.mrb[64].mxu1  ;;  %v3721_v62 = vpop.f32.mrb[64].mxu0 }
 0x17a   : > { %v3634_v28 = vpop.f32.mrb[65].mxu1  ;;  %v3722_v5 = vpop.f32.mrb[65].mxu0 }
 0x17b   : > { %v3635_v11 = vadd.f32 %v3634_v28, %v3633_v16  ;;  %v3723_v13 = vadd.f32 %v3722_v5, %v3721_v62  ;;  %v3636_v14 = vpop.f32.mrb[66].mxu1  ;;  %v3724_v15 = vpop.f32.mrb[66].mxu0  ;;  %v4477_v16 = vld [vmem:[%s4549_s9 + $0x510] ss:$52 sps:$4 sm:$0xff]  }
 0x17c   : > { %v3637_v18 = vpop.f32.mrb[67].mxu1  ;;  %v3725_v8 = vpop.f32.mrb[67].mxu0 }
 0x17d   : > { %v2304_v19 = vadd.f32 %v3635_v11, %v4990_v24  ;;  %v5166_v20 = vadd.f32 %v3723_v13, %v2296_v57  ;;  %v3638_v22 = vadd.f32 %v3637_v18, %v3636_v14  ;;  %v3726_v23 = vadd.f32 %v3725_v8, %v3724_v15  ;;  %v4475_v24 = vld [vmem:[%s4549_s9 + $0x508] ss:$52 sps:$4 sm:$0xff]   ;;  %s3177_s9 = sshll.u32 %s5341_s16, 3 }
 0x17e   : > { %2858 = vmatmul.mubr.bf16.gmra.mrb[172].mxu1 %v4471_v35  ;;  %4093 = vmatmul.mubr.msk.bf16.gmra.mrb[172].mxu0 %vm2012_vm1, %v4472_v48  ;;  %s5281_s30 = scalar_lea.vmem %s5339_s3, %s3177_s9 }
 0x17f   : > { %v2307_v27 = vadd.f32 %v3638_v22, %v4995_v29  ;;  %v5170_v30 = vadd.f32 %v3726_v23, %v2299_v63  ;;  %2865 = vmatprep.mubr.bf16.mxu1 %v4473_v17  ;;  %4096 = vmatprep.mubr.msk.bf16.mxu0 %vm4487_vm0, %v4486_v10 }
 0x181   : > { %v3639_v32 = vpop.f32.mrb[68].mxu1  ;;  %v3727_v33 = vpop.f32.mrb[68].mxu0 }
 0x182   : > { %v3640_v61 = vpop.f32.mrb[69].mxu1  ;;  %v3728_v21 = vpop.f32.mrb[69].mxu0 }
 0x183   : > { %v3641_v41 = vadd.f32 %v3640_v61, %v3639_v32  ;;  %v3729_v51 = vadd.f32 %v3728_v21, %v3727_v33  ;;  %v3642_v43 = vpop.f32.mrb[70].mxu1  ;;  %v3730_v44 = vpop.f32.mrb[70].mxu0 }
 0x184   : > { %v3643_v45 = vpop.f32.mrb[71].mxu1  ;;  %v3731_v46 = vpop.f32.mrb[71].mxu0 }
 0x185   : > { %v2312_v29 = vadd.f32 %v3641_v41, %v5004_v47  ;;  %v5177_v34 = vadd.f32 %v3729_v51, %v2304_v19  ;;  %v3644_v50 = vadd.f32 %v3643_v45, %v3642_v43  ;;  %v3732_v55 = vadd.f32 %v3731_v46, %v3730_v44 }
 0x186   : > { %2866 = vmatmul.mubr.bf16.gmra.mrb[176].mxu1 %v4475_v24  ;;  %4097 = vmatmul.mubr.msk.bf16.gmra.mrb[176].mxu0 %vm2012_vm1, %v4476_v37 }
 0x187   : > { %v2315_v56 = vadd.f32 %v3644_v50, %v5009_v53  ;;  %v5181_v54 = vadd.f32 %v3732_v55, %v2307_v27  ;;  %4100 = vmatprep.mubr.msk.bf16.mxu0 %vm4487_vm0, %v4486_v10 }
 0x189   : > { %v3645_v57 = vpop.f32.mrb[72].mxu1  ;;  %v3733_v59 = vpop.f32.mrb[72].mxu0 }
 0x18a   : > { %v3646_v60 = vpop.f32.mrb[73].mxu1  ;;  %v3734_v63 = vpop.f32.mrb[73].mxu0 }
 0x18b   : > { %v3647_v47 = vadd.f32 %v3646_v60, %v3645_v57  ;;  %v3735_v62 = vadd.f32 %v3734_v63, %v3733_v59  ;;  %v3648_v28 = vpop.f32.mrb[74].mxu1  ;;  %v3736_v5 = vpop.f32.mrb[74].mxu0 }
 0x18c   : > { %v3649_v35 = vpop.f32.mrb[75].mxu1  ;;  %v3737_v48 = vpop.f32.mrb[75].mxu0 }
 0x18d   : > { %v2320_v11 = vadd.f32 %v3647_v47, %v5017_v7  ;;  %v5187_v13 = vadd.f32 %v3735_v62, %v2312_v29  ;;  %v3650_v53 = vadd.f32 %v3649_v35, %v3648_v28  ;;  %v3738_v14 = vadd.f32 %v3737_v48, %v3736_v5 }
 0x18e   : > { %4101 = vmatmul.mubr.msk.bf16.gmra.mrb[180].mxu0 %vm2012_vm1, %v4477_v16 }
 0x18f   : > { %v2323_v10 = vadd.f32 %v3650_v53, %v5022_v12  ;;  %v5191_v15 = vadd.f32 %v3738_v14, %v2315_v56 }
 0x191   : > { %v3739_v17 = vpop.f32.mrb[76].mxu0  ;;  %v3761_v18 = vpop.f32.mrb[76].mxu1 }
 0x192   : > { %v3740_v8 = vpop.f32.mrb[77].mxu0  ;;  %v3762_v19 = vpop.f32.mrb[77].mxu1 }
 0x193   : > { %v3741_v22 = vadd.f32 %v3740_v8, %v3739_v17  ;;  %v3763_v23 = vadd.f32 %v3762_v19, %v3761_v18  ;;  %v3742_v27 = vpop.f32.mrb[78].mxu0  ;;  %v3764_v32 = vpop.f32.mrb[78].mxu1 }
 0x194   : > { %v3743_v33 = vpop.f32.mrb[79].mxu0  ;;  %v3765_v7 = vpop.f32.mrb[79].mxu1 }
 0x195   : > { %v5193_v61 = vadd.f32 %v3741_v22, %v2320_v11  ;;  %v2498_v21 = vadd.f32 %v3763_v23, %v5047_v1  ;;  %v3744_v24 = vadd.f32 %v3743_v33, %v3742_v27  ;;  %v3766_v37 = vadd.f32 %v3765_v7, %v3764_v32 }
 0x197   : > { %v5196_v41 = vadd.f32 %v3744_v24, %v2323_v10  ;;  %v2501_v12 = vadd.f32 %v3766_v37, %v5050_v4 }
 0x199   : > { %v3767_v51 = vpop.f32.mrb[80].mxu1  ;;  %v3855_v43 = vpop.f32.mrb[80].mxu0 }
 0x19a   : > { %v3768_v44 = vpop.f32.mrb[81].mxu1  ;;  %v3856_v45 = vpop.f32.mrb[81].mxu0 }
 0x19b   : > { %v3769_v46 = vadd.f32 %v3768_v44, %v3767_v51  ;;  %v3857_v29 = vadd.f32 %v3856_v45, %v3855_v43  ;;  %v3770_v50 = vpop.f32.mrb[82].mxu1  ;;  %v3858_v55 = vpop.f32.mrb[82].mxu0 }
 0x19c   : > { %v3771_v56 = vpop.f32.mrb[83].mxu1  ;;  %v3859_v57 = vpop.f32.mrb[83].mxu0 }
 0x19d   : > { %v2506_v59 = vadd.f32 %v3769_v46, %v5061_v36  ;;  %v5200_v60 = vadd.f32 %v3857_v29, %v2498_v21  ;;  %v3772_v1 = vadd.f32 %v3771_v56, %v3770_v50  ;;  %v3860_v63 = vadd.f32 %v3859_v57, %v3858_v55 }
 0x19f   : > { %v2509_v16 = vadd.f32 %v3772_v1, %v5064_v40  ;;  %v5203_v47 = vadd.f32 %v3860_v63, %v2501_v12 }
 0x1a1   : > { %v3773_v4 = vpop.f32.mrb[84].mxu1  ;;  %v3861_v62 = vpop.f32.mrb[84].mxu0 }
 0x1a2   : > { %v3774_v28 = vpop.f32.mrb[85].mxu1  ;;  %v3862_v5 = vpop.f32.mrb[85].mxu0 }
 0x1a3   : > { %v3775_v35 = vadd.f32 %v3774_v28, %v3773_v4  ;;  %v3863_v48 = vadd.f32 %v3862_v5, %v3861_v62  ;;  %v3776_v11 = vpop.f32.mrb[86].mxu1  ;;  %v3864_v53 = vpop.f32.mrb[86].mxu0 }
 0x1a4   : > { %v3777_v14 = vpop.f32.mrb[87].mxu1  ;;  %v3865_v10 = vpop.f32.mrb[87].mxu0 }
 0x1a5   : > { %v2514_v36 = vadd.f32 %v3775_v35, %v5075_v2  ;;  %v5206_v17 = vadd.f32 %v3863_v48, %v2506_v59  ;;  %v3778_v18 = vadd.f32 %v3777_v14, %v3776_v11  ;;  %v3866_v8 = vadd.f32 %v3865_v10, %v3864_v53 }
 0x1a7   : > { %v2517_v40 = vadd.f32 %v3778_v18, %v5078_v52  ;;  %v5209_v19 = vadd.f32 %v3866_v8, %v2509_v16 }
 0x1a9   : > { %v3779_v22 = vpop.f32.mrb[88].mxu1  ;;  %v3867_v23 = vpop.f32.mrb[88].mxu0 }
 0x1aa   : > { %v3780_v27 = vpop.f32.mrb[89].mxu1  ;;  %v3868_v32 = vpop.f32.mrb[89].mxu0 }
 0x1ab   : > { %v3781_v33 = vadd.f32 %v3780_v27, %v3779_v22  ;;  %v3869_v7 = vadd.f32 %v3868_v32, %v3867_v23  ;;  %v3782_v21 = vpop.f32.mrb[90].mxu1  ;;  %v3870_v24 = vpop.f32.mrb[90].mxu0 }
 0x1ac   : > { %v3783_v37 = vpop.f32.mrb[91].mxu1  ;;  %v3871_v12 = vpop.f32.mrb[91].mxu0 }
 0x1ad   : > { %v2522_v2 = vadd.f32 %v3781_v33, %v5089_v39  ;;  %v5212_v51 = vadd.f32 %v3869_v7, %v2514_v36  ;;  %v3784_v43 = vadd.f32 %v3783_v37, %v3782_v21  ;;  %v3872_v44 = vadd.f32 %v3871_v12, %v3870_v24 }
 0x1af   : > { %v2525_v52 = vadd.f32 %v3784_v43, %v5092_v6  ;;  %v5215_v45 = vadd.f32 %v3872_v44, %v2517_v40 }
 0x1b1   : > { %v3785_v46 = vpop.f32.mrb[92].mxu1  ;;  %v3873_v29 = vpop.f32.mrb[92].mxu0 }
 0x1b2   : > { %v3786_v50 = vpop.f32.mrb[93].mxu1  ;;  %v3874_v55 = vpop.f32.mrb[93].mxu0 }
 0x1b3   : > { %v3787_v56 = vadd.f32 %v3786_v50, %v3785_v46  ;;  %v3875_v57 = vadd.f32 %v3874_v55, %v3873_v29  ;;  %v3788_v59 = vpop.f32.mrb[94].mxu1  ;;  %v3876_v1 = vpop.f32.mrb[94].mxu0 }
 0x1b4   : > { %v3789_v63 = vpop.f32.mrb[95].mxu1  ;;  %v3877_v16 = vpop.f32.mrb[95].mxu0 }
 0x1b5   : > { %v2530_v39 = vadd.f32 %v3787_v56, %v5103_v3  ;;  %v5218_v4 = vadd.f32 %v3875_v57, %v2522_v2  ;;  %v3790_v62 = vadd.f32 %v3789_v63, %v3788_v59  ;;  %v3878_v28 = vadd.f32 %v3877_v16, %v3876_v1 }
 0x1b7   : > { %v2533_v6 = vadd.f32 %v3790_v62, %v5106_v25  ;;  %v5221_v5 = vadd.f32 %v3878_v28, %v2525_v52 }
 0x1b9   : > { %v3791_v35 = vpop.f32.mrb[96].mxu1  ;;  %v3879_v48 = vpop.f32.mrb[96].mxu0 }
 0x1ba   : > { %v3792_v11 = vpop.f32.mrb[97].mxu1  ;;  %v3880_v53 = vpop.f32.mrb[97].mxu0 }
 0x1bb   : > { %v3793_v14 = vadd.f32 %v3792_v11, %v3791_v35  ;;  %v3881_v10 = vadd.f32 %v3880_v53, %v3879_v48  ;;  %v3794_v36 = vpop.f32.mrb[98].mxu1  ;;  %v3882_v18 = vpop.f32.mrb[98].mxu0 }
 0x1bc   : > { %v3795_v8 = vpop.f32.mrb[99].mxu1  ;;  %v3883_v40 = vpop.f32.mrb[99].mxu0 }
 0x1bd   : > { %v2538_v3 = vadd.f32 %v3793_v14, %v5117_v26  ;;  %v5224_v22 = vadd.f32 %v3881_v10, %v2530_v39  ;;  %v3796_v23 = vadd.f32 %v3795_v8, %v3794_v36  ;;  %v3884_v27 = vadd.f32 %v3883_v40, %v3882_v18 }
 0x1bf   : > { %v2541_v25 = vadd.f32 %v3796_v23, %v5120_v49  ;;  %v5227_v32 = vadd.f32 %v3884_v27, %v2533_v6 }
 0x1c1   : > { %v3797_v33 = vpop.f32.mrb[100].mxu1  ;;  %v3885_v7 = vpop.f32.mrb[100].mxu0 }
 0x1c2   : > { %v3798_v21 = vpop.f32.mrb[101].mxu1  ;;  %v3886_v24 = vpop.f32.mrb[101].mxu0 }
 0x1c3   : > { %v3799_v37 = vadd.f32 %v3798_v21, %v3797_v33  ;;  %v3887_v12 = vadd.f32 %v3886_v24, %v3885_v7  ;;  %v3800_v2 = vpop.f32.mrb[102].mxu1  ;;  %v3888_v43 = vpop.f32.mrb[102].mxu0 }
 0x1c4   : > { %v3801_v44 = vpop.f32.mrb[103].mxu1  ;;  %v3889_v52 = vpop.f32.mrb[103].mxu0 }
 0x1c5   : > { %v2546_v26 = vadd.f32 %v3799_v37, %v5131_v42  ;;  %v5230_v46 = vadd.f32 %v3887_v12, %v2538_v3  ;;  %v3802_v29 = vadd.f32 %v3801_v44, %v3800_v2  ;;  %v3890_v50 = vadd.f32 %v3889_v52, %v3888_v43 }
 0x1c7   : > { %v2549_v49 = vadd.f32 %v3802_v29, %v5134_v9  ;;  %v5233_v55 = vadd.f32 %v3890_v50, %v2541_v25 }
 0x1c9   : > { %v3803_v56 = vpop.f32.mrb[104].mxu1  ;;  %v3891_v57 = vpop.f32.mrb[104].mxu0 }
 0x1ca   : > { %v3804_v59 = vpop.f32.mrb[105].mxu1  ;;  %v3892_v1 = vpop.f32.mrb[105].mxu0 }
 0x1cb   : > { %v3805_v63 = vadd.f32 %v3804_v59, %v3803_v56  ;;  %v3893_v16 = vadd.f32 %v3892_v1, %v3891_v57  ;;  %v3806_v39 = vpop.f32.mrb[106].mxu1  ;;  %v3894_v62 = vpop.f32.mrb[106].mxu0 }
 0x1cc   : > { %v3807_v28 = vpop.f32.mrb[107].mxu1  ;;  %v3895_v6 = vpop.f32.mrb[107].mxu0 }
 0x1cd   : > { %v2554_v42 = vadd.f32 %v3805_v63, %v5142_v31  ;;  %v5236_v35 = vadd.f32 %v3893_v16, %v2546_v26  ;;  %v3808_v48 = vadd.f32 %v3807_v28, %v3806_v39  ;;  %v3896_v11 = vadd.f32 %v3895_v6, %v3894_v62 }
 0x1cf   : > { %v2557_v9 = vadd.f32 %v3808_v48, %v5146_v38  ;;  %v5239_v53 = vadd.f32 %v3896_v11, %v2549_v49 }
 0x1d1   : > { %v3809_v14 = vpop.f32.mrb[108].mxu1  ;;  %v3897_v10 = vpop.f32.mrb[108].mxu0 }
 0x1d2   : > { %v3810_v36 = vpop.f32.mrb[109].mxu1  ;;  %v3898_v18 = vpop.f32.mrb[109].mxu0 }
 0x1d3   : > { %v3811_v8 = vadd.f32 %v3810_v36, %v3809_v14  ;;  %v3899_v40 = vadd.f32 %v3898_v18, %v3897_v10  ;;  %v3812_v3 = vpop.f32.mrb[110].mxu1  ;;  %v3900_v23 = vpop.f32.mrb[110].mxu0 }
 0x1d4   : > { %v3813_v27 = vpop.f32.mrb[111].mxu1  ;;  %v3901_v25 = vpop.f32.mrb[111].mxu0 }
 0x1d5   : > { %v2562_v31 = vadd.f32 %v3811_v8, %v5154_v58  ;;  %v5242_v33 = vadd.f32 %v3899_v40, %v2554_v42  ;;  %v3814_v7 = vadd.f32 %v3813_v27, %v3812_v3  ;;  %v3902_v21 = vadd.f32 %v3901_v25, %v3900_v23 }
 0x1d7   : > { %v2565_v38 = vadd.f32 %v3814_v7, %v5158_v0  ;;  %v5245_v24 = vadd.f32 %v3902_v21, %v2557_v9 }
 0x1d9   : > { %v3815_v37 = vpop.f32.mrb[112].mxu1  ;;  %v3903_v12 = vpop.f32.mrb[112].mxu0 }
 0x1da   : > { %v3816_v2 = vpop.f32.mrb[113].mxu1  ;;  %v3904_v43 = vpop.f32.mrb[113].mxu0 }
 0x1db   : > { %v3817_v44 = vadd.f32 %v3816_v2, %v3815_v37  ;;  %v3905_v52 = vadd.f32 %v3904_v43, %v3903_v12  ;;  %v3818_v26 = vpop.f32.mrb[114].mxu1  ;;  %v3906_v29 = vpop.f32.mrb[114].mxu0 }
 0x1dc   : > { %v3819_v50 = vpop.f32.mrb[115].mxu1  ;;  %v3907_v49 = vpop.f32.mrb[115].mxu0 }
 0x1dd   : > { %v2570_v58 = vadd.f32 %v3817_v44, %v5166_v20  ;;  %v5248_v56 = vadd.f32 %v3905_v52, %v2562_v31  ;;  %v3820_v57 = vadd.f32 %v3819_v50, %v3818_v26  ;;  %v3908_v59 = vadd.f32 %v3907_v49, %v3906_v29 }
 0x1df   : > { %v2573_v0 = vadd.f32 %v3820_v57, %v5170_v30  ;;  %v5251_v1 = vadd.f32 %v3908_v59, %v2565_v38 }
 0x1e1   : > { %v3821_v63 = vpop.f32.mrb[116].mxu1  ;;  %v3909_v16 = vpop.f32.mrb[116].mxu0 }
 0x1e2   : > { %v3822_v39 = vpop.f32.mrb[117].mxu1  ;;  %v3910_v62 = vpop.f32.mrb[117].mxu0 }
 0x1e3   : > { %v3823_v28 = vadd.f32 %v3822_v39, %v3821_v63  ;;  %v3911_v6 = vadd.f32 %v3910_v62, %v3909_v16  ;;  %v3824_v42 = vpop.f32.mrb[118].mxu1  ;;  %v3912_v48 = vpop.f32.mrb[118].mxu0 }
 0x1e4   : > { %v3825_v11 = vpop.f32.mrb[119].mxu1  ;;  %v3913_v9 = vpop.f32.mrb[119].mxu0 }
 0x1e5   : > { %v2578_v20 = vadd.f32 %v3823_v28, %v5177_v34  ;;  %v5254_v14 = vadd.f32 %v3911_v6, %v2570_v58  ;;  %v3826_v10 = vadd.f32 %v3825_v11, %v3824_v42  ;;  %v3914_v36 = vadd.f32 %v3913_v9, %v3912_v48 }
 0x1e7   : > { %v2581_v30 = vadd.f32 %v3826_v10, %v5181_v54  ;;  %v5257_v18 = vadd.f32 %v3914_v36, %v2573_v0 }
 0x1e9   : > { %v3827_v8 = vpop.f32.mrb[120].mxu1  ;;  %v3915_v40 = vpop.f32.mrb[120].mxu0 }
 0x1ea   : > { %v3828_v3 = vpop.f32.mrb[121].mxu1  ;;  %v3916_v23 = vpop.f32.mrb[121].mxu0 }
 0x1eb   : > { %v3829_v27 = vadd.f32 %v3828_v3, %v3827_v8  ;;  %v3917_v25 = vadd.f32 %v3916_v23, %v3915_v40  ;;  %v3830_v31 = vpop.f32.mrb[122].mxu1  ;;  %v3918_v7 = vpop.f32.mrb[122].mxu0 }
 0x1ec   : > { %v3831_v21 = vpop.f32.mrb[123].mxu1  ;;  %v3919_v38 = vpop.f32.mrb[123].mxu0 }
 0x1ed   : > { %v2586_v34 = vadd.f32 %v3829_v27, %v5187_v13  ;;  %v5260_v37 = vadd.f32 %v3917_v25, %v2578_v20  ;;  %v3832_v12 = vadd.f32 %v3831_v21, %v3830_v31  ;;  %v3920_v2 = vadd.f32 %v3919_v38, %v3918_v7 }
 0x1ef   : > { %v2589_v54 = vadd.f32 %v3832_v12, %v5191_v15  ;;  %v5263_v43 = vadd.f32 %v3920_v2, %v2581_v30 }
 0x1f1   : > { %v3833_v44 = vpop.f32.mrb[124].mxu1  ;;  %v3921_v52 = vpop.f32.mrb[124].mxu0 }
 0x1f2   : > { %v3834_v26 = vpop.f32.mrb[125].mxu1  ;;  %v3922_v29 = vpop.f32.mrb[125].mxu0 }
 0x1f3   : > { %v3835_v50 = vadd.f32 %v3834_v26, %v3833_v44  ;;  %v3923_v49 = vadd.f32 %v3922_v29, %v3921_v52  ;;  %v3836_v58 = vpop.f32.mrb[126].mxu1  ;;  %v3924_v57 = vpop.f32.mrb[126].mxu0 }
 0x1f4   : > { %v3837_v59 = vpop.f32.mrb[127].mxu1  ;;  %v3925_v0 = vpop.f32.mrb[127].mxu0 }
 0x1f5   : > { %v2594_v13 = vadd.f32 %v3835_v50, %v5193_v61  ;;  %v5266_v63 = vadd.f32 %v3923_v49, %v2586_v34  ;;  %v3838_v16 = vadd.f32 %v3837_v59, %v3836_v58  ;;  %v3926_v39 = vadd.f32 %v3925_v0, %v3924_v57 }
 0x1f7   : > { %v2597_v15 = vadd.f32 %v3838_v16, %v5196_v41  ;;  %v5269_v62 = vadd.f32 %v3926_v39, %v2589_v54 }
 0x1f9   : > { %v3927_v28 = vpop.f32.mrb[128].mxu0  ;;  %v3949_v6 = vpop.f32.mrb[128].mxu1 }
 0x1fa   : > { %v3928_v42 = vpop.f32.mrb[129].mxu0  ;;  %v3950_v48 = vpop.f32.mrb[129].mxu1 }
 0x1fb   : > { %v3929_v11 = vadd.f32 %v3928_v42, %v3927_v28  ;;  %v3951_v9 = vadd.f32 %v3950_v48, %v3949_v6  ;;  %v3930_v20 = vpop.f32.mrb[130].mxu0  ;;  %v3952_v10 = vpop.f32.mrb[130].mxu1 }
 0x1fc   : > { %v3931_v36 = vpop.f32.mrb[131].mxu0  ;;  %v3953_v30 = vpop.f32.mrb[131].mxu1 }
 0x1fd   : > { %v5271_v61 = vadd.f32 %v3929_v11, %v2594_v13  ;;  %v3932_v8 = vadd.f32 %v3931_v36, %v3930_v20  ;;  %v3954_v40 = vadd.f32 %v3953_v30, %v3952_v10  ;;  %v2772_v3 = vadd.f32 %v3951_v9, %v5200_v60 }
 0x1ff   : > { %v5274_v41 = vadd.f32 %v3932_v8, %v2597_v15  ;;  %v2775_v23 = vadd.f32 %v3954_v40, %v5203_v47 }
 0x201   : > { %v3955_v27 = vpop.f32.mrb[132].mxu1  ;;  %v2908_v25 = vpop.f32.mrb[132].mxu0 }
 0x202   : > { %v2909_v31 = vadd.f32 %v2908_v25, %v2772_v3  ;;  %v3956_v7 = vpop.f32.mrb[133].mxu1  ;;  %v4054_v21 = vpop.f32.mrb[133].mxu0 }
 0x203   : > { %v3957_v38 = vadd.f32 %v3956_v7, %v3955_v27  ;;  %v3958_v34 = vpop.f32.mrb[134].mxu1  ;;  %v2911_v12 = vpop.f32.mrb[134].mxu0 }
 0x204   : > { %vm3011_vm2 = vcmp.ge.f32.partialorder %v2909_v31, 0.0  ;;  %v3037_v60 = vmul.f32 0.2, %v2909_v31  ;;  %v2912_v2 = vadd.f32 %v2911_v12, %v2775_v23  ;;  %v3959_v47 = vpop.f32.mrb[135].mxu1  ;;  %v4055_v54 = vpop.f32.mrb[135].mxu0 }
 0x205   : > { %v3960_v44 = vadd.f32 %v3959_v47, %v3958_v34  ;;  %v2780_v52 = vadd.f32 %v3957_v38, %v5206_v17 }
 0x206   : > { %v3063_v26 = vsel %vm3011_vm2, %v2909_v31, %v3037_v60  ;;  %vm3012_vm3 = vcmp.ge.f32.partialorder %v2912_v2, 0.0  ;;  %v3038_v29 = vmul.f32 0.2, %v2912_v2 }
 0x207   : > { %3089 = vst [vmem:[%s5281_s30] sm:$0xff] %v3063_v26  ;;  %v2783_v50 = vadd.f32 %v3960_v44, %v5209_v19 }
 0x208   : > { %v3064_v49 = vsel %vm3012_vm3, %v2912_v2, %v3038_v29 }
 0x209   : > { %3090 = vst [vmem:[%s5281_s30 + $0x8] sm:$0xff] %v3064_v49  ;;  %v3961_v58 = vpop.f32.mrb[136].mxu1  ;;  %v2916_v57 = vpop.f32.mrb[136].mxu0 }
 0x20a   : > { %v2917_v59 = vadd.f32 %v2916_v57, %v2780_v52  ;;  %v3962_v0 = vpop.f32.mrb[137].mxu1  ;;  %v4058_v13 = vpop.f32.mrb[137].mxu0 }
 0x20b   : > { %v3963_v16 = vadd.f32 %v3962_v0, %v3961_v58  ;;  %v3964_v39 = vpop.f32.mrb[138].mxu1  ;;  %v2919_v15 = vpop.f32.mrb[138].mxu0 }
 0x20c   : > { %vm3013_vm4 = vcmp.ge.f32.partialorder %v2917_v59, 0.0  ;;  %v3039_v17 = vmul.f32 0.2, %v2917_v59  ;;  %v2920_v28 = vadd.f32 %v2919_v15, %v2783_v50  ;;  %v3965_v6 = vpop.f32.mrb[139].mxu1  ;;  %v4059_v42 = vpop.f32.mrb[139].mxu0 }
 0x20d   : > { %v3966_v48 = vadd.f32 %v3965_v6, %v3964_v39  ;;  %v2788_v19 = vadd.f32 %v3963_v16, %v5212_v51 }
 0x20e   : > { %v3065_v11 = vsel %vm3013_vm4, %v2917_v59, %v3039_v17  ;;  %vm3014_vm5 = vcmp.ge.f32.partialorder %v2920_v28, 0.0  ;;  %v3040_v9 = vmul.f32 0.2, %v2920_v28 }
 0x20f   : > { %3091 = vst [vmem:[%s5281_s30 + $0x10] sm:$0xff] %v3065_v11  ;;  %v2791_v20 = vadd.f32 %v3966_v48, %v5215_v45 }
 0x210   : > { %v3066_v10 = vsel %vm3014_vm5, %v2920_v28, %v3040_v9 }
 0x211   : > { %3092 = vst [vmem:[%s5281_s30 + $0x18] sm:$0xff] %v3066_v10  ;;  %v3967_v36 = vpop.f32.mrb[140].mxu1  ;;  %v2924_v30 = vpop.f32.mrb[140].mxu0 }
 0x212   : > { %v2925_v8 = vadd.f32 %v2924_v30, %v2788_v19  ;;  %v3968_v40 = vpop.f32.mrb[141].mxu1  ;;  %v4062_v3 = vpop.f32.mrb[141].mxu0 }
 0x213   : > { %v3969_v23 = vadd.f32 %v3968_v40, %v3967_v36  ;;  %v3970_v27 = vpop.f32.mrb[142].mxu1  ;;  %v2927_v25 = vpop.f32.mrb[142].mxu0 }
 0x214   : > { %vm3015_vm6 = vcmp.ge.f32.partialorder %v2925_v8, 0.0  ;;  %v3041_v51 = vmul.f32 0.2, %v2925_v8  ;;  %v2928_v31 = vadd.f32 %v2927_v25, %v2791_v20  ;;  %v3971_v7 = vpop.f32.mrb[143].mxu1  ;;  %v4063_v21 = vpop.f32.mrb[143].mxu0 }
 0x215   : > { %v3972_v38 = vadd.f32 %v3971_v7, %v3970_v27  ;;  %v2796_v45 = vadd.f32 %v3969_v23, %v5218_v4 }
 0x216   : > { %v3067_v34 = vsel %vm3015_vm6, %v2925_v8, %v3041_v51  ;;  %vm3016_vm7 = vcmp.ge.f32.partialorder %v2928_v31, 0.0  ;;  %v3042_v12 = vmul.f32 0.2, %v2928_v31 }
 0x217   : > { %3093 = vst [vmem:[%s5281_s30 + $0x20] sm:$0xff] %v3067_v34  ;;  %v2799_v60 = vadd.f32 %v3972_v38, %v5221_v5 }
 0x218   : > { %v3068_v2 = vsel %vm3016_vm7, %v2928_v31, %v3042_v12 }
 0x219   : > { %3094 = vst [vmem:[%s5281_s30 + $0x28] sm:$0xff] %v3068_v2  ;;  %v3973_v47 = vpop.f32.mrb[144].mxu1  ;;  %v2932_v54 = vpop.f32.mrb[144].mxu0 }
 0x21a   : > { %v2933_v44 = vadd.f32 %v2932_v54, %v2796_v45  ;;  %v3974_v52 = vpop.f32.mrb[145].mxu1  ;;  %v4066_v26 = vpop.f32.mrb[145].mxu0 }
 0x21b   : > { %v3975_v29 = vadd.f32 %v3974_v52, %v3973_v47  ;;  %v3976_v50 = vpop.f32.mrb[146].mxu1  ;;  %v2935_v49 = vpop.f32.mrb[146].mxu0 }
 0x21c   : > { %vm3017_vm8 = vcmp.ge.f32.partialorder %v2933_v44, 0.0  ;;  %v3043_v4 = vmul.f32 0.2, %v2933_v44  ;;  %v2936_v58 = vadd.f32 %v2935_v49, %v2799_v60  ;;  %v3977_v57 = vpop.f32.mrb[147].mxu1  ;;  %v4067_v59 = vpop.f32.mrb[147].mxu0 }
 0x21d   : > { %v3978_v0 = vadd.f32 %v3977_v57, %v3976_v50  ;;  %v2804_v5 = vadd.f32 %v3975_v29, %v5224_v22 }
 0x21e   : > { %v3069_v13 = vsel %vm3017_vm8, %v2933_v44, %v3043_v4  ;;  %vm3018_vm9 = vcmp.ge.f32.partialorder %v2936_v58, 0.0  ;;  %v3044_v16 = vmul.f32 0.2, %v2936_v58 }
 0x21f   : > { %3095 = vst [vmem:[%s5281_s30 + $0x30] sm:$0xff] %v3069_v13  ;;  %v2807_v39 = vadd.f32 %v3978_v0, %v5227_v32 }
 0x220   : > { %v3070_v15 = vsel %vm3018_vm9, %v2936_v58, %v3044_v16 }
 0x221   : > { %3096 = vst [vmem:[%s5281_s30 + $0x38] sm:$0xff] %v3070_v15  ;;  %v3979_v17 = vpop.f32.mrb[148].mxu1  ;;  %v2940_v28 = vpop.f32.mrb[148].mxu0 }
 0x222   : > { %v2941_v6 = vadd.f32 %v2940_v28, %v2804_v5  ;;  %v3980_v42 = vpop.f32.mrb[149].mxu1  ;;  %v4070_v48 = vpop.f32.mrb[149].mxu0 }
 0x223   : > { %v3981_v19 = vadd.f32 %v3980_v42, %v3979_v17  ;;  %v3982_v11 = vpop.f32.mrb[150].mxu1  ;;  %v2943_v9 = vpop.f32.mrb[150].mxu0 }
 0x224   : > { %vm3019_vm10 = vcmp.ge.f32.partialorder %v2941_v6, 0.0  ;;  %v3045_v22 = vmul.f32 0.2, %v2941_v6  ;;  %v2944_v20 = vadd.f32 %v2943_v9, %v2807_v39  ;;  %v3983_v10 = vpop.f32.mrb[151].mxu1  ;;  %v4071_v36 = vpop.f32.mrb[151].mxu0 }
 0x225   : > { %v3984_v30 = vadd.f32 %v3983_v10, %v3982_v11  ;;  %v2812_v32 = vadd.f32 %v3981_v19, %v5230_v46 }
 0x226   : > { %v3071_v8 = vsel %vm3019_vm10, %v2941_v6, %v3045_v22  ;;  %vm3020_vm11 = vcmp.ge.f32.partialorder %v2944_v20, 0.0  ;;  %v3046_v40 = vmul.f32 0.2, %v2944_v20 }
 0x227   : > { %3097 = vst [vmem:[%s5281_s30 + $0x40] sm:$0xff] %v3071_v8  ;;  %v2815_v3 = vadd.f32 %v3984_v30, %v5233_v55 }
 0x228   : > { %v3072_v23 = vsel %vm3020_vm11, %v2944_v20, %v3046_v40 }
 0x229   : > { %3098 = vst [vmem:[%s5281_s30 + $0x48] sm:$0xff] %v3072_v23  ;;  %v3985_v27 = vpop.f32.mrb[152].mxu1  ;;  %v2948_v25 = vpop.f32.mrb[152].mxu0 }
 0x22a   : > { %v2949_v51 = vadd.f32 %v2948_v25, %v2812_v32  ;;  %v3986_v31 = vpop.f32.mrb[153].mxu1  ;;  %v4074_v7 = vpop.f32.mrb[153].mxu0 }
 0x22b   : > { %v3987_v21 = vadd.f32 %v3986_v31, %v3985_v27  ;;  %v3988_v38 = vpop.f32.mrb[154].mxu1  ;;  %v2951_v45 = vpop.f32.mrb[154].mxu0 }
 0x22c   : > { %vm3021_vm12 = vcmp.ge.f32.partialorder %v2949_v51, 0.0  ;;  %v3047_v46 = vmul.f32 0.2, %v2949_v51  ;;  %v2952_v34 = vadd.f32 %v2951_v45, %v2815_v3  ;;  %v3989_v12 = vpop.f32.mrb[155].mxu1  ;;  %v4075_v60 = vpop.f32.mrb[155].mxu0 }
 0x22d   : > { %v3990_v2 = vadd.f32 %v3989_v12, %v3988_v38  ;;  %v2820_v55 = vadd.f32 %v3987_v21, %v5236_v35 }
 0x22e   : > { %v3073_v47 = vsel %vm3021_vm12, %v2949_v51, %v3047_v46  ;;  %vm3022_vm13 = vcmp.ge.f32.partialorder %v2952_v34, 0.0  ;;  %v3048_v54 = vmul.f32 0.2, %v2952_v34 }
 0x22f   : > { %3099 = vst [vmem:[%s5281_s30 + $0x50] sm:$0xff] %v3073_v47  ;;  %v2823_v44 = vadd.f32 %v3990_v2, %v5239_v53 }
 0x230   : > { %v3074_v52 = vsel %vm3022_vm13, %v2952_v34, %v3048_v54 }
 0x231   : > { %3100 = vst [vmem:[%s5281_s30 + $0x58] sm:$0xff] %v3074_v52  ;;  %v3991_v26 = vpop.f32.mrb[156].mxu1  ;;  %v2956_v29 = vpop.f32.mrb[156].mxu0 }
 0x232   : > { %v2957_v50 = vadd.f32 %v2956_v29, %v2820_v55  ;;  %v3992_v49 = vpop.f32.mrb[157].mxu1  ;;  %v4078_v4 = vpop.f32.mrb[157].mxu0 }
 0x233   : > { %v3993_v58 = vadd.f32 %v3992_v49, %v3991_v26  ;;  %v3994_v57 = vpop.f32.mrb[158].mxu1  ;;  %v2959_v59 = vpop.f32.mrb[158].mxu0 }
 0x234   : > { %vm3023_vm14 = vcmp.ge.f32.partialorder %v2957_v50, 0.0  ;;  %v3049_v35 = vmul.f32 0.2, %v2957_v50  ;;  %v2960_v0 = vadd.f32 %v2959_v59, %v2823_v44  ;;  %v3995_v5 = vpop.f32.mrb[159].mxu1  ;;  %v4079_v13 = vpop.f32.mrb[159].mxu0 }
 0x235   : > { %v3996_v16 = vadd.f32 %v3995_v5, %v3994_v57  ;;  %v2828_v53 = vadd.f32 %v3993_v58, %v5242_v33 }
 0x236   : > { %v3075_v39 = vsel %vm3023_vm14, %v2957_v50, %v3049_v35  ;;  %vm3024_vm15 = vcmp.ge.f32.partialorder %v2960_v0, 0.0  ;;  %v3050_v15 = vmul.f32 0.2, %v2960_v0 }
 0x237   : > { %3101 = vst [vmem:[%s5281_s30 + $0x60] sm:$0xff] %v3075_v39  ;;  %v2831_v17 = vadd.f32 %v3996_v16, %v5245_v24 }
 0x238   : > { %v3076_v28 = vsel %vm3024_vm15, %v2960_v0, %v3050_v15 }
 0x239   : > { %3102 = vst [vmem:[%s5281_s30 + $0x68] sm:$0xff] %v3076_v28  ;;  %v3997_v6 = vpop.f32.mrb[160].mxu1  ;;  %v2964_v42 = vpop.f32.mrb[160].mxu0 }
 0x23a   : > { %v2965_v48 = vadd.f32 %v2964_v42, %v2828_v53  ;;  %v3998_v19 = vpop.f32.mrb[161].mxu1  ;;  %v4082_v11 = vpop.f32.mrb[161].mxu0 }
 0x23b   : > { %v3999_v9 = vadd.f32 %v3998_v19, %v3997_v6  ;;  %v4000_v22 = vpop.f32.mrb[162].mxu1  ;;  %v2967_v20 = vpop.f32.mrb[162].mxu0 }
 0x23c   : > { %vm3025_vm0 = vcmp.ge.f32.partialorder %v2965_v48, 0.0  ;;  %v3051_v33 = vmul.f32 0.2, %v2965_v48  ;;  %v2968_v10 = vadd.f32 %v2967_v20, %v2831_v17  ;;  %v4001_v36 = vpop.f32.mrb[163].mxu1  ;;  %v4083_v30 = vpop.f32.mrb[163].mxu0 }
 0x23d   : > { %v4002_v32 = vadd.f32 %v4001_v36, %v4000_v22  ;;  %v2836_v24 = vadd.f32 %v3999_v9, %v5248_v56 }
 0x23e   : > { %v3077_v8 = vsel %vm3025_vm0, %v2965_v48, %v3051_v33  ;;  %vm3026_vm1 = vcmp.ge.f32.partialorder %v2968_v10, 0.0  ;;  %v3052_v40 = vmul.f32 0.2, %v2968_v10 }
 0x23f   : > { %3103 = vst [vmem:[%s5281_s30 + $0x70] sm:$0xff] %v3077_v8  ;;  %v2839_v3 = vadd.f32 %v4002_v32, %v5251_v1 }
 0x240   : > { %v3078_v23 = vsel %vm3026_vm1, %v2968_v10, %v3052_v40 }
 0x241   : > { %3104 = vst [vmem:[%s5281_s30 + $0x78] sm:$0xff] %v3078_v23  ;;  %v4003_v27 = vpop.f32.mrb[164].mxu1  ;;  %v2972_v25 = vpop.f32.mrb[164].mxu0 }
 0x242   : > { %v2973_v51 = vadd.f32 %v2972_v25, %v2836_v24  ;;  %v4004_v31 = vpop.f32.mrb[165].mxu1  ;;  %v4086_v7 = vpop.f32.mrb[165].mxu0 }
 0x243   : > { %v4005_v21 = vadd.f32 %v4004_v31, %v4003_v27  ;;  %v4006_v38 = vpop.f32.mrb[166].mxu1  ;;  %v2975_v45 = vpop.f32.mrb[166].mxu0 }
 0x244   : > { %vm3027_vm2 = vcmp.ge.f32.partialorder %v2973_v51, 0.0  ;;  %v3053_v56 = vmul.f32 0.2, %v2973_v51  ;;  %v2976_v46 = vadd.f32 %v2975_v45, %v2839_v3  ;;  %v4007_v34 = vpop.f32.mrb[167].mxu1  ;;  %v4087_v12 = vpop.f32.mrb[167].mxu0 }
 0x245   : > { %v4008_v60 = vadd.f32 %v4007_v34, %v4006_v38  ;;  %v2844_v1 = vadd.f32 %v4005_v21, %v5254_v14 }
 0x246   : > { %v3079_v2 = vsel %vm3027_vm2, %v2973_v51, %v3053_v56  ;;  %vm3028_vm3 = vcmp.ge.f32.partialorder %v2976_v46, 0.0  ;;  %v3054_v55 = vmul.f32 0.2, %v2976_v46 }
 0x247   : > { %3105 = vst [vmem:[%s5281_s30 + $0x80] sm:$0xff] %v3079_v2  ;;  %v2847_v47 = vadd.f32 %v4008_v60, %v5257_v18 }
 0x248   : > { %v3080_v54 = vsel %vm3028_vm3, %v2976_v46, %v3054_v55 }
 0x249   : > { %3106 = vst [vmem:[%s5281_s30 + $0x88] sm:$0xff] %v3080_v54  ;;  %v4009_v44 = vpop.f32.mrb[168].mxu1  ;;  %v2980_v52 = vpop.f32.mrb[168].mxu0 }
 0x24a   : > { %v2981_v26 = vadd.f32 %v2980_v52, %v2844_v1  ;;  %v4010_v29 = vpop.f32.mrb[169].mxu1  ;;  %v4090_v50 = vpop.f32.mrb[169].mxu0 }
 0x24b   : > { %v4011_v49 = vadd.f32 %v4010_v29, %v4009_v44  ;;  %v4012_v4 = vpop.f32.mrb[170].mxu1  ;;  %v2983_v58 = vpop.f32.mrb[170].mxu0 }
 0x24c   : > { %vm3029_vm4 = vcmp.ge.f32.partialorder %v2981_v26, 0.0  ;;  %v3055_v14 = vmul.f32 0.2, %v2981_v26  ;;  %v2984_v57 = vadd.f32 %v2983_v58, %v2847_v47  ;;  %v4013_v59 = vpop.f32.mrb[171].mxu1  ;;  %v4091_v35 = vpop.f32.mrb[171].mxu0 }
 0x24d   : > { %v4014_v0 = vadd.f32 %v4013_v59, %v4012_v4  ;;  %v2852_v18 = vadd.f32 %v4011_v49, %v5260_v37 }
 0x24e   : > { %v3081_v5 = vsel %vm3029_vm4, %v2981_v26, %v3055_v14  ;;  %vm3030_vm5 = vcmp.ge.f32.partialorder %v2984_v57, 0.0  ;;  %v3056_v13 = vmul.f32 0.2, %v2984_v57 }
 0x24f   : > { %3107 = vst [vmem:[%s5281_s30 + $0x90] sm:$0xff] %v3081_v5  ;;  %v2855_v16 = vadd.f32 %v4014_v0, %v5263_v43 }
 0x250   : > { %v3082_v53 = vsel %vm3030_vm5, %v2984_v57, %v3056_v13 }
 0x251   : > { %3108 = vst [vmem:[%s5281_s30 + $0x98] sm:$0xff] %v3082_v53  ;;  %v4015_v39 = vpop.f32.mrb[172].mxu1  ;;  %v2988_v15 = vpop.f32.mrb[172].mxu0 }
 0x252   : > { %v2989_v17 = vadd.f32 %v2988_v15, %v2852_v18  ;;  %v4016_v28 = vpop.f32.mrb[173].mxu1  ;;  %v4094_v6 = vpop.f32.mrb[173].mxu0 }
 0x253   : > { %v4017_v42 = vadd.f32 %v4016_v28, %v4015_v39  ;;  %v4018_v48 = vpop.f32.mrb[174].mxu1  ;;  %v2991_v19 = vpop.f32.mrb[174].mxu0 }
 0x254   : > { %vm3031_vm6 = vcmp.ge.f32.partialorder %v2989_v17, 0.0  ;;  %v3057_v37 = vmul.f32 0.2, %v2989_v17  ;;  %v2992_v11 = vadd.f32 %v2991_v19, %v2855_v16  ;;  %v4019_v9 = vpop.f32.mrb[175].mxu1  ;;  %v4095_v22 = vpop.f32.mrb[175].mxu0 }
 0x255   : > { %v4020_v20 = vadd.f32 %v4019_v9, %v4018_v48  ;;  %v2860_v43 = vadd.f32 %v4017_v42, %v5266_v63 }
 0x256   : > { %v3083_v33 = vsel %vm3031_vm6, %v2989_v17, %v3057_v37  ;;  %vm3032_vm7 = vcmp.ge.f32.partialorder %v2992_v11, 0.0  ;;  %v3058_v10 = vmul.f32 0.2, %v2992_v11 }
 0x257   : > { %3109 = vst [vmem:[%s5281_s30 + $0xa0] sm:$0xff] %v3083_v33  ;;  %v2863_v36 = vadd.f32 %v4020_v20, %v5269_v62 }
 0x258   : > { %v3084_v30 = vsel %vm3032_vm7, %v2992_v11, %v3058_v10 }
 0x259   : > { %3110 = vst [vmem:[%s5281_s30 + $0xa8] sm:$0xff] %v3084_v30  ;;  %v4021_v32 = vpop.f32.mrb[176].mxu1  ;;  %v2996_v24 = vpop.f32.mrb[176].mxu0 }
 0x25a   : > { %v2997_v8 = vadd.f32 %v2996_v24, %v2860_v43  ;;  %v4022_v40 = vpop.f32.mrb[177].mxu1  ;;  %v4098_v3 = vpop.f32.mrb[177].mxu0 }
 0x25b   : > { %v4023_v23 = vadd.f32 %v4022_v40, %v4021_v32  ;;  %v4024_v27 = vpop.f32.mrb[178].mxu1  ;;  %v2999_v25 = vpop.f32.mrb[178].mxu0 }
 0x25c   : > { %vm3033_vm8 = vcmp.ge.f32.partialorder %v2997_v8, 0.0  ;;  %v3059_v63 = vmul.f32 0.2, %v2997_v8  ;;  %v3000_v51 = vadd.f32 %v2999_v25, %v2863_v36  ;;  %v4025_v31 = vpop.f32.mrb[179].mxu1  ;;  %v4099_v7 = vpop.f32.mrb[179].mxu0 }
 0x25d   : > { %v4026_v21 = vadd.f32 %v4025_v31, %v4024_v27  ;;  %v2868_v62 = vadd.f32 %v4023_v23, %v5271_v61 }
 0x25e   : > { %v3085_v38 = vsel %vm3033_vm8, %v2997_v8, %v3059_v63  ;;  %vm3034_vm9 = vcmp.ge.f32.partialorder %v3000_v51, 0.0  ;;  %v3060_v45 = vmul.f32 0.2, %v3000_v51 }
 0x25f   : > { %3111 = vst [vmem:[%s5281_s30 + $0xb0] sm:$0xff] %v3085_v38  ;;  %v2871_v56 = vadd.f32 %v4026_v21, %v5274_v41 }
 0x260   : > { %v3086_v46 = vsel %vm3034_vm9, %v3000_v51, %v3060_v45 }
 0x261   : > { %3112 = vst [vmem:[%s5281_s30 + $0xb8] sm:$0xff] %v3086_v46  ;;  %v3004_v34 = vpop.f32.mrb[180].mxu0 }
 0x262   : > { %v3005_v12 = vadd.f32 %v3004_v34, %v2868_v62  ;;  %v4102_v60 = vpop.f32.mrb[181].mxu0 }
 0x263   : > { %v3007_v1 = vpop.f32.mrb[182].mxu0 }
 0x264   : > { %vm3035_vm10 = vcmp.ge.f32.partialorder %v3005_v12, 0.0  ;;  %v3061_v2 = vmul.f32 0.2, %v3005_v12  ;;  %v3008_v55 = vadd.f32 %v3007_v1, %v2871_v56  ;;  %v4103_v47 = vpop.f32.mrb[183].mxu0 }
 0x266   : > { %v3087_v54 = vsel %vm3035_vm10, %v3005_v12, %v3061_v2  ;;  %vm3036_vm11 = vcmp.ge.f32.partialorder %v3008_v55, 0.0  ;;  %v3062_v61 = vmul.f32 0.2, %v3008_v55 }
 0x267   : > { %3113 = vst [vmem:[%s5281_s30 + $0xc0] sm:$0xff] %v3087_v54 }
 0x268   : > { %v3088_v44 = vsel %vm3036_vm11, %v3008_v55, %v3062_v61 }
 0x269   : > { %3114 = vst [vmem:[%s5281_s30 + $0xc8] sm:$0xff] %v3088_v44 }
 0x26a PF: > { %s13_s12 = sadd.s32 1, %s4484_s12  }
 0x26b   : > { %p10_p4 = scmp.ge.s32.totalorder %s13_s12, 4  }
 0x26d   :  { %12 = sbr.rel (!%p10_p4) target bundleno = 1 (0x1), region = 62 }

// kernel: tile.30
= control target key start
LH: loop header
LB: loop body
LE: loop exit
PB: predicated region body
PF: predicated region fallthrough
CT: control target
= control target key end

     0   :  { %s22_s0 = inlined_call_operand.vmem [shape: f32[16], index: 0, kind: input, shape index: {}]   ;;  %s23_s1 = inlined_call_operand.vmem [shape: f32[8,16], index: 1, kind: output, shape index: {}]  }
   0x1   :  { %v4_v0 = vld [vmem:[%s22_s0] ss:$0 sm:$0xff] }
   0x2   :  { %5 = vst [vmem:[%s23_s1] sm:$0xff] %v4_v0 }

// kernel: tile.31
= control target key start
LH: loop header
LB: loop body
LE: loop exit
PB: predicated region body
PF: predicated region fallthrough
CT: control target
= control target key end

     0   :  { %s67_s10 = smov 112   ;;  %s68_s11 = smov 80   ;;  %vm3_vm0 = vcmask 130048   ;;  %vm9_vm1 = vcmask 1048448   ;;  %vm15_vm2 = vcmask 917248   ;;  %vm21_vm3 = vcmask 786048   ;;  %s111_s0 = inlined_call_operand.vmem [shape: f32[8,16], index: 0, kind: input, shape index: {}]   ;;  %s112_s1 = inlined_call_operand.vmem [shape: f32[1,128], index: 1, kind: output, shape index: {}]  }
   0x1   :  { %v53_v0 = vld [vmem:[%s111_s0 + $0x7] sm:$0x1]   ;;  %v55_v1 = vld [vmem:[%s111_s0 + $0x5] sm:$0x1]   ;;  %v54_v2 = vld [vmem:[%s111_s0 + $0x6] sm:$0x1]  }
   0x2   :  { %7 = vrot.lane.b32.xlu0 %v53_v0, %s67_s10  ;;  %19 = vrot.lane.b32.xlu1 %v55_v1, %s68_s11  ;;  %v56_v3 = vld [vmem:[%s111_s0 + $0x4] sm:$0x1]   ;;  %v2_v4 = vld [vmem:[%s111_s0] sm:$0x1]   ;;  %s69_s18 = smov 96   ;;  %s70_s19 = smov 64  }
   0x3   :  { %4 = vst.msk [vmem:[#allocation0] sm:$0x1] %vm3_vm0, %v2_v4   ;;  %v57_v5 = vld [vmem:[%s111_s0 + $0x3] sm:$0x1]   ;;  %v58_v6 = vld [vmem:[%s111_s0 + $0x2] sm:$0x1]  }
   0x4   :  { %s71_s24 = smov 48   ;;  %s72_s25 = smov 32   ;;  %v59_v7 = vld [vmem:[%s111_s0 + $0x1] sm:$0x1]   ;;  %vm27_vm4 = vcmask 654848   ;;  %vm33_vm5 = vcmask 523648  }
   0x5   :  { %s73_s0 = smov 16   ;;  %vm39_vm6 = vcmask 392448   ;;  %vm45_vm7 = vcmask 261248  }
   0x6   :  { %13 = vrot.lane.b32.xlu0 %v54_v2, %s69_s18  ;;  %25 = vrot.lane.b32.xlu1 %v56_v3, %s70_s19 }
   0xa   :  { %31 = vrot.lane.b32.xlu0 %v57_v5, %s71_s24  ;;  %37 = vrot.lane.b32.xlu1 %v58_v6, %s72_s25 }
   0xe   :  { %43 = vrot.lane.b32.xlu0 %v59_v7, %s73_s0 }
  0x74   :  { %v8_v8 = vpop.permute.xlu0 %7   ;;  %v20_v9 = vpop.permute.xlu1 %19  }
  0x75   :  { %10 = vst.msk [vmem:[#allocation0] sm:$0x1] %vm9_vm1, %v8_v8  }
  0x78   :  { %v14_v10 = vpop.permute.xlu0 %13   ;;  %v26_v11 = vpop.permute.xlu1 %25  }
  0x79   :  { %16 = vst.msk [vmem:[#allocation0] sm:$0x1] %vm15_vm2, %v14_v10  }
  0x7a   :  { %22 = vst.msk [vmem:[#allocation0] sm:$0x1] %vm21_vm3, %v20_v9  }
  0x7b   :  { %28 = vst.msk [vmem:[#allocation0] sm:$0x1] %vm27_vm4, %v26_v11  }
  0x7c   :  { %v32_v12 = vpop.permute.xlu0 %31   ;;  %v38_v13 = vpop.permute.xlu1 %37  }
  0x7d   :  { %34 = vst.msk [vmem:[#allocation0] sm:$0x1] %vm33_vm5, %v32_v12  }
  0x7e   :  { %40 = vst.msk [vmem:[#allocation0] sm:$0x1] %vm39_vm6, %v38_v13  }
  0x80   :  { %v44_v14 = vpop.permute.xlu0 %43  }
  0x81   :  { %46 = vst.msk [vmem:[#allocation0] sm:$0x1] %vm45_vm7, %v44_v14  }
  0x88   :  { %v50_v15 = vld [vmem:[#allocation0] sm:$0x1] }
  0x89   :  { %52 = vst [vmem:[%s112_s1] sm:$0x1] %v50_v15 }

// kernel: _forward_impl.8
= control target key start
LH: loop header
LB: loop body
LE: loop exit
PB: predicated region body
PF: predicated region fallthrough
CT: control target
= control target key end

     0   :  { %s3188_s12 = smov 0   ;;  %s3770_s0 = inlined_call_operand.vmem [shape: bf16[224,1600], index: 0, kind: input, shape index: {}]   ;;  %s3771_s1 = inlined_call_operand.vmem [shape: bf16[1600,128], index: 1, kind: input, shape index: {}]   ;;  %s3772_s2 = inlined_call_operand.vmem [shape: f32[1,128], index: 2, kind: input, shape index: {}]   ;;  %s3773_s3 = inlined_call_operand.vmem [shape: f32[224,128], index: 3, kind: output, shape index: {}]  }
   0x1 LB: > { %s2295_s13 = sadd.s32 4294967295, %s3164_s12   ;;  %p2299_p0 = scmp.ge.s32.totalorder %s3164_s12, 1  ;;  %s3164_s12 = sphi %s3188_s12, %s13_s12  }
   0x2   : > { %p139_p1 = scmp.lt.s32.totalorder %s3164_s12, 3 }
   0x4   : > { %p140_p2 = pnand %p2299_p0, %p139_p1 }
   0x5   : > { %v2925_v0 = vld [vmem:[%s3771_s1 + $0x40] sm:$0xff] (!%p140_p2)   ;;  %s164_s16 = smul.u32 (!%p140_p2), 14, %s2295_s13  ;;  %v2927_v2 = vld [vmem:[%s3771_s1 + $0x48] sm:$0xff] (!%p140_p2)   ;;  %v2929_v4 = vld [vmem:[%s3771_s1 + $0x50] sm:$0xff] (!%p140_p2)   ;;  %vm3167_vm0 = vmmov (!%p140_p2), 0   ;;  %vm1538_vm1 = vcmask (!%p140_p2), 523264  }
   0x6   : > { %143 = sbr.rel (%p140_p2) target bundleno = 455 (0x1c7), region = 32  ;;  %v2926_v1 = vld [vmem:[%s3771_s1] sm:$0xff] (!%p140_p2)   ;;  %2898 = vmatprep.subr.bf16.mxu1 (!%p140_p2), %v2925_v0  ;;  %2503 = vmatprep.subr.bf16.mxu0 (!%p140_p2), %v2925_v0  ;;  %v2928_v3 = vld [vmem:[%s3771_s1 + $0x8] sm:$0xff] (!%p140_p2)   ;;  %v2930_v5 = vld [vmem:[%s3771_s1 + $0x10] sm:$0xff] (!%p140_p2)  }
   0x7   : > { %p165_p3 = scmp.lt.s32.totalorder (!%p140_p2), %s164_s16, 27  ;;  %2906 = vmatpush3.bf16.msra.mxu1 (!%p140_p2), %v2926_v1  ;;  %2504 = vmatpush3.bf16.msra.mxu0 (!%p140_p2), %v2926_v1  ;;  %v2931_v6 = vld [vmem:[%s3771_s1 + $0x58] sm:$0xff] (!%p140_p2)   ;;  %v2933_v8 = vld [vmem:[%s3771_s1 + $0x60] sm:$0xff] (!%p140_p2)   ;;  %v2935_v10 = vld [vmem:[%s3771_s1 + $0x68] sm:$0xff] (!%p140_p2)  }
   0x8   : > { %2899 = vmatprep.subr.bf16.mxu1 (!%p140_p2), %v2927_v2  ;;  %2505 = vmatprep.subr.bf16.mxu0 (!%p140_p2), %v2927_v2  ;;  %v2932_v7 = vld [vmem:[%s3771_s1 + $0x18] sm:$0xff] (!%p140_p2)   ;;  %v2934_v9 = vld [vmem:[%s3771_s1 + $0x20] sm:$0xff] (!%p140_p2)   ;;  %v2936_v12 = vld [vmem:[%s3771_s1 + $0x28] sm:$0xff] (!%p140_p2)  }
   0x9   : > { %v2937_v14 = vld [vmem:[%s3771_s1 + $0x70] sm:$0xff] (!%p140_p2)   ;;  %v2939_v16 = vld [vmem:[%s3771_s1 + $0x78] sm:$0xff] (!%p140_p2)   ;;  %v2944_v18 = vld [vmem:[%s3771_s1 + $0xc0] sm:$0xff] (!%p140_p2)  }
   0xa   : > { %v2938_v15 = vld [vmem:[%s3771_s1 + $0x30] sm:$0xff] (!%p140_p2)   ;;  %v2940_v17 = vld [vmem:[%s3771_s1 + $0x38] sm:$0xff] (!%p140_p2)   ;;  %v2949_v21 = vld [vmem:[%s3771_s1 + $0x140] sm:$0xff] (!%p140_p2)  }
   0xb   : > { %2907 = vmatpush3.bf16.msra.mxu1 (!%p140_p2), %v2928_v3  ;;  %2506 = vmatpush3.bf16.msra.mxu0 (!%p140_p2), %v2928_v3  ;;  %v2948_v22 = vld [vmem:[%s3771_s1 + $0x80] sm:$0xff] (!%p140_p2)   ;;  %v2951_v24 = vld [vmem:[%s3771_s1 + $0xc8] sm:$0xff] (!%p140_p2)   ;;  %v2955_v30 = vld [vmem:[%s3771_s1 + $0xd0] sm:$0xff] (!%p140_p2)  }
   0xc   : > { %2900 = vmatprep.subr.bf16.mxu1 (!%p140_p2), %v2929_v4  ;;  %2507 = vmatprep.subr.bf16.mxu0 (!%p140_p2), %v2929_v4  ;;  %v2950_v23 = vld [vmem:[%s3771_s1 + $0x100] sm:$0xff] (!%p140_p2)   ;;  %v2953_v25 = vld [vmem:[%s3771_s1 + $0x148] sm:$0xff] (!%p140_p2)   ;;  %v2960_v31 = vld [vmem:[%s3771_s1 + $0x150] sm:$0xff] (!%p140_p2)  }
   0xd   : > { %s3775_s16 = smov (!%p165_p3, %s164_s16), 27  ;;  %v2952_v27 = vld [vmem:[%s3771_s1 + $0x88] sm:$0xff]   ;;  %v2958_v32 = vld [vmem:[%s3771_s1 + $0x90] sm:$0xff]   ;;  %v2962_v36 = vld [vmem:[%s3771_s1 + $0xd8] sm:$0xff]  }
   0xe   : > { %s2914_s29 = smul.u32 52, %s3775_s16  ;;  %v2954_v29 = vld [vmem:[%s3771_s1 + $0x108] sm:$0xff]   ;;  %v2961_v35 = vld [vmem:[%s3771_s1 + $0x110] sm:$0xff]   ;;  %v2967_v37 = vld [vmem:[%s3771_s1 + $0x158] sm:$0xff]   ;;  %s2301_s27 = sshll.u32 %s3775_s16, 3 }
   0xf   : > { %2908 = vmatpush3.bf16.msra.mxu1 %v2930_v5  ;;  %2508 = vmatpush3.bf16.msra.mxu0 %v2930_v5  ;;  %v2965_v38 = vld [vmem:[%s3771_s1 + $0x98] sm:$0xff]   ;;  %v2969_v41 = vld [vmem:[%s3771_s1 + $0xe0] sm:$0xff]   ;;  %v2976_v48 = vld [vmem:[%s3771_s1 + $0xe8] sm:$0xff]   ;;  %s3739_s30 = scalar_lea.vmem %s3773_s3, %s2301_s27 }
  0x10   : > { %2901 = vmatprep.subr.bf16.mxu1 %v2931_v6  ;;  %2509 = vmatprep.subr.bf16.mxu0 %v2931_v6  ;;  %s3229_s9 = scalar_lea.vmem %s3770_s0, %s2914_s29  ;;  %v2968_v39 = vld [vmem:[%s3771_s1 + $0x118] sm:$0xff]   ;;  %v2974_v42 = vld [vmem:[%s3771_s1 + $0x160] sm:$0xff]   ;;  %v2981_v49 = vld [vmem:[%s3771_s1 + $0x168] sm:$0xff]  }
  0x11   : > { %v2943_v11 = vld [vmem:[%s3229_s9 + $0x1a4] ss:$52 sps:$4 sm:$0xff]   ;;  %v2941_v19 = vld [vmem:[%s3229_s9 + $0x1a0] ss:$52 sps:$4 sm:$0xff]   ;;  %v2959_v33 = vld [vmem:[%s3229_s9 + $0x68] ss:$52 sps:$4 sm:$0xff]  }
  0x12   : > { %v2947_v13 = vld [vmem:[%s3229_s9 + $0x4] ss:$52 sps:$4 sm:$0xff]   ;;  %1624 = vmatprep.mubr.bf16.mxu1 %v2943_v11  ;;  %v2945_v20 = vld [vmem:[%s3229_s9] ss:$52 sps:$4 sm:$0xff]   ;;  %v2966_v34 = vld [vmem:[%s3229_s9 + $0x208] ss:$52 sps:$4 sm:$0xff]  }
  0x13   : > { %2909 = vmatpush3.bf16.msra.mxu1 %v2932_v7  ;;  %2510 = vmatpush3.bf16.msra.mxu0 %v2932_v7  ;;  %v2956_v26 = vld [vmem:[%s3229_s9 + $0x6c] ss:$52 sps:$4 sm:$0xff]   ;;  %v2970_v40 = vld [vmem:[%s3229_s9 + $0xd4] ss:$52 sps:$4 sm:$0xff]   ;;  %v2973_v45 = vld [vmem:[%s3229_s9 + $0xd0] ss:$52 sps:$4 sm:$0xff]  }
  0x14   : > { %2902 = vmatprep.subr.bf16.mxu1 %v2933_v8  ;;  %2511 = vmatprep.subr.bf16.mxu0 %v2933_v8  ;;  %v2963_v28 = vld [vmem:[%s3229_s9 + $0x20c] ss:$52 sps:$4 sm:$0xff]   ;;  %v2977_v43 = vld [vmem:[%s3229_s9 + $0x274] ss:$52 sps:$4 sm:$0xff]   ;;  %v2980_v47 = vld [vmem:[%s3229_s9 + $0x270] ss:$52 sps:$4 sm:$0xff]  }
  0x15   : > { %1592 = vmatprep.mubr.bf16.mxu0 %v2947_v13  ;;  %v2972_v44 = vld [vmem:[%s3771_s1 + $0xa0] sm:$0xff]   ;;  %v2979_v50 = vld [vmem:[%s3771_s1 + $0xa8] sm:$0xff]   ;;  %v2984_v51 = vld [vmem:[%s3229_s9 + $0x13c] ss:$52 sps:$4 sm:$0xff]  }
  0x16   : > { %v2975_v46 = vld [vmem:[%s3771_s1 + $0x120] sm:$0xff]   ;;  %v2982_v52 = vld [vmem:[%s3771_s1 + $0x128] sm:$0xff]   ;;  %v2983_v53 = vld [vmem:[%s3771_s1 + $0xf0] sm:$0xff]  }
  0x17   : > { %2910 = vmatpush3.bf16.msra.mxu1 %v2934_v9  ;;  %2512 = vmatpush3.bf16.msra.mxu0 %v2934_v9  ;;  %v2988_v54 = vld [vmem:[%s3771_s1 + $0x170] sm:$0xff]   ;;  %v2987_v56 = vld [vmem:[%s3229_s9 + $0x138] ss:$52 sps:$4 sm:$0xff]   ;;  %v2997_v63 = vld [vmem:[%s3771_s1 + $0x1c0] sm:$0xff]  }
  0x18   : > { %2903 = vmatprep.subr.bf16.mxu1 %v2935_v10  ;;  %2513 = vmatprep.subr.bf16.mxu0 %v2935_v10  ;;  %v2986_v55 = vld [vmem:[%s3771_s1 + $0xb0] sm:$0xff]   ;;  %v2990_v58 = vld [vmem:[%s3771_s1 + $0xf8] sm:$0xff]   ;;  %v2995_v61 = vld [vmem:[%s3229_s9 + $0xc] ss:$52 sps:$4 sm:$0xff]  }
  0x19   : > { %v2989_v57 = vld [vmem:[%s3771_s1 + $0x130] sm:$0xff]   ;;  %v2992_v59 = vld [vmem:[%s3771_s1 + $0x178] sm:$0xff]   ;;  %v3001_v3 = vld [vmem:[%s3771_s1 + $0x180] sm:$0xff]  }
  0x1a   : > { %v2991_v60 = vld [vmem:[%s3771_s1 + $0xb8] sm:$0xff]   ;;  %v2998_v1 = vld [vmem:[%s3229_s9 + $0x10] ss:$52 sps:$4 sm:$0xff]   ;;  %v3000_v2 = vld [vmem:[%s3229_s9 + $0x14] ss:$52 sps:$4 sm:$0xff]  }
  0x1b   : > { %2911 = vmatpush3.bf16.msra.mxu1 %v2936_v12  ;;  %2514 = vmatpush3.bf16.msra.mxu0 %v2936_v12  ;;  %v2996_v62 = vld [vmem:[%s3771_s1 + $0x138] sm:$0xff]   ;;  %v3002_v4 = vld [vmem:[%s3771_s1 + $0x240] sm:$0xff]   ;;  %v3004_v6 = vld [vmem:[%s3229_s9 + $0x74] ss:$52 sps:$4 sm:$0xff]  }
  0x1c   : > { %2904 = vmatprep.subr.bf16.mxu1 %v2937_v14  ;;  %2515 = vmatprep.subr.bf16.mxu0 %v2937_v14  ;;  %v2993_v0 = vld [vmem:[%s3229_s9 + $0x8] ss:$52 sps:$4 sm:$0xff]   ;;  %v3003_v5 = vld [vmem:[%s3771_s1 + $0x200] sm:$0xff]   ;;  %v3011_v11 = vld [vmem:[%s3229_s9 + $0x78] ss:$52 sps:$4 sm:$0xff]  }
  0x1d   : > { %v3006_v7 = vld [vmem:[%s3771_s1 + $0x1c8] sm:$0xff]   ;;  %v3007_v9 = vld [vmem:[%s3229_s9 + $0x70] ss:$52 sps:$4 sm:$0xff]  }
  0x1e   : > { %v3008_v8 = vld [vmem:[%s3771_s1 + $0x188] sm:$0xff]   ;;  %v3009_v10 = vld [vmem:[%s3229_s9 + $0x7c] ss:$52 sps:$4 sm:$0xff]  }
  0x1f   : > { %2912 = vmatpush3.bf16.msra.mxu1 %v2938_v15  ;;  %2516 = vmatpush3.bf16.msra.mxu0 %v2938_v15  ;;  %v3012_v12 = vld [vmem:[%s3771_s1 + $0x248] sm:$0xff]   ;;  %v3014_v14 = vld [vmem:[%s3771_s1 + $0x1d0] sm:$0xff]  }
  0x20   : > { %2905 = vmatprep.subr.bf16.mxu1 %v2939_v16  ;;  %2517 = vmatprep.subr.bf16.mxu0 %v2939_v16  ;;  %v3013_v13 = vld [vmem:[%s3771_s1 + $0x208] sm:$0xff]   ;;  %v3015_v15 = vld [vmem:[%s3229_s9 + $0xdc] ss:$52 sps:$4 sm:$0xff]  }
  0x21   : > { %v3017_v16 = vld [vmem:[%s3771_s1 + $0x190] sm:$0xff]  }
  0x23   : > { %2913 = vmatpush3.bf16.msra.mxu1 %v2940_v17  ;;  %2518 = vmatpush3.bf16.msra.mxu0 %v2940_v17  ;;  %v3019_v17 = vld [vmem:[%s3229_s9 + $0xe4] ss:$52 sps:$4 sm:$0xff]  }
  0x24   : > { %2561 = vmatprep.subr.bf16.mxu1 %v2944_v18  ;;  %2619 = vmatprep.subr.bf16.mxu0 %v2949_v21  ;;  %v3018_v18 = vld [vmem:[%s3229_s9 + $0xd8] ss:$52 sps:$4 sm:$0xff]   ;;  %v3023_v21 = vld [vmem:[%s3771_s1 + $0x210] sm:$0xff]  }
  0x26   : > { %1625 = vmatmul.mubr.bf16.vlgmr.msra.gmra.mrb[0].mxu1 %v2941_v19  ;;  %1593 = vmatmul.mubr.bf16.vlgmr.msra.gmra.mrb[0].mxu0 %v2945_v20  ;;  %v3021_v19 = vld [vmem:[%s3229_s9 + $0xe0] ss:$52 sps:$4 sm:$0xff]  }
  0x27   : > { %2562 = vmatpush3.bf16.msra.mxu1 %v2948_v22  ;;  %2620 = vmatpush3.bf16.msra.mxu0 %v2950_v23  ;;  %v3022_v20 = vld [vmem:[%s3771_s1 + $0x250] sm:$0xff]   ;;  %v3024_v22 = vld [vmem:[%s3771_s1 + $0x1d8] sm:$0xff]  }
  0x28   : > { %2563 = vmatprep.subr.bf16.mxu1 %v2951_v24  ;;  %2621 = vmatprep.subr.bf16.mxu0 %v2953_v25  ;;  %v3025_v23 = vld [vmem:[%s3771_s1 + $0x198] sm:$0xff]   ;;  %v3029_v25 = vld [vmem:[%s3229_s9 + $0x14c] ss:$52 sps:$4 sm:$0xff]  }
  0x29   : > { %1600 = vmatprep.mubr.bf16.mxu0 %v2956_v26  ;;  %1632 = vmatprep.mubr.bf16.mxu1 %v2963_v28  ;;  %v3026_v24 = vld [vmem:[%s3229_s9 + $0x144] ss:$52 sps:$4 sm:$0xff]   ;;  %v3028_v28 = vld [vmem:[%s3229_s9 + $0x140] ss:$52 sps:$4 sm:$0xff]  }
  0x2a   : > { %v3032_v26 = vld [vmem:[%s3771_s1 + $0x258] sm:$0xff]  }
  0x2b   : > { %2564 = vmatpush3.bf16.msra.mxu1 %v2952_v27  ;;  %2622 = vmatpush3.bf16.msra.mxu0 %v2954_v29  ;;  %v3033_v27 = vld [vmem:[%s3771_s1 + $0x218] sm:$0xff]   ;;  %v3034_v29 = vld [vmem:[%s3771_s1 + $0x1e0] sm:$0xff]  }
  0x2c   : > { %2565 = vmatprep.subr.bf16.mxu1 %v2955_v30  ;;  %2623 = vmatprep.subr.bf16.mxu0 %v2960_v31  ;;  %v3035_v30 = vld [vmem:[%s3771_s1 + $0x1a0] sm:$0xff]   ;;  %v3031_v31 = vld [vmem:[%s3229_s9 + $0x148] ss:$52 sps:$4 sm:$0xff]  }
  0x2e   : > { %1601 = vmatmul.mubr.bf16.gmra.mrb[4].mxu0 %v2959_v33  ;;  %1633 = vmatmul.mubr.bf16.gmra.mrb[4].mxu1 %v2966_v34  ;;  %v3039_v33 = vld [vmem:[%s3229_s9 + $0x1b4] ss:$52 sps:$4 sm:$0xff]   ;;  %v3041_v34 = vld [vmem:[%s3771_s1 + $0x260] sm:$0xff]  }
  0x2f   : > { %2566 = vmatpush3.bf16.msra.mxu1 %v2958_v32  ;;  %2624 = vmatpush3.bf16.msra.mxu0 %v2961_v35  ;;  %v3036_v32 = vld [vmem:[%s3229_s9 + $0x1ac] ss:$52 sps:$4 sm:$0xff]  }
  0x30   : > { %2567 = vmatprep.subr.bf16.mxu1 %v2962_v36  ;;  %2625 = vmatprep.subr.bf16.mxu0 %v2967_v37  ;;  %v3043_v35 = vld [vmem:[%s3771_s1 + $0x220] sm:$0xff]   ;;  %v3044_v36 = vld [vmem:[%s3771_s1 + $0x1e8] sm:$0xff]  }
  0x31   : > { %1608 = vmatprep.mubr.bf16.mxu0 %v2970_v40  ;;  %1640 = vmatprep.mubr.bf16.mxu1 %v2977_v43  ;;  %v3038_v37 = vld [vmem:[%s3229_s9 + $0x1a8] ss:$52 sps:$4 sm:$0xff]  }
  0x32   : > { %v3046_v40 = vld [vmem:[%s3229_s9 + $0x214] ss:$52 sps:$4 sm:$0xff]  }
  0x33   : > { %2568 = vmatpush3.bf16.msra.mxu1 %v2965_v38  ;;  %2626 = vmatpush3.bf16.msra.mxu0 %v2968_v39  ;;  %v3045_v38 = vld [vmem:[%s3771_s1 + $0x1a8] sm:$0xff]   ;;  %v3042_v39 = vld [vmem:[%s3229_s9 + $0x1b0] ss:$52 sps:$4 sm:$0xff]  }
  0x34   : > { %2569 = vmatprep.subr.bf16.mxu1 %v2969_v41  ;;  %2627 = vmatprep.subr.bf16.mxu0 %v2974_v42  ;;  %v3049_v41 = vld [vmem:[%s3771_s1 + $0x268] sm:$0xff]   ;;  %v3050_v42 = vld [vmem:[%s3229_s9 + $0x21c] ss:$52 sps:$4 sm:$0xff]  }
  0x35   : > { %v3052_v43 = vld [vmem:[%s3771_s1 + $0x228] sm:$0xff]  }
  0x36   : > { %1609 = vmatmul.mubr.bf16.gmra.mrb[8].mxu0 %v2973_v45  ;;  %1641 = vmatmul.mubr.bf16.gmra.mrb[8].mxu1 %v2980_v47  ;;  %v3055_v45 = vld [vmem:[%s3771_s1 + $0x1b0] sm:$0xff]   ;;  %v3053_v47 = vld [vmem:[%s3229_s9 + $0x218] ss:$52 sps:$4 sm:$0xff]  }
  0x37   : > { %2570 = vmatpush3.bf16.msra.mxu1 %v2972_v44  ;;  %2628 = vmatpush3.bf16.msra.mxu0 %v2975_v46  ;;  %v3054_v44 = vld [vmem:[%s3771_s1 + $0x1f0] sm:$0xff]  }
  0x38   : > { %2571 = vmatprep.subr.bf16.mxu1 %v2976_v48  ;;  %2629 = vmatprep.subr.bf16.mxu0 %v2981_v49  ;;  %v3048_v46 = vld [vmem:[%s3229_s9 + $0x210] ss:$52 sps:$4 sm:$0xff]  }
  0x39   : > { %1616 = vmatprep.mubr.bf16.mxu0 %v2984_v51  ;;  %1681 = vmatprep.mubr.bf16.mxu1 %v2995_v61  ;;  %v3056_v48 = vld [vmem:[%s3229_s9 + $0x27c] ss:$52 sps:$4 sm:$0xff]   ;;  %v3061_v51 = vld [vmem:[%s3229_s9 + $0x284] ss:$52 sps:$4 sm:$0xff]   ;;  %v3166_v61 = vmov 0.0  }
  0x3a   : > { %v3058_v49 = vld [vmem:[%s3771_s1 + $0x270] sm:$0xff]  }
  0x3b   : > { %2572 = vmatpush3.bf16.msra.mxu1 %v2979_v50  ;;  %2630 = vmatpush3.bf16.msra.mxu0 %v2982_v52  ;;  %v3060_v50 = vld [vmem:[%s3771_s1 + $0x230] sm:$0xff]   ;;  %v3063_v52 = vld [vmem:[%s3771_s1 + $0x1f8] sm:$0xff]  }
  0x3c   : > { %2573 = vmatprep.subr.bf16.mxu1 %v2983_v53  ;;  %2631 = vmatprep.subr.bf16.mxu0 %v2988_v54  ;;  %v3065_v53 = vld [vmem:[%s3771_s1 + $0x1b8] sm:$0xff]  }
  0x3d   : > { %v3066_v54 = vld [vmem:[%s3771_s1 + $0x278] sm:$0xff]  }
  0x3e   : > { %1617 = vmatmul.mubr.bf16.gmra.mrb[12].mxu0 %v2987_v56  ;;  %v3064_v56 = vld [vmem:[%s3229_s9 + $0x280] ss:$52 sps:$4 sm:$0xff]  }
  0x3f   : > { %2574 = vmatpush3.bf16.msra.mxu1 %v2986_v55  ;;  %2632 = vmatpush3.bf16.msra.mxu0 %v2989_v57  ;;  %v3059_v55 = vld [vmem:[%s3229_s9 + $0x278] ss:$52 sps:$4 sm:$0xff]  }
  0x40   : > { %2575 = vmatprep.subr.bf16.mxu1 %v2990_v58  ;;  %2633 = vmatprep.subr.bf16.mxu0 %v2992_v59  ;;  %v3070_v57 = vld [vmem:[%s3771_s1 + $0x238] sm:$0xff]   ;;  %v3071_v58 = vld [vmem:[%s3771_s1 + $0x2c0] sm:$0xff]  }
  0x41   : > { %1770 = vmatprep.mubr.bf16.mxu0 %v3000_v2  ;;  %v3069_v59 = vld [vmem:[%s3229_s9 + $0x1c] ss:$52 sps:$4 sm:$0xff]   ;;  %v3077_v2 = vld [vmem:[%s3229_s9 + $0x84] ss:$52 sps:$4 sm:$0xff]  }
  0x43   : > { %2576 = vmatpush3.bf16.msra.mxu1 %v2991_v60  ;;  %2634 = vmatpush3.bf16.msra.mxu0 %v2996_v62  ;;  %v3074_v60 = vld [vmem:[%s3229_s9 + $0x24] ss:$52 sps:$4 sm:$0xff]  }
  0x44   : > { %2677 = vmatprep.subr.bf16.mxu1 %v2997_v63  ;;  %2735 = vmatprep.subr.bf16.mxu0 %v3002_v4  ;;  %v3067_v62 = vld [vmem:[%s3229_s9 + $0x18] ss:$52 sps:$4 sm:$0xff]   ;;  %v3072_v63 = vld [vmem:[%s3229_s9 + $0x20] ss:$52 sps:$4 sm:$0xff]  }
  0x45   : > { %v3082_v4 = vld [vmem:[%s3229_s9 + $0x8c] ss:$52 sps:$4 sm:$0xff]  }
  0x46   : > { %1682 = vmatmul.mubr.bf16.vlgmr.msra.gmra.mrb[12].mxu1 %v2993_v0  ;;  %1771 = vmatmul.mubr.bf16.vlgmr.msra.gmra.mrb[16].mxu0 %v2998_v1  ;;  %v3075_v0 = vld [vmem:[%s3771_s1 + $0x280] sm:$0xff]  }
  0x47   : > { %2678 = vmatpush3.bf16.msra.mxu1 %v3001_v3  ;;  %2736 = vmatpush3.bf16.msra.mxu0 %v3003_v5  ;;  %v3076_v1 = vld [vmem:[%s3771_s1 + $0x300] sm:$0xff]   ;;  %v3079_v3 = vld [vmem:[%s3771_s1 + $0x2c8] sm:$0xff]  }
  0x48   : > { %1689 = vmatprep.mubr.bf16.mxu1 %v3004_v6  ;;  %2679 = vmatprep.subr.bf16.mxu1 %v3006_v7  ;;  %v3081_v5 = vld [vmem:[%s3771_s1 + $0x288] sm:$0xff]   ;;  %v3080_v7 = vld [vmem:[%s3229_s9 + $0x80] ss:$52 sps:$4 sm:$0xff]  }
  0x49   : > { %1778 = vmatprep.mubr.bf16.mxu0 %v3009_v10  ;;  %2737 = vmatprep.subr.bf16.mxu0 %v3012_v12  ;;  %v3093_v6 = vld [vmem:[%s3771_s1 + $0x308] sm:$0xff]  }
  0x4a   : > { %v3086_v10 = vld [vmem:[%s3229_s9 + $0xec] ss:$52 sps:$4 sm:$0xff]   ;;  %v3090_v12 = vld [vmem:[%s3229_s9 + $0xf4] ss:$52 sps:$4 sm:$0xff]  }
  0x4b   : > { %2680 = vmatpush3.bf16.msra.mxu1 %v3008_v8  ;;  %2738 = vmatpush3.bf16.msra.mxu0 %v3013_v13  ;;  %v3085_v8 = vld [vmem:[%s3771_s1 + $0x2d0] sm:$0xff]   ;;  %v3094_v13 = vld [vmem:[%s3771_s1 + $0x2d8] sm:$0xff]  }
  0x4c   : > { %2681 = vmatprep.subr.bf16.mxu1 %v3014_v14  ;;  %2739 = vmatprep.subr.bf16.mxu0 %v3022_v20  ;;  %v3095_v14 = vld [vmem:[%s3771_s1 + $0x298] sm:$0xff]  }
  0x4d   : > { %v3099_v20 = vld [vmem:[%s3229_s9 + $0x15c] ss:$52 sps:$4 sm:$0xff]  }
  0x4e   : > { %1690 = vmatmul.mubr.bf16.gmra.mrb[16].mxu1 %v3007_v9  ;;  %1779 = vmatmul.mubr.bf16.gmra.mrb[20].mxu0 %v3011_v11  ;;  %v3084_v9 = vld [vmem:[%s3229_s9 + $0x88] ss:$52 sps:$4 sm:$0xff]   ;;  %v3088_v11 = vld [vmem:[%s3771_s1 + $0x290] sm:$0xff]  }
  0x4f   : > { %1697 = vmatprep.mubr.bf16.mxu1 %v3015_v15  ;;  %2682 = vmatpush3.bf16.msra.mxu1 %v3017_v16  ;;  %v3089_v15 = vld [vmem:[%s3229_s9 + $0xe8] ss:$52 sps:$4 sm:$0xff]   ;;  %v3092_v16 = vld [vmem:[%s3229_s9 + $0xf0] ss:$52 sps:$4 sm:$0xff]  }
  0x50   : > { %1786 = vmatprep.mubr.bf16.mxu0 %v3019_v17  ;;  %2740 = vmatpush3.bf16.msra.mxu0 %v3023_v21  ;;  %v3102_v17 = vld [vmem:[%s3771_s1 + $0x2e0] sm:$0xff]  }
  0x51   : > { %2683 = vmatprep.subr.bf16.mxu1 %v3024_v22  ;;  %2741 = vmatprep.subr.bf16.mxu0 %v3032_v26  ;;  %v3103_v21 = vld [vmem:[%s3771_s1 + $0x2a0] sm:$0xff]   ;;  %v3111_v22 = vld [vmem:[%s3771_s1 + $0x2e8] sm:$0xff]   ;;  %v3104_v26 = vld [vmem:[%s3229_s9 + $0x1bc] ss:$52 sps:$4 sm:$0xff]  }
  0x53   : > { %2684 = vmatpush3.bf16.msra.mxu1 %v3025_v23  ;;  %v3098_v23 = vld [vmem:[%s3229_s9 + $0x150] ss:$52 sps:$4 sm:$0xff]  }
  0x54   : > { %2742 = vmatpush3.bf16.msra.mxu0 %v3033_v27  ;;  %2685 = vmatprep.subr.bf16.mxu1 %v3034_v29  ;;  %v3119_v27 = vld [vmem:[%s3771_s1 + $0x2f0] sm:$0xff]   ;;  %v3124_v29 = vld [vmem:[%s3771_s1 + $0x318] sm:$0xff]  }
  0x55   : > { %2743 = vmatprep.subr.bf16.mxu0 %v3041_v34  ;;  %v3109_v34 = vld [vmem:[%s3229_s9 + $0x1c0] ss:$52 sps:$4 sm:$0xff]  }
  0x56   : > { %1698 = vmatmul.mubr.bf16.gmra.mrb[20].mxu1 %v3018_v18  ;;  %1787 = vmatmul.mubr.bf16.gmra.mrb[24].mxu0 %v3021_v19  ;;  %v3096_v18 = vld [vmem:[%s3229_s9 + $0x154] ss:$52 sps:$4 sm:$0xff]  }
  0x57   : > { %1705 = vmatprep.mubr.bf16.mxu1 %v3026_v24  ;;  %1794 = vmatprep.mubr.bf16.mxu0 %v3029_v25  ;;  %v3110_v19 = vld [vmem:[%s3771_s1 + $0x310] sm:$0xff]   ;;  %v3101_v24 = vld [vmem:[%s3229_s9 + $0x158] ss:$52 sps:$4 sm:$0xff]  }
  0x58   : > { %2686 = vmatpush3.bf16.msra.mxu1 %v3035_v30  ;;  %2744 = vmatpush3.bf16.msra.mxu0 %v3043_v35  ;;  %v3112_v25 = vld [vmem:[%s3771_s1 + $0x2a8] sm:$0xff]   ;;  %v3120_v30 = vld [vmem:[%s3771_s1 + $0x2b0] sm:$0xff]   ;;  %v3113_v35 = vld [vmem:[%s3229_s9 + $0x224] ss:$52 sps:$4 sm:$0xff]  }
  0x59   : > { %2687 = vmatprep.subr.bf16.mxu1 %v3044_v36  ;;  %2745 = vmatprep.subr.bf16.mxu0 %v3049_v41  ;;  %v3116_v36 = vld [vmem:[%s3229_s9 + $0x22c] ss:$52 sps:$4 sm:$0xff]   ;;  %v3123_v41 = vld [vmem:[%s3229_s9 + $0x288] ss:$52 sps:$4 sm:$0xff]  }
  0x5c   : > { %2688 = vmatpush3.bf16.msra.mxu1 %v3045_v38  ;;  %2746 = vmatpush3.bf16.msra.mxu0 %v3052_v43  ;;  %v3118_v38 = vld [vmem:[%s3229_s9 + $0x228] ss:$52 sps:$4 sm:$0xff]   ;;  %v3132_v43 = vld [vmem:[%s3229_s9 + $0x2c] ss:$52 sps:$4 sm:$0xff]  }
  0x5d   : > { %2689 = vmatprep.subr.bf16.mxu1 %v3054_v44  ;;  %2747 = vmatprep.subr.bf16.mxu0 %v3058_v49  ;;  %v3130_v44 = vld [vmem:[%s3229_s9 + $0x28] ss:$52 sps:$4 sm:$0xff]  }
  0x5e   : > { %1706 = vmatmul.mubr.bf16.gmra.mrb[24].mxu1 %v3028_v28  ;;  %1795 = vmatmul.mubr.bf16.gmra.mrb[28].mxu0 %v3031_v31  ;;  %v3107_v28 = vld [vmem:[%s3229_s9 + $0x1c4] ss:$52 sps:$4 sm:$0xff]   ;;  %v3138_v49 = vld [vmem:[%s3229_s9 + $0xfc] ss:$52 sps:$4 sm:$0xff]  }
  0x5f   : > { %1713 = vmatprep.mubr.bf16.mxu1 %v3036_v32  ;;  %1802 = vmatprep.mubr.bf16.mxu0 %v3039_v33  ;;  %v3127_v31 = vld [vmem:[%s3771_s1 + $0x2f8] sm:$0xff]  }
  0x60   : > { %2690 = vmatpush3.bf16.msra.mxu1 %v3055_v45  ;;  %2748 = vmatpush3.bf16.msra.mxu0 %v3060_v50  ;;  %v3106_v32 = vld [vmem:[%s3229_s9 + $0x1b8] ss:$52 sps:$4 sm:$0xff]   ;;  %v3133_v45 = vld [vmem:[%s3229_s9 + $0x30] ss:$52 sps:$4 sm:$0xff]  }
  0x61   : > { %2691 = vmatprep.subr.bf16.mxu1 %v3063_v52  ;;  %2749 = vmatprep.subr.bf16.mxu0 %v3066_v54  ;;  %v3129_v33 = vld [vmem:[%s3771_s1 + $0x2b8] sm:$0xff]  }
  0x62   : > { %v3140_v50 = vld [vmem:[%s3229_s9 + $0xf8] ss:$52 sps:$4 sm:$0xff]   ;;  %v3145_v54 = vld [vmem:[%s3229_s9 + $0x168] ss:$52 sps:$4 sm:$0xff]  }
  0x63   : > { %v3142_v52 = vld [vmem:[%s3229_s9 + $0x164] ss:$52 sps:$4 sm:$0xff]  }
  0x64   : > { %2692 = vmatpush3.bf16.msra.mxu1 %v3065_v53  ;;  %2750 = vmatpush3.bf16.msra.mxu0 %v3070_v57  ;;  %v3144_v53 = vld [vmem:[%s3229_s9 + $0x160] ss:$52 sps:$4 sm:$0xff]   ;;  %v3149_v57 = vld [vmem:[%s3229_s9 + $0x1d0] ss:$52 sps:$4 sm:$0xff]  }
  0x65   : > { %2793 = vmatprep.subr.bf16.mxu1 %v3071_v58  ;;  %2862 = vmatprep.subr.bf16.mxu0 %v3166_v61  ;;  %v3150_v58 = vld [vmem:[%s3229_s9 + $0x234] ss:$52 sps:$4 sm:$0xff]  }
  0x66   : > { %1714 = vmatmul.mubr.bf16.gmra.mrb[28].mxu1 %v3038_v37  ;;  %1803 = vmatmul.mubr.bf16.gmra.mrb[32].mxu0 %v3042_v39  ;;  %v3115_v37 = vld [vmem:[%s3229_s9 + $0x220] ss:$52 sps:$4 sm:$0xff]  }
  0x67   : > { %1721 = vmatprep.mubr.bf16.mxu1 %v3046_v40  ;;  %1810 = vmatprep.mubr.bf16.mxu0 %v3050_v42  ;;  %v3121_v39 = vld [vmem:[%s3229_s9 + $0x28c] ss:$52 sps:$4 sm:$0xff]   ;;  %v3125_v40 = vld [vmem:[%s3229_s9 + $0x294] ss:$52 sps:$4 sm:$0xff]   ;;  %v3128_v42 = vld [vmem:[%s3229_s9 + $0x290] ss:$52 sps:$4 sm:$0xff]  }
  0x6e   : > { %1722 = vmatmul.mubr.bf16.gmra.mrb[32].mxu1 %v3048_v46  ;;  %1811 = vmatmul.mubr.bf16.gmra.mrb[36].mxu0 %v3053_v47  ;;  %v3134_v46 = vld [vmem:[%s3229_s9 + $0x94] ss:$52 sps:$4 sm:$0xff]   ;;  %v3136_v47 = vld [vmem:[%s3229_s9 + $0x90] ss:$52 sps:$4 sm:$0xff]  }
  0x6f   : > { %1729 = vmatprep.mubr.bf16.mxu1 %v3056_v48  ;;  %1818 = vmatprep.mubr.bf16.mxu0 %v3061_v51  ;;  %v3137_v48 = vld [vmem:[%s3229_s9 + $0x98] ss:$52 sps:$4 sm:$0xff]   ;;  %v3141_v51 = vld [vmem:[%s3229_s9 + $0x100] ss:$52 sps:$4 sm:$0xff]  }
  0x76   : > { %1730 = vmatmul.mubr.bf16.gmra.mrb[36].mxu1 %v3059_v55  ;;  %1819 = vmatmul.mubr.bf16.gmra.mrb[40].mxu0 %v3064_v56  ;;  %v3146_v55 = vld [vmem:[%s3229_s9 + $0x1cc] ss:$52 sps:$4 sm:$0xff]   ;;  %v3148_v56 = vld [vmem:[%s3229_s9 + $0x1c8] ss:$52 sps:$4 sm:$0xff]  }
  0x77   : > { %1859 = vmatprep.mubr.bf16.mxu1 %v3069_v59  ;;  %1948 = vmatprep.mubr.bf16.mxu0 %v3074_v60  ;;  %v3152_v59 = vld [vmem:[%s3229_s9 + $0x230] ss:$52 sps:$4 sm:$0xff]   ;;  %v3153_v60 = vld [vmem:[%s3229_s9 + $0x238] ss:$52 sps:$4 sm:$0xff]  }
  0x7e   : > { %1860 = vmatmul.mubr.bf16.vlgmr.msra.gmra.mrb[40].mxu1 %v3067_v62  ;;  %1949 = vmatmul.mubr.bf16.vlgmr.msra.gmra.mrb[44].mxu0 %v3072_v63  ;;  %v3154_v62 = vld [vmem:[%s3229_s9 + $0x29c] ss:$52 sps:$4 sm:$0xff]   ;;  %v3156_v63 = vld [vmem:[%s3229_s9 + $0x298] ss:$52 sps:$4 sm:$0xff]  }
  0x7f   : > { %2794 = vmatpush3.bf16.msra.mxu1 %v3075_v0  ;;  %2863 = vmatpush3.bf16.msra.mxu0 %v3076_v1  ;;  %v3157_v0 = vld [vmem:[%s3229_s9 + $0x2a0] ss:$52 sps:$4 sm:$0xff]  }
  0x80   : > { %1867 = vmatprep.mubr.bf16.mxu1 %v3077_v2  ;;  %2795 = vmatprep.subr.bf16.mxu1 %v3079_v3 }
  0x81   : > { %1956 = vmatprep.mubr.bf16.mxu0 %v3082_v4  ;;  %2864 = vmatprep.subr.bf16.mxu0 %v3166_v61 }
  0x83   : > { %2796 = vmatpush3.bf16.msra.mxu1 %v3081_v5  ;;  %2865 = vmatpush3.bf16.msra.mxu0 %v3093_v6 }
  0x84   : > { %2797 = vmatprep.subr.bf16.mxu1 %v3085_v8  ;;  %2866 = vmatprep.subr.bf16.mxu0 %v3166_v61 }
  0x86   : > { %1868 = vmatmul.mubr.bf16.gmra.mrb[44].mxu1 %v3080_v7  ;;  %1957 = vmatmul.mubr.bf16.gmra.mrb[48].mxu0 %v3084_v9 }
  0x87   : > { %1875 = vmatprep.mubr.bf16.mxu1 %v3086_v10  ;;  %2798 = vmatpush3.bf16.msra.mxu1 %v3088_v11 }
  0x88   : > { %1964 = vmatprep.mubr.bf16.mxu0 %v3090_v12  ;;  %2799 = vmatprep.subr.bf16.mxu1 %v3094_v13 }
  0x89   : > { %2867 = vmatpush3.bf16.msra.mxu0 %v3110_v19 }
  0x8a   : > { %2868 = vmatprep.subr.bf16.mxu0 %v3166_v61 }
  0x8b   : > { %2800 = vmatpush3.bf16.msra.mxu1 %v3095_v14 }
  0x8c   : > { %2801 = vmatprep.subr.bf16.mxu1 %v3102_v17 }
  0x8d   : > { %2869 = vmatpush3.bf16.msra.mxu0 %v3124_v29 }
  0x8e   : > { %1876 = vmatmul.mubr.bf16.gmra.mrb[48].mxu1 %v3089_v15  ;;  %1965 = vmatmul.mubr.bf16.gmra.mrb[52].mxu0 %v3092_v16 }
  0x8f   : > { %1883 = vmatprep.mubr.bf16.mxu1 %v3096_v18  ;;  %1972 = vmatprep.mubr.bf16.mxu0 %v3099_v20 }
  0x90   : > { %2802 = vmatpush3.bf16.msra.mxu1 %v3103_v21 }
  0x91   : > { %2803 = vmatprep.subr.bf16.mxu1 %v3111_v22 }
  0x94   : > { %2804 = vmatpush3.bf16.msra.mxu1 %v3112_v25 }
  0x95   : > { %2805 = vmatprep.subr.bf16.mxu1 %v3119_v27 }
  0x96   : > { %1884 = vmatmul.mubr.bf16.gmra.mrb[52].mxu1 %v3098_v23  ;;  %1973 = vmatmul.mubr.bf16.gmra.mrb[56].mxu0 %v3101_v24 }
  0x97   : > { %1891 = vmatprep.mubr.bf16.mxu1 %v3104_v26  ;;  %1980 = vmatprep.mubr.bf16.mxu0 %v3107_v28 }
  0x98   : > { %2806 = vmatpush3.bf16.msra.mxu1 %v3120_v30 }
  0x99   : > { %2807 = vmatprep.subr.bf16.mxu1 %v3127_v31 }
  0x9c   : > { %2808 = vmatpush3.bf16.msra.mxu1 %v3129_v33 }
  0x9e   : > { %1892 = vmatmul.mubr.bf16.gmra.mrb[56].mxu1 %v3106_v32  ;;  %1981 = vmatmul.mubr.bf16.gmra.mrb[60].mxu0 %v3109_v34 }
  0x9f   : > { %1899 = vmatprep.mubr.bf16.mxu1 %v3113_v35  ;;  %1988 = vmatprep.mubr.bf16.mxu0 %v3116_v36 }
  0xa6   : > { %1900 = vmatmul.mubr.bf16.gmra.mrb[60].mxu1 %v3115_v37  ;;  %1989 = vmatmul.mubr.bf16.gmra.mrb[64].mxu0 %v3118_v38 }
  0xa7   : > { %1907 = vmatprep.mubr.bf16.mxu1 %v3121_v39  ;;  %1996 = vmatprep.mubr.bf16.mxu0 %v3125_v40 }
  0xae   : > { %1908 = vmatmul.mubr.bf16.gmra.mrb[64].mxu1 %v3123_v41  ;;  %1997 = vmatmul.mubr.bf16.gmra.mrb[68].mxu0 %v3128_v42 }
  0xaf   : > { %2037 = vmatprep.mubr.bf16.mxu1 %v3132_v43  ;;  %2870 = vmatprep.mubr.msk.bf16.mxu0 %vm3167_vm0, %v3166_v61 }
  0xb6   : > { %2038 = vmatmul.mubr.bf16.vlgmr.msra.gmra.mrb[68].mxu1 %v3130_v44  ;;  %2871 = vmatmul.mubr.msk.bf16.vlgmr.msra.gmra.mrb[72].mxu0 %vm1538_vm1, %v3133_v45  ;;  %v3639_v44 = vld [vmem:[%s3772_s2] ss:$0 sm:$0xff] }
  0xb7   : > { %2045 = vmatprep.mubr.bf16.mxu1 %v3134_v46  ;;  %2874 = vmatprep.mubr.msk.bf16.mxu0 %vm3167_vm0, %v3166_v61 }
  0xbe   : > { %2046 = vmatmul.mubr.bf16.gmra.mrb[72].mxu1 %v3136_v47  ;;  %2875 = vmatmul.mubr.msk.bf16.gmra.mrb[76].mxu0 %vm1538_vm1, %v3137_v48 }
  0xbf   : > { %2053 = vmatprep.mubr.bf16.mxu1 %v3138_v49  ;;  %2878 = vmatprep.mubr.msk.bf16.mxu0 %vm3167_vm0, %v3166_v61 }
  0xc6   : > { %2054 = vmatmul.mubr.bf16.gmra.mrb[76].mxu1 %v3140_v50  ;;  %2879 = vmatmul.mubr.msk.bf16.gmra.mrb[80].mxu0 %vm1538_vm1, %v3141_v51 }
  0xc7   : > { %2061 = vmatprep.mubr.bf16.mxu1 %v3142_v52  ;;  %2882 = vmatprep.mubr.msk.bf16.mxu0 %vm3167_vm0, %v3166_v61 }
  0xce   : > { %2062 = vmatmul.mubr.bf16.gmra.mrb[80].mxu1 %v3144_v53  ;;  %2883 = vmatmul.mubr.msk.bf16.gmra.mrb[84].mxu0 %vm1538_vm1, %v3145_v54 }
  0xcf   : > { %2069 = vmatprep.mubr.bf16.mxu1 %v3146_v55  ;;  %2886 = vmatprep.mubr.msk.bf16.mxu0 %vm3167_vm0, %v3166_v61 }
  0xd6   : > { %2070 = vmatmul.mubr.bf16.gmra.mrb[84].mxu1 %v3148_v56  ;;  %2887 = vmatmul.mubr.msk.bf16.gmra.mrb[88].mxu0 %vm1538_vm1, %v3149_v57 }
  0xd7   : > { %2077 = vmatprep.mubr.bf16.mxu1 %v3150_v58  ;;  %2890 = vmatprep.mubr.msk.bf16.mxu0 %vm3167_vm0, %v3166_v61 }
  0xde   : > { %2078 = vmatmul.mubr.bf16.gmra.mrb[88].mxu1 %v3152_v59  ;;  %2891 = vmatmul.mubr.msk.bf16.gmra.mrb[92].mxu0 %vm1538_vm1, %v3153_v60 }
  0xdf   : > { %2085 = vmatprep.mubr.bf16.mxu1 %v3154_v62  ;;  %2894 = vmatprep.mubr.msk.bf16.mxu0 %vm3167_vm0, %v3166_v61 }
  0xe6   : > { %2086 = vmatmul.mubr.bf16.gmra.mrb[92].mxu1 %v3156_v63  ;;  %2895 = vmatmul.mubr.msk.bf16.gmra.mrb[96].mxu0 %vm1538_vm1, %v3157_v0 }
  0xf9   : > { %v2543_v1 = vpop.f32.mrb[0].mxu1  ;;  %v2519_v2 = vpop.f32.mrb[0].mxu0 }
  0xfa   : > { %v2544_v3 = vpop.f32.mrb[1].mxu1  ;;  %v2520_v4 = vpop.f32.mrb[1].mxu0 }
  0xfb   : > { %v3620_v5 = vadd.f32 %v2544_v3, %v2543_v1  ;;  %v2546_v6 = vpop.f32.mrb[2].mxu1  ;;  %v2521_v7 = vadd.f32 %v2520_v4, %v2519_v2  ;;  %v2522_v8 = vpop.f32.mrb[2].mxu0 }
  0xfc   : > { %v2547_v9 = vpop.f32.mrb[3].mxu1  ;;  %v2523_v10 = vpop.f32.mrb[3].mxu0 }
  0xfd   : > { %v3622_v11 = vadd.f32 %v2547_v9, %v2546_v6  ;;  %v2524_v12 = vadd.f32 %v2523_v10, %v2522_v8  ;;  %v1595_v47 = vadd.f32 %v2521_v7, %v3639_v44 }
  0xff   : > { %v1598_v54 = vadd.f32 %v2524_v12, %v3639_v44 }
 0x101   : > { %v2525_v61 = vpop.f32.mrb[4].mxu0  ;;  %v2549_v13 = vpop.f32.mrb[4].mxu1 }
 0x102   : > { %v2526_v14 = vpop.f32.mrb[5].mxu0  ;;  %v2550_v15 = vpop.f32.mrb[5].mxu1 }
 0x103   : > { %v2527_v16 = vadd.f32 %v2526_v14, %v2525_v61  ;;  %v2528_v17 = vpop.f32.mrb[6].mxu0  ;;  %v3624_v18 = vadd.f32 %v2550_v15, %v2549_v13  ;;  %v2552_v19 = vpop.f32.mrb[6].mxu1 }
 0x104   : > { %v2529_v20 = vpop.f32.mrb[7].mxu0  ;;  %v2553_v21 = vpop.f32.mrb[7].mxu1 }
 0x105   : > { %v2530_v22 = vadd.f32 %v2529_v20, %v2528_v17  ;;  %v3626_v23 = vadd.f32 %v2553_v21, %v2552_v19  ;;  %v1603_v2 = vadd.f32 %v2527_v16, %v3639_v44 }
 0x107   : > { %v1606_v10 = vadd.f32 %v2530_v22, %v3639_v44 }
 0x109   : > { %v2531_v24 = vpop.f32.mrb[8].mxu0  ;;  %v2555_v25 = vpop.f32.mrb[8].mxu1 }
 0x10a   : > { %v2532_v26 = vpop.f32.mrb[9].mxu0  ;;  %v2556_v27 = vpop.f32.mrb[9].mxu1 }
 0x10b   : > { %v2533_v28 = vadd.f32 %v2532_v26, %v2531_v24  ;;  %v2534_v29 = vpop.f32.mrb[10].mxu0  ;;  %v3628_v30 = vadd.f32 %v2556_v27, %v2555_v25  ;;  %v2558_v31 = vpop.f32.mrb[10].mxu1 }
 0x10c   : > { %v2535_v32 = vpop.f32.mrb[11].mxu0  ;;  %v2559_v33 = vpop.f32.mrb[11].mxu1 }
 0x10d   : > { %v2536_v34 = vadd.f32 %v2535_v32, %v2534_v29  ;;  %v3630_v35 = vadd.f32 %v2559_v33, %v2558_v31  ;;  %v1611_v24 = vadd.f32 %v2533_v28, %v3639_v44 }
 0x10f   : > { %v1614_v32 = vadd.f32 %v2536_v34, %v3639_v44 }
 0x111   : > { %v2537_v36 = vpop.f32.mrb[12].mxu0 }
 0x112   : > { %v2538_v37 = vpop.f32.mrb[13].mxu0 }
 0x113   : > { %v3632_v38 = vadd.f32 %v2538_v37, %v2537_v36  ;;  %v2540_v39 = vpop.f32.mrb[14].mxu0 }
 0x114   : > { %v2541_v40 = vpop.f32.mrb[15].mxu0 }
 0x115   : > { %v3634_v41 = vadd.f32 %v2541_v40, %v2540_v39 }
 0x119   : > { %v2577_v42 = vpop.f32.mrb[12].mxu1  ;;  %v2635_v43 = vpop.f32.mrb[16].mxu0 }
 0x11a   : > { %v2578_v45 = vpop.f32.mrb[13].mxu1  ;;  %v2636_v46 = vpop.f32.mrb[17].mxu0 }
 0x11b   : > { %v2579_v48 = vadd.f32 %v2578_v45, %v2577_v42  ;;  %v2580_v49 = vpop.f32.mrb[14].mxu1  ;;  %v2637_v50 = vadd.f32 %v2636_v46, %v2635_v43  ;;  %v2638_v51 = vpop.f32.mrb[18].mxu0 }
 0x11c   : > { %v2581_v52 = vpop.f32.mrb[15].mxu1  ;;  %v2639_v53 = vpop.f32.mrb[19].mxu0 }
 0x11d   : > { %v1684_v55 = vadd.f32 %v2579_v48, %v1595_v47  ;;  %v2582_v56 = vadd.f32 %v2581_v52, %v2580_v49  ;;  %v2640_v57 = vadd.f32 %v2639_v53, %v2638_v51  ;;  %v1619_v47 = vadd.f32 %v3632_v38, %v3639_v44 }
 0x11e   : > { %v1622_v53 = vadd.f32 %v3634_v41, %v3639_v44 }
 0x11f   : > { %v1687_v58 = vadd.f32 %v2582_v56, %v1598_v54  ;;  %v3643_v59 = vadd.f32 %v2637_v50, %v1684_v55 }
 0x121   : > { %v3645_v60 = vadd.f32 %v2640_v57, %v1687_v58  ;;  %v2583_v62 = vpop.f32.mrb[16].mxu1  ;;  %v2641_v63 = vpop.f32.mrb[20].mxu0 }
 0x122   : > { %v2584_v0 = vpop.f32.mrb[17].mxu1  ;;  %v2642_v1 = vpop.f32.mrb[21].mxu0 }
 0x123   : > { %v2585_v3 = vadd.f32 %v2584_v0, %v2583_v62  ;;  %v2586_v4 = vpop.f32.mrb[18].mxu1  ;;  %v2643_v6 = vadd.f32 %v2642_v1, %v2641_v63  ;;  %v2644_v7 = vpop.f32.mrb[22].mxu0 }
 0x124   : > { %v2587_v8 = vpop.f32.mrb[19].mxu1  ;;  %v2645_v9 = vpop.f32.mrb[23].mxu0 }
 0x125   : > { %v1692_v12 = vadd.f32 %v2585_v3, %v1603_v2  ;;  %v2588_v61 = vadd.f32 %v2587_v8, %v2586_v4  ;;  %v2646_v13 = vadd.f32 %v2645_v9, %v2644_v7  ;;  %v1627_v2 = vadd.f32 %v3620_v5, %v3639_v44 }
 0x126   : > { %v1630_v9 = vadd.f32 %v3622_v11, %v3639_v44 }
 0x127   : > { %v1695_v14 = vadd.f32 %v2588_v61, %v1606_v10  ;;  %v3649_v15 = vadd.f32 %v2643_v6, %v1692_v12 }
 0x129   : > { %v3651_v17 = vadd.f32 %v2646_v13, %v1695_v14  ;;  %v2589_v19 = vpop.f32.mrb[20].mxu1  ;;  %v2647_v20 = vpop.f32.mrb[24].mxu0 }
 0x12a   : > { %v2590_v21 = vpop.f32.mrb[21].mxu1  ;;  %v2648_v16 = vpop.f32.mrb[25].mxu0 }
 0x12b   : > { %v2591_v25 = vadd.f32 %v2590_v21, %v2589_v19  ;;  %v2592_v26 = vpop.f32.mrb[22].mxu1  ;;  %v2649_v27 = vadd.f32 %v2648_v16, %v2647_v20  ;;  %v2650_v29 = vpop.f32.mrb[26].mxu0 }
 0x12c   : > { %v2593_v31 = vpop.f32.mrb[23].mxu1  ;;  %v2651_v22 = vpop.f32.mrb[27].mxu0 }
 0x12d   : > { %v1700_v33 = vadd.f32 %v2591_v25, %v1611_v24  ;;  %v2594_v36 = vadd.f32 %v2593_v31, %v2592_v26  ;;  %v2652_v37 = vadd.f32 %v2651_v22, %v2650_v29  ;;  %v1635_v24 = vadd.f32 %v3624_v18, %v3639_v44 }
 0x12e   : > { %v1638_v22 = vadd.f32 %v3626_v23, %v3639_v44 }
 0x12f   : > { %v1703_v39 = vadd.f32 %v2594_v36, %v1614_v32  ;;  %v3655_v40 = vadd.f32 %v2649_v27, %v1700_v33 }
 0x131   : > { %v3657_v42 = vadd.f32 %v2652_v37, %v1703_v39  ;;  %v2595_v43 = vpop.f32.mrb[24].mxu1  ;;  %v2653_v45 = vpop.f32.mrb[28].mxu0 }
 0x132   : > { %v2596_v46 = vpop.f32.mrb[25].mxu1  ;;  %v2654_v28 = vpop.f32.mrb[29].mxu0 }
 0x133   : > { %v2597_v48 = vadd.f32 %v2596_v46, %v2595_v43  ;;  %v2598_v49 = vpop.f32.mrb[26].mxu1  ;;  %v2655_v50 = vadd.f32 %v2654_v28, %v2653_v45  ;;  %v2656_v51 = vpop.f32.mrb[30].mxu0 }
 0x134   : > { %v2599_v34 = vpop.f32.mrb[27].mxu1  ;;  %v2657_v52 = vpop.f32.mrb[31].mxu0 }
 0x135   : > { %v1708_v54 = vadd.f32 %v2597_v48, %v1619_v47  ;;  %v2600_v55 = vadd.f32 %v2599_v34, %v2598_v49  ;;  %v2658_v56 = vadd.f32 %v2657_v52, %v2656_v51  ;;  %v1643_v47 = vadd.f32 %v3628_v30, %v3639_v44 }
 0x136   : > { %v1646_v52 = vadd.f32 %v3630_v35, %v3639_v44 }
 0x137   : > { %v1711_v57 = vadd.f32 %v2600_v55, %v1622_v53  ;;  %v3663_v58 = vadd.f32 %v2655_v50, %v1708_v54 }
 0x139   : > { %v3665_v62 = vadd.f32 %v2658_v56, %v1711_v57  ;;  %v2601_v63 = vpop.f32.mrb[28].mxu1  ;;  %v2659_v0 = vpop.f32.mrb[32].mxu0 }
 0x13a   : > { %v2602_v38 = vpop.f32.mrb[29].mxu1  ;;  %v2660_v1 = vpop.f32.mrb[33].mxu0 }
 0x13b   : > { %v2603_v3 = vadd.f32 %v2602_v38, %v2601_v63  ;;  %v2604_v4 = vpop.f32.mrb[30].mxu1  ;;  %v2661_v6 = vadd.f32 %v2660_v1, %v2659_v0  ;;  %v2662_v7 = vpop.f32.mrb[34].mxu0 }
 0x13c   : > { %v2605_v41 = vpop.f32.mrb[31].mxu1  ;;  %v2663_v8 = vpop.f32.mrb[35].mxu0 }
 0x13d   : > { %v1716_v10 = vadd.f32 %v2603_v3, %v1627_v2  ;;  %v2606_v12 = vadd.f32 %v2605_v41, %v2604_v4  ;;  %v2664_v61 = vadd.f32 %v2663_v8, %v2662_v7 }
 0x13f   : > { %v1719_v13 = vadd.f32 %v2606_v12, %v1630_v9  ;;  %v3671_v14 = vadd.f32 %v2661_v6, %v1716_v10 }
 0x141   : > { %v3673_v19 = vadd.f32 %v2664_v61, %v1719_v13  ;;  %v2607_v20 = vpop.f32.mrb[32].mxu1  ;;  %v2665_v21 = vpop.f32.mrb[36].mxu0 }
 0x142   : > { %v2608_v5 = vpop.f32.mrb[33].mxu1  ;;  %v2666_v16 = vpop.f32.mrb[37].mxu0 }
 0x143   : > { %v2609_v25 = vadd.f32 %v2608_v5, %v2607_v20  ;;  %v2610_v26 = vpop.f32.mrb[34].mxu1  ;;  %v2667_v27 = vadd.f32 %v2666_v16, %v2665_v21  ;;  %v2668_v29 = vpop.f32.mrb[38].mxu0 }
 0x144   : > { %v2611_v11 = vpop.f32.mrb[35].mxu1  ;;  %v2669_v31 = vpop.f32.mrb[39].mxu0 }
 0x145   : > { %v1724_v32 = vadd.f32 %v2609_v25, %v1635_v24  ;;  %v2612_v33 = vadd.f32 %v2611_v11, %v2610_v26  ;;  %v2670_v36 = vadd.f32 %v2669_v31, %v2668_v29 }
 0x147   : > { %v1727_v37 = vadd.f32 %v2612_v33, %v1638_v22  ;;  %v3679_v39 = vadd.f32 %v2667_v27, %v1724_v32 }
 0x149   : > { %v3681_v43 = vadd.f32 %v2670_v36, %v1727_v37  ;;  %v2613_v45 = vpop.f32.mrb[36].mxu1  ;;  %v2671_v46 = vpop.f32.mrb[40].mxu0 }
 0x14a   : > { %v2614_v18 = vpop.f32.mrb[37].mxu1  ;;  %v2672_v28 = vpop.f32.mrb[41].mxu0 }
 0x14b   : > { %v2615_v48 = vadd.f32 %v2614_v18, %v2613_v45  ;;  %v2616_v49 = vpop.f32.mrb[38].mxu1  ;;  %v2673_v50 = vadd.f32 %v2672_v28, %v2671_v46  ;;  %v2674_v51 = vpop.f32.mrb[42].mxu0 }
 0x14c   : > { %v2617_v23 = vpop.f32.mrb[39].mxu1  ;;  %v2675_v34 = vpop.f32.mrb[43].mxu0 }
 0x14d   : > { %v1732_v53 = vadd.f32 %v2615_v48, %v1643_v47  ;;  %v2618_v54 = vadd.f32 %v2617_v23, %v2616_v49  ;;  %v2676_v55 = vadd.f32 %v2675_v34, %v2674_v51 }
 0x14f   : > { %v1735_v56 = vadd.f32 %v2618_v54, %v1646_v52  ;;  %v3687_v57 = vadd.f32 %v2673_v50, %v1732_v53 }
 0x151   : > { %v3689_v63 = vadd.f32 %v2676_v55, %v1735_v56  ;;  %v2693_v0 = vpop.f32.mrb[40].mxu1  ;;  %v2751_v38 = vpop.f32.mrb[44].mxu0 }
 0x152   : > { %v2694_v30 = vpop.f32.mrb[41].mxu1  ;;  %v2752_v1 = vpop.f32.mrb[45].mxu0 }
 0x153   : > { %v2695_v2 = vadd.f32 %v2694_v30, %v2693_v0  ;;  %v2696_v3 = vpop.f32.mrb[42].mxu1  ;;  %v2753_v4 = vadd.f32 %v2752_v1, %v2751_v38  ;;  %v2754_v6 = vpop.f32.mrb[46].mxu0 }
 0x154   : > { %v2697_v7 = vpop.f32.mrb[43].mxu1  ;;  %v2755_v41 = vpop.f32.mrb[47].mxu0 }
 0x155   : > { %v1862_v35 = vadd.f32 %v2695_v2, %v3643_v59  ;;  %v2698_v44 = vadd.f32 %v2697_v7, %v2696_v3  ;;  %v2756_v8 = vadd.f32 %v2755_v41, %v2754_v6 }
 0x157   : > { %v1865_v9 = vadd.f32 %v2698_v44, %v3645_v60  ;;  %v3693_v10 = vadd.f32 %v2753_v4, %v1862_v35 }
 0x159   : > { %v3695_v12 = vadd.f32 %v2756_v8, %v1865_v9  ;;  %v2699_v61 = vpop.f32.mrb[44].mxu1  ;;  %v2757_v13 = vpop.f32.mrb[48].mxu0 }
 0x15a   : > { %v2700_v20 = vpop.f32.mrb[45].mxu1  ;;  %v2758_v21 = vpop.f32.mrb[49].mxu0 }
 0x15b   : > { %v2701_v5 = vadd.f32 %v2700_v20, %v2699_v61  ;;  %v2702_v16 = vpop.f32.mrb[46].mxu1  ;;  %v2759_v24 = vadd.f32 %v2758_v21, %v2757_v13  ;;  %v2760_v25 = vpop.f32.mrb[50].mxu0 }
 0x15c   : > { %v2703_v26 = vpop.f32.mrb[47].mxu1  ;;  %v2761_v27 = vpop.f32.mrb[51].mxu0 }
 0x15d   : > { %v1870_v59 = vadd.f32 %v2701_v5, %v3649_v15  ;;  %v2704_v29 = vadd.f32 %v2703_v26, %v2702_v16  ;;  %v2762_v11 = vadd.f32 %v2761_v27, %v2760_v25 }
 0x15f   : > { %v1873_v60 = vadd.f32 %v2704_v29, %v3651_v17  ;;  %v3699_v31 = vadd.f32 %v2759_v24, %v1870_v59 }
 0x161   : > { %v3701_v22 = vadd.f32 %v2762_v11, %v1873_v60  ;;  %v2705_v32 = vpop.f32.mrb[48].mxu1  ;;  %v2763_v33 = vpop.f32.mrb[52].mxu0 }
 0x162   : > { %v2706_v36 = vpop.f32.mrb[49].mxu1  ;;  %v2764_v37 = vpop.f32.mrb[53].mxu0 }
 0x163   : > { %v2707_v45 = vadd.f32 %v2706_v36, %v2705_v32  ;;  %v2708_v46 = vpop.f32.mrb[50].mxu1  ;;  %v2765_v18 = vadd.f32 %v2764_v37, %v2763_v33  ;;  %v2766_v28 = vpop.f32.mrb[54].mxu0 }
 0x164   : > { %v2709_v47 = vpop.f32.mrb[51].mxu1  ;;  %v2767_v48 = vpop.f32.mrb[55].mxu0 }
 0x165   : > { %v1878_v15 = vadd.f32 %v2707_v45, %v3655_v40  ;;  %v2710_v49 = vadd.f32 %v2709_v47, %v2708_v46  ;;  %v2768_v50 = vadd.f32 %v2767_v48, %v2766_v28 }
 0x167   : > { %v1881_v17 = vadd.f32 %v2710_v49, %v3657_v42  ;;  %v3705_v51 = vadd.f32 %v2765_v18, %v1878_v15 }
 0x169   : > { %v3707_v23 = vadd.f32 %v2768_v50, %v1881_v17  ;;  %v2711_v34 = vpop.f32.mrb[52].mxu1  ;;  %v2769_v52 = vpop.f32.mrb[56].mxu0 }
 0x16a   : > { %v2712_v53 = vpop.f32.mrb[53].mxu1  ;;  %v2770_v54 = vpop.f32.mrb[57].mxu0 }
 0x16b   : > { %v2713_v55 = vadd.f32 %v2712_v53, %v2711_v34  ;;  %v2714_v56 = vpop.f32.mrb[54].mxu1  ;;  %v2771_v0 = vadd.f32 %v2770_v54, %v2769_v52  ;;  %v2772_v38 = vpop.f32.mrb[58].mxu0 }
 0x16c   : > { %v2715_v30 = vpop.f32.mrb[55].mxu1  ;;  %v2773_v1 = vpop.f32.mrb[59].mxu0 }
 0x16d   : > { %v1886_v40 = vadd.f32 %v2713_v55, %v3663_v58  ;;  %v2716_v2 = vadd.f32 %v2715_v30, %v2714_v56  ;;  %v2774_v3 = vadd.f32 %v2773_v1, %v2772_v38 }
 0x16f   : > { %v1889_v42 = vadd.f32 %v2716_v2, %v3665_v62  ;;  %v3711_v4 = vadd.f32 %v2771_v0, %v1886_v40 }
 0x171   : > { %v3713_v6 = vadd.f32 %v2774_v3, %v1889_v42  ;;  %v2717_v7 = vpop.f32.mrb[56].mxu1  ;;  %v2775_v41 = vpop.f32.mrb[60].mxu0 }
 0x172   : > { %v2718_v35 = vpop.f32.mrb[57].mxu1  ;;  %v2776_v44 = vpop.f32.mrb[61].mxu0 }
 0x173   : > { %v2719_v8 = vadd.f32 %v2718_v35, %v2717_v7  ;;  %v2720_v9 = vpop.f32.mrb[58].mxu1  ;;  %v2777_v61 = vadd.f32 %v2776_v44, %v2775_v41  ;;  %v2778_v13 = vpop.f32.mrb[62].mxu0 }
 0x174   : > { %v2721_v20 = vpop.f32.mrb[59].mxu1  ;;  %v2779_v21 = vpop.f32.mrb[63].mxu0 }
 0x175   : > { %v1894_v58 = vadd.f32 %v2719_v8, %v3671_v14  ;;  %v2722_v5 = vadd.f32 %v2721_v20, %v2720_v9  ;;  %v2780_v16 = vadd.f32 %v2779_v21, %v2778_v13 }
 0x177   : > { %v1897_v62 = vadd.f32 %v2722_v5, %v3673_v19  ;;  %v3717_v24 = vadd.f32 %v2777_v61, %v1894_v58 }
 0x179   : > { %v3719_v25 = vadd.f32 %v2780_v16, %v1897_v62  ;;  %v2723_v26 = vpop.f32.mrb[60].mxu1  ;;  %v2781_v27 = vpop.f32.mrb[64].mxu0 }
 0x17a   : > { %v2724_v59 = vpop.f32.mrb[61].mxu1  ;;  %v2782_v29 = vpop.f32.mrb[65].mxu0 }
 0x17b   : > { %v2725_v11 = vadd.f32 %v2724_v59, %v2723_v26  ;;  %v2726_v60 = vpop.f32.mrb[62].mxu1  ;;  %v2783_v32 = vadd.f32 %v2782_v29, %v2781_v27  ;;  %v2784_v33 = vpop.f32.mrb[66].mxu0 }
 0x17c   : > { %v2727_v36 = vpop.f32.mrb[63].mxu1  ;;  %v2785_v37 = vpop.f32.mrb[67].mxu0 }
 0x17d   : > { %v1902_v14 = vadd.f32 %v2725_v11, %v3679_v39  ;;  %v2728_v45 = vadd.f32 %v2727_v36, %v2726_v60  ;;  %v2786_v46 = vadd.f32 %v2785_v37, %v2784_v33 }
 0x17f   : > { %v1905_v19 = vadd.f32 %v2728_v45, %v3681_v43  ;;  %v3723_v18 = vadd.f32 %v2783_v32, %v1902_v14 }
 0x181   : > { %v3725_v28 = vadd.f32 %v2786_v46, %v1905_v19  ;;  %v2729_v47 = vpop.f32.mrb[64].mxu1  ;;  %v2787_v48 = vpop.f32.mrb[68].mxu0 }
 0x182   : > { %v2730_v15 = vpop.f32.mrb[65].mxu1  ;;  %v2788_v49 = vpop.f32.mrb[69].mxu0 }
 0x183   : > { %v2731_v50 = vadd.f32 %v2730_v15, %v2729_v47  ;;  %v2732_v17 = vpop.f32.mrb[66].mxu1  ;;  %v2789_v34 = vadd.f32 %v2788_v49, %v2787_v48  ;;  %v2790_v52 = vpop.f32.mrb[70].mxu0 }
 0x184   : > { %v2733_v53 = vpop.f32.mrb[67].mxu1  ;;  %v2791_v54 = vpop.f32.mrb[71].mxu0 }
 0x185   : > { %v1910_v39 = vadd.f32 %v2731_v50, %v3687_v57  ;;  %v2734_v55 = vadd.f32 %v2733_v53, %v2732_v17  ;;  %v2792_v56 = vadd.f32 %v2791_v54, %v2790_v52 }
 0x187   : > { %v1913_v43 = vadd.f32 %v2734_v55, %v3689_v63  ;;  %v3729_v0 = vadd.f32 %v2789_v34, %v1910_v39 }
 0x189   : > { %v3731_v38 = vadd.f32 %v2792_v56, %v1913_v43  ;;  %v2809_v30 = vpop.f32.mrb[68].mxu1  ;;  %v2128_v1 = vpop.f32.mrb[72].mxu0 }
 0x18a   : > { %v2810_v40 = vpop.f32.mrb[69].mxu1  ;;  %v2872_v2 = vpop.f32.mrb[73].mxu0 }
 0x18b   : > { %v2811_v3 = vadd.f32 %v2810_v40, %v2809_v30  ;;  %v2812_v42 = vpop.f32.mrb[70].mxu1  ;;  %v2131_v7 = vpop.f32.mrb[74].mxu0 }
 0x18c   : > { %v2813_v41 = vpop.f32.mrb[71].mxu1  ;;  %v2873_v35 = vpop.f32.mrb[75].mxu0 }
 0x18d   : > { %v2814_v44 = vadd.f32 %v2813_v41, %v2812_v42  ;;  %v2040_v57 = vadd.f32 %v2811_v3, %v3693_v10 }
 0x18f   : > { %v2129_v8 = vadd.f32 %v2128_v1, %v2040_v57  ;;  %v2043_v63 = vadd.f32 %v2814_v44, %v3695_v12 }
 0x191   : > { %vm2183_vm2 = vcmp.ge.f32.partialorder %v2129_v8, 0.0  ;;  %v2197_v9 = vmul.f32 0.2, %v2129_v8  ;;  %v2132_v61 = vadd.f32 %v2131_v7, %v2043_v63  ;;  %v2815_v13 = vpop.f32.mrb[72].mxu1  ;;  %v2136_v20 = vpop.f32.mrb[76].mxu0 }
 0x192   : > { %v2816_v21 = vpop.f32.mrb[73].mxu1  ;;  %v2876_v58 = vpop.f32.mrb[77].mxu0 }
 0x193   : > { %v2211_v5 = vsel %vm2183_vm2, %v2129_v8, %v2197_v9  ;;  %vm2184_vm3 = vcmp.ge.f32.partialorder %v2132_v61, 0.0  ;;  %v2198_v10 = vmul.f32 0.2, %v2132_v61  ;;  %v2817_v16 = vadd.f32 %v2816_v21, %v2815_v13  ;;  %v2818_v62 = vpop.f32.mrb[74].mxu1  ;;  %v2139_v12 = vpop.f32.mrb[78].mxu0 }
 0x194   : > { %2225 = vst [vmem:[%s3739_s30] sm:$0xff] %v2211_v5  ;;  %v2819_v26 = vpop.f32.mrb[75].mxu1  ;;  %v2877_v27 = vpop.f32.mrb[79].mxu0 }
 0x195   : > { %v2212_v59 = vsel %vm2184_vm3, %v2132_v61, %v2198_v10  ;;  %v2820_v29 = vadd.f32 %v2819_v26, %v2818_v62  ;;  %v2048_v11 = vadd.f32 %v2817_v16, %v3699_v31 }
 0x196   : > { %2226 = vst [vmem:[%s3739_s30 + $0x8] sm:$0xff] %v2212_v59 }
 0x197   : > { %v2137_v60 = vadd.f32 %v2136_v20, %v2048_v11  ;;  %v2051_v32 = vadd.f32 %v2820_v29, %v3701_v22 }
 0x199   : > { %vm2185_vm4 = vcmp.ge.f32.partialorder %v2137_v60, 0.0  ;;  %v2199_v33 = vmul.f32 0.2, %v2137_v60  ;;  %v2140_v36 = vadd.f32 %v2139_v12, %v2051_v32  ;;  %v2821_v37 = vpop.f32.mrb[76].mxu1  ;;  %v2144_v14 = vpop.f32.mrb[80].mxu0 }
 0x19a   : > { %v2822_v45 = vpop.f32.mrb[77].mxu1  ;;  %v2880_v46 = vpop.f32.mrb[81].mxu0 }
 0x19b   : > { %v2213_v19 = vsel %vm2185_vm4, %v2137_v60, %v2199_v33  ;;  %vm2186_vm5 = vcmp.ge.f32.partialorder %v2140_v36, 0.0  ;;  %v2200_v47 = vmul.f32 0.2, %v2140_v36  ;;  %v2823_v48 = vadd.f32 %v2822_v45, %v2821_v37  ;;  %v2824_v15 = vpop.f32.mrb[78].mxu1  ;;  %v2147_v49 = vpop.f32.mrb[82].mxu0 }
 0x19c   : > { %2227 = vst [vmem:[%s3739_s30 + $0x10] sm:$0xff] %v2213_v19  ;;  %v2825_v31 = vpop.f32.mrb[79].mxu1  ;;  %v2881_v50 = vpop.f32.mrb[83].mxu0 }
 0x19d   : > { %v2214_v17 = vsel %vm2186_vm5, %v2140_v36, %v2200_v47  ;;  %v2826_v34 = vadd.f32 %v2825_v31, %v2824_v15  ;;  %v2056_v22 = vadd.f32 %v2823_v48, %v3705_v51 }
 0x19e   : > { %2228 = vst [vmem:[%s3739_s30 + $0x18] sm:$0xff] %v2214_v17 }
 0x19f   : > { %v2145_v52 = vadd.f32 %v2144_v14, %v2056_v22  ;;  %v2059_v53 = vadd.f32 %v2826_v34, %v3707_v23 }
 0x1a1   : > { %vm2187_vm6 = vcmp.ge.f32.partialorder %v2145_v52, 0.0  ;;  %v2201_v54 = vmul.f32 0.2, %v2145_v52  ;;  %v2148_v39 = vadd.f32 %v2147_v49, %v2059_v53  ;;  %v2827_v55 = vpop.f32.mrb[80].mxu1  ;;  %v2152_v56 = vpop.f32.mrb[84].mxu0 }
 0x1a2   : > { %v2828_v43 = vpop.f32.mrb[81].mxu1  ;;  %v2884_v30 = vpop.f32.mrb[85].mxu0 }
 0x1a3   : > { %v2215_v1 = vsel %vm2187_vm6, %v2145_v52, %v2201_v54  ;;  %vm2188_vm7 = vcmp.ge.f32.partialorder %v2148_v39, 0.0  ;;  %v2202_v40 = vmul.f32 0.2, %v2148_v39  ;;  %v2829_v2 = vadd.f32 %v2828_v43, %v2827_v55  ;;  %v2830_v3 = vpop.f32.mrb[82].mxu1  ;;  %v2155_v42 = vpop.f32.mrb[86].mxu0 }
 0x1a4   : > { %2229 = vst [vmem:[%s3739_s30 + $0x20] sm:$0xff] %v2215_v1  ;;  %v2831_v51 = vpop.f32.mrb[83].mxu1  ;;  %v2885_v7 = vpop.f32.mrb[87].mxu0 }
 0x1a5   : > { %v2216_v41 = vsel %vm2188_vm7, %v2148_v39, %v2202_v40  ;;  %v2832_v35 = vadd.f32 %v2831_v51, %v2830_v3  ;;  %v2064_v23 = vadd.f32 %v2829_v2, %v3711_v4 }
 0x1a6   : > { %2230 = vst [vmem:[%s3739_s30 + $0x28] sm:$0xff] %v2216_v41 }
 0x1a7   : > { %v2153_v44 = vadd.f32 %v2152_v56, %v2064_v23  ;;  %v2067_v57 = vadd.f32 %v2832_v35, %v3713_v6 }
 0x1a9   : > { %vm2189_vm8 = vcmp.ge.f32.partialorder %v2153_v44, 0.0  ;;  %v2203_v8 = vmul.f32 0.2, %v2153_v44  ;;  %v2156_v63 = vadd.f32 %v2155_v42, %v2067_v57  ;;  %v2833_v9 = vpop.f32.mrb[84].mxu1  ;;  %v2160_v61 = vpop.f32.mrb[88].mxu0 }
 0x1aa   : > { %v2834_v13 = vpop.f32.mrb[85].mxu1  ;;  %v2888_v20 = vpop.f32.mrb[89].mxu0 }
 0x1ab   : > { %v2217_v21 = vsel %vm2189_vm8, %v2153_v44, %v2203_v8  ;;  %vm2190_vm9 = vcmp.ge.f32.partialorder %v2156_v63, 0.0  ;;  %v2204_v58 = vmul.f32 0.2, %v2156_v63  ;;  %v2835_v5 = vadd.f32 %v2834_v13, %v2833_v9  ;;  %v2836_v10 = vpop.f32.mrb[86].mxu1  ;;  %v2163_v16 = vpop.f32.mrb[90].mxu0 }
 0x1ac   : > { %2231 = vst [vmem:[%s3739_s30 + $0x30] sm:$0xff] %v2217_v21  ;;  %v2837_v4 = vpop.f32.mrb[87].mxu1  ;;  %v2889_v62 = vpop.f32.mrb[91].mxu0 }
 0x1ad   : > { %v2218_v12 = vsel %vm2190_vm9, %v2156_v63, %v2204_v58  ;;  %v2838_v26 = vadd.f32 %v2837_v4, %v2836_v10  ;;  %v2072_v6 = vadd.f32 %v2835_v5, %v3717_v24 }
 0x1ae   : > { %2232 = vst [vmem:[%s3739_s30 + $0x38] sm:$0xff] %v2218_v12 }
 0x1af   : > { %v2161_v27 = vadd.f32 %v2160_v61, %v2072_v6  ;;  %v2075_v59 = vadd.f32 %v2838_v26, %v3719_v25 }
 0x1b1   : > { %vm2191_vm10 = vcmp.ge.f32.partialorder %v2161_v27, 0.0  ;;  %v2205_v29 = vmul.f32 0.2, %v2161_v27  ;;  %v2164_v11 = vadd.f32 %v2163_v16, %v2075_v59  ;;  %v2839_v60 = vpop.f32.mrb[88].mxu1  ;;  %v2168_v32 = vpop.f32.mrb[92].mxu0 }
 0x1b2   : > { %v2840_v33 = vpop.f32.mrb[89].mxu1  ;;  %v2892_v36 = vpop.f32.mrb[93].mxu0 }
 0x1b3   : > { %v2219_v37 = vsel %vm2191_vm10, %v2161_v27, %v2205_v29  ;;  %vm2192_vm11 = vcmp.ge.f32.partialorder %v2164_v11, 0.0  ;;  %v2206_v14 = vmul.f32 0.2, %v2164_v11  ;;  %v2841_v45 = vadd.f32 %v2840_v33, %v2839_v60  ;;  %v2842_v46 = vpop.f32.mrb[90].mxu1  ;;  %v2171_v19 = vpop.f32.mrb[94].mxu0 }
 0x1b4   : > { %2233 = vst [vmem:[%s3739_s30 + $0x40] sm:$0xff] %v2219_v37  ;;  %v2843_v24 = vpop.f32.mrb[91].mxu1  ;;  %v2893_v47 = vpop.f32.mrb[95].mxu0 }
 0x1b5   : > { %v2220_v48 = vsel %vm2192_vm11, %v2164_v11, %v2206_v14  ;;  %v2844_v15 = vadd.f32 %v2843_v24, %v2842_v46  ;;  %v2080_v25 = vadd.f32 %v2841_v45, %v3723_v18 }
 0x1b6   : > { %2234 = vst [vmem:[%s3739_s30 + $0x48] sm:$0xff] %v2220_v48 }
 0x1b7   : > { %v2169_v49 = vadd.f32 %v2168_v32, %v2080_v25  ;;  %v2083_v31 = vadd.f32 %v2844_v15, %v3725_v28 }
 0x1b9   : > { %vm2193_vm12 = vcmp.ge.f32.partialorder %v2169_v49, 0.0  ;;  %v2207_v50 = vmul.f32 0.2, %v2169_v49  ;;  %v2172_v17 = vadd.f32 %v2171_v19, %v2083_v31  ;;  %v2845_v34 = vpop.f32.mrb[92].mxu1  ;;  %v2176_v22 = vpop.f32.mrb[96].mxu0 }
 0x1ba   : > { %v2846_v52 = vpop.f32.mrb[93].mxu1  ;;  %v2896_v53 = vpop.f32.mrb[97].mxu0 }
 0x1bb   : > { %v2221_v54 = vsel %vm2193_vm12, %v2169_v49, %v2207_v50  ;;  %vm2194_vm13 = vcmp.ge.f32.partialorder %v2172_v17, 0.0  ;;  %v2208_v39 = vmul.f32 0.2, %v2172_v17  ;;  %v2847_v55 = vadd.f32 %v2846_v52, %v2845_v34  ;;  %v2848_v56 = vpop.f32.mrb[94].mxu1  ;;  %v2179_v43 = vpop.f32.mrb[98].mxu0 }
 0x1bc   : > { %2235 = vst [vmem:[%s3739_s30 + $0x50] sm:$0xff] %v2221_v54  ;;  %v2849_v18 = vpop.f32.mrb[95].mxu1  ;;  %v2897_v30 = vpop.f32.mrb[99].mxu0 }
 0x1bd   : > { %v2222_v28 = vsel %vm2194_vm13, %v2172_v17, %v2208_v39  ;;  %v2850_v1 = vadd.f32 %v2849_v18, %v2848_v56  ;;  %v2088_v40 = vadd.f32 %v2847_v55, %v3729_v0 }
 0x1be   : > { %2236 = vst [vmem:[%s3739_s30 + $0x58] sm:$0xff] %v2222_v28 }
 0x1bf   : > { %v2177_v2 = vadd.f32 %v2176_v22, %v2088_v40  ;;  %v2091_v3 = vadd.f32 %v2850_v1, %v3731_v38 }
 0x1c1   : > { %vm2195_vm14 = vcmp.ge.f32.partialorder %v2177_v2, 0.0  ;;  %v2209_v42 = vmul.f32 0.2, %v2177_v2  ;;  %v2180_v51 = vadd.f32 %v2179_v43, %v2091_v3 }
 0x1c3   : > { %v2223_v7 = vsel %vm2195_vm14, %v2177_v2, %v2209_v42  ;;  %vm2196_vm15 = vcmp.ge.f32.partialorder %v2180_v51, 0.0  ;;  %v2210_v41 = vmul.f32 0.2, %v2180_v51 }
 0x1c4   : > { %2237 = vst [vmem:[%s3739_s30 + $0x60] sm:$0xff] %v2223_v7 }
 0x1c5   : > { %v2224_v35 = vsel %vm2196_vm15, %v2180_v51, %v2210_v41 }
 0x1c6   : > { %2238 = vst [vmem:[%s3739_s30 + $0x68] sm:$0xff] %v2224_v35 }
 0x1c7 PF: > { %s13_s12 = sadd.s32 1, %s3164_s12  }
 0x1c8   : > { %p10_p4 = scmp.ge.s32.totalorder %s13_s12, 4  }
 0x1ca   :  { %12 = sbr.rel (!%p10_p4) target bundleno = 1 (0x1), region = 62 }

// kernel: tile.35
= control target key start
LH: loop header
LB: loop body
LE: loop exit
PB: predicated region body
PF: predicated region fallthrough
CT: control target
= control target key end

     0   :  { %s22_s0 = inlined_call_operand.vmem [shape: f32[32], index: 0, kind: input, shape index: {}]   ;;  %s23_s1 = inlined_call_operand.vmem [shape: f32[4,32], index: 1, kind: output, shape index: {}]  }
   0x1   :  { %v4_v0 = vld [vmem:[%s22_s0] ss:$0 sm:$0xff] }
   0x2   :  { %5 = vst [vmem:[%s23_s1] sm:$0xf] %v4_v0 }

// kernel: tile.36
= control target key start
LH: loop header
LB: loop body
LE: loop exit
PB: predicated region body
PF: predicated region fallthrough
CT: control target
= control target key end

     0   :  { %vm7_vm0 = vcmask 261120   ;;  %s37_s8 = smov 32   ;;  %s38_s9 = smov 64   ;;  %vm13_vm1 = vcmask 1048320   ;;  %vm19_vm2 = vcmask 785920   ;;  %vm25_vm3 = vcmask 523520   ;;  %s55_s0 = inlined_call_operand.vmem [shape: f32[4,32], index: 0, kind: input, shape index: {}]   ;;  %s56_s1 = inlined_call_operand.vmem [shape: f32[1,128], index: 1, kind: output, shape index: {}]  }
   0x1   :  { %v4_v0 = vld [vmem:[%s55_s0] sm:$0xf]  ;;  %s36_s0 = smov 96  }
   0x2   :  { %5 = vst [vmem:[#allocation1] sm:$0xf] %v4_v0 }
   0x9   :  { %v10_v1 = vld [vmem:[#allocation1 + $0x3] sm:$0x1]   ;;  %v22_v2 = vld [vmem:[#allocation1 + $0x1] sm:$0x1]   ;;  %v6_v3 = vld [vmem:[#allocation1] sm:$0x1]  }
   0xa   :  { %11 = vrot.lane.b32.xlu0 %v10_v1, %s36_s0  ;;  %23 = vrot.lane.b32.xlu1 %v22_v2, %s37_s8  ;;  %v16_v4 = vld [vmem:[#allocation1 + $0x2] sm:$0x1]   ;;  %8 = vst.msk [vmem:[#allocation0] sm:$0x1] %vm7_vm0, %v6_v3  }
   0xe   :  { %17 = vrot.lane.b32.xlu0 %v16_v4, %s38_s9 }
  0x7c   :  { %v12_v5 = vpop.permute.xlu0 %11   ;;  %v24_v6 = vpop.permute.xlu1 %23  }
  0x7d   :  { %14 = vst.msk [vmem:[#allocation0] sm:$0x1] %vm13_vm1, %v12_v5  }
  0x80   :  { %v18_v7 = vpop.permute.xlu0 %17  }
  0x81   :  { %20 = vst.msk [vmem:[#allocation0] sm:$0x1] %vm19_vm2, %v18_v7  }
  0x82   :  { %26 = vst.msk [vmem:[#allocation0] sm:$0x1] %vm25_vm3, %v24_v6  }
  0x89   :  { %v30_v8 = vld [vmem:[#allocation0] sm:$0x1] }
  0x8a   :  { %32 = vst [vmem:[%s56_s1] sm:$0x1] %v30_v8 }

// kernel: _forward_impl.9
= control target key start
LH: loop header
LB: loop body
LE: loop exit
PB: predicated region body
PF: predicated region fallthrough
CT: control target
= control target key end

     0   :  { %s2510_s12 = smov 0   ;;  %s2912_s0 = inlined_call_operand.vmem [shape: bf16[128,1600], index: 0, kind: input, shape index: {}]   ;;  %s2913_s1 = inlined_call_operand.vmem [shape: bf16[1600,128], index: 1, kind: input, shape index: {}]   ;;  %s2914_s2 = inlined_call_operand.vmem [shape: f32[1,128], index: 2, kind: input, shape index: {}]   ;;  %s2915_s3 = inlined_call_operand.vmem [shape: f32[128,128], index: 3, kind: output, shape index: {}]  }
   0x1 LB: > { %s1857_s13 = sadd.s32 4294967295, %s2488_s12   ;;  %p1861_p0 = scmp.ge.s32.totalorder %s2488_s12, 1  ;;  %s2488_s12 = sphi %s2510_s12, %s13_s12  }
   0x2   : > { %p139_p1 = scmp.lt.s32.totalorder %s2488_s12, 3 }
   0x4   : > { %p140_p2 = pnand %p1861_p0, %p139_p1 }
   0x5   : > { %v2306_v0 = vld [vmem:[%s2913_s1 + $0x40] sm:$0xff] (!%p140_p2)   ;;  %v2310_v4 = vld [vmem:[%s2913_s1 + $0x48] sm:$0xff] (!%p140_p2)   ;;  %v2314_v8 = vld [vmem:[%s2913_s1 + $0x50] sm:$0xff] (!%p140_p2)   ;;  %s1862_s19 = sshll.u32 (!%p140_p2), %s1857_s13, 3  ;;  %vm1301_vm0 = vcmask (!%p140_p2), 523264  }
   0x6   : > { %143 = sbr.rel (%p140_p2) target bundleno = 360 (0x168), region = 32  ;;  %v2307_v1 = vld [vmem:[%s2913_s1 + $0xc0] sm:$0xff] (!%p140_p2)   ;;  %2025 = vmatprep.subr.bf16.mxu0 (!%p140_p2), %v2306_v0  ;;  %v2311_v5 = vld [vmem:[%s2913_s1 + $0xc8] sm:$0xff] (!%p140_p2)   ;;  %v2315_v9 = vld [vmem:[%s2913_s1 + $0xd0] sm:$0xff] (!%p140_p2)   ;;  %p165_p3 = scmp.lt.s32.totalorder (!%p140_p2), %s1862_s19, 15 }
   0x7   : > { %v2308_v2 = vld [vmem:[%s2913_s1] sm:$0xff] (!%p140_p2)   ;;  %2065 = vmatprep.subr.bf16.mxu1 (!%p140_p2), %v2307_v1  ;;  %v2312_v6 = vld [vmem:[%s2913_s1 + $0x8] sm:$0xff] (!%p140_p2)   ;;  %v2316_v10 = vld [vmem:[%s2913_s1 + $0x10] sm:$0xff] (!%p140_p2)  }
   0x8   : > { %v2309_v3 = vld [vmem:[%s2913_s1 + $0x80] sm:$0xff] (!%p140_p2)   ;;  %2026 = vmatpush3.bf16.msra.mxu0 (!%p140_p2), %v2308_v2  ;;  %v2313_v7 = vld [vmem:[%s2913_s1 + $0x88] sm:$0xff] (!%p140_p2)   ;;  %v2317_v11 = vld [vmem:[%s2913_s1 + $0x90] sm:$0xff] (!%p140_p2)  }
   0x9   : > { %2066 = vmatpush3.bf16.msra.mxu1 (!%p140_p2), %v2309_v3  ;;  %2027 = vmatprep.subr.bf16.mxu0 (!%p140_p2), %v2310_v4  ;;  %v2318_v12 = vld [vmem:[%s2913_s1 + $0x58] sm:$0xff] (!%p140_p2)   ;;  %v2322_v16 = vld [vmem:[%s2913_s1 + $0x60] sm:$0xff] (!%p140_p2)   ;;  %v2326_v20 = vld [vmem:[%s2913_s1 + $0x68] sm:$0xff] (!%p140_p2)  }
   0xa   : > { %2067 = vmatprep.subr.bf16.mxu1 (!%p140_p2), %v2311_v5  ;;  %v2319_v13 = vld [vmem:[%s2913_s1 + $0xd8] sm:$0xff] (!%p140_p2)   ;;  %v2323_v17 = vld [vmem:[%s2913_s1 + $0xe0] sm:$0xff] (!%p140_p2)   ;;  %v2327_v21 = vld [vmem:[%s2913_s1 + $0xe8] sm:$0xff] (!%p140_p2)  }
   0xb   : > { %v2320_v14 = vld [vmem:[%s2913_s1 + $0x18] sm:$0xff] (!%p140_p2)   ;;  %v2324_v18 = vld [vmem:[%s2913_s1 + $0x20] sm:$0xff] (!%p140_p2)   ;;  %v2328_v22 = vld [vmem:[%s2913_s1 + $0x28] sm:$0xff] (!%p140_p2)  }
   0xc   : > { %2028 = vmatpush3.bf16.msra.mxu0 (!%p140_p2), %v2312_v6  ;;  %v2321_v15 = vld [vmem:[%s2913_s1 + $0x98] sm:$0xff] (!%p140_p2)   ;;  %v2325_v19 = vld [vmem:[%s2913_s1 + $0xa0] sm:$0xff] (!%p140_p2)   ;;  %v2329_v23 = vld [vmem:[%s2913_s1 + $0xa8] sm:$0xff] (!%p140_p2)  }
   0xd   : > { %2068 = vmatpush3.bf16.msra.mxu1 %v2313_v7  ;;  %2029 = vmatprep.subr.bf16.mxu0 %v2314_v8  ;;  %s2917_s19 = smov (!%p165_p3, %s1862_s19), 15  ;;  %v2330_v24 = vld [vmem:[%s2913_s1 + $0x70] sm:$0xff]   ;;  %v2334_v28 = vld [vmem:[%s2913_s1 + $0x78] sm:$0xff]   ;;  %v2344_v36 = vld [vmem:[%s2913_s1 + $0x140] sm:$0xff]  }
   0xe   : > { %2069 = vmatprep.subr.bf16.mxu1 %v2315_v9  ;;  %v2331_v25 = vld [vmem:[%s2913_s1 + $0xf0] sm:$0xff]   ;;  %s2297_s16 = smul.u32 52, %s2917_s19  ;;  %v2335_v29 = vld [vmem:[%s2913_s1 + $0xf8] sm:$0xff]   ;;  %v2345_v37 = vld [vmem:[%s2913_s1 + $0x1c0] sm:$0xff]  }
   0xf   : > { %v2332_v26 = vld [vmem:[%s2913_s1 + $0x30] sm:$0xff]   ;;  %v2336_v30 = vld [vmem:[%s2913_s1 + $0x38] sm:$0xff]   ;;  %v2346_v38 = vld [vmem:[%s2913_s1 + $0x100] sm:$0xff]  }
  0x10   : > { %2030 = vmatpush3.bf16.msra.mxu0 %v2316_v10  ;;  %v2333_v27 = vld [vmem:[%s2913_s1 + $0xb0] sm:$0xff]   ;;  %s2616_s13 = scalar_lea.vmem %s2912_s0, %s2297_s16  ;;  %v2337_v31 = vld [vmem:[%s2913_s1 + $0xb8] sm:$0xff]   ;;  %v2347_v39 = vld [vmem:[%s2913_s1 + $0x180] sm:$0xff]  }
  0x11   : > { %2070 = vmatpush3.bf16.msra.mxu1 %v2317_v11  ;;  %2031 = vmatprep.subr.bf16.mxu0 %v2318_v12  ;;  %v2338_v32 = vld [vmem:[%s2616_s13] ss:$52 sps:$4 sm:$0xff]   ;;  %v2340_v33 = vld [vmem:[%s2616_s13 + $0x4] ss:$52 sps:$4 sm:$0xff]   ;;  %v2341_v34 = vld [vmem:[%s2616_s13 + $0x8] ss:$52 sps:$4 sm:$0xff]  }
  0x12   : > { %2071 = vmatprep.subr.bf16.mxu1 %v2319_v13  ;;  %v2343_v35 = vld [vmem:[%s2616_s13 + $0xc] ss:$52 sps:$4 sm:$0xff]   ;;  %1346 = vmatprep.mubr.bf16.mxu0 %v2340_v33  ;;  %v2354_v45 = vld [vmem:[%s2616_s13 + $0x74] ss:$52 sps:$4 sm:$0xff]   ;;  %v2357_v47 = vld [vmem:[%s2616_s13 + $0x70] ss:$52 sps:$4 sm:$0xff]  }
  0x13   : > { %1411 = vmatprep.mubr.bf16.mxu1 %v2343_v35  ;;  %v2348_v40 = vld [vmem:[%s2913_s1 + $0x148] sm:$0xff]   ;;  %v2358_v48 = vld [vmem:[%s2913_s1 + $0x150] sm:$0xff]   ;;  %v2362_v52 = vld [vmem:[%s2913_s1 + $0x158] sm:$0xff]  }
  0x14   : > { %2032 = vmatpush3.bf16.msra.mxu0 %v2320_v14  ;;  %v2349_v41 = vld [vmem:[%s2913_s1 + $0x1c8] sm:$0xff]   ;;  %v2359_v49 = vld [vmem:[%s2913_s1 + $0x1d0] sm:$0xff]   ;;  %v2363_v53 = vld [vmem:[%s2913_s1 + $0x1d8] sm:$0xff]  }
  0x15   : > { %2072 = vmatpush3.bf16.msra.mxu1 %v2321_v15  ;;  %2033 = vmatprep.subr.bf16.mxu0 %v2322_v16  ;;  %v2350_v42 = vld [vmem:[%s2913_s1 + $0x108] sm:$0xff]   ;;  %v2360_v50 = vld [vmem:[%s2913_s1 + $0x110] sm:$0xff]   ;;  %v2364_v54 = vld [vmem:[%s2913_s1 + $0x118] sm:$0xff]  }
  0x16   : > { %2073 = vmatprep.subr.bf16.mxu1 %v2323_v17  ;;  %v2351_v43 = vld [vmem:[%s2913_s1 + $0x188] sm:$0xff]   ;;  %v2361_v51 = vld [vmem:[%s2913_s1 + $0x190] sm:$0xff]   ;;  %v2365_v55 = vld [vmem:[%s2913_s1 + $0x198] sm:$0xff]  }
  0x17   : > { %v2352_v44 = vld [vmem:[%s2616_s13 + $0x6c] ss:$52 sps:$4 sm:$0xff]   ;;  %v2356_v46 = vld [vmem:[%s2616_s13 + $0x68] ss:$52 sps:$4 sm:$0xff]   ;;  %v2370_v58 = vld [vmem:[%s2616_s13 + $0xd0] ss:$52 sps:$4 sm:$0xff]  }
  0x18   : > { %2034 = vmatpush3.bf16.msra.mxu0 %v2324_v18  ;;  %v2366_v56 = vld [vmem:[%s2616_s13 + $0xd4] ss:$52 sps:$4 sm:$0xff]   ;;  %v2368_v57 = vld [vmem:[%s2616_s13 + $0xdc] ss:$52 sps:$4 sm:$0xff]   ;;  %v2371_v59 = vld [vmem:[%s2616_s13 + $0xd8] ss:$52 sps:$4 sm:$0xff]  }
  0x19   : > { %2074 = vmatpush3.bf16.msra.mxu1 %v2325_v19  ;;  %2035 = vmatprep.subr.bf16.mxu0 %v2326_v20  ;;  %v2372_v60 = vld [vmem:[%s2913_s1 + $0x160] sm:$0xff]   ;;  %v2376_v0 = vld [vmem:[%s2913_s1 + $0x168] sm:$0xff]   ;;  %v2380_v4 = vld [vmem:[%s2616_s13 + $0x13c] ss:$52 sps:$4 sm:$0xff]  }
  0x1a   : > { %2075 = vmatprep.subr.bf16.mxu1 %v2327_v21  ;;  %v2373_v61 = vld [vmem:[%s2913_s1 + $0x1e0] sm:$0xff]   ;;  %v2377_v1 = vld [vmem:[%s2913_s1 + $0x1e8] sm:$0xff]   ;;  %v2386_v8 = vld [vmem:[%s2913_s1 + $0x170] sm:$0xff]  }
  0x1b   : > { %v2374_v62 = vld [vmem:[%s2913_s1 + $0x120] sm:$0xff]   ;;  %v2378_v2 = vld [vmem:[%s2913_s1 + $0x128] sm:$0xff]   ;;  %v2387_v9 = vld [vmem:[%s2913_s1 + $0x1f0] sm:$0xff]  }
  0x1c   : > { %2036 = vmatpush3.bf16.msra.mxu0 %v2328_v22  ;;  %v2375_v63 = vld [vmem:[%s2913_s1 + $0x1a0] sm:$0xff]   ;;  %v2379_v3 = vld [vmem:[%s2913_s1 + $0x1a8] sm:$0xff]   ;;  %v2388_v10 = vld [vmem:[%s2913_s1 + $0x130] sm:$0xff]  }
  0x1d   : > { %2076 = vmatpush3.bf16.msra.mxu1 %v2329_v23  ;;  %2037 = vmatprep.subr.bf16.mxu0 %v2330_v24  ;;  %v2382_v5 = vld [vmem:[%s2616_s13 + $0x144] ss:$52 sps:$4 sm:$0xff]   ;;  %v2385_v7 = vld [vmem:[%s2616_s13 + $0x140] ss:$52 sps:$4 sm:$0xff]   ;;  %v2399_v19 = vld [vmem:[%s2616_s13 + $0x1c] ss:$52 sps:$4 sm:$0xff]  }
  0x1e   : > { %2077 = vmatprep.subr.bf16.mxu1 %v2331_v25  ;;  %v2384_v6 = vld [vmem:[%s2616_s13 + $0x138] ss:$52 sps:$4 sm:$0xff]   ;;  %v2389_v11 = vld [vmem:[%s2913_s1 + $0x1b0] sm:$0xff]   ;;  %v2400_v20 = vld [vmem:[%s2913_s1 + $0x240] sm:$0xff]  }
  0x1f   : > { %v2390_v12 = vld [vmem:[%s2913_s1 + $0x178] sm:$0xff]   ;;  %v2394_v16 = vld [vmem:[%s2616_s13 + $0x10] ss:$52 sps:$4 sm:$0xff]   ;;  %v2396_v17 = vld [vmem:[%s2616_s13 + $0x14] ss:$52 sps:$4 sm:$0xff]  }
  0x20   : > { %2038 = vmatpush3.bf16.msra.mxu0 %v2332_v26  ;;  %v2391_v13 = vld [vmem:[%s2913_s1 + $0x1f8] sm:$0xff]   ;;  %v2401_v21 = vld [vmem:[%s2913_s1 + $0x2c0] sm:$0xff]   ;;  %v2404_v24 = vld [vmem:[%s2913_s1 + $0x248] sm:$0xff]  }
  0x21   : > { %2078 = vmatpush3.bf16.msra.mxu1 %v2333_v27  ;;  %2039 = vmatprep.subr.bf16.mxu0 %v2334_v28  ;;  %v2392_v14 = vld [vmem:[%s2913_s1 + $0x138] sm:$0xff]   ;;  %v2402_v22 = vld [vmem:[%s2913_s1 + $0x200] sm:$0xff]   ;;  %v2405_v25 = vld [vmem:[%s2913_s1 + $0x2c8] sm:$0xff]  }
  0x22   : > { %2079 = vmatprep.subr.bf16.mxu1 %v2335_v29  ;;  %v2393_v15 = vld [vmem:[%s2913_s1 + $0x1b8] sm:$0xff]   ;;  %v2403_v23 = vld [vmem:[%s2913_s1 + $0x280] sm:$0xff]   ;;  %v2406_v26 = vld [vmem:[%s2913_s1 + $0x208] sm:$0xff]  }
  0x23   : > { %v2397_v18 = vld [vmem:[%s2616_s13 + $0x18] ss:$52 sps:$4 sm:$0xff]   ;;  %v2408_v28 = vld [vmem:[%s2616_s13 + $0x7c] ss:$52 sps:$4 sm:$0xff]  }
  0x24   : > { %2040 = vmatpush3.bf16.msra.mxu0 %v2336_v30  ;;  %v2407_v27 = vld [vmem:[%s2913_s1 + $0x288] sm:$0xff]   ;;  %v2410_v29 = vld [vmem:[%s2616_s13 + $0x84] ss:$52 sps:$4 sm:$0xff]   ;;  %v2415_v33 = vld [vmem:[%s2913_s1 + $0x2d0] sm:$0xff]  }
  0x25   : > { %2080 = vmatpush3.bf16.msra.mxu1 %v2337_v31  ;;  %2105 = vmatprep.subr.bf16.mxu0 %v2344_v36  ;;  %v2412_v30 = vld [vmem:[%s2616_s13 + $0x78] ss:$52 sps:$4 sm:$0xff]   ;;  %v2413_v31 = vld [vmem:[%s2616_s13 + $0x80] ss:$52 sps:$4 sm:$0xff]  }
  0x26   : > { %2145 = vmatprep.subr.bf16.mxu1 %v2345_v37  ;;  %v2417_v35 = vld [vmem:[%s2913_s1 + $0x290] sm:$0xff]   ;;  %v2418_v36 = vld [vmem:[%s2913_s1 + $0x258] sm:$0xff]  }
  0x27   : > { %1347 = vmatmul.mubr.bf16.vlgmr.msra.gmra.mrb[0].mxu0 %v2338_v32  ;;  %v2414_v32 = vld [vmem:[%s2913_s1 + $0x250] sm:$0xff]   ;;  %v2419_v37 = vld [vmem:[%s2913_s1 + $0x2d8] sm:$0xff]  }
  0x28   : > { %1412 = vmatmul.mubr.bf16.vlgmr.msra.gmra.mrb[0].mxu1 %v2341_v34  ;;  %2106 = vmatpush3.bf16.msra.mxu0 %v2346_v38  ;;  %v2416_v34 = vld [vmem:[%s2913_s1 + $0x210] sm:$0xff]   ;;  %v2420_v38 = vld [vmem:[%s2913_s1 + $0x218] sm:$0xff]  }
  0x29   : > { %2146 = vmatpush3.bf16.msra.mxu1 %v2347_v39  ;;  %2107 = vmatprep.subr.bf16.mxu0 %v2348_v40  ;;  %v2421_v39 = vld [vmem:[%s2913_s1 + $0x298] sm:$0xff]  }
  0x2a   : > { %2147 = vmatprep.subr.bf16.mxu1 %v2349_v41  ;;  %1354 = vmatprep.mubr.bf16.mxu0 %v2352_v44  ;;  %v2422_v40 = vld [vmem:[%s2616_s13 + $0xe4] ss:$52 sps:$4 sm:$0xff]   ;;  %v2424_v41 = vld [vmem:[%s2616_s13 + $0xec] ss:$52 sps:$4 sm:$0xff]  }
  0x2b   : > { %1419 = vmatprep.mubr.bf16.mxu1 %v2354_v45  ;;  %v2428_v44 = vld [vmem:[%s2913_s1 + $0x260] sm:$0xff]  }
  0x2c   : > { %2108 = vmatpush3.bf16.msra.mxu0 %v2350_v42  ;;  %v2426_v42 = vld [vmem:[%s2616_s13 + $0xe0] ss:$52 sps:$4 sm:$0xff]  }
  0x2d   : > { %2148 = vmatpush3.bf16.msra.mxu1 %v2351_v43  ;;  %2109 = vmatprep.subr.bf16.mxu0 %v2358_v48  ;;  %v2427_v43 = vld [vmem:[%s2616_s13 + $0xe8] ss:$52 sps:$4 sm:$0xff]   ;;  %v2429_v45 = vld [vmem:[%s2913_s1 + $0x2e0] sm:$0xff]  }
  0x2e   : > { %2149 = vmatprep.subr.bf16.mxu1 %v2359_v49  ;;  %v2432_v48 = vld [vmem:[%s2913_s1 + $0x268] sm:$0xff]  }
  0x2f   : > { %1355 = vmatmul.mubr.bf16.gmra.mrb[4].mxu0 %v2356_v46  ;;  %v2430_v46 = vld [vmem:[%s2913_s1 + $0x220] sm:$0xff]   ;;  %v2433_v49 = vld [vmem:[%s2913_s1 + $0x2e8] sm:$0xff]  }
  0x30   : > { %1420 = vmatmul.mubr.bf16.gmra.mrb[4].mxu1 %v2357_v47  ;;  %2110 = vmatpush3.bf16.msra.mxu0 %v2360_v50  ;;  %v2431_v47 = vld [vmem:[%s2913_s1 + $0x2a0] sm:$0xff]   ;;  %v2434_v50 = vld [vmem:[%s2913_s1 + $0x228] sm:$0xff]  }
  0x31   : > { %2150 = vmatpush3.bf16.msra.mxu1 %v2361_v51  ;;  %2111 = vmatprep.subr.bf16.mxu0 %v2362_v52  ;;  %v2435_v51 = vld [vmem:[%s2913_s1 + $0x2a8] sm:$0xff]  }
  0x32   : > { %2151 = vmatprep.subr.bf16.mxu1 %v2363_v53  ;;  %1362 = vmatprep.mubr.bf16.mxu0 %v2366_v56  ;;  %v2436_v52 = vld [vmem:[%s2616_s13 + $0x14c] ss:$52 sps:$4 sm:$0xff]   ;;  %v2438_v53 = vld [vmem:[%s2616_s13 + $0x154] ss:$52 sps:$4 sm:$0xff]  }
  0x33   : > { %1427 = vmatprep.mubr.bf16.mxu1 %v2368_v57  ;;  %v2442_v56 = vld [vmem:[%s2913_s1 + $0x270] sm:$0xff]  }
  0x34   : > { %2112 = vmatpush3.bf16.msra.mxu0 %v2364_v54  ;;  %v2440_v54 = vld [vmem:[%s2616_s13 + $0x148] ss:$52 sps:$4 sm:$0xff]   ;;  %v2443_v57 = vld [vmem:[%s2913_s1 + $0x2f0] sm:$0xff]  }
  0x35   : > { %2152 = vmatpush3.bf16.msra.mxu1 %v2365_v55  ;;  %2113 = vmatprep.subr.bf16.mxu0 %v2372_v60  ;;  %v2441_v55 = vld [vmem:[%s2616_s13 + $0x150] ss:$52 sps:$4 sm:$0xff]   ;;  %v2446_v60 = vld [vmem:[%s2913_s1 + $0x278] sm:$0xff]  }
  0x36   : > { %2153 = vmatprep.subr.bf16.mxu1 %v2373_v61  ;;  %v2447_v61 = vld [vmem:[%s2913_s1 + $0x2f8] sm:$0xff]  }
  0x37   : > { %1363 = vmatmul.mubr.bf16.gmra.mrb[8].mxu0 %v2370_v58  ;;  %v2444_v58 = vld [vmem:[%s2913_s1 + $0x230] sm:$0xff]  }
  0x38   : > { %1428 = vmatmul.mubr.bf16.gmra.mrb[8].mxu1 %v2371_v59  ;;  %2114 = vmatpush3.bf16.msra.mxu0 %v2374_v62  ;;  %v2445_v59 = vld [vmem:[%s2913_s1 + $0x2b0] sm:$0xff]   ;;  %v2448_v62 = vld [vmem:[%s2913_s1 + $0x238] sm:$0xff]  }
  0x39   : > { %2154 = vmatpush3.bf16.msra.mxu1 %v2375_v63  ;;  %2115 = vmatprep.subr.bf16.mxu0 %v2376_v0  ;;  %v2449_v63 = vld [vmem:[%s2913_s1 + $0x2b8] sm:$0xff]   ;;  %v2450_v0 = vld [vmem:[%s2616_s13 + $0x20] ss:$52 sps:$4 sm:$0xff]  }
  0x3a   : > { %2155 = vmatprep.subr.bf16.mxu1 %v2377_v1  ;;  %1370 = vmatprep.mubr.bf16.mxu0 %v2380_v4  ;;  %v2452_v1 = vld [vmem:[%s2616_s13 + $0x24] ss:$52 sps:$4 sm:$0xff]  }
  0x3b   : > { %1435 = vmatprep.mubr.bf16.mxu1 %v2382_v5  ;;  %v2456_v4 = vld [vmem:[%s2913_s1 + $0x300] sm:$0xff]  }
  0x3c   : > { %2116 = vmatpush3.bf16.msra.mxu0 %v2378_v2  ;;  %v2453_v2 = vld [vmem:[%s2616_s13 + $0x28] ss:$52 sps:$4 sm:$0xff]   ;;  %v2457_v5 = vld [vmem:[%s2616_s13 + $0x8c] ss:$52 sps:$4 sm:$0xff]  }
  0x3d   : > { %2156 = vmatpush3.bf16.msra.mxu1 %v2379_v3  ;;  %2117 = vmatprep.subr.bf16.mxu0 %v2386_v8  ;;  %v2455_v3 = vld [vmem:[%s2616_s13 + $0x2c] ss:$52 sps:$4 sm:$0xff]   ;;  %v2461_v8 = vld [vmem:[%s2616_s13 + $0x88] ss:$52 sps:$4 sm:$0xff]  }
  0x3e   : > { %2157 = vmatprep.subr.bf16.mxu1 %v2387_v9  ;;  %v2462_v9 = vld [vmem:[%s2616_s13 + $0x90] ss:$52 sps:$4 sm:$0xff]  }
  0x3f   : > { %1371 = vmatmul.mubr.bf16.gmra.mrb[12].mxu0 %v2384_v6  ;;  %v2459_v6 = vld [vmem:[%s2616_s13 + $0x94] ss:$52 sps:$4 sm:$0xff]  }
  0x40   : > { %1436 = vmatmul.mubr.bf16.gmra.mrb[12].mxu1 %v2385_v7  ;;  %2118 = vmatpush3.bf16.msra.mxu0 %v2388_v10  ;;  %v2463_v7 = vld [vmem:[%s2913_s1 + $0x308] sm:$0xff]  }
  0x41   : > { %2158 = vmatpush3.bf16.msra.mxu1 %v2389_v11  ;;  %2119 = vmatprep.subr.bf16.mxu0 %v2390_v12  ;;  %v2464_v10 = vld [vmem:[%s2616_s13 + $0xf4] ss:$52 sps:$4 sm:$0xff]   ;;  %v2466_v11 = vld [vmem:[%s2616_s13 + $0xfc] ss:$52 sps:$4 sm:$0xff]  }
  0x42   : > { %2159 = vmatprep.subr.bf16.mxu1 %v2391_v13  ;;  %1476 = vmatprep.mubr.bf16.mxu0 %v2396_v17  ;;  %v2470_v12 = vld [vmem:[%s2913_s1 + $0x310] sm:$0xff]   ;;  %v2477_v13 = vld [vmem:[%s2913_s1 + $0x318] sm:$0xff]  }
  0x43   : > { %1541 = vmatprep.mubr.bf16.mxu1 %v2399_v19  ;;  %v2473_v17 = vld [vmem:[%s2616_s13 + $0x164] ss:$52 sps:$4 sm:$0xff]   ;;  %v2476_v19 = vld [vmem:[%s2616_s13 + $0x160] ss:$52 sps:$4 sm:$0xff]  }
  0x44   : > { %2120 = vmatpush3.bf16.msra.mxu0 %v2392_v14  ;;  %v2468_v14 = vld [vmem:[%s2616_s13 + $0xf0] ss:$52 sps:$4 sm:$0xff]  }
  0x45   : > { %2160 = vmatpush3.bf16.msra.mxu1 %v2393_v15  ;;  %2185 = vmatprep.subr.bf16.mxu0 %v2400_v20  ;;  %v2469_v15 = vld [vmem:[%s2616_s13 + $0xf8] ss:$52 sps:$4 sm:$0xff]   ;;  %v2478_v20 = vld [vmem:[%s2616_s13 + $0x30] ss:$52 sps:$4 sm:$0xff]  }
  0x46   : > { %2225 = vmatprep.subr.bf16.mxu1 %v2401_v21  ;;  %v2479_v21 = vld [vmem:[%s2616_s13 + $0x100] ss:$52 sps:$4 sm:$0xff]  }
  0x47   : > { %1477 = vmatmul.mubr.bf16.vlgmr.msra.gmra.mrb[16].mxu0 %v2394_v16  ;;  %v2471_v16 = vld [vmem:[%s2616_s13 + $0x15c] ss:$52 sps:$4 sm:$0xff]  }
  0x48   : > { %1542 = vmatmul.mubr.bf16.vlgmr.msra.gmra.mrb[16].mxu1 %v2397_v18  ;;  %2186 = vmatpush3.bf16.msra.mxu0 %v2402_v22  ;;  %v2475_v18 = vld [vmem:[%s2616_s13 + $0x158] ss:$52 sps:$4 sm:$0xff]  }
  0x49   : > { %2226 = vmatpush3.bf16.msra.mxu1 %v2403_v23  ;;  %2187 = vmatprep.subr.bf16.mxu0 %v2404_v24  ;;  %v2480_v22 = vld [vmem:[%s2616_s13 + $0x98] ss:$52 sps:$4 sm:$0xff]   ;;  %v2481_v23 = vld [vmem:[%s2616_s13 + $0x168] ss:$52 sps:$4 sm:$0xff]   ;;  %s1865_s13 = sshll.u32 %s2917_s19, 3 }
  0x4a   : > { %2227 = vmatprep.subr.bf16.mxu1 %v2405_v25  ;;  %1484 = vmatprep.mubr.bf16.mxu0 %v2408_v28  ;;  %s2898_s28 = scalar_lea.vmem %s2915_s3, %s1865_s13 }
  0x4b   : > { %1549 = vmatprep.mubr.bf16.mxu1 %v2410_v29 }
  0x4c   : > { %2188 = vmatpush3.bf16.msra.mxu0 %v2406_v26  ;;  %v1866_v26 = vld [vmem:[%s2914_s2] ss:$0 sm:$0xff] }
  0x4d   : > { %2228 = vmatpush3.bf16.msra.mxu1 %v2407_v27  ;;  %2189 = vmatprep.subr.bf16.mxu0 %v2414_v32 }
  0x4e   : > { %2229 = vmatprep.subr.bf16.mxu1 %v2415_v33 }
  0x4f   : > { %1485 = vmatmul.mubr.bf16.gmra.mrb[20].mxu0 %v2412_v30 }
  0x50   : > { %1550 = vmatmul.mubr.bf16.gmra.mrb[20].mxu1 %v2413_v31  ;;  %2190 = vmatpush3.bf16.msra.mxu0 %v2416_v34 }
  0x51   : > { %2230 = vmatpush3.bf16.msra.mxu1 %v2417_v35  ;;  %2191 = vmatprep.subr.bf16.mxu0 %v2418_v36 }
  0x52   : > { %2231 = vmatprep.subr.bf16.mxu1 %v2419_v37  ;;  %1492 = vmatprep.mubr.bf16.mxu0 %v2422_v40 }
  0x53   : > { %1557 = vmatprep.mubr.bf16.mxu1 %v2424_v41 }
  0x54   : > { %2192 = vmatpush3.bf16.msra.mxu0 %v2420_v38 }
  0x55   : > { %2232 = vmatpush3.bf16.msra.mxu1 %v2421_v39  ;;  %2193 = vmatprep.subr.bf16.mxu0 %v2428_v44 }
  0x56   : > { %2233 = vmatprep.subr.bf16.mxu1 %v2429_v45 }
  0x57   : > { %1493 = vmatmul.mubr.bf16.gmra.mrb[24].mxu0 %v2426_v42 }
  0x58   : > { %1558 = vmatmul.mubr.bf16.gmra.mrb[24].mxu1 %v2427_v43  ;;  %2194 = vmatpush3.bf16.msra.mxu0 %v2430_v46 }
  0x59   : > { %2234 = vmatpush3.bf16.msra.mxu1 %v2431_v47  ;;  %2195 = vmatprep.subr.bf16.mxu0 %v2432_v48 }
  0x5a   : > { %2235 = vmatprep.subr.bf16.mxu1 %v2433_v49  ;;  %1500 = vmatprep.mubr.bf16.mxu0 %v2436_v52 }
  0x5b   : > { %1565 = vmatprep.mubr.bf16.mxu1 %v2438_v53 }
  0x5c   : > { %2196 = vmatpush3.bf16.msra.mxu0 %v2434_v50 }
  0x5d   : > { %2236 = vmatpush3.bf16.msra.mxu1 %v2435_v51  ;;  %2197 = vmatprep.subr.bf16.mxu0 %v2442_v56 }
  0x5e   : > { %2237 = vmatprep.subr.bf16.mxu1 %v2443_v57 }
  0x5f   : > { %1501 = vmatmul.mubr.bf16.gmra.mrb[28].mxu0 %v2440_v54 }
  0x60   : > { %1566 = vmatmul.mubr.bf16.gmra.mrb[28].mxu1 %v2441_v55  ;;  %2198 = vmatpush3.bf16.msra.mxu0 %v2444_v58 }
  0x61   : > { %2238 = vmatpush3.bf16.msra.mxu1 %v2445_v59  ;;  %2199 = vmatprep.subr.bf16.mxu0 %v2446_v60 }
  0x62   : > { %2239 = vmatprep.subr.bf16.mxu1 %v2447_v61  ;;  %1606 = vmatprep.mubr.bf16.mxu0 %v2452_v1 }
  0x63   : > { %1671 = vmatprep.mubr.bf16.mxu1 %v2455_v3 }
  0x64   : > { %2200 = vmatpush3.bf16.msra.mxu0 %v2448_v62 }
  0x65   : > { %2240 = vmatpush3.bf16.msra.mxu1 %v2449_v63  ;;  %2273 = vmatprep.subr.bf16.mxu0 %v2456_v4 }
  0x66   : > { %2289 = vmatprep.subr.bf16.mxu1 %v2456_v4 }
  0x67   : > { %1607 = vmatmul.mubr.bf16.vlgmr.msra.gmra.mrb[32].mxu0 %v2450_v0 }
  0x68   : > { %1672 = vmatmul.mubr.bf16.vlgmr.msra.gmra.mrb[32].mxu1 %v2453_v2  ;;  %2274 = vmatpush3.bf16.msra.mxu0 %v2456_v4 }
  0x69   : > { %2293 = vmatpush3.bf16.msra.mxu1 %v2456_v4  ;;  %1614 = vmatprep.mubr.bf16.mxu0 %v2457_v5 }
  0x6a   : > { %1679 = vmatprep.mubr.bf16.mxu1 %v2459_v6  ;;  %2275 = vmatprep.subr.bf16.mxu0 %v2463_v7 }
  0x6b   : > { %2290 = vmatprep.subr.bf16.mxu1 %v2463_v7 }
  0x6c   : > { %2276 = vmatpush3.bf16.msra.mxu0 %v2463_v7 }
  0x6d   : > { %2294 = vmatpush3.bf16.msra.mxu1 %v2463_v7  ;;  %2277 = vmatprep.subr.bf16.mxu0 %v2470_v12 }
  0x6e   : > { %2291 = vmatprep.subr.bf16.mxu1 %v2470_v12 }
  0x6f   : > { %1615 = vmatmul.mubr.bf16.gmra.mrb[36].mxu0 %v2461_v8 }
  0x70   : > { %1680 = vmatmul.mubr.bf16.gmra.mrb[36].mxu1 %v2462_v9  ;;  %1622 = vmatprep.mubr.bf16.mxu0 %v2464_v10 }
  0x71   : > { %1687 = vmatprep.mubr.bf16.mxu1 %v2466_v11  ;;  %2278 = vmatpush3.bf16.msra.mxu0 %v2470_v12 }
  0x72   : > { %2295 = vmatpush3.bf16.msra.mxu1 %v2470_v12  ;;  %2279 = vmatprep.subr.bf16.mxu0 %v2477_v13 }
  0x73   : > { %2292 = vmatprep.subr.bf16.mxu1 %v2477_v13 }
  0x75   : > { %2280 = vmatpush3.bf16.msra.mxu0 %v2477_v13 }
  0x76   : > { %2296 = vmatpush3.bf16.msra.mxu1 %v2477_v13 }
  0x77   : > { %1623 = vmatmul.mubr.bf16.gmra.mrb[40].mxu0 %v2468_v14 }
  0x78   : > { %1688 = vmatmul.mubr.bf16.gmra.mrb[40].mxu1 %v2469_v15  ;;  %1630 = vmatprep.mubr.bf16.mxu0 %v2471_v16 }
  0x79   : > { %1695 = vmatprep.mubr.bf16.mxu1 %v2473_v17 }
  0x7f   : > { %1631 = vmatmul.mubr.bf16.gmra.mrb[44].mxu0 %v2475_v18 }
  0x80   : > { %1696 = vmatmul.mubr.bf16.gmra.mrb[44].mxu1 %v2476_v19  ;;  %2281 = vmatprep.mubr.msk.bf16.mxu0 %vm1301_vm0, %v2478_v20 }
  0x81   : > { %2285 = vmatprep.mubr.msk.bf16.mxu1 %vm1301_vm0, %v2479_v21 }
  0x87   : > { %2282 = vmatmul.mubr.msk.bf16.vlgmr.msra.gmra.mrb[48].mxu0 %vm1301_vm0, %v2480_v22 }
  0x88   : > { %2286 = vmatmul.mubr.msk.bf16.vlgmr.msra.gmra.mrb[48].mxu1 %vm1301_vm0, %v2481_v23 }
  0xfa   : > { %v2041_v24 = vpop.f32.mrb[0].mxu0 }
  0xfb   : > { %v2081_v25 = vpop.f32.mrb[0].mxu1  ;;  %v2042_v27 = vpop.f32.mrb[1].mxu0 }
  0xfc   : > { %v2043_v28 = vadd.f32 %v2042_v27, %v2041_v24  ;;  %v2082_v29 = vpop.f32.mrb[1].mxu1  ;;  %v2044_v30 = vpop.f32.mrb[2].mxu0 }
  0xfd   : > { %v2083_v31 = vadd.f32 %v2082_v29, %v2081_v25  ;;  %v2084_v32 = vpop.f32.mrb[2].mxu1  ;;  %v2045_v33 = vpop.f32.mrb[3].mxu0 }
  0xfe   : > { %v1349_v34 = vadd.f32 %v2043_v28, %v1866_v26  ;;  %v2046_v35 = vadd.f32 %v2045_v33, %v2044_v30  ;;  %v2085_v36 = vpop.f32.mrb[3].mxu1 }
  0xff   : > { %v2086_v37 = vadd.f32 %v2085_v36, %v2084_v32 }
 0x100   : > { %v1414_v38 = vadd.f32 %v2083_v31, %v1349_v34  ;;  %v1352_v39 = vadd.f32 %v2046_v35, %v1866_v26 }
 0x102   : > { %v1417_v40 = vadd.f32 %v2086_v37, %v1352_v39  ;;  %v2047_v41 = vpop.f32.mrb[4].mxu0 }
 0x103   : > { %v2087_v42 = vpop.f32.mrb[4].mxu1  ;;  %v2048_v43 = vpop.f32.mrb[5].mxu0 }
 0x104   : > { %v2049_v44 = vadd.f32 %v2048_v43, %v2047_v41  ;;  %v2088_v45 = vpop.f32.mrb[5].mxu1  ;;  %v2050_v46 = vpop.f32.mrb[6].mxu0 }
 0x105   : > { %v2089_v47 = vadd.f32 %v2088_v45, %v2087_v42  ;;  %v2090_v48 = vpop.f32.mrb[6].mxu1  ;;  %v2051_v49 = vpop.f32.mrb[7].mxu0 }
 0x106   : > { %v1357_v50 = vadd.f32 %v2049_v44, %v1866_v26  ;;  %v2052_v51 = vadd.f32 %v2051_v49, %v2050_v46  ;;  %v2091_v52 = vpop.f32.mrb[7].mxu1 }
 0x107   : > { %v2092_v53 = vadd.f32 %v2091_v52, %v2090_v48 }
 0x108   : > { %v1422_v54 = vadd.f32 %v2089_v47, %v1357_v50  ;;  %v1360_v55 = vadd.f32 %v2052_v51, %v1866_v26 }
 0x10a   : > { %v2883_v56 = vadd.f32 %v2092_v53, %v1360_v55  ;;  %v2053_v57 = vpop.f32.mrb[8].mxu0 }
 0x10b   : > { %v2093_v58 = vpop.f32.mrb[8].mxu1  ;;  %v2054_v59 = vpop.f32.mrb[9].mxu0 }
 0x10c   : > { %v2055_v60 = vadd.f32 %v2054_v59, %v2053_v57  ;;  %v2094_v61 = vpop.f32.mrb[9].mxu1  ;;  %v2056_v62 = vpop.f32.mrb[10].mxu0 }
 0x10d   : > { %v2095_v63 = vadd.f32 %v2094_v61, %v2093_v58  ;;  %v2096_v0 = vpop.f32.mrb[10].mxu1  ;;  %v2057_v1 = vpop.f32.mrb[11].mxu0 }
 0x10e   : > { %v1365_v2 = vadd.f32 %v2055_v60, %v1866_v26  ;;  %v2058_v3 = vadd.f32 %v2057_v1, %v2056_v62  ;;  %v2097_v4 = vpop.f32.mrb[11].mxu1 }
 0x10f   : > { %v2098_v5 = vadd.f32 %v2097_v4, %v2096_v0 }
 0x110   : > { %v1430_v6 = vadd.f32 %v2095_v63, %v1365_v2  ;;  %v1368_v7 = vadd.f32 %v2058_v3, %v1866_v26 }
 0x112   : > { %v2885_v8 = vadd.f32 %v2098_v5, %v1368_v7  ;;  %v2059_v9 = vpop.f32.mrb[12].mxu0 }
 0x113   : > { %v2099_v10 = vpop.f32.mrb[12].mxu1  ;;  %v2060_v11 = vpop.f32.mrb[13].mxu0 }
 0x114   : > { %v2100_v12 = vpop.f32.mrb[13].mxu1  ;;  %v2061_v13 = vadd.f32 %v2060_v11, %v2059_v9  ;;  %v2062_v15 = vpop.f32.mrb[14].mxu0 }
 0x115   : > { %v2101_v14 = vadd.f32 %v2100_v12, %v2099_v10  ;;  %v2102_v16 = vpop.f32.mrb[14].mxu1  ;;  %v2063_v17 = vpop.f32.mrb[15].mxu0 }
 0x116   : > { %v2103_v18 = vpop.f32.mrb[15].mxu1  ;;  %v1373_v19 = vadd.f32 %v2061_v13, %v1866_v26  ;;  %v2064_v20 = vadd.f32 %v2063_v17, %v2062_v15 }
 0x117   : > { %v2104_v21 = vadd.f32 %v2103_v18, %v2102_v16 }
 0x118   : > { %v1438_v22 = vadd.f32 %v2101_v14, %v1373_v19  ;;  %v1376_v23 = vadd.f32 %v2064_v20, %v1866_v26 }
 0x11a   : > { %v2887_v24 = vadd.f32 %v2104_v21, %v1376_v23  ;;  %v2121_v25 = vpop.f32.mrb[16].mxu0 }
 0x11b   : > { %v2122_v27 = vpop.f32.mrb[17].mxu0  ;;  %v2161_v28 = vpop.f32.mrb[16].mxu1 }
 0x11c   : > { %v2123_v29 = vadd.f32 %v2122_v27, %v2121_v25  ;;  %v2124_v30 = vpop.f32.mrb[18].mxu0  ;;  %v2162_v31 = vpop.f32.mrb[17].mxu1 }
 0x11d   : > { %v2125_v32 = vpop.f32.mrb[19].mxu0  ;;  %v2163_v34 = vadd.f32 %v2162_v31, %v2161_v28  ;;  %v2164_v35 = vpop.f32.mrb[18].mxu1 }
 0x11e   : > { %v1479_v33 = vadd.f32 %v2123_v29, %v1414_v38  ;;  %v2126_v36 = vadd.f32 %v2125_v32, %v2124_v30  ;;  %v2165_v37 = vpop.f32.mrb[19].mxu1 }
 0x11f   : > { %v2166_v42 = vadd.f32 %v2165_v37, %v2164_v35 }
 0x120   : > { %v1544_v39 = vadd.f32 %v2163_v34, %v1479_v33  ;;  %v1482_v41 = vadd.f32 %v2126_v36, %v1417_v40 }
 0x122   : > { %v1547_v43 = vadd.f32 %v2166_v42, %v1482_v41  ;;  %v2127_v44 = vpop.f32.mrb[20].mxu0 }
 0x123   : > { %v2167_v26 = vpop.f32.mrb[20].mxu1  ;;  %v2128_v45 = vpop.f32.mrb[21].mxu0 }
 0x124   : > { %v2129_v46 = vadd.f32 %v2128_v45, %v2127_v44  ;;  %v2168_v47 = vpop.f32.mrb[21].mxu1  ;;  %v2130_v48 = vpop.f32.mrb[22].mxu0 }
 0x125   : > { %v2169_v49 = vadd.f32 %v2168_v47, %v2167_v26  ;;  %v2170_v50 = vpop.f32.mrb[22].mxu1  ;;  %v2131_v51 = vpop.f32.mrb[23].mxu0 }
 0x126   : > { %v1487_v52 = vadd.f32 %v2129_v46, %v1422_v54  ;;  %v2132_v53 = vadd.f32 %v2131_v51, %v2130_v48  ;;  %v2171_v38 = vpop.f32.mrb[23].mxu1 }
 0x127   : > { %v2172_v55 = vadd.f32 %v2171_v38, %v2170_v50 }
 0x128   : > { %v1552_v57 = vadd.f32 %v2169_v49, %v1487_v52  ;;  %v1490_v58 = vadd.f32 %v2132_v53, %v2883_v56 }
 0x12a   : > { %v1555_v59 = vadd.f32 %v2172_v55, %v1490_v58  ;;  %v2133_v40 = vpop.f32.mrb[24].mxu0 }
 0x12b   : > { %v2173_v60 = vpop.f32.mrb[24].mxu1  ;;  %v2134_v61 = vpop.f32.mrb[25].mxu0 }
 0x12c   : > { %v2174_v62 = vpop.f32.mrb[25].mxu1  ;;  %v2135_v63 = vadd.f32 %v2134_v61, %v2133_v40  ;;  %v2136_v1 = vpop.f32.mrb[26].mxu0 }
 0x12d   : > { %v2175_v0 = vadd.f32 %v2174_v62, %v2173_v60  ;;  %v2176_v2 = vpop.f32.mrb[26].mxu1  ;;  %v2137_v3 = vpop.f32.mrb[27].mxu0 }
 0x12e   : > { %v2177_v4 = vpop.f32.mrb[27].mxu1  ;;  %v1495_v5 = vadd.f32 %v2135_v63, %v1430_v6  ;;  %v2138_v7 = vadd.f32 %v2137_v3, %v2136_v1 }
 0x12f   : > { %v2178_v54 = vadd.f32 %v2177_v4, %v2176_v2 }
 0x130   : > { %v1560_v9 = vadd.f32 %v2175_v0, %v1495_v5  ;;  %v1498_v10 = vadd.f32 %v2138_v7, %v2885_v8 }
 0x132   : > { %v1563_v11 = vadd.f32 %v2178_v54, %v1498_v10  ;;  %v2139_v12 = vpop.f32.mrb[28].mxu0 }
 0x133   : > { %v2179_v56 = vpop.f32.mrb[28].mxu1  ;;  %v2140_v13 = vpop.f32.mrb[29].mxu0 }
 0x134   : > { %v2141_v14 = vadd.f32 %v2140_v13, %v2139_v12  ;;  %v2180_v15 = vpop.f32.mrb[29].mxu1  ;;  %v2142_v16 = vpop.f32.mrb[30].mxu0 }
 0x135   : > { %v2181_v17 = vadd.f32 %v2180_v15, %v2179_v56  ;;  %v2182_v18 = vpop.f32.mrb[30].mxu1  ;;  %v2143_v19 = vpop.f32.mrb[31].mxu0 }
 0x136   : > { %v1503_v20 = vadd.f32 %v2141_v14, %v1438_v22  ;;  %v2144_v21 = vadd.f32 %v2143_v19, %v2142_v16  ;;  %v2183_v23 = vpop.f32.mrb[31].mxu1 }
 0x137   : > { %v2184_v25 = vadd.f32 %v2183_v23, %v2182_v18 }
 0x138   : > { %v1568_v6 = vadd.f32 %v2181_v17, %v1503_v20  ;;  %v1506_v27 = vadd.f32 %v2144_v21, %v2887_v24 }
 0x13a   : > { %v1571_v28 = vadd.f32 %v2184_v25, %v1506_v27  ;;  %v2201_v29 = vpop.f32.mrb[32].mxu0 }
 0x13b   : > { %v2241_v8 = vpop.f32.mrb[32].mxu1  ;;  %v2202_v30 = vpop.f32.mrb[33].mxu0 }
 0x13c   : > { %v2203_v31 = vadd.f32 %v2202_v30, %v2201_v29  ;;  %v2242_v32 = vpop.f32.mrb[33].mxu1  ;;  %v2204_v33 = vpop.f32.mrb[34].mxu0 }
 0x13d   : > { %v2243_v34 = vadd.f32 %v2242_v32, %v2241_v8  ;;  %v2244_v35 = vpop.f32.mrb[34].mxu1  ;;  %v2205_v36 = vpop.f32.mrb[35].mxu0 }
 0x13e   : > { %v1609_v37 = vadd.f32 %v2203_v31, %v1544_v39  ;;  %v2206_v41 = vadd.f32 %v2205_v36, %v2204_v33  ;;  %v2245_v42 = vpop.f32.mrb[35].mxu1 }
 0x13f   : > { %v2246_v22 = vadd.f32 %v2245_v42, %v2244_v35 }
 0x140   : > { %v1612_v44 = vadd.f32 %v2206_v41, %v1547_v43  ;;  %v1674_v26 = vadd.f32 %v2243_v34, %v1609_v37 }
 0x142   : > { %v2207_v45 = vpop.f32.mrb[36].mxu0  ;;  %v2892_v46 = vadd.f32 %v2246_v22, %v1612_v44 }
 0x143   : > { %v2247_v24 = vpop.f32.mrb[36].mxu1  ;;  %v2208_v47 = vpop.f32.mrb[37].mxu0 }
 0x144   : > { %v2209_v48 = vadd.f32 %v2208_v47, %v2207_v45  ;;  %v2248_v49 = vpop.f32.mrb[37].mxu1  ;;  %v2210_v50 = vpop.f32.mrb[38].mxu0 }
 0x145   : > { %v2249_v51 = vadd.f32 %v2248_v49, %v2247_v24  ;;  %v2250_v52 = vpop.f32.mrb[38].mxu1  ;;  %v2211_v53 = vpop.f32.mrb[39].mxu0 }
 0x146   : > { %v1617_v38 = vadd.f32 %v2209_v48, %v1552_v57  ;;  %v2212_v55 = vadd.f32 %v2211_v53, %v2210_v50  ;;  %v2251_v58 = vpop.f32.mrb[39].mxu1 }
 0x147   : > { %v2252_v39 = vadd.f32 %v2251_v58, %v2250_v52 }
 0x148   : > { %v1620_v40 = vadd.f32 %v2212_v55, %v1555_v59  ;;  %v1682_v60 = vadd.f32 %v2249_v51, %v1617_v38 }
 0x14a   : > { %v2213_v61 = vpop.f32.mrb[40].mxu0  ;;  %v1685_v43 = vadd.f32 %v2252_v39, %v1620_v40 }
 0x14b   : > { %v2253_v62 = vpop.f32.mrb[40].mxu1  ;;  %v2214_v63 = vpop.f32.mrb[41].mxu0 }
 0x14c   : > { %v2215_v0 = vadd.f32 %v2214_v63, %v2213_v61  ;;  %v2254_v1 = vpop.f32.mrb[41].mxu1  ;;  %v2216_v2 = vpop.f32.mrb[42].mxu0 }
 0x14d   : > { %v2255_v3 = vadd.f32 %v2254_v1, %v2253_v62  ;;  %v2256_v4 = vpop.f32.mrb[42].mxu1  ;;  %v2217_v5 = vpop.f32.mrb[43].mxu0 }
 0x14e   : > { %v1625_v7 = vadd.f32 %v2215_v0, %v1560_v9  ;;  %v2218_v54 = vadd.f32 %v2217_v5, %v2216_v2  ;;  %v2257_v10 = vpop.f32.mrb[43].mxu1 }
 0x14f   : > { %v2258_v12 = vadd.f32 %v2257_v10, %v2256_v4 }
 0x150   : > { %v1628_v57 = vadd.f32 %v2218_v54, %v1563_v11  ;;  %v1690_v56 = vadd.f32 %v2255_v3, %v1625_v7 }
 0x152   : > { %v2219_v13 = vpop.f32.mrb[44].mxu0  ;;  %v1693_v59 = vadd.f32 %v2258_v12, %v1628_v57 }
 0x153   : > { %v2259_v14 = vpop.f32.mrb[44].mxu1  ;;  %v2220_v15 = vpop.f32.mrb[45].mxu0 }
 0x154   : > { %v2221_v16 = vadd.f32 %v2220_v15, %v2219_v13  ;;  %v2260_v17 = vpop.f32.mrb[45].mxu1  ;;  %v2222_v18 = vpop.f32.mrb[46].mxu0 }
 0x155   : > { %v2261_v19 = vadd.f32 %v2260_v17, %v2259_v14  ;;  %v2262_v20 = vpop.f32.mrb[46].mxu1  ;;  %v2223_v21 = vpop.f32.mrb[47].mxu0 }
 0x156   : > { %v1633_v23 = vadd.f32 %v2221_v16, %v1568_v6  ;;  %v2224_v25 = vadd.f32 %v2223_v21, %v2222_v18  ;;  %v2263_v27 = vpop.f32.mrb[47].mxu1 }
 0x157   : > { %v2264_v9 = vadd.f32 %v2263_v27, %v2262_v20 }
 0x158   : > { %v1636_v29 = vadd.f32 %v2224_v25, %v1571_v28  ;;  %v1698_v8 = vadd.f32 %v2261_v19, %v1633_v23 }
 0x15a   : > { %v2283_v11 = vpop.f32.mrb[48].mxu0  ;;  %v1701_v30 = vadd.f32 %v2264_v9, %v1636_v29 }
 0x15b   : > { %v1747_v31 = vadd.f32 %v2283_v11, %v1682_v60  ;;  %v2287_v32 = vpop.f32.mrb[48].mxu1  ;;  %v1738_v33 = vpop.f32.mrb[49].mxu0 }
 0x15c   : > { %v1763_v34 = vadd.f32 %v2287_v32, %v1698_v8  ;;  %v1739_v35 = vadd.f32 %v1738_v33, %v1674_v26  ;;  %v1754_v36 = vpop.f32.mrb[49].mxu1  ;;  %v2284_v37 = vpop.f32.mrb[50].mxu0 }
 0x15d   : > { %vm1771_vm1 = vcmp.ge.f32.partialorder %v1747_v31, 0.0  ;;  %v1779_v6 = vmul.f32 0.2, %v1747_v31  ;;  %v1755_v28 = vadd.f32 %v1754_v36, %v1690_v56  ;;  %v1750_v41 = vadd.f32 %v2284_v37, %v1685_v43  ;;  %v2288_v42 = vpop.f32.mrb[50].mxu1  ;;  %v1741_v22 = vpop.f32.mrb[51].mxu0 }
 0x15e   : > { %vm1775_vm2 = vcmp.ge.f32.partialorder %v1763_v34, 0.0  ;;  %v1783_v44 = vmul.f32 0.2, %v1763_v34  ;;  %vm1769_vm3 = vcmp.ge.f32.partialorder %v1739_v35, 0.0  ;;  %v1777_v26 = vmul.f32 0.2, %v1739_v35 }
 0x15f   : > { %v1787_v45 = vsel %vm1771_vm1, %v1747_v31, %v1779_v6  ;;  %vm1773_vm4 = vcmp.ge.f32.partialorder %v1755_v28, 0.0  ;;  %v1781_v24 = vmul.f32 0.2, %v1755_v28  ;;  %vm1772_vm5 = vcmp.ge.f32.partialorder %v1750_v41, 0.0  ;;  %v1757_v47 = vpop.f32.mrb[51].mxu1 }
 0x160   : > { %1795 = vst [vmem:[%s2898_s28 + $0x10] sm:$0xff] %v1787_v45  ;;  %v1791_v48 = vsel %vm1775_vm2, %v1763_v34, %v1783_v44  ;;  %v1785_v49 = vsel %vm1769_vm3, %v1739_v35, %v1777_v26  ;;  %v1780_v50 = vmul.f32 0.2, %v1750_v41  ;;  %v1766_v51 = vadd.f32 %v2288_v42, %v1701_v30 }
 0x161   : > { %1799 = vst [vmem:[%s2898_s28 + $0x30] sm:$0xff] %v1791_v48  ;;  %1793 = vst [vmem:[%s2898_s28] sm:$0xff] %v1785_v49  ;;  %v1789_v52 = vsel %vm1773_vm4, %v1755_v28, %v1781_v24  ;;  %v1742_v53 = vadd.f32 %v1741_v22, %v2892_v46  ;;  %v1758_v38 = vadd.f32 %v1757_v47, %v1693_v59 }
 0x162   : > { %1797 = vst [vmem:[%s2898_s28 + $0x20] sm:$0xff] %v1789_v52  ;;  %v1788_v55 = vsel %vm1772_vm5, %v1750_v41, %v1780_v50  ;;  %vm1776_vm6 = vcmp.ge.f32.partialorder %v1766_v51, 0.0  ;;  %v1784_v58 = vmul.f32 0.2, %v1766_v51 }
 0x163   : > { %1796 = vst [vmem:[%s2898_s28 + $0x18] sm:$0xff] %v1788_v55  ;;  %vm1770_vm7 = vcmp.ge.f32.partialorder %v1742_v53, 0.0  ;;  %v1778_v39 = vmul.f32 0.2, %v1742_v53  ;;  %vm1774_vm8 = vcmp.ge.f32.partialorder %v1758_v38, 0.0 }
 0x164   : > { %v1782_v40 = vmul.f32 0.2, %v1758_v38  ;;  %v1792_v60 = vsel %vm1776_vm6, %v1766_v51, %v1784_v58 }
 0x165   : > { %1800 = vst [vmem:[%s2898_s28 + $0x38] sm:$0xff] %v1792_v60  ;;  %v1786_v61 = vsel %vm1770_vm7, %v1742_v53, %v1778_v39 }
 0x166   : > { %v1790_v43 = vsel %vm1774_vm8, %v1758_v38, %v1782_v40  ;;  %1794 = vst [vmem:[%s2898_s28 + $0x8] sm:$0xff] %v1786_v61 }
 0x167   : > { %1798 = vst [vmem:[%s2898_s28 + $0x28] sm:$0xff] %v1790_v43 }
 0x168 PF: > { %s13_s12 = sadd.s32 1, %s2488_s12  }
 0x169   : > { %p10_p4 = scmp.ge.s32.totalorder %s13_s12, 4  }
 0x16b   :  { %12 = sbr.rel (!%p10_p4) target bundleno = 1 (0x1), region = 62 }

// kernel: tile.40
= control target key start
LH: loop header
LB: loop body
LE: loop exit
PB: predicated region body
PF: predicated region fallthrough
CT: control target
= control target key end

     0   :  { %s22_s0 = inlined_call_operand.vmem [shape: f32[64], index: 0, kind: input, shape index: {}]   ;;  %s23_s1 = inlined_call_operand.vmem [shape: f32[2,64], index: 1, kind: output, shape index: {}]  }
   0x1   :  { %v4_v0 = vld [vmem:[%s22_s0] ss:$0 sm:$0xff] }
   0x2   :  { %5 = vst [vmem:[%s23_s1] sm:$0x3] %v4_v0 }

// kernel: tile.41
= control target key start
LH: loop header
LB: loop body
LE: loop exit
PB: predicated region body
PF: predicated region fallthrough
CT: control target
= control target key end

     0   :  { %vm7_vm0 = vcmask 523264   ;;  %vm13_vm1 = vcmask 1048064   ;;  %s39_s0 = inlined_call_operand.vmem [shape: f32[2,64], index: 0, kind: input, shape index: {}]   ;;  %s40_s1 = inlined_call_operand.vmem [shape: f32[1,128], index: 1, kind: output, shape index: {}]  }
   0x1   :  { %v4_v0 = vld [vmem:[%s39_s0] sm:$0x3]  ;;  %s22_s0 = smov 64  }
   0x2   :  { %5 = vst [vmem:[#allocation1] sm:$0x3] %v4_v0 }
   0x9   :  { %v10_v1 = vld [vmem:[#allocation1 + $0x1] sm:$0x1]   ;;  %v6_v2 = vld [vmem:[#allocation1] sm:$0x1]  }
   0xa   :  { %11 = vrot.lane.b32.xlu0 %v10_v1, %s22_s0  ;;  %8 = vst.msk [vmem:[#allocation0] sm:$0x1] %vm7_vm0, %v6_v2  }
  0x7c   :  { %v12_v3 = vpop.permute.xlu0 %11  }
  0x7d   :  { %14 = vst.msk [vmem:[#allocation0] sm:$0x1] %vm13_vm1, %v12_v3  }
  0x84   :  { %v18_v4 = vld [vmem:[#allocation0] sm:$0x1] }
  0x85   :  { %20 = vst [vmem:[%s40_s1] sm:$0x1] %v18_v4 }

// kernel: _forward_impl.10
= control target key start
LH: loop header
LB: loop body
LE: loop exit
PB: predicated region body
PF: predicated region fallthrough
CT: control target
= control target key end

     0   :  { %s2066_s12 = smov 0   ;;  %s2420_s0 = inlined_call_operand.vmem [shape: bf16[64,1600], index: 0, kind: input, shape index: {}]   ;;  %s2421_s1 = inlined_call_operand.vmem [shape: bf16[1600,128], index: 1, kind: input, shape index: {}]   ;;  %s2422_s2 = inlined_call_operand.vmem [shape: f32[1,128], index: 2, kind: input, shape index: {}]   ;;  %s2423_s3 = inlined_call_operand.vmem [shape: f32[64,128], index: 3, kind: output, shape index: {}]  }
   0x1 LB: > { %s1565_s13 = sadd.s32 4294967295, %s2044_s12   ;;  %p1569_p0 = scmp.ge.s32.totalorder %s2044_s12, 1  ;;  %s2044_s12 = sphi %s2066_s12, %s13_s12  }
   0x2   : > { %p139_p1 = scmp.lt.s32.totalorder %s2044_s12, 3 }
   0x4   : > { %p140_p2 = pnand %p1569_p0, %p139_p1 }
   0x5   : > { %v1900_v0 = vld [vmem:[%s2421_s1 + $0x40] sm:$0xff] (!%p140_p2)   ;;  %v1904_v4 = vld [vmem:[%s2421_s1 + $0x48] sm:$0xff] (!%p140_p2)   ;;  %v1908_v8 = vld [vmem:[%s2421_s1 + $0x50] sm:$0xff] (!%p140_p2)   ;;  %s1570_s17 = sshll.u32 (!%p140_p2), %s1565_s13, 2  ;;  %vm1143_vm0 = vcmask (!%p140_p2), 523264  }
   0x6   : > { %143 = sbr.rel (%p140_p2) target bundleno = 339 (0x153), region = 32  ;;  %v1901_v1 = vld [vmem:[%s2421_s1] sm:$0xff] (!%p140_p2)   ;;  %1705 = vmatprep.subr.bf16.mxu0 (!%p140_p2), %v1900_v0  ;;  %v1905_v5 = vld [vmem:[%s2421_s1 + $0x8] sm:$0xff] (!%p140_p2)   ;;  %v1909_v9 = vld [vmem:[%s2421_s1 + $0x10] sm:$0xff] (!%p140_p2)   ;;  %p165_p3 = scmp.lt.s32.totalorder (!%p140_p2), %s1570_s17, 7 }
   0x7   : > { %v1902_v2 = vld [vmem:[%s2421_s1 + $0xc0] sm:$0xff] (!%p140_p2)   ;;  %1706 = vmatpush3.bf16.msra.mxu0 (!%p140_p2), %v1901_v1  ;;  %v1906_v6 = vld [vmem:[%s2421_s1 + $0xc8] sm:$0xff] (!%p140_p2)   ;;  %v1910_v10 = vld [vmem:[%s2421_s1 + $0xd0] sm:$0xff] (!%p140_p2)  }
   0x8   : > { %v1903_v3 = vld [vmem:[%s2421_s1 + $0x80] sm:$0xff] (!%p140_p2)   ;;  %1733 = vmatprep.subr.bf16.mxu1 (!%p140_p2), %v1902_v2  ;;  %1707 = vmatprep.subr.bf16.mxu0 (!%p140_p2), %v1904_v4  ;;  %v1907_v7 = vld [vmem:[%s2421_s1 + $0x88] sm:$0xff] (!%p140_p2)   ;;  %v1911_v11 = vld [vmem:[%s2421_s1 + $0x90] sm:$0xff] (!%p140_p2)  }
   0x9   : > { %1734 = vmatpush3.bf16.msra.mxu1 (!%p140_p2), %v1903_v3  ;;  %v1912_v12 = vld [vmem:[%s2421_s1 + $0x58] sm:$0xff] (!%p140_p2)   ;;  %v1916_v16 = vld [vmem:[%s2421_s1 + $0x60] sm:$0xff] (!%p140_p2)   ;;  %v1920_v20 = vld [vmem:[%s2421_s1 + $0x68] sm:$0xff] (!%p140_p2)  }
   0xa   : > { %1735 = vmatprep.subr.bf16.mxu1 (!%p140_p2), %v1906_v6  ;;  %v1913_v13 = vld [vmem:[%s2421_s1 + $0x18] sm:$0xff] (!%p140_p2)   ;;  %v1917_v17 = vld [vmem:[%s2421_s1 + $0x20] sm:$0xff] (!%p140_p2)   ;;  %v1921_v21 = vld [vmem:[%s2421_s1 + $0x28] sm:$0xff] (!%p140_p2)  }
   0xb   : > { %1708 = vmatpush3.bf16.msra.mxu0 (!%p140_p2), %v1905_v5  ;;  %v1914_v14 = vld [vmem:[%s2421_s1 + $0xd8] sm:$0xff] (!%p140_p2)   ;;  %v1918_v18 = vld [vmem:[%s2421_s1 + $0xe0] sm:$0xff] (!%p140_p2)   ;;  %v1922_v22 = vld [vmem:[%s2421_s1 + $0xe8] sm:$0xff] (!%p140_p2)  }
   0xc   : > { %1709 = vmatprep.subr.bf16.mxu0 (!%p140_p2), %v1908_v8  ;;  %v1915_v15 = vld [vmem:[%s2421_s1 + $0x98] sm:$0xff] (!%p140_p2)   ;;  %v1919_v19 = vld [vmem:[%s2421_s1 + $0xa0] sm:$0xff] (!%p140_p2)   ;;  %v1923_v23 = vld [vmem:[%s2421_s1 + $0xa8] sm:$0xff] (!%p140_p2)  }
   0xd   : > { %1736 = vmatpush3.bf16.msra.mxu1 %v1907_v7  ;;  %s2425_s17 = smov (!%p165_p3, %s1570_s17), 7  ;;  %v1924_v24 = vld [vmem:[%s2421_s1 + $0x70] sm:$0xff]   ;;  %v1928_v28 = vld [vmem:[%s2421_s1 + $0x78] sm:$0xff]   ;;  %v1935_v34 = vld [vmem:[%s2421_s1 + $0x140] sm:$0xff]  }
   0xe   : > { %1737 = vmatprep.subr.bf16.mxu1 %v1910_v10  ;;  %s1891_s14 = smul.u32 52, %s2425_s17  ;;  %v1925_v25 = vld [vmem:[%s2421_s1 + $0x30] sm:$0xff]   ;;  %v1929_v29 = vld [vmem:[%s2421_s1 + $0x38] sm:$0xff]   ;;  %v1939_v37 = vld [vmem:[%s2421_s1 + $0x100] sm:$0xff]  }
   0xf   : > { %1710 = vmatpush3.bf16.msra.mxu0 %v1909_v9  ;;  %v1926_v26 = vld [vmem:[%s2421_s1 + $0xf0] sm:$0xff]   ;;  %v1930_v30 = vld [vmem:[%s2421_s1 + $0xf8] sm:$0xff]   ;;  %v1940_v38 = vld [vmem:[%s2421_s1 + $0x1c0] sm:$0xff]  }
  0x10   : > { %1711 = vmatprep.subr.bf16.mxu0 %v1912_v12  ;;  %v1927_v27 = vld [vmem:[%s2421_s1 + $0xb0] sm:$0xff]   ;;  %s2169_s13 = scalar_lea.vmem %s2420_s0, %s1891_s14  ;;  %v1934_v33 = vld [vmem:[%s2421_s1 + $0xb8] sm:$0xff]   ;;  %v1941_v39 = vld [vmem:[%s2421_s1 + $0x180] sm:$0xff]  }
  0x11   : > { %1738 = vmatpush3.bf16.msra.mxu1 %v1911_v11  ;;  %v1931_v31 = vld [vmem:[%s2169_s13] ss:$52 sps:$4 sm:$0xff]   ;;  %v1933_v32 = vld [vmem:[%s2169_s13 + $0x4] ss:$52 sps:$4 sm:$0xff]   ;;  %v1936_v35 = vld [vmem:[%s2169_s13 + $0x8] ss:$52 sps:$4 sm:$0xff]  }
  0x12   : > { %1739 = vmatprep.subr.bf16.mxu1 %v1914_v14  ;;  %1182 = vmatprep.mubr.bf16.mxu0 %v1933_v32  ;;  %v1938_v36 = vld [vmem:[%s2169_s13 + $0xc] ss:$52 sps:$4 sm:$0xff]   ;;  %v1946_v44 = vld [vmem:[%s2421_s1 + $0x150] sm:$0xff]   ;;  %v1950_v48 = vld [vmem:[%s2421_s1 + $0x158] sm:$0xff]  }
  0x13   : > { %1712 = vmatpush3.bf16.msra.mxu0 %v1913_v13  ;;  %1231 = vmatprep.mubr.bf16.mxu1 %v1938_v36  ;;  %v1942_v40 = vld [vmem:[%s2421_s1 + $0x148] sm:$0xff]   ;;  %v1947_v45 = vld [vmem:[%s2421_s1 + $0x110] sm:$0xff]   ;;  %v1951_v49 = vld [vmem:[%s2421_s1 + $0x118] sm:$0xff]  }
  0x14   : > { %1713 = vmatprep.subr.bf16.mxu0 %v1916_v16  ;;  %v1943_v41 = vld [vmem:[%s2421_s1 + $0x108] sm:$0xff]   ;;  %v1948_v46 = vld [vmem:[%s2421_s1 + $0x1d0] sm:$0xff]   ;;  %v1952_v50 = vld [vmem:[%s2421_s1 + $0x1d8] sm:$0xff]  }
  0x15   : > { %1740 = vmatpush3.bf16.msra.mxu1 %v1915_v15  ;;  %v1944_v42 = vld [vmem:[%s2421_s1 + $0x1c8] sm:$0xff]   ;;  %v1949_v47 = vld [vmem:[%s2421_s1 + $0x190] sm:$0xff]   ;;  %v1953_v51 = vld [vmem:[%s2421_s1 + $0x198] sm:$0xff]  }
  0x16   : > { %1741 = vmatprep.subr.bf16.mxu1 %v1918_v18  ;;  %v1945_v43 = vld [vmem:[%s2421_s1 + $0x188] sm:$0xff]   ;;  %v1954_v52 = vld [vmem:[%s2421_s1 + $0x160] sm:$0xff]   ;;  %v1968_v0 = vld [vmem:[%s2421_s1 + $0x170] sm:$0xff]  }
  0x17   : > { %1714 = vmatpush3.bf16.msra.mxu0 %v1917_v17  ;;  %v1955_v53 = vld [vmem:[%s2421_s1 + $0x120] sm:$0xff]   ;;  %v1958_v56 = vld [vmem:[%s2421_s1 + $0x168] sm:$0xff]   ;;  %v1969_v1 = vld [vmem:[%s2421_s1 + $0x130] sm:$0xff]  }
  0x18   : > { %1715 = vmatprep.subr.bf16.mxu0 %v1920_v20  ;;  %v1956_v54 = vld [vmem:[%s2421_s1 + $0x1e0] sm:$0xff]   ;;  %v1961_v58 = vld [vmem:[%s2421_s1 + $0x128] sm:$0xff]   ;;  %v1970_v2 = vld [vmem:[%s2421_s1 + $0x1f0] sm:$0xff]  }
  0x19   : > { %1742 = vmatpush3.bf16.msra.mxu1 %v1919_v19  ;;  %v1957_v55 = vld [vmem:[%s2421_s1 + $0x1a0] sm:$0xff]   ;;  %v1962_v59 = vld [vmem:[%s2169_s13 + $0x68] ss:$52 sps:$4 sm:$0xff]   ;;  %v1971_v3 = vld [vmem:[%s2421_s1 + $0x1b0] sm:$0xff]  }
  0x1a   : > { %1743 = vmatprep.subr.bf16.mxu1 %v1922_v22  ;;  %v1959_v57 = vld [vmem:[%s2169_s13 + $0x6c] ss:$52 sps:$4 sm:$0xff]   ;;  %v1964_v61 = vld [vmem:[%s2169_s13 + $0x74] ss:$52 sps:$4 sm:$0xff]   ;;  %v1967_v63 = vld [vmem:[%s2169_s13 + $0x70] ss:$52 sps:$4 sm:$0xff]  }
  0x1b   : > { %1716 = vmatpush3.bf16.msra.mxu0 %v1921_v21  ;;  %v1963_v60 = vld [vmem:[%s2421_s1 + $0x1e8] sm:$0xff]   ;;  %v1972_v4 = vld [vmem:[%s2421_s1 + $0x178] sm:$0xff]   ;;  %v1975_v7 = vld [vmem:[%s2169_s13 + $0x10] ss:$52 sps:$4 sm:$0xff]  }
  0x1c   : > { %1717 = vmatprep.subr.bf16.mxu0 %v1924_v24  ;;  %v1966_v62 = vld [vmem:[%s2421_s1 + $0x1a8] sm:$0xff]   ;;  %v1973_v5 = vld [vmem:[%s2421_s1 + $0x138] sm:$0xff]   ;;  %v1979_v10 = vld [vmem:[%s2421_s1 + $0x240] sm:$0xff]  }
  0x1d   : > { %1744 = vmatpush3.bf16.msra.mxu1 %v1923_v23  ;;  %v1974_v6 = vld [vmem:[%s2421_s1 + $0x1f8] sm:$0xff]   ;;  %v1977_v8 = vld [vmem:[%s2169_s13 + $0x14] ss:$52 sps:$4 sm:$0xff]   ;;  %v1983_v13 = vld [vmem:[%s2421_s1 + $0x200] sm:$0xff]  }
  0x1e   : > { %1745 = vmatprep.subr.bf16.mxu1 %v1926_v26  ;;  %v1978_v9 = vld [vmem:[%s2421_s1 + $0x1b8] sm:$0xff]   ;;  %v1984_v14 = vld [vmem:[%s2421_s1 + $0x2c0] sm:$0xff]   ;;  %v1986_v16 = vld [vmem:[%s2421_s1 + $0x248] sm:$0xff]  }
  0x1f   : > { %1718 = vmatpush3.bf16.msra.mxu0 %v1925_v25  ;;  %v1980_v11 = vld [vmem:[%s2169_s13 + $0x18] ss:$52 sps:$4 sm:$0xff]   ;;  %v1982_v12 = vld [vmem:[%s2169_s13 + $0x1c] ss:$52 sps:$4 sm:$0xff]   ;;  %v1985_v15 = vld [vmem:[%s2421_s1 + $0x280] sm:$0xff]  }
  0x20   : > { %1719 = vmatprep.subr.bf16.mxu0 %v1928_v28  ;;  %v1987_v17 = vld [vmem:[%s2421_s1 + $0x208] sm:$0xff]   ;;  %v1989_v19 = vld [vmem:[%s2169_s13 + $0x7c] ss:$52 sps:$4 sm:$0xff]   ;;  %v1994_v23 = vld [vmem:[%s2169_s13 + $0x84] ss:$52 sps:$4 sm:$0xff]  }
  0x21   : > { %1746 = vmatpush3.bf16.msra.mxu1 %v1927_v27  ;;  %v1988_v18 = vld [vmem:[%s2421_s1 + $0x2c8] sm:$0xff]   ;;  %v1993_v22 = vld [vmem:[%s2421_s1 + $0x250] sm:$0xff]   ;;  %v2000_v28 = vld [vmem:[%s2421_s1 + $0x258] sm:$0xff]  }
  0x22   : > { %1747 = vmatprep.subr.bf16.mxu1 %v1930_v30  ;;  %v1991_v20 = vld [vmem:[%s2421_s1 + $0x288] sm:$0xff]   ;;  %v1996_v24 = vld [vmem:[%s2421_s1 + $0x210] sm:$0xff]   ;;  %v2002_v30 = vld [vmem:[%s2421_s1 + $0x2d8] sm:$0xff]  }
  0x23   : > { %1720 = vmatpush3.bf16.msra.mxu0 %v1929_v29  ;;  %v1992_v21 = vld [vmem:[%s2169_s13 + $0x78] ss:$52 sps:$4 sm:$0xff]   ;;  %v1997_v25 = vld [vmem:[%s2169_s13 + $0x80] ss:$52 sps:$4 sm:$0xff]  }
  0x24   : > { %1761 = vmatprep.subr.bf16.mxu0 %v1935_v34  ;;  %v1998_v26 = vld [vmem:[%s2421_s1 + $0x2d0] sm:$0xff]   ;;  %v2001_v29 = vld [vmem:[%s2421_s1 + $0x218] sm:$0xff]   ;;  %v2004_v32 = vld [vmem:[%s2421_s1 + $0x260] sm:$0xff]  }
  0x25   : > { %1748 = vmatpush3.bf16.msra.mxu1 %v1934_v33  ;;  %v1999_v27 = vld [vmem:[%s2421_s1 + $0x290] sm:$0xff]   ;;  %v2005_v33 = vld [vmem:[%s2421_s1 + $0x220] sm:$0xff]   ;;  %v2008_v36 = vld [vmem:[%s2421_s1 + $0x268] sm:$0xff]  }
  0x26   : > { %1183 = vmatmul.mubr.bf16.vlgmr.msra.gmra.mrb[0].mxu0 %v1931_v31  ;;  %1789 = vmatprep.subr.bf16.mxu1 %v1940_v38  ;;  %v2003_v31 = vld [vmem:[%s2421_s1 + $0x298] sm:$0xff]   ;;  %v2006_v34 = vld [vmem:[%s2421_s1 + $0x2e0] sm:$0xff]   ;;  %v2010_v38 = vld [vmem:[%s2421_s1 + $0x2e8] sm:$0xff]  }
  0x27   : > { %1762 = vmatpush3.bf16.msra.mxu0 %v1939_v37  ;;  %1190 = vmatprep.mubr.bf16.mxu0 %v1959_v57  ;;  %v2009_v37 = vld [vmem:[%s2421_s1 + $0x228] sm:$0xff]  }
  0x28   : > { %1232 = vmatmul.mubr.bf16.vlgmr.msra.gmra.mrb[0].mxu1 %v1936_v35  ;;  %1763 = vmatprep.subr.bf16.mxu0 %v1942_v40  ;;  %v2007_v35 = vld [vmem:[%s2421_s1 + $0x2a0] sm:$0xff]   ;;  %v2012_v40 = vld [vmem:[%s2421_s1 + $0x270] sm:$0xff]  }
  0x29   : > { %1790 = vmatpush3.bf16.msra.mxu1 %v1941_v39  ;;  %1239 = vmatprep.mubr.bf16.mxu1 %v1964_v61  ;;  %v2011_v39 = vld [vmem:[%s2421_s1 + $0x2a8] sm:$0xff]  }
  0x2a   : > { %1791 = vmatprep.subr.bf16.mxu1 %v1944_v42  ;;  %v2014_v42 = vld [vmem:[%s2421_s1 + $0x2f0] sm:$0xff]   ;;  %v2037_v61 = vld [vmem:[%s2169_s13 + $0x98] ss:$52 sps:$4 sm:$0xff]  }
  0x2b   : > { %1764 = vmatpush3.bf16.msra.mxu0 %v1943_v41  ;;  %v2013_v41 = vld [vmem:[%s2421_s1 + $0x230] sm:$0xff]  }
  0x2c   : > { %1765 = vmatprep.subr.bf16.mxu0 %v1946_v44  ;;  %v2016_v44 = vld [vmem:[%s2421_s1 + $0x278] sm:$0xff]   ;;  %v2032_v57 = vld [vmem:[%s2169_s13 + $0x94] ss:$52 sps:$4 sm:$0xff]  }
  0x2d   : > { %1792 = vmatpush3.bf16.msra.mxu1 %v1945_v43  ;;  %v2015_v43 = vld [vmem:[%s2421_s1 + $0x2b0] sm:$0xff]  }
  0x2e   : > { %1793 = vmatprep.subr.bf16.mxu1 %v1948_v46  ;;  %1191 = vmatmul.mubr.bf16.gmra.mrb[4].mxu0 %v1962_v59  ;;  %v2018_v46 = vld [vmem:[%s2421_s1 + $0x2f8] sm:$0xff]   ;;  %v2036_v59 = vld [vmem:[%s2169_s13 + $0x30] ss:$52 sps:$4 sm:$0xff]  }
  0x2f   : > { %1766 = vmatpush3.bf16.msra.mxu0 %v1947_v45  ;;  %1280 = vmatprep.mubr.bf16.mxu0 %v1977_v8  ;;  %v2017_v45 = vld [vmem:[%s2421_s1 + $0x238] sm:$0xff]  }
  0x30   : > { %1767 = vmatprep.subr.bf16.mxu0 %v1950_v48  ;;  %1240 = vmatmul.mubr.bf16.gmra.mrb[4].mxu1 %v1967_v63  ;;  %v2021_v48 = vld [vmem:[%s2169_s13 + $0x24] ss:$52 sps:$4 sm:$0xff]   ;;  %v1574_v63 = vld [vmem:[%s2422_s2] ss:$0 sm:$0xff] }
  0x31   : > { %1794 = vmatpush3.bf16.msra.mxu1 %v1949_v47  ;;  %1329 = vmatprep.mubr.bf16.mxu1 %v1982_v12  ;;  %v2019_v47 = vld [vmem:[%s2169_s13 + $0x20] ss:$52 sps:$4 sm:$0xff]  }
  0x32   : > { %1795 = vmatprep.subr.bf16.mxu1 %v1952_v50  ;;  %v2023_v50 = vld [vmem:[%s2421_s1 + $0x300] sm:$0xff]  }
  0x33   : > { %1768 = vmatpush3.bf16.msra.mxu0 %v1951_v49  ;;  %v2022_v49 = vld [vmem:[%s2421_s1 + $0x2b8] sm:$0xff]  }
  0x34   : > { %1769 = vmatprep.subr.bf16.mxu0 %v1954_v52  ;;  %v2026_v52 = vld [vmem:[%s2169_s13 + $0x2c] ss:$52 sps:$4 sm:$0xff]  }
  0x35   : > { %1796 = vmatpush3.bf16.msra.mxu1 %v1953_v51  ;;  %v2024_v51 = vld [vmem:[%s2169_s13 + $0x28] ss:$52 sps:$4 sm:$0xff]  }
  0x36   : > { %1797 = vmatprep.subr.bf16.mxu1 %v1956_v54  ;;  %v2028_v54 = vld [vmem:[%s2169_s13 + $0x8c] ss:$52 sps:$4 sm:$0xff]  }
  0x37   : > { %1770 = vmatpush3.bf16.msra.mxu0 %v1955_v53  ;;  %v2027_v53 = vld [vmem:[%s2421_s1 + $0x308] sm:$0xff]  }
  0x38   : > { %1771 = vmatprep.subr.bf16.mxu0 %v1958_v56  ;;  %v2031_v56 = vld [vmem:[%s2421_s1 + $0x310] sm:$0xff]  }
  0x39   : > { %1798 = vmatpush3.bf16.msra.mxu1 %v1957_v55  ;;  %v2030_v55 = vld [vmem:[%s2169_s13 + $0x88] ss:$52 sps:$4 sm:$0xff]  }
  0x3a   : > { %1799 = vmatprep.subr.bf16.mxu1 %v1963_v60  ;;  %v2034_v60 = vld [vmem:[%s2169_s13 + $0x90] ss:$52 sps:$4 sm:$0xff]   ;;  %s1573_s13 = sshll.u32 %s2425_s17, 3 }
  0x3b   : > { %1772 = vmatpush3.bf16.msra.mxu0 %v1961_v58  ;;  %v2035_v58 = vld [vmem:[%s2421_s1 + $0x318] sm:$0xff]   ;;  %s175_s28 = scalar_lea.vmem %s2423_s3, %s1573_s13 }
  0x3c   : > { %1773 = vmatprep.subr.bf16.mxu0 %v1968_v0 }
  0x3d   : > { %1800 = vmatpush3.bf16.msra.mxu1 %v1966_v62 }
  0x3e   : > { %1801 = vmatprep.subr.bf16.mxu1 %v1970_v2 }
  0x3f   : > { %1774 = vmatpush3.bf16.msra.mxu0 %v1969_v1 }
  0x40   : > { %1775 = vmatprep.subr.bf16.mxu0 %v1972_v4 }
  0x41   : > { %1802 = vmatpush3.bf16.msra.mxu1 %v1971_v3 }
  0x42   : > { %1803 = vmatprep.subr.bf16.mxu1 %v1974_v6 }
  0x43   : > { %1776 = vmatpush3.bf16.msra.mxu0 %v1973_v5 }
  0x44   : > { %1817 = vmatprep.subr.bf16.mxu0 %v1979_v10 }
  0x45   : > { %1804 = vmatpush3.bf16.msra.mxu1 %v1978_v9 }
  0x46   : > { %1281 = vmatmul.mubr.bf16.vlgmr.msra.gmra.mrb[8].mxu0 %v1975_v7  ;;  %1845 = vmatprep.subr.bf16.mxu1 %v1984_v14 }
  0x47   : > { %1818 = vmatpush3.bf16.msra.mxu0 %v1983_v13  ;;  %1288 = vmatprep.mubr.bf16.mxu0 %v1989_v19 }
  0x48   : > { %1330 = vmatmul.mubr.bf16.vlgmr.msra.gmra.mrb[8].mxu1 %v1980_v11  ;;  %1819 = vmatprep.subr.bf16.mxu0 %v1986_v16 }
  0x49   : > { %1846 = vmatpush3.bf16.msra.mxu1 %v1985_v15  ;;  %1337 = vmatprep.mubr.bf16.mxu1 %v1994_v23 }
  0x4a   : > { %1847 = vmatprep.subr.bf16.mxu1 %v1988_v18 }
  0x4b   : > { %1820 = vmatpush3.bf16.msra.mxu0 %v1987_v17 }
  0x4c   : > { %1821 = vmatprep.subr.bf16.mxu0 %v1993_v22 }
  0x4d   : > { %1848 = vmatpush3.bf16.msra.mxu1 %v1991_v20 }
  0x4e   : > { %1289 = vmatmul.mubr.bf16.gmra.mrb[12].mxu0 %v1992_v21  ;;  %1849 = vmatprep.subr.bf16.mxu1 %v1998_v26 }
  0x4f   : > { %1822 = vmatpush3.bf16.msra.mxu0 %v1996_v24  ;;  %1378 = vmatprep.mubr.bf16.mxu0 %v2021_v48 }
  0x50   : > { %1338 = vmatmul.mubr.bf16.gmra.mrb[12].mxu1 %v1997_v25  ;;  %1823 = vmatprep.subr.bf16.mxu0 %v2000_v28 }
  0x51   : > { %1850 = vmatpush3.bf16.msra.mxu1 %v1999_v27  ;;  %1427 = vmatprep.mubr.bf16.mxu1 %v2026_v52 }
  0x52   : > { %1851 = vmatprep.subr.bf16.mxu1 %v2002_v30 }
  0x53   : > { %1824 = vmatpush3.bf16.msra.mxu0 %v2001_v29 }
  0x54   : > { %1825 = vmatprep.subr.bf16.mxu0 %v2004_v32 }
  0x55   : > { %1852 = vmatpush3.bf16.msra.mxu1 %v2003_v31 }
  0x56   : > { %1853 = vmatprep.subr.bf16.mxu1 %v2006_v34 }
  0x57   : > { %1826 = vmatpush3.bf16.msra.mxu0 %v2005_v33 }
  0x58   : > { %1827 = vmatprep.subr.bf16.mxu0 %v2008_v36 }
  0x59   : > { %1854 = vmatpush3.bf16.msra.mxu1 %v2007_v35 }
  0x5a   : > { %1855 = vmatprep.subr.bf16.mxu1 %v2010_v38 }
  0x5b   : > { %1828 = vmatpush3.bf16.msra.mxu0 %v2009_v37 }
  0x5c   : > { %1829 = vmatprep.subr.bf16.mxu0 %v2012_v40 }
  0x5d   : > { %1856 = vmatpush3.bf16.msra.mxu1 %v2011_v39 }
  0x5e   : > { %1857 = vmatprep.subr.bf16.mxu1 %v2014_v42 }
  0x5f   : > { %1830 = vmatpush3.bf16.msra.mxu0 %v2013_v41 }
  0x60   : > { %1831 = vmatprep.subr.bf16.mxu0 %v2016_v44 }
  0x61   : > { %1858 = vmatpush3.bf16.msra.mxu1 %v2015_v43 }
  0x62   : > { %1859 = vmatprep.subr.bf16.mxu1 %v2018_v46 }
  0x63   : > { %1832 = vmatpush3.bf16.msra.mxu0 %v2017_v45 }
  0x64   : > { %1879 = vmatprep.subr.bf16.mxu0 %v2023_v50 }
  0x65   : > { %1860 = vmatpush3.bf16.msra.mxu1 %v2022_v49 }
  0x66   : > { %1379 = vmatmul.mubr.bf16.vlgmr.msra.gmra.mrb[16].mxu0 %v2019_v47 }
  0x67   : > { %1880 = vmatpush3.bf16.msra.mxu0 %v2023_v50  ;;  %1386 = vmatprep.mubr.bf16.mxu0 %v2028_v54 }
  0x68   : > { %1428 = vmatmul.mubr.bf16.vlgmr.msra.gmra.mrb[16].mxu1 %v2024_v51  ;;  %1881 = vmatprep.subr.bf16.mxu0 %v2027_v53 }
  0x69   : > { %1435 = vmatprep.mubr.bf16.mxu1 %v2032_v57 }
  0x6b   : > { %1882 = vmatpush3.bf16.msra.mxu0 %v2027_v53 }
  0x6c   : > { %1883 = vmatprep.subr.bf16.mxu0 %v2031_v56 }
  0x6e   : > { %1387 = vmatmul.mubr.bf16.gmra.mrb[20].mxu0 %v2030_v55 }
  0x6f   : > { %1887 = vmatprep.mubr.msk.bf16.mxu0 %vm1143_vm0, %v2036_v59  ;;  %1884 = vmatpush3.bf16.msra.mxu0 %v2031_v56 }
  0x70   : > { %1885 = vmatprep.subr.bf16.mxu0 %v2035_v58  ;;  %1436 = vmatmul.mubr.bf16.gmra.mrb[20].mxu1 %v2034_v60 }
  0x73   : > { %1886 = vmatpush3.bf16.msra.mxu0 %v2035_v58 }
  0x76   : > { %1888 = vmatmul.mubr.msk.bf16.vlgmr.msra.gmra.mrb[24].mxu0 %vm1143_vm0, %v2037_v61 }
  0xf9   : > { %v1721_v62 = vpop.f32.mrb[0].mxu0 }
  0xfa   : > { %v1722_v0 = vpop.f32.mrb[1].mxu0 }
  0xfb   : > { %v1723_v1 = vadd.f32 %v1722_v0, %v1721_v62  ;;  %v1724_v2 = vpop.f32.mrb[2].mxu0  ;;  %v1749_v3 = vpop.f32.mrb[0].mxu1 }
  0xfc   : > { %v1725_v4 = vpop.f32.mrb[3].mxu0  ;;  %v1750_v7 = vpop.f32.mrb[1].mxu1 }
  0xfd   : > { %v1185_v5 = vadd.f32 %v1723_v1, %v1574_v63  ;;  %v1726_v6 = vadd.f32 %v1725_v4, %v1724_v2  ;;  %v1751_v8 = vadd.f32 %v1750_v7, %v1749_v3  ;;  %v1752_v9 = vpop.f32.mrb[2].mxu1 }
  0xfe   : > { %v1753_v11 = vpop.f32.mrb[3].mxu1 }
  0xff   : > { %v1188_v10 = vadd.f32 %v1726_v6, %v1574_v63  ;;  %v1234_v12 = vadd.f32 %v1751_v8, %v1185_v5  ;;  %v1754_v13 = vadd.f32 %v1753_v11, %v1752_v9 }
 0x101   : > { %v1237_v14 = vadd.f32 %v1754_v13, %v1188_v10  ;;  %v1727_v15 = vpop.f32.mrb[4].mxu0 }
 0x102   : > { %v1728_v16 = vpop.f32.mrb[5].mxu0 }
 0x103   : > { %v1729_v17 = vadd.f32 %v1728_v16, %v1727_v15  ;;  %v1730_v18 = vpop.f32.mrb[6].mxu0  ;;  %v1755_v19 = vpop.f32.mrb[4].mxu1 }
 0x104   : > { %v1731_v20 = vpop.f32.mrb[7].mxu0  ;;  %v1756_v23 = vpop.f32.mrb[5].mxu1 }
 0x105   : > { %v1193_v21 = vadd.f32 %v1729_v17, %v1574_v63  ;;  %v1732_v22 = vadd.f32 %v1731_v20, %v1730_v18  ;;  %v1757_v24 = vadd.f32 %v1756_v23, %v1755_v19  ;;  %v1758_v25 = vpop.f32.mrb[6].mxu1 }
 0x106   : > { %v1759_v27 = vpop.f32.mrb[7].mxu1 }
 0x107   : > { %v1196_v26 = vadd.f32 %v1732_v22, %v1574_v63  ;;  %v1242_v28 = vadd.f32 %v1757_v24, %v1193_v21  ;;  %v1760_v29 = vadd.f32 %v1759_v27, %v1758_v25 }
 0x109   : > { %v1245_v30 = vadd.f32 %v1760_v29, %v1196_v26 }
 0x119   : > { %v1777_v31 = vpop.f32.mrb[8].mxu0 }
 0x11a   : > { %v1778_v32 = vpop.f32.mrb[9].mxu0 }
 0x11b   : > { %v1779_v33 = vadd.f32 %v1778_v32, %v1777_v31  ;;  %v1780_v34 = vpop.f32.mrb[10].mxu0  ;;  %v1805_v35 = vpop.f32.mrb[8].mxu1 }
 0x11c   : > { %v1781_v36 = vpop.f32.mrb[11].mxu0  ;;  %v1806_v39 = vpop.f32.mrb[9].mxu1 }
 0x11d   : > { %v1283_v37 = vadd.f32 %v1779_v33, %v1234_v12  ;;  %v1782_v38 = vadd.f32 %v1781_v36, %v1780_v34  ;;  %v1807_v40 = vadd.f32 %v1806_v39, %v1805_v35  ;;  %v1808_v41 = vpop.f32.mrb[10].mxu1 }
 0x11e   : > { %v1809_v43 = vpop.f32.mrb[11].mxu1 }
 0x11f   : > { %v1286_v42 = vadd.f32 %v1782_v38, %v1237_v14  ;;  %v1332_v44 = vadd.f32 %v1807_v40, %v1283_v37  ;;  %v1810_v45 = vadd.f32 %v1809_v43, %v1808_v41 }
 0x121   : > { %v1335_v46 = vadd.f32 %v1810_v45, %v1286_v42  ;;  %v1783_v47 = vpop.f32.mrb[12].mxu0 }
 0x122   : > { %v1784_v48 = vpop.f32.mrb[13].mxu0 }
 0x123   : > { %v1785_v49 = vadd.f32 %v1784_v48, %v1783_v47  ;;  %v1786_v50 = vpop.f32.mrb[14].mxu0  ;;  %v1811_v51 = vpop.f32.mrb[12].mxu1 }
 0x124   : > { %v1787_v52 = vpop.f32.mrb[15].mxu0  ;;  %v1812_v55 = vpop.f32.mrb[13].mxu1 }
 0x125   : > { %v1291_v53 = vadd.f32 %v1785_v49, %v1242_v28  ;;  %v1788_v54 = vadd.f32 %v1787_v52, %v1786_v50  ;;  %v1813_v56 = vadd.f32 %v1812_v55, %v1811_v51  ;;  %v1814_v57 = vpop.f32.mrb[14].mxu1 }
 0x126   : > { %v1815_v59 = vpop.f32.mrb[15].mxu1 }
 0x127   : > { %v1294_v58 = vadd.f32 %v1788_v54, %v1245_v30  ;;  %v1340_v60 = vadd.f32 %v1813_v56, %v1291_v53  ;;  %v1816_v61 = vadd.f32 %v1815_v59, %v1814_v57 }
 0x129   : > { %v1343_v62 = vadd.f32 %v1816_v61, %v1294_v58 }
 0x139   : > { %v1833_v63 = vpop.f32.mrb[16].mxu0 }
 0x13a   : > { %v1834_v0 = vpop.f32.mrb[17].mxu0 }
 0x13b   : > { %v1835_v1 = vadd.f32 %v1834_v0, %v1833_v63  ;;  %v1836_v2 = vpop.f32.mrb[18].mxu0  ;;  %v1861_v5 = vpop.f32.mrb[16].mxu1 }
 0x13c   : > { %v1837_v3 = vpop.f32.mrb[19].mxu0  ;;  %v1862_v7 = vpop.f32.mrb[17].mxu1 }
 0x13d   : > { %v1381_v4 = vadd.f32 %v1835_v1, %v1332_v44  ;;  %v1838_v6 = vadd.f32 %v1837_v3, %v1836_v2  ;;  %v1863_v9 = vadd.f32 %v1862_v7, %v1861_v5  ;;  %v1864_v10 = vpop.f32.mrb[18].mxu1 }
 0x13e   : > { %v1865_v11 = vpop.f32.mrb[19].mxu1 }
 0x13f   : > { %v1384_v8 = vadd.f32 %v1838_v6, %v1335_v46  ;;  %v1866_v12 = vadd.f32 %v1865_v11, %v1864_v10  ;;  %v1430_v14 = vadd.f32 %v1863_v9, %v1381_v4 }
 0x141   : > { %v1839_v13 = vpop.f32.mrb[20].mxu0  ;;  %v1433_v18 = vadd.f32 %v1866_v12, %v1384_v8 }
 0x142   : > { %v1840_v15 = vpop.f32.mrb[21].mxu0 }
 0x143   : > { %v1841_v16 = vadd.f32 %v1840_v15, %v1839_v13  ;;  %v1842_v17 = vpop.f32.mrb[22].mxu0  ;;  %v1867_v21 = vpop.f32.mrb[20].mxu1 }
 0x144   : > { %v1843_v19 = vpop.f32.mrb[23].mxu0  ;;  %v1868_v23 = vpop.f32.mrb[21].mxu1 }
 0x145   : > { %v1389_v20 = vadd.f32 %v1841_v16, %v1340_v60  ;;  %v1844_v22 = vadd.f32 %v1843_v19, %v1842_v17  ;;  %v1869_v25 = vadd.f32 %v1868_v23, %v1867_v21  ;;  %v1870_v26 = vpop.f32.mrb[22].mxu1 }
 0x146   : > { %v1871_v27 = vpop.f32.mrb[23].mxu1 }
 0x147   : > { %v1392_v24 = vadd.f32 %v1844_v22, %v1343_v62  ;;  %v1872_v28 = vadd.f32 %v1871_v27, %v1870_v26  ;;  %v1438_v29 = vadd.f32 %v1869_v25, %v1389_v20 }
 0x149   : > { %v1889_v30 = vpop.f32.mrb[24].mxu0  ;;  %v1441_v33 = vadd.f32 %v1872_v28, %v1392_v24 }
 0x14a   : > { %v1487_v31 = vadd.f32 %v1889_v30, %v1438_v29  ;;  %v1478_v32 = vpop.f32.mrb[25].mxu0 }
 0x14b   : > { %v1479_v34 = vadd.f32 %v1478_v32, %v1430_v14  ;;  %v1890_v35 = vpop.f32.mrb[26].mxu0 }
 0x14c   : > { %v1490_v36 = vadd.f32 %v1890_v35, %v1441_v33  ;;  %v1481_v37 = vpop.f32.mrb[27].mxu0  ;;  %vm1495_vm2 = vcmp.ge.f32.partialorder %v1487_v31, 0.0  ;;  %v1499_v40 = vmul.f32 0.2, %v1487_v31 }
 0x14d   : > { %vm1493_vm1 = vcmp.ge.f32.partialorder %v1479_v34, 0.0  ;;  %v1497_v38 = vmul.f32 0.2, %v1479_v34  ;;  %v1482_v39 = vadd.f32 %v1481_v37, %v1433_v18 }
 0x14e   : > { %v1500_v42 = vmul.f32 0.2, %v1490_v36  ;;  %vm1496_vm4 = vcmp.ge.f32.partialorder %v1490_v36, 0.0  ;;  %v1503_v45 = vsel %vm1495_vm2, %v1487_v31, %v1499_v40 }
 0x14f   : > { %v1501_v41 = vsel %vm1493_vm1, %v1479_v34, %v1497_v38  ;;  %vm1494_vm3 = vcmp.ge.f32.partialorder %v1482_v39, 0.0  ;;  %v1498_v43 = vmul.f32 0.2, %v1482_v39  ;;  %1507 = vst [vmem:[%s175_s28 + $0x10] sm:$0xff] %v1503_v45 }
 0x150   : > { %1505 = vst [vmem:[%s175_s28] sm:$0xff] %v1501_v41  ;;  %v1504_v46 = vsel %vm1496_vm4, %v1490_v36, %v1500_v42 }
 0x151   : > { %v1502_v44 = vsel %vm1494_vm3, %v1482_v39, %v1498_v43  ;;  %1508 = vst [vmem:[%s175_s28 + $0x18] sm:$0xff] %v1504_v46 }
 0x152   : > { %1506 = vst [vmem:[%s175_s28 + $0x8] sm:$0xff] %v1502_v44 }
 0x153 PF: > { %s13_s12 = sadd.s32 1, %s2044_s12  }
 0x154   : > { %p10_p4 = scmp.ge.s32.totalorder %s13_s12, 4  }
 0x156   :  { %12 = sbr.rel (!%p10_p4) target bundleno = 1 (0x1), region = 62 }

// kernel: _forward_impl.11
= control target key start
LH: loop header
LB: loop body
LE: loop exit
PB: predicated region body
PF: predicated region fallthrough
CT: control target
= control target key end

     0   :  { %v3181_v21 = vmov 1983009808   ;;  %v33_v23 = vlaneseq  ;;  %vm735_vm0 = vcmask 1041408   ;;  %vm783_vm1 = vcmask 517120   ;;  %s3949_s2 = inlined_call_operand.vmem [shape: bf16[3136,8], index: 2, kind: input, shape index: {}]   ;;  %s3950_s0 = inlined_call_operand.vmem [shape: f32[2,3136], index: 0, kind: input, shape index: {}]   ;;  %s3951_s1 = inlined_call_operand.vmem [shape: f32[2,3136], index: 1, kind: input, shape index: {}]   ;;  %s3952_s3 = inlined_call_operand.vmem [shape: f32[2,8], index: 3, kind: output, shape index: {}]  }
   0x1   :  { %v2979_v0 = vld [vmem:[%s3949_s2 + $0x40] sm:$0xff]   ;;  %v2983_v4 = vld [vmem:[%s3949_s2 + $0x48] sm:$0xff]   ;;  %v2987_v8 = vld [vmem:[%s3949_s2 + $0x50] sm:$0xff]   ;;  %v31_v22 = vunpack.c.l.s4 %v3181_v21  ;;  %vm3183_vm2 = vmmov 0   ;;  %vm1968_vm3 = vcmask 523264   ;;  %vm2492_vm5 = vcmask 58368  }
   0x2   :  { %v2980_v1 = vld [vmem:[%s3949_s2] sm:$0xff]   ;;  %2695 = vmatprep.subr.bf16.mxu0 %v2979_v0  ;;  %v2984_v5 = vld [vmem:[%s3949_s2 + $0x8] sm:$0xff]   ;;  %v2988_v9 = vld [vmem:[%s3949_s2 + $0x10] sm:$0xff]   ;;  %v34_v29 = vshrl.u32 %v33_v23, 7 }
   0x3   :  { %v2981_v2 = vld [vmem:[%s3949_s2 + $0xc0] sm:$0xff]   ;;  %2696 = vmatpush3.bf16.msra.mxu0 %v2980_v1  ;;  %v2985_v6 = vld [vmem:[%s3949_s2 + $0xc8] sm:$0xff]   ;;  %v2989_v10 = vld [vmem:[%s3949_s2 + $0xd0] sm:$0xff]   ;;  %v32_v28 = vunpack.c.0.s8 %v31_v22 }
   0x4   :  { %v2982_v3 = vld [vmem:[%s3949_s2 + $0x80] sm:$0xff]   ;;  %2717 = vmatprep.subr.bf16.mxu1 %v2981_v2  ;;  %2697 = vmatprep.subr.bf16.mxu0 %v2983_v4  ;;  %v2986_v7 = vld [vmem:[%s3949_s2 + $0x88] sm:$0xff]   ;;  %v2990_v11 = vld [vmem:[%s3949_s2 + $0x90] sm:$0xff]  }
   0x5   :  { %2718 = vmatpush3.bf16.msra.mxu1 %v2982_v3  ;;  %v2991_v12 = vld [vmem:[%s3949_s2 + $0x58] sm:$0xff]   ;;  %v2995_v16 = vld [vmem:[%s3949_s2 + $0x60] sm:$0xff]   ;;  %v2999_v20 = vld [vmem:[%s3949_s2 + $0x68] sm:$0xff]   ;;  %v3292_v34 = vsub.s32 %v32_v28, %v34_v29 }
   0x6   :  { %2719 = vmatprep.subr.bf16.mxu1 %v2985_v6  ;;  %v2992_v13 = vld [vmem:[%s3949_s2 + $0x18] sm:$0xff]   ;;  %v2996_v17 = vld [vmem:[%s3949_s2 + $0x20] sm:$0xff]   ;;  %v3000_v24 = vld [vmem:[%s3949_s2 + $0x28] sm:$0xff]  }
   0x7   :  { %2698 = vmatpush3.bf16.msra.mxu0 %v2984_v5  ;;  %v2993_v14 = vld [vmem:[%s3949_s2 + $0xd8] sm:$0xff]   ;;  %v2997_v18 = vld [vmem:[%s3949_s2 + $0xe0] sm:$0xff]   ;;  %v3001_v25 = vld [vmem:[%s3949_s2 + $0xe8] sm:$0xff]  }
   0x8   :  { %2699 = vmatprep.subr.bf16.mxu0 %v2987_v8  ;;  %v2994_v15 = vld [vmem:[%s3949_s2 + $0x98] sm:$0xff]   ;;  %v2998_v19 = vld [vmem:[%s3949_s2 + $0xa0] sm:$0xff]   ;;  %v3002_v26 = vld [vmem:[%s3949_s2 + $0xa8] sm:$0xff]  }
   0x9   :  { %2720 = vmatpush3.bf16.msra.mxu1 %v2986_v7  ;;  %v3003_v27 = vld [vmem:[%s3949_s2 + $0x70] sm:$0xff]   ;;  %v3007_v33 = vld [vmem:[%s3949_s2 + $0x78] sm:$0xff]   ;;  %v3303_v37 = vld [vmem:[%s3950_s0] sm:$0xff] }
   0xa   :  { %2721 = vmatprep.subr.bf16.mxu1 %v2989_v10  ;;  %v3004_v30 = vld [vmem:[%s3949_s2 + $0x30] sm:$0xff]   ;;  %v3008_v35 = vld [vmem:[%s3949_s2 + $0x38] sm:$0xff]   ;;  %v36_v38 = vrot.slane %v3303_v37, %v3292_v34  ;;  %v29_v40 = vcombine.high %v3303_v37, %v3303_v37  ;;  %v3011_v41 = vld [vmem:[%s3949_s2 + $0x140] sm:$0xff]  }
   0xb   :  { %2700 = vmatpush3.bf16.msra.mxu0 %v2988_v9  ;;  %v3005_v31 = vld [vmem:[%s3949_s2 + $0xf0] sm:$0xff]   ;;  %v3009_v36 = vld [vmem:[%s3949_s2 + $0xf8] sm:$0xff]   ;;  %v3014_v45 = vld [vmem:[%s3949_s2 + $0x1c0] sm:$0xff]  }
   0xc   :  { %2701 = vmatprep.subr.bf16.mxu0 %v2991_v12  ;;  %v3006_v32 = vld [vmem:[%s3949_s2 + $0xb0] sm:$0xff]   ;;  %v3010_v39 = vld [vmem:[%s3949_s2 + $0xb8] sm:$0xff]   ;;  %v44_v42 = vcombine.high %v36_v38, %v36_v38  ;;  %v163_v43 = vpack.c.bf16 %v36_v38, %v36_v38  ;;  %v43_v44 = vrot.slane %v29_v40, %v3292_v34  ;;  %v3013_v47 = vld [vmem:[%s3949_s2 + $0x100] sm:$0xff]  }
   0xd   :  { %2722 = vmatpush3.bf16.msra.mxu1 %v2990_v11  ;;  %v3016_v49 = vld [vmem:[%s3949_s2 + $0x148] sm:$0xff]   ;;  %v3015_v51 = vld [vmem:[%s3949_s2 + $0x180] sm:$0xff]   ;;  %v3020_v55 = vld [vmem:[%s3949_s2 + $0x150] sm:$0xff]  }
   0xe   :  { %2723 = vmatprep.subr.bf16.mxu1 %v2993_v14  ;;  %v164_v46 = vpack.c.bf16 %v44_v42, %v44_v42  ;;  %v45_v48 = vcombine.high %v43_v44, %v43_v44  ;;  %v165_v50 = vpack.c.bf16 %v43_v44, %v43_v44  ;;  %v3017_v52 = vld [vmem:[%s3949_s2 + $0x108] sm:$0xff]   ;;  %v3021_v57 = vld [vmem:[%s3949_s2 + $0x110] sm:$0xff]   ;;  %v3024_v59 = vld [vmem:[%s3949_s2 + $0x158] sm:$0xff]  }
   0xf   :  { %2702 = vmatpush3.bf16.msra.mxu0 %v2992_v13  ;;  %v3018_v54 = vld [vmem:[%s3949_s2 + $0x1c8] sm:$0xff]   ;;  %v3022_v58 = vld [vmem:[%s3949_s2 + $0x1d0] sm:$0xff]   ;;  %v3025_v61 = vld [vmem:[%s3949_s2 + $0x118] sm:$0xff]  }
  0x10   :  { %2703 = vmatprep.subr.bf16.mxu0 %v2995_v16  ;;  %2004 = vmatprep.mubr.bf16.mxu0 %v164_v46  ;;  %v166_v53 = vpack.c.bf16 %v45_v48, %v45_v48  ;;  %v3019_v56 = vld [vmem:[%s3949_s2 + $0x188] sm:$0xff]   ;;  %v3023_v60 = vld [vmem:[%s3949_s2 + $0x190] sm:$0xff]   ;;  %v3026_v62 = vld [vmem:[%s3949_s2 + $0x1d8] sm:$0xff]  }
  0x11   :  { %2724 = vmatpush3.bf16.msra.mxu1 %v2994_v15  ;;  %v3028_v63 = vld [vmem:[%s3949_s2 + $0x160] sm:$0xff]   ;;  %v3027_v0 = vld [vmem:[%s3949_s2 + $0x198] sm:$0xff]   ;;  %v3032_v3 = vld [vmem:[%s3949_s2 + $0x168] sm:$0xff]  }
  0x12   :  { %2725 = vmatprep.subr.bf16.mxu1 %v2997_v18  ;;  %2044 = vmatprep.mubr.bf16.mxu1 %v166_v53  ;;  %v3029_v1 = vld [vmem:[%s3949_s2 + $0x120] sm:$0xff]   ;;  %v3033_v6 = vld [vmem:[%s3949_s2 + $0x128] sm:$0xff]   ;;  %v3036_v8 = vld [vmem:[%s3949_s2 + $0x170] sm:$0xff]  }
  0x13   :  { %2704 = vmatpush3.bf16.msra.mxu0 %v2996_v17  ;;  %v3030_v2 = vld [vmem:[%s3949_s2 + $0x1e0] sm:$0xff]   ;;  %v3034_v7 = vld [vmem:[%s3949_s2 + $0x1e8] sm:$0xff]   ;;  %v3037_v11 = vld [vmem:[%s3949_s2 + $0x130] sm:$0xff]  }
  0x14   :  { %2705 = vmatprep.subr.bf16.mxu0 %v2999_v20  ;;  %v580_v4 = vld [vmem:[%s3951_s1] sm:$0xff]  ;;  %v3035_v9 = vld [vmem:[%s3949_s2 + $0x1a8] sm:$0xff]   ;;  %v3038_v12 = vld [vmem:[%s3949_s2 + $0x1f0] sm:$0xff]  }
  0x15   :  { %2726 = vmatpush3.bf16.msra.mxu1 %v2998_v19  ;;  %v3031_v5 = vld [vmem:[%s3949_s2 + $0x1a0] sm:$0xff]   ;;  %v587_v10 = vmul.f32 %v580_v4, %v3303_v37  ;;  %v3040_v13 = vld [vmem:[%s3949_s2 + $0x178] sm:$0xff]   ;;  %v3039_v14 = vld [vmem:[%s3949_s2 + $0x1b0] sm:$0xff]  }
  0x16   :  { %2727 = vmatprep.subr.bf16.mxu1 %v3001_v25  ;;  %v3041_v16 = vld [vmem:[%s3949_s2 + $0x138] sm:$0xff]   ;;  %v16_v17 = vld [vmem:[%s3950_s0 + $0x8] sm:$0xff]  ;;  %v3046_v29 = vld [vmem:[%s3949_s2 + $0x200] sm:$0xff]  }
  0x17   :  { %2706 = vmatpush3.bf16.msra.mxu0 %v3000_v24  ;;  %v608_v15 = vrot.slane %v587_v10, %v3292_v34  ;;  %v3042_v18 = vld [vmem:[%s3949_s2 + $0x1f8] sm:$0xff]   ;;  %v53_v19 = vrot.slane %v16_v17, %v3292_v34  ;;  %v46_v20 = vcombine.high %v16_v17, %v16_v17  ;;  %v3044_v24 = vld [vmem:[%s3949_s2 + $0x240] sm:$0xff]   ;;  %v3049_v38 = vld [vmem:[%s3949_s2 + $0x248] sm:$0xff]  }
  0x18   :  { %2707 = vmatprep.subr.bf16.mxu0 %v3003_v27  ;;  %v3043_v21 = vld [vmem:[%s3949_s2 + $0x1b8] sm:$0xff]   ;;  %v3050_v42 = vld [vmem:[%s3949_s2 + $0x208] sm:$0xff]   ;;  %v3053_v46 = vld [vmem:[%s3949_s2 + $0x250] sm:$0xff]  }
  0x19   :  { %2728 = vmatpush3.bf16.msra.mxu1 %v3002_v26  ;;  %v61_v22 = vcombine.high %v53_v19, %v53_v19  ;;  %v60_v25 = vrot.slane %v46_v20, %v3292_v34  ;;  %v601_v26 = vcombine.high %v587_v10, %v587_v10  ;;  %v616_v27 = vcombine.high %v608_v15, %v608_v15  ;;  %v3052_v44 = vld [vmem:[%s3949_s2 + $0x288] sm:$0xff]   ;;  %v3074_v20 = vld [vmem:[%s3949_s2 + $0x238] sm:$0xff]  }
  0x1a   :  { %2729 = vmatprep.subr.bf16.mxu1 %v3005_v31  ;;  %v167_v28 = vpack.c.bf16 %v53_v19, %v53_v19  ;;  %v736_v40 = vsel %vm735_vm0, %v608_v15, 0.0  ;;  %v3068_v10 = vld [vmem:[%s3949_s2 + $0x2a8] sm:$0xff]   ;;  %v3070_v15 = vld [vmem:[%s3949_s2 + $0x230] sm:$0xff]   ;;  %v3073_v19 = vld [vmem:[%s3949_s2 + $0x278] sm:$0xff]  }
  0x1b   :  { %2708 = vmatpush3.bf16.msra.mxu0 %v3004_v30  ;;  %v168_v30 = vpack.c.bf16 %v61_v22, %v61_v22  ;;  %v62_v31 = vcombine.high %v60_v25, %v60_v25  ;;  %v169_v37 = vpack.c.bf16 %v60_v25, %v60_v25  ;;  %v3075_v22 = vld [vmem:[%s3949_s2 + $0x2f8] sm:$0xff]  }
  0x1c   :  { %2709 = vmatprep.subr.bf16.mxu0 %v3007_v33  ;;  %v3048_v33 = vld [vmem:[%s3949_s2 + $0x280] sm:$0xff]   ;;  %v18_v25 = vld [vmem:[%s3950_s0 + $0x18] sm:$0xff] }
  0x1d   :  { %2730 = vmatpush3.bf16.msra.mxu1 %v3006_v32  ;;  %v3047_v32 = vld [vmem:[%s3949_s2 + $0x2c0] sm:$0xff]  }
  0x1e   :  { %2731 = vmatprep.subr.bf16.mxu1 %v3009_v36  ;;  %v170_v36 = vpack.c.bf16 %v62_v31, %v62_v31 }
  0x1f   :  { %2710 = vmatpush3.bf16.msra.mxu0 %v3008_v35  ;;  %v581_v35 = vld [vmem:[%s3951_s1 + $0x8] sm:$0xff] }
  0x20   :  { %2739 = vmatprep.subr.bf16.mxu0 %v3011_v41  ;;  %v737_v41 = vsel %vm735_vm0, %v616_v27, 0.0  ;;  %v582_v27 = vld [vmem:[%s3951_s1 + $0x10] sm:$0xff] }
  0x21   :  { %2732 = vmatpush3.bf16.msra.mxu1 %v3010_v39  ;;  %v615_v39 = vrot.slane %v601_v26, %v3292_v34 }
  0x22   :  { %2761 = vmatprep.subr.bf16.mxu1 %v3014_v45  ;;  %2005 = vmatmul.mubr.bf16.vlgmr.msra.gmra.mrb[0].mxu0 %v163_v43  ;;  %v3051_v43 = vld [vmem:[%s3949_s2 + $0x2c8] sm:$0xff]   ;;  %v738_v45 = vadd.f32 %v737_v41, %v736_v40  ;;  %v80_v40 = vcombine.high %v18_v25, %v18_v25 }
  0x23   :  { %2740 = vmatpush3.bf16.msra.mxu0 %v3013_v47  ;;  %2084 = vmatprep.mubr.bf16.mxu0 %v168_v30  ;;  %v617_v47 = vcombine.high %v615_v39, %v615_v39  ;;  %v739_v48 = vsel %vm735_vm0, %v615_v39, 0.0  ;;  %v3540_v30 = vrot.slane %v18_v25, %v3292_v34 }
  0x24   :  { %2741 = vmatprep.subr.bf16.mxu0 %v3016_v49  ;;  %2045 = vmatmul.mubr.bf16.vlgmr.msra.gmra.mrb[0].mxu1 %v165_v50  ;;  %v588_v49 = vmul.f32 %v581_v35, %v16_v17  ;;  %v3054_v50 = vld [vmem:[%s3949_s2 + $0x210] sm:$0xff]   ;;  %v740_v53 = vadd.f32 %v739_v48, %v738_v45  ;;  %v3076_v35 = vld [vmem:[%s3949_s2 + $0x2b8] sm:$0xff]   ;;  %v3080_v48 = vld [vmem:[%s3949_s2 + $0x3c0] sm:$0xff]  }
  0x25   :  { %2762 = vmatpush3.bf16.msra.mxu1 %v3015_v51  ;;  %2124 = vmatprep.mubr.bf16.mxu1 %v170_v36  ;;  %v3055_v51 = vld [vmem:[%s3949_s2 + $0x2d0] sm:$0xff]  }
  0x26   :  { %2763 = vmatprep.subr.bf16.mxu1 %v3018_v54  ;;  %v3057_v54 = vld [vmem:[%s3949_s2 + $0x258] sm:$0xff]   ;;  %v3072_v17 = vld [vmem:[%s3949_s2 + $0x2b0] sm:$0xff]  }
  0x27   :  { %2742 = vmatpush3.bf16.msra.mxu0 %v3017_v52  ;;  %v3056_v52 = vld [vmem:[%s3949_s2 + $0x290] sm:$0xff]  }
  0x28   :  { %2743 = vmatprep.subr.bf16.mxu0 %v3020_v55  ;;  %v741_v55 = vsel %vm735_vm0, %v617_v47, 0.0 }
  0x29   :  { %2764 = vmatpush3.bf16.msra.mxu1 %v3019_v56  ;;  %v625_v56 = vrot.slane %v588_v49, %v3292_v34 }
  0x2a   :  { %2765 = vmatprep.subr.bf16.mxu1 %v3022_v58  ;;  %v3059_v58 = vld [vmem:[%s3949_s2 + $0x2d8] sm:$0xff]  }
  0x2b   :  { %2744 = vmatpush3.bf16.msra.mxu0 %v3021_v57  ;;  %v3058_v57 = vld [vmem:[%s3949_s2 + $0x218] sm:$0xff]  }
  0x2c   :  { %2745 = vmatprep.subr.bf16.mxu0 %v3024_v59  ;;  %v3060_v59 = vld [vmem:[%s3949_s2 + $0x298] sm:$0xff]  }
  0x2d   :  { %2766 = vmatpush3.bf16.msra.mxu1 %v3023_v60  ;;  %v742_v60 = vadd.f32 %v741_v55, %v740_v53  ;;  %v3082_v55 = vld [vmem:[%s3949_s2 + $0x348] sm:$0xff]  }
  0x2e   :  { %2767 = vmatprep.subr.bf16.mxu1 %v3026_v62  ;;  %v618_v62 = vcombine.high %v588_v49, %v588_v49 }
  0x2f   :  { %2746 = vmatpush3.bf16.msra.mxu0 %v3025_v61  ;;  %v3061_v61 = vld [vmem:[%s3949_s2 + $0x260] sm:$0xff]  }
  0x30   :  { %2747 = vmatprep.subr.bf16.mxu0 %v3028_v63  ;;  %v633_v63 = vcombine.high %v625_v56, %v625_v56 }
  0x31   :  { %2768 = vmatpush3.bf16.msra.mxu1 %v3027_v0  ;;  %v743_v0 = vsel %vm735_vm0, %v625_v56, 0.0 }
  0x32   :  { %2769 = vmatprep.subr.bf16.mxu1 %v3030_v2  ;;  %v3063_v2 = vld [vmem:[%s3949_s2 + $0x2e0] sm:$0xff]   ;;  %v744_v4 = vadd.f32 %v743_v0, %v742_v60 }
  0x33   :  { %2748 = vmatpush3.bf16.msra.mxu0 %v3029_v1  ;;  %v3062_v1 = vld [vmem:[%s3949_s2 + $0x220] sm:$0xff]  }
  0x34   :  { %2749 = vmatprep.subr.bf16.mxu0 %v3032_v3  ;;  %v3064_v3 = vld [vmem:[%s3949_s2 + $0x2a0] sm:$0xff]  }
  0x35   :  { %2770 = vmatpush3.bf16.msra.mxu1 %v3031_v5  ;;  %v3065_v5 = vld [vmem:[%s3949_s2 + $0x268] sm:$0xff]  }
  0x36   :  { %2771 = vmatprep.subr.bf16.mxu1 %v3034_v7  ;;  %v745_v7 = vsel %vm735_vm0, %v633_v63, 0.0 }
  0x37   :  { %2750 = vmatpush3.bf16.msra.mxu0 %v3033_v6  ;;  %v632_v6 = vrot.slane %v618_v62, %v3292_v34  ;;  %v3084_v62 = vld [vmem:[%s3949_s2 + $0x3c8] sm:$0xff]  }
  0x38   :  { %2751 = vmatprep.subr.bf16.mxu0 %v3036_v8  ;;  %v3066_v8 = vld [vmem:[%s3949_s2 + $0x228] sm:$0xff]  }
  0x39   :  { %2772 = vmatpush3.bf16.msra.mxu1 %v3035_v9  ;;  %v3067_v9 = vld [vmem:[%s3949_s2 + $0x2e8] sm:$0xff]  }
  0x3a   :  { %2773 = vmatprep.subr.bf16.mxu1 %v3038_v12  ;;  %v3069_v12 = vld [vmem:[%s3949_s2 + $0x270] sm:$0xff]  }
  0x3b   :  { %2752 = vmatpush3.bf16.msra.mxu0 %v3037_v11  ;;  %v746_v11 = vadd.f32 %v745_v7, %v744_v4  ;;  %v3085_v7 = vld [vmem:[%s3949_s2 + $0x388] sm:$0xff]  }
  0x3c   :  { %2753 = vmatprep.subr.bf16.mxu0 %v3040_v13  ;;  %v634_v13 = vcombine.high %v632_v6, %v632_v6 }
  0x3d   :  { %2774 = vmatpush3.bf16.msra.mxu1 %v3039_v14  ;;  %v747_v14 = vsel %vm735_vm0, %v632_v6, 0.0 }
  0x3e   :  { %2775 = vmatprep.subr.bf16.mxu1 %v3042_v18  ;;  %v748_v18 = vadd.f32 %v747_v14, %v746_v11  ;;  %v585_v14 = vld [vmem:[%s3951_s1 + $0x28] sm:$0xff] }
  0x3f   :  { %2754 = vmatpush3.bf16.msra.mxu0 %v3041_v16  ;;  %v3071_v16 = vld [vmem:[%s3949_s2 + $0x2f0] sm:$0xff]  }
  0x40   :  { %2783 = vmatprep.subr.bf16.mxu0 %v3044_v24  ;;  %v17_v24 = vld [vmem:[%s3950_s0 + $0x10] sm:$0xff] }
  0x41   :  { %2776 = vmatpush3.bf16.msra.mxu1 %v3043_v21  ;;  %v749_v21 = vsel %vm735_vm0, %v634_v13, 0.0  ;;  %v70_v26 = vrot.slane %v17_v24, %v3292_v34  ;;  %v589_v31 = vmul.f32 %v582_v27, %v17_v24  ;;  %v3598_v13 = vld [vmem:[%s3950_s0 + $0x28] sm:$0xff] }
  0x42   :  { %2085 = vmatmul.mubr.bf16.vlgmr.msra.gmra.mrb[4].mxu0 %v167_v28  ;;  %2805 = vmatprep.subr.bf16.mxu1 %v3047_v32  ;;  %v583_v28 = vld [vmem:[%s3951_s1 + $0x18] sm:$0xff] }
  0x43   :  { %2784 = vmatpush3.bf16.msra.mxu0 %v3046_v29  ;;  %v63_v29 = vcombine.high %v17_v24, %v17_v24  ;;  %v590_v32 = vmul.f32 %v583_v28, %v18_v25  ;;  %v78_v36 = vcombine.high %v70_v26, %v70_v26  ;;  %v635_v41 = vcombine.high %v589_v31, %v589_v31  ;;  %v3088_v24 = vld [vmem:[%s3949_s2 + $0x3d0] sm:$0xff]   ;;  %v3090_v28 = vld [vmem:[%s3949_s2 + $0x358] sm:$0xff]  }
  0x44   :  { %2785 = vmatprep.subr.bf16.mxu0 %v3049_v38  ;;  %2125 = vmatmul.mubr.bf16.vlgmr.msra.gmra.mrb[4].mxu1 %v169_v37  ;;  %v171_v37 = vpack.c.bf16 %v70_v26, %v70_v26  ;;  %v3077_v38 = vld [vmem:[%s3949_s2 + $0x340] sm:$0xff]   ;;  %v3089_v26 = vld [vmem:[%s3949_s2 + $0x390] sm:$0xff]  }
  0x45   :  { %2806 = vmatpush3.bf16.msra.mxu1 %v3048_v33  ;;  %v750_v33 = vadd.f32 %v749_v21, %v748_v18  ;;  %v77_v39 = vrot.slane %v63_v29, %v3292_v34  ;;  %v172_v45 = vpack.c.bf16 %v78_v36, %v78_v36  ;;  %v652_v49 = vcombine.high %v590_v32, %v590_v32 }
  0x46   :  { %2807 = vmatprep.subr.bf16.mxu1 %v3051_v43  ;;  %v3079_v43 = vld [vmem:[%s3949_s2 + $0x300] sm:$0xff]   ;;  %v592_v29 = vmul.f32 %v585_v14, %v3598_v13 }
  0x47   :  { %2786 = vmatpush3.bf16.msra.mxu0 %v3050_v42  ;;  %v642_v42 = vrot.slane %v589_v31, %v3292_v34  ;;  %v79_v47 = vcombine.high %v77_v39, %v77_v39  ;;  %v173_v53 = vpack.c.bf16 %v77_v39, %v77_v39  ;;  %2164 = vmatprep.mubr.bf16.mxu0 %v172_v45  ;;  %v3094_v45 = vld [vmem:[%s3949_s2 + $0x360] sm:$0xff]  }
  0x48   :  { %2787 = vmatprep.subr.bf16.mxu0 %v3053_v46  ;;  %v659_v46 = vrot.slane %v590_v32, %v3292_v34  ;;  %v666_v0 = vrot.slane %v652_v49, %v3292_v34  ;;  %v3095_v49 = vld [vmem:[%s3949_s2 + $0x320] sm:$0xff]  }
  0x49   :  { %2808 = vmatpush3.bf16.msra.mxu1 %v3052_v44  ;;  %v95_v44 = vcombine.high %v3540_v30, %v3540_v30 }
  0x4a   :  { %2809 = vmatprep.subr.bf16.mxu1 %v3055_v51  ;;  %v650_v51 = vcombine.high %v642_v42, %v642_v42  ;;  %v667_v4 = vcombine.high %v659_v46, %v659_v46  ;;  %v763_v25 = vsel %vm735_vm0, %v666_v0, 0.0 }
  0x4b   :  { %2788 = vmatpush3.bf16.msra.mxu0 %v3054_v50  ;;  %v649_v50 = vrot.slane %v635_v41, %v3292_v34 }
  0x4c   :  { %2789 = vmatprep.subr.bf16.mxu0 %v3057_v54  ;;  %v3081_v54 = vld [vmem:[%s3949_s2 + $0x380] sm:$0xff]  }
  0x4d   :  { %2810 = vmatpush3.bf16.msra.mxu1 %v3056_v52  ;;  %v751_v52 = vsel %vm735_vm0, %v642_v42, 0.0  ;;  %v755_v60 = vsel %vm735_vm0, %v649_v50, 0.0  ;;  %v686_v42 = vcombine.high %v592_v29, %v592_v29 }
  0x4e   :  { %2811 = vmatprep.subr.bf16.mxu1 %v3059_v58  ;;  %v752_v56 = vadd.f32 %v751_v52, %v750_v33  ;;  %v651_v58 = vcombine.high %v649_v50, %v649_v50 }
  0x4f   :  { %2790 = vmatpush3.bf16.msra.mxu0 %v3058_v57  ;;  %v174_v57 = vpack.c.bf16 %v79_v47, %v79_v47  ;;  %v586_v47 = vld [vmem:[%s3951_s1 + $0x30] sm:$0x3] }
  0x50   :  { %2791 = vmatprep.subr.bf16.mxu0 %v3061_v61  ;;  %v3083_v61 = vld [vmem:[%s3949_s2 + $0x308] sm:$0xff]  }
  0x51   :  { %2812 = vmatpush3.bf16.msra.mxu1 %v3060_v59  ;;  %v753_v59 = vsel %vm735_vm0, %v650_v51, 0.0  ;;  %2204 = vmatprep.mubr.bf16.mxu1 %v174_v57  ;;  %v3096_v51 = vld [vmem:[%s3949_s2 + $0x3e0] sm:$0xff]   ;;  %v3098_v57 = vld [vmem:[%s3949_s2 + $0x368] sm:$0xff]  }
  0x52   :  { %2813 = vmatprep.subr.bf16.mxu1 %v3063_v2  ;;  %v754_v63 = vadd.f32 %v753_v59, %v752_v56  ;;  %v757_v2 = vsel %vm735_vm0, %v651_v58, 0.0  ;;  %v3099_v59 = vld [vmem:[%s3949_s2 + $0x328] sm:$0xff]  }
  0x53   :  { %2792 = vmatpush3.bf16.msra.mxu0 %v3062_v1  ;;  %v176_v1 = vpack.c.bf16 %v95_v44, %v95_v44 }
  0x54   :  { %2793 = vmatprep.subr.bf16.mxu0 %v3065_v5  ;;  %v3583_v5 = vrot.slane %v80_v40, %v3292_v34  ;;  %v756_v6 = vadd.f32 %v755_v60, %v754_v63  ;;  %v3093_v40 = vld [vmem:[%s3949_s2 + $0x398] sm:$0xff]  }
  0x55   :  { %2814 = vmatpush3.bf16.msra.mxu1 %v3064_v3  ;;  %v3580_v3 = vld [vmem:[%s3950_s0 + $0x20] sm:$0xff] }
  0x56   :  { %2815 = vmatprep.subr.bf16.mxu1 %v3067_v9  ;;  %v759_v9 = vsel %vm735_vm0, %v659_v46, 0.0  ;;  %v96_v11 = vcombine.high %v3583_v5, %v3583_v5  ;;  %v3642_v46 = vld [vmem:[%s3950_s0 + $0x30] sm:$0x3]  ;;  %v97_v63 = vcombine.high %v3580_v3, %v3580_v3 }
  0x57   :  { %2794 = vmatpush3.bf16.msra.mxu0 %v3066_v8  ;;  %v584_v8 = vld [vmem:[%s3951_s1 + $0x20] sm:$0xff]  ;;  %v593_v60 = vmul.f32 %v586_v47, %v3642_v46  ;;  %v3125_v47 = vld [vmem:[%s3949_s2 + $0x4d8] sm:$0xff]  }
  0x58   :  { %2795 = vmatprep.subr.bf16.mxu0 %v3069_v12  ;;  %v758_v12 = vadd.f32 %v757_v2, %v756_v6  ;;  %v178_v21 = vpack.c.bf16 %v96_v11, %v96_v11  ;;  %v3102_v6 = vld [vmem:[%s3949_s2 + $0x370] sm:$0xff]   ;;  %v3692_v14 = vrot.slane %v97_v63, %v3292_v34 }
  0x59   :  { %2816 = vmatpush3.bf16.msra.mxu1 %v3068_v10  ;;  %v591_v10 = vmul.f32 %v584_v8, %v3580_v3  ;;  %v3103_v8 = vld [vmem:[%s3949_s2 + $0x330] sm:$0xff]  }
  0x5a   :  { %2817 = vmatprep.subr.bf16.mxu1 %v3071_v16  ;;  %v3086_v16 = vld [vmem:[%s3949_s2 + $0x350] sm:$0xff]  }
  0x5b   :  { %2796 = vmatpush3.bf16.msra.mxu0 %v3070_v15  ;;  %v668_v15 = vcombine.high %v666_v0, %v666_v0  ;;  %v676_v18 = vrot.slane %v591_v10, %v3292_v34 }
  0x5c   :  { %2797 = vmatprep.subr.bf16.mxu0 %v3073_v19  ;;  %v761_v19 = vsel %vm735_vm0, %v667_v4, 0.0 }
  0x5d   :  { %2818 = vmatpush3.bf16.msra.mxu1 %v3072_v17  ;;  %v669_v17 = vcombine.high %v591_v10, %v591_v10  ;;  %v684_v32 = vcombine.high %v676_v18, %v676_v18  ;;  %v765_v33 = vsel %vm735_vm0, %v668_v15, 0.0  ;;  %v709_v10 = vrot.slane %v593_v60, %v3292_v34  ;;  %v3136_v60 = vld [vmem:[%s3949_s2 + $0x430] sm:$0xff]  }
  0x5e   :  { %2819 = vmatprep.subr.bf16.mxu1 %v3075_v22  ;;  %v760_v22 = vadd.f32 %v759_v9, %v758_v12  ;;  %v3684_v9 = vrot.slane %v3580_v3, %v3292_v34  ;;  %v3104_v12 = vld [vmem:[%s3949_s2 + $0x3f0] sm:$0xff]  }
  0x5f   :  { %2798 = vmatpush3.bf16.msra.mxu0 %v3074_v20  ;;  %v3087_v20 = vld [vmem:[%s3949_s2 + $0x310] sm:$0xff]   ;;  %v683_v31 = vrot.slane %v669_v17, %v3292_v34  ;;  %v769_v44 = vsel %vm735_vm0, %v684_v32, 0.0  ;;  %v3106_v17 = vld [vmem:[%s3949_s2 + $0x378] sm:$0xff]  }
  0x60   :  { %2827 = vmatprep.subr.bf16.mxu0 %v3077_v38  ;;  %v762_v27 = vadd.f32 %v761_v19, %v760_v22  ;;  %v3092_v38 = vld [vmem:[%s3949_s2 + $0x3d8] sm:$0xff]   ;;  %v3105_v3 = vld [vmem:[%s3949_s2 + $0x3b0] sm:$0xff]  }
  0x61   :  { %2820 = vmatpush3.bf16.msra.mxu1 %v3076_v35  ;;  %v3091_v35 = vld [vmem:[%s3949_s2 + $0x318] sm:$0xff]   ;;  %v685_v41 = vcombine.high %v683_v31, %v683_v31  ;;  %v771_v50 = vsel %vm735_vm0, %v683_v31, 0.0 }
  0x62   :  { %2165 = vmatmul.mubr.bf16.vlgmr.msra.gmra.mrb[8].mxu0 %v171_v37  ;;  %2849 = vmatprep.subr.bf16.mxu1 %v3080_v48  ;;  %v764_v36 = vadd.f32 %v763_v25, %v762_v27  ;;  %v767_v37 = vsel %vm735_vm0, %v676_v18, 0.0  ;;  %v3107_v19 = vld [vmem:[%s3949_s2 + $0x338] sm:$0xff]   ;;  %v113_v25 = vcombine.high %v3692_v14, %v3692_v14 }
  0x63   :  { %2828 = vmatpush3.bf16.msra.mxu0 %v3079_v43  ;;  %2244 = vmatprep.mubr.bf16.mxu0 %v176_v1  ;;  %v693_v43 = vrot.slane %v592_v29, %v3292_v34  ;;  %v773_v56 = vsel %vm735_vm0, %v685_v41, 0.0  ;;  %v3101_v1 = vld [vmem:[%s3949_s2 + $0x3a8] sm:$0xff]   ;;  %v3108_v22 = vld [vmem:[%s3949_s2 + $0x3f8] sm:$0xff]   ;;  %v177_v29 = vpack.c.bf16 %v3583_v5, %v3583_v5  ;;  %v3114_v5 = vld [vmem:[%s3949_s2 + $0x480] sm:$0xff]  }
  0x64   :  { %2205 = vmatmul.mubr.bf16.vlgmr.msra.gmra.mrb[8].mxu1 %v173_v53  ;;  %2829 = vmatprep.subr.bf16.mxu0 %v3082_v55  ;;  %v766_v39 = vadd.f32 %v765_v33, %v764_v36  ;;  %v3097_v53 = vld [vmem:[%s3949_s2 + $0x3a0] sm:$0xff]   ;;  %v3109_v27 = vld [vmem:[%s3949_s2 + $0x3b8] sm:$0xff]   ;;  %v3115_v36 = vld [vmem:[%s3949_s2 + $0x448] sm:$0xff]  }
  0x65   :  { %2850 = vmatpush3.bf16.msra.mxu1 %v3081_v54  ;;  %2284 = vmatprep.mubr.bf16.mxu1 %v178_v21  ;;  %v700_v54 = vrot.slane %v686_v42, %v3292_v34  ;;  %v701_v55 = vcombine.high %v693_v43, %v693_v43  ;;  %v784_v21 = vsel %vm783_vm1, %v709_v10, 0.0  ;;  %v3113_v33 = vld [vmem:[%s3949_s2 + $0x4c0] sm:$0xff]   ;;  %v3120_v41 = vld [vmem:[%s3949_s2 + $0x410] sm:$0xff]  }
  0x66   :  { %2851 = vmatprep.subr.bf16.mxu1 %v3084_v62  ;;  %v768_v48 = vadd.f32 %v767_v37, %v766_v39  ;;  %v3100_v62 = vld [vmem:[%s3949_s2 + $0x3e8] sm:$0xff]   ;;  %v3121_v42 = vld [vmem:[%s3949_s2 + $0x4d0] sm:$0xff]   ;;  %v3143_v10 = vld [vmem:[%s3949_s2 + $0x540] sm:$0xff]  }
  0x67   :  { %2830 = vmatpush3.bf16.msra.mxu0 %v3083_v61  ;;  %v775_v61 = vsel %vm735_vm0, %v693_v43, 0.0  ;;  %v702_v2 = vcombine.high %v700_v54, %v700_v54  ;;  %v777_v4 = vsel %vm735_vm0, %v701_v55, 0.0  ;;  %v779_v11 = vsel %vm735_vm0, %v700_v54, 0.0  ;;  %v3116_v37 = vld [vmem:[%s3949_s2 + $0x408] sm:$0xff]   ;;  %v3122_v43 = vld [vmem:[%s3949_s2 + $0x490] sm:$0xff]  }
  0x68   :  { %2831 = vmatprep.subr.bf16.mxu0 %v3086_v16  ;;  %v770_v52 = vadd.f32 %v769_v44, %v768_v48  ;;  %v3118_v39 = vld [vmem:[%s3949_s2 + $0x488] sm:$0xff]   ;;  %v3123_v44 = vld [vmem:[%s3949_s2 + $0x458] sm:$0xff]   ;;  %v114_v55 = vcombine.high %v3598_v13, %v3598_v13 }
  0x69   :  { %2852 = vmatpush3.bf16.msra.mxu1 %v3085_v7  ;;  %v781_v16 = vsel %vm735_vm0, %v702_v2, 0.0  ;;  %v3126_v48 = vld [vmem:[%s3949_s2 + $0x498] sm:$0xff]   ;;  %v3132_v54 = vld [vmem:[%s3949_s2 + $0x428] sm:$0xff]  }
  0x6a   :  { %2853 = vmatprep.subr.bf16.mxu1 %v3088_v24  ;;  %v772_v58 = vadd.f32 %v771_v50, %v770_v52  ;;  %v175_v24 = vpack.c.bf16 %v3540_v30, %v3540_v30  ;;  %v3112_v30 = vld [vmem:[%s3949_s2 + $0x400] sm:$0xff]  }
  0x6b   :  { %2832 = vmatpush3.bf16.msra.mxu0 %v3087_v20  ;;  %v112_v20 = vcombine.high %v3684_v9, %v3684_v9  ;;  %v3128_v50 = vld [vmem:[%s3949_s2 + $0x420] sm:$0xff]  }
  0x6c   :  { %2833 = vmatprep.subr.bf16.mxu0 %v3090_v28  ;;  %v774_v0 = vadd.f32 %v773_v56, %v772_v58  ;;  %v3110_v28 = vld [vmem:[%s3949_s2 + $0x440] sm:$0xff]   ;;  %v3133_v56 = vld [vmem:[%s3949_s2 + $0x4e8] sm:$0xff]   ;;  %v3794_v58 = vrot.slane %v3598_v13, %v3292_v34  ;;  %v3138_v13 = vld [vmem:[%s3949_s2 + $0x4b0] sm:$0xff]  }
  0x6d   :  { %2854 = vmatpush3.bf16.msra.mxu1 %v3089_v26  ;;  %v180_v32 = vpack.c.bf16 %v112_v20, %v112_v20  ;;  %v3130_v52 = vld [vmem:[%s3949_s2 + $0x4a0] sm:$0xff]   ;;  %v3153_v20 = vld [vmem:[%s3949_s2 + $0x510] sm:$0xff]  }
  0x6e   :  { %2855 = vmatprep.subr.bf16.mxu1 %v3092_v38  ;;  %v776_v7 = vadd.f32 %v775_v61, %v774_v0  ;;  %v3117_v38 = vld [vmem:[%s3949_s2 + $0x4c8] sm:$0xff]   ;;  %v3803_v61 = vrot.slane %v114_v55, %v3292_v34  ;;  %v129_v63 = vcombine.high %v3794_v58, %v3794_v58  ;;  %v3139_v0 = vld [vmem:[%s3949_s2 + $0x478] sm:$0xff]  }
  0x6f   :  { %2834 = vmatpush3.bf16.msra.mxu0 %v3091_v35  ;;  %v182_v35 = vpack.c.bf16 %v113_v25, %v113_v25  ;;  %v3157_v25 = vld [vmem:[%s3949_s2 + $0x518] sm:$0xff]  }
  0x70   :  { %2835 = vmatprep.subr.bf16.mxu0 %v3094_v45  ;;  %v778_v15 = vadd.f32 %v777_v4, %v776_v7  ;;  %v3124_v45 = vld [vmem:[%s3949_s2 + $0x418] sm:$0xff]   ;;  %v130_v2 = vcombine.high %v3803_v61, %v3803_v61 }
  0x71   :  { %2856 = vmatpush3.bf16.msra.mxu1 %v3093_v40  ;;  %v3119_v40 = vld [vmem:[%s3949_s2 + $0x450] sm:$0xff]   ;;  %v3141_v4 = vld [vmem:[%s3949_s2 + $0x4f8] sm:$0xff]  }
  0x72   :  { %2857 = vmatprep.subr.bf16.mxu1 %v3096_v51  ;;  %v780_v18 = vadd.f32 %v779_v11, %v778_v15  ;;  %v3129_v51 = vld [vmem:[%s3949_s2 + $0x4e0] sm:$0xff]   ;;  %v3142_v7 = vld [vmem:[%s3949_s2 + $0x4b8] sm:$0xff]   ;;  %v181_v11 = vpack.c.bf16 %v3692_v14, %v3692_v14  ;;  %v3148_v14 = vld [vmem:[%s3949_s2 + $0x548] sm:$0xff]  }
  0x73   :  { %2836 = vmatpush3.bf16.msra.mxu0 %v3095_v49  ;;  %v3127_v49 = vld [vmem:[%s3949_s2 + $0x460] sm:$0xff]  }
  0x74   :  { %2837 = vmatprep.subr.bf16.mxu0 %v3098_v57  ;;  %v782_v26 = vadd.f32 %v781_v16, %v780_v18  ;;  %v3134_v57 = vld [vmem:[%s3949_s2 + $0x4a8] sm:$0xff]   ;;  %v3146_v15 = vld [vmem:[%s3949_s2 + $0x5c0] sm:$0xff]  }
  0x75   :  { %2858 = vmatpush3.bf16.msra.mxu1 %v3097_v53  ;;  %v3131_v53 = vld [vmem:[%s3949_s2 + $0x468] sm:$0xff]  }
  0x76   :  { %2859 = vmatprep.subr.bf16.mxu1 %v3100_v62  ;;  %v785_v31 = vadd.f32 %v784_v21, %v782_v26  ;;  %v3137_v62 = vld [vmem:[%s3949_s2 + $0x4f0] sm:$0xff]   ;;  %v3149_v16 = vld [vmem:[%s3949_s2 + $0x508] sm:$0xff]   ;;  %v3158_v26 = vld [vmem:[%s3949_s2 + $0x5d8] sm:$0xff]  }
  0x77   :  { %2838 = vmatpush3.bf16.msra.mxu0 %v3099_v59  ;;  %v3135_v59 = vld [vmem:[%s3949_s2 + $0x470] sm:$0xff]   ;;  %v3151_v18 = vld [vmem:[%s3949_s2 + $0x588] sm:$0xff]  }
  0x78   :  { %2839 = vmatprep.subr.bf16.mxu0 %v3102_v6  ;;  %786 = vadd.xlane.f32.xlu0 %v785_v31  ;;  %v179_v6 = vpack.c.bf16 %v3684_v9, %v3684_v9  ;;  %v186_v9 = vpack.c.bf16 %v130_v2, %v130_v2  ;;  %v3154_v21 = vld [vmem:[%s3949_s2 + $0x5d0] sm:$0xff]   ;;  %v3162_v31 = vld [vmem:[%s3949_s2 + $0x5e0] sm:$0xff]  }
  0x79   :  { %2860 = vmatpush3.bf16.msra.mxu1 %v3101_v1  ;;  %v3140_v1 = vld [vmem:[%s3949_s2 + $0x438] sm:$0xff]  }
  0x7a   :  { %2861 = vmatprep.subr.bf16.mxu1 %v3104_v12  ;;  %v3145_v12 = vld [vmem:[%s3949_s2 + $0x500] sm:$0xff]  }
  0x7b   :  { %2840 = vmatpush3.bf16.msra.mxu0 %v3103_v8  ;;  %v184_v8 = vpack.c.bf16 %v129_v63, %v129_v63 }
  0x7c   :  { %2841 = vmatprep.subr.bf16.mxu0 %v3106_v17  ;;  %v3150_v17 = vld [vmem:[%s3949_s2 + $0x5c8] sm:$0xff]  }
  0x7d   :  { %2862 = vmatpush3.bf16.msra.mxu1 %v3105_v3  ;;  %v3147_v3 = vld [vmem:[%s3949_s2 + $0x580] sm:$0xff]  }
  0x7e   :  { %2863 = vmatprep.subr.bf16.mxu1 %v3108_v22  ;;  %v3155_v22 = vld [vmem:[%s3949_s2 + $0x590] sm:$0xff]  }
  0x7f   :  { %2842 = vmatpush3.bf16.msra.mxu0 %v3107_v19  ;;  %v3152_v19 = vld [vmem:[%s3949_s2 + $0x550] sm:$0xff]  }
  0x80   :  { %2871 = vmatprep.subr.bf16.mxu0 %v3110_v28  ;;  %v3160_v28 = vld [vmem:[%s3949_s2 + $0x560] sm:$0xff]  }
  0x81   :  { %2864 = vmatpush3.bf16.msra.mxu1 %v3109_v27  ;;  %v3159_v27 = vld [vmem:[%s3949_s2 + $0x598] sm:$0xff]  }
  0x82   :  { %2245 = vmatmul.mubr.bf16.vlgmr.msra.gmra.mrb[12].mxu0 %v175_v24  ;;  %2893 = vmatprep.subr.bf16.mxu1 %v3113_v33  ;;  %v3156_v24 = vld [vmem:[%s3949_s2 + $0x558] sm:$0xff]   ;;  %v3165_v33 = vld [vmem:[%s3949_s2 + $0x528] sm:$0xff]  }
  0x83   :  { %2872 = vmatpush3.bf16.msra.mxu0 %v3112_v30  ;;  %2324 = vmatprep.mubr.bf16.mxu0 %v180_v32  ;;  %v3163_v30 = vld [vmem:[%s3949_s2 + $0x5a0] sm:$0xff]   ;;  %v3164_v32 = vld [vmem:[%s3949_s2 + $0x568] sm:$0xff]  }
  0x84   :  { %2285 = vmatmul.mubr.bf16.vlgmr.msra.gmra.mrb[12].mxu1 %v177_v29  ;;  %2873 = vmatprep.subr.bf16.mxu0 %v3115_v36  ;;  %v3161_v29 = vld [vmem:[%s3949_s2 + $0x520] sm:$0xff]   ;;  %v3168_v36 = vld [vmem:[%s3949_s2 + $0x570] sm:$0xff]  }
  0x85   :  { %2894 = vmatpush3.bf16.msra.mxu1 %v3114_v5  ;;  %2364 = vmatprep.mubr.bf16.mxu1 %v182_v35  ;;  %v3166_v35 = vld [vmem:[%s3949_s2 + $0x5e8] sm:$0xff]  }
  0x86   :  { %2895 = vmatprep.subr.bf16.mxu1 %v3117_v38  ;;  %v3167_v5 = vld [vmem:[%s3949_s2 + $0x5a8] sm:$0xff]   ;;  %v3170_v38 = vld [vmem:[%s3949_s2 + $0x5f0] sm:$0xff]  }
  0x87   :  { %2874 = vmatpush3.bf16.msra.mxu0 %v3116_v37  ;;  %v3169_v37 = vld [vmem:[%s3949_s2 + $0x530] sm:$0xff]  }
  0x88   :  { %2875 = vmatprep.subr.bf16.mxu0 %v3119_v40  ;;  %v3172_v40 = vld [vmem:[%s3949_s2 + $0x578] sm:$0xff]  }
  0x89   :  { %2896 = vmatpush3.bf16.msra.mxu1 %v3118_v39  ;;  %v3171_v39 = vld [vmem:[%s3949_s2 + $0x5b0] sm:$0xff]  }
  0x8a   :  { %2897 = vmatprep.subr.bf16.mxu1 %v3121_v42  ;;  %v3174_v42 = vld [vmem:[%s3949_s2 + $0x5f8] sm:$0xff]  }
  0x8b   :  { %2876 = vmatpush3.bf16.msra.mxu0 %v3120_v41  ;;  %v3173_v41 = vld [vmem:[%s3949_s2 + $0x538] sm:$0xff]  }
  0x8c   :  { %2877 = vmatprep.subr.bf16.mxu0 %v3123_v44  ;;  %v3175_v44 = vld [vmem:[%s3949_s2 + $0x5b8] sm:$0xff]  }
  0x8d   :  { %2898 = vmatpush3.bf16.msra.mxu1 %v3122_v43  ;;  %v183_v43 = vpack.c.bf16 %v3794_v58, %v3794_v58 }
  0x8e   :  { %2899 = vmatprep.subr.bf16.mxu1 %v3125_v47  ;;  %v3177_v47 = vld [vmem:[%s3949_s2 + $0x600] sm:$0xff]  }
  0x8f   :  { %2878 = vmatpush3.bf16.msra.mxu0 %v3124_v45  ;;  %v3182_v45 = vmov 0.0  }
  0x90   :  { %2879 = vmatprep.subr.bf16.mxu0 %v3127_v49  ;;  %v3178_v49 = vld [vmem:[%s3949_s2 + $0x608] sm:$0xff]  }
  0x91   :  { %2900 = vmatpush3.bf16.msra.mxu1 %v3126_v48  ;;  %v185_v48 = vpack.c.bf16 %v3803_v61, %v3803_v61 }
  0x92   :  { %2901 = vmatprep.subr.bf16.mxu1 %v3129_v51  ;;  %v137_v51 = vrot.slane %v3642_v46, %v3292_v34  ;;  %v789_v46 = vand.u32 127, %v33_v23 }
  0x93   :  { %2880 = vmatpush3.bf16.msra.mxu0 %v3128_v50  ;;  %v3179_v50 = vld [vmem:[%s3949_s2 + $0x610] sm:$0xff]  }
  0x94   :  { %2881 = vmatprep.subr.bf16.mxu0 %v3131_v53  ;;  %v187_v53 = vpack.c.bf16 %v137_v51, %v137_v51  ;;  %vm790_vm4 = vcmp.eq.s32.totalorder %v789_v46, 0 }
  0x95   :  { %2902 = vmatpush3.bf16.msra.mxu1 %v3130_v52  ;;  %v3180_v52 = vld [vmem:[%s3949_s2 + $0x618] sm:$0xff]  }
  0x96   :  { %2903 = vmatprep.subr.bf16.mxu1 %v3133_v56 }
  0x97   :  { %2882 = vmatpush3.bf16.msra.mxu0 %v3132_v54 }
  0x98   :  { %2883 = vmatprep.subr.bf16.mxu0 %v3135_v59 }
  0x99   :  { %2904 = vmatpush3.bf16.msra.mxu1 %v3134_v57 }
  0x9a   :  { %2905 = vmatprep.subr.bf16.mxu1 %v3137_v62 }
  0x9b   :  { %2884 = vmatpush3.bf16.msra.mxu0 %v3136_v60 }
  0x9c   :  { %2885 = vmatprep.subr.bf16.mxu0 %v3139_v0 }
  0x9d   :  { %2906 = vmatpush3.bf16.msra.mxu1 %v3138_v13 }
  0x9e   :  { %2907 = vmatprep.subr.bf16.mxu1 %v3141_v4 }
  0x9f   :  { %2886 = vmatpush3.bf16.msra.mxu0 %v3140_v1 }
  0xa0   :  { %2915 = vmatprep.subr.bf16.mxu0 %v3143_v10 }
  0xa1   :  { %2908 = vmatpush3.bf16.msra.mxu1 %v3142_v7 }
  0xa2   :  { %2325 = vmatmul.mubr.bf16.vlgmr.msra.gmra.mrb[16].mxu0 %v179_v6  ;;  %2937 = vmatprep.subr.bf16.mxu1 %v3146_v15 }
  0xa3   :  { %2916 = vmatpush3.bf16.msra.mxu0 %v3145_v12  ;;  %2404 = vmatprep.mubr.bf16.mxu0 %v184_v8 }
  0xa4   :  { %2365 = vmatmul.mubr.bf16.vlgmr.msra.gmra.mrb[16].mxu1 %v181_v11  ;;  %2917 = vmatprep.subr.bf16.mxu0 %v3148_v14 }
  0xa5   :  { %2938 = vmatpush3.bf16.msra.mxu1 %v3147_v3  ;;  %2444 = vmatprep.mubr.bf16.mxu1 %v186_v9 }
  0xa6   :  { %2939 = vmatprep.subr.bf16.mxu1 %v3150_v17 }
  0xa7   :  { %2918 = vmatpush3.bf16.msra.mxu0 %v3149_v16 }
  0xa8   :  { %2919 = vmatprep.subr.bf16.mxu0 %v3152_v19 }
  0xa9   :  { %2940 = vmatpush3.bf16.msra.mxu1 %v3151_v18 }
  0xaa   :  { %2941 = vmatprep.subr.bf16.mxu1 %v3154_v21 }
  0xab   :  { %2920 = vmatpush3.bf16.msra.mxu0 %v3153_v20 }
  0xac   :  { %2921 = vmatprep.subr.bf16.mxu0 %v3156_v24 }
  0xad   :  { %2942 = vmatpush3.bf16.msra.mxu1 %v3155_v22 }
  0xae   :  { %2943 = vmatprep.subr.bf16.mxu1 %v3158_v26 }
  0xaf   :  { %2922 = vmatpush3.bf16.msra.mxu0 %v3157_v25 }
  0xb0   :  { %2923 = vmatprep.subr.bf16.mxu0 %v3160_v28 }
  0xb1   :  { %2944 = vmatpush3.bf16.msra.mxu1 %v3159_v27 }
  0xb2   :  { %2945 = vmatprep.subr.bf16.mxu1 %v3162_v31 }
  0xb3   :  { %2924 = vmatpush3.bf16.msra.mxu0 %v3161_v29 }
  0xb4   :  { %2925 = vmatprep.subr.bf16.mxu0 %v3164_v32 }
  0xb5   :  { %2946 = vmatpush3.bf16.msra.mxu1 %v3163_v30 }
  0xb6   :  { %2947 = vmatprep.subr.bf16.mxu1 %v3166_v35 }
  0xb7   :  { %2926 = vmatpush3.bf16.msra.mxu0 %v3165_v33 }
  0xb8   :  { %2927 = vmatprep.subr.bf16.mxu0 %v3168_v36 }
  0xb9   :  { %2948 = vmatpush3.bf16.msra.mxu1 %v3167_v5 }
  0xba   :  { %2949 = vmatprep.subr.bf16.mxu1 %v3170_v38 }
  0xbb   :  { %2928 = vmatpush3.bf16.msra.mxu0 %v3169_v37 }
  0xbc   :  { %2929 = vmatprep.subr.bf16.mxu0 %v3172_v40 }
  0xbd   :  { %2950 = vmatpush3.bf16.msra.mxu1 %v3171_v39 }
  0xbe   :  { %2951 = vmatprep.subr.bf16.mxu1 %v3174_v42 }
  0xbf   :  { %2930 = vmatpush3.bf16.msra.mxu0 %v3173_v41 }
  0xc0   :  { %2964 = vmatprep.subr.bf16.mxu0 %v3182_v45 }
  0xc1   :  { %2952 = vmatpush3.bf16.msra.mxu1 %v3175_v44 }
  0xc2   :  { %2405 = vmatmul.mubr.bf16.vlgmr.msra.gmra.mrb[20].mxu0 %v183_v43 }
  0xc3   :  { %2965 = vmatpush3.bf16.msra.mxu0 %v3177_v47  ;;  %2972 = vmatprep.mubr.msk.bf16.mxu0 %vm3183_vm2, %v3182_v45 }
  0xc4   :  { %2445 = vmatmul.mubr.bf16.vlgmr.msra.gmra.mrb[20].mxu1 %v185_v48  ;;  %2966 = vmatprep.subr.bf16.mxu0 %v3182_v45 }
  0xc7   :  { %2967 = vmatpush3.bf16.msra.mxu0 %v3178_v49 }
  0xc8   :  { %2968 = vmatprep.subr.bf16.mxu0 %v3182_v45 }
  0xcb   :  { %2969 = vmatpush3.bf16.msra.mxu0 %v3179_v50 }
  0xcc   :  { %2970 = vmatprep.subr.bf16.mxu0 %v3182_v45 }
  0xcf   :  { %2971 = vmatpush3.bf16.msra.mxu0 %v3180_v52 }
  0xd2   :  { %2973 = vmatmul.mubr.msk.bf16.vlgmr.msra.gmra.mrb[24].mxu0 %vm1968_vm3, %v187_v53 }
  0xf5   :  { %v2711_v54 = vpop.f32.mrb[0].mxu0 }
  0xf6   :  { %v2712_v55 = vpop.f32.mrb[1].mxu0 }
  0xf7   :  { %v2713_v56 = vadd.f32 %v2712_v55, %v2711_v54  ;;  %v2714_v57 = vpop.f32.mrb[2].mxu0  ;;  %v2733_v58 = vpop.f32.mrb[0].mxu1 }
  0xf8   :  { %v2715_v59 = vpop.f32.mrb[3].mxu0  ;;  %v2734_v60 = vpop.f32.mrb[1].mxu1 }
  0xf9   :  { %v2735_v61 = vadd.f32 %v2734_v60, %v2733_v58  ;;  %v2736_v62 = vpop.f32.mrb[2].mxu1 }
  0xfa   :  { %v2737_v34 = vpop.f32.mrb[3].mxu1 }
 0x105   :  { %v787_v13 = vpop.xlane.xlu0 %786 }
 0x106   :  { %v791_v63 = vsel %vm790_vm4, %v787_v13, 0.0 }
 0x107   :  { %v2007_v0 = vadd.f32 %v2713_v56, %v791_v63 }
 0x109   :  { %v2047_v1 = vadd.f32 %v2735_v61, %v2007_v0 }
 0x115   :  { %v2755_v2 = vpop.f32.mrb[4].mxu0 }
 0x116   :  { %v2756_v4 = vpop.f32.mrb[5].mxu0 }
 0x117   :  { %v2757_v6 = vadd.f32 %v2756_v4, %v2755_v2  ;;  %v2758_v7 = vpop.f32.mrb[6].mxu0  ;;  %v2777_v8 = vpop.f32.mrb[4].mxu1 }
 0x118   :  { %v2759_v10 = vpop.f32.mrb[7].mxu0  ;;  %v2778_v12 = vpop.f32.mrb[5].mxu1 }
 0x119   :  { %v2087_v11 = vadd.f32 %v2757_v6, %v2047_v1  ;;  %v2779_v9 = vadd.f32 %v2778_v12, %v2777_v8  ;;  %v2780_v15 = vpop.f32.mrb[6].mxu1 }
 0x11a   :  { %v2781_v3 = vpop.f32.mrb[7].mxu1 }
 0x11b   :  { %v2127_v14 = vadd.f32 %v2779_v9, %v2087_v11 }
 0x135   :  { %v2799_v16 = vpop.f32.mrb[8].mxu0 }
 0x136   :  { %v2800_v17 = vpop.f32.mrb[9].mxu0 }
 0x137   :  { %v2801_v23 = vadd.f32 %v2800_v17, %v2799_v16  ;;  %v2802_v18 = vpop.f32.mrb[10].mxu0  ;;  %v2821_v19 = vpop.f32.mrb[8].mxu1 }
 0x138   :  { %v2803_v20 = vpop.f32.mrb[11].mxu0  ;;  %v2822_v21 = vpop.f32.mrb[9].mxu1 }
 0x139   :  { %v2167_v22 = vadd.f32 %v2801_v23, %v2127_v14  ;;  %v2823_v24 = vadd.f32 %v2822_v21, %v2821_v19  ;;  %v2824_v25 = vpop.f32.mrb[10].mxu1 }
 0x13a   :  { %v2825_v26 = vpop.f32.mrb[11].mxu1 }
 0x13b   :  { %v2207_v27 = vadd.f32 %v2823_v24, %v2167_v22 }
 0x155   :  { %v2843_v28 = vpop.f32.mrb[12].mxu0 }
 0x156   :  { %v2844_v29 = vpop.f32.mrb[13].mxu0 }
 0x157   :  { %v2845_v31 = vadd.f32 %v2844_v29, %v2843_v28  ;;  %v2846_v30 = vpop.f32.mrb[14].mxu0  ;;  %v2865_v32 = vpop.f32.mrb[12].mxu1 }
 0x158   :  { %v2847_v33 = vpop.f32.mrb[15].mxu0  ;;  %v2866_v35 = vpop.f32.mrb[13].mxu1 }
 0x159   :  { %v2247_v5 = vadd.f32 %v2845_v31, %v2207_v27  ;;  %v2867_v36 = vadd.f32 %v2866_v35, %v2865_v32  ;;  %v2868_v37 = vpop.f32.mrb[14].mxu1 }
 0x15a   :  { %v2869_v38 = vpop.f32.mrb[15].mxu1 }
 0x15b   :  { %v2287_v39 = vadd.f32 %v2867_v36, %v2247_v5 }
 0x175   :  { %v2887_v40 = vpop.f32.mrb[16].mxu0 }
 0x176   :  { %v2888_v41 = vpop.f32.mrb[17].mxu0 }
 0x177   :  { %v2889_v42 = vadd.f32 %v2888_v41, %v2887_v40  ;;  %v2890_v43 = vpop.f32.mrb[18].mxu0  ;;  %v2909_v44 = vpop.f32.mrb[16].mxu1 }
 0x178   :  { %v2891_v45 = vpop.f32.mrb[19].mxu0  ;;  %v2910_v47 = vpop.f32.mrb[17].mxu1 }
 0x179   :  { %v2327_v48 = vadd.f32 %v2889_v42, %v2287_v39  ;;  %v2911_v49 = vadd.f32 %v2910_v47, %v2909_v44  ;;  %v2912_v50 = vpop.f32.mrb[18].mxu1 }
 0x17a   :  { %v2913_v51 = vpop.f32.mrb[19].mxu1 }
 0x17b   :  { %v2367_v52 = vadd.f32 %v2911_v49, %v2327_v48 }
 0x195   :  { %v2931_v53 = vpop.f32.mrb[20].mxu0 }
 0x196   :  { %v2932_v54 = vpop.f32.mrb[21].mxu0 }
 0x197   :  { %v2933_v55 = vadd.f32 %v2932_v54, %v2931_v53  ;;  %v2934_v56 = vpop.f32.mrb[22].mxu0  ;;  %v2953_v57 = vpop.f32.mrb[20].mxu1 }
 0x198   :  { %v2935_v58 = vpop.f32.mrb[23].mxu0  ;;  %v2954_v59 = vpop.f32.mrb[21].mxu1 }
 0x199   :  { %v2407_v60 = vadd.f32 %v2933_v55, %v2367_v52  ;;  %v2955_v61 = vadd.f32 %v2954_v59, %v2953_v57  ;;  %v2956_v62 = vpop.f32.mrb[22].mxu1 }
 0x19a   :  { %v2957_v34 = vpop.f32.mrb[23].mxu1 }
 0x19b   :  { %v2447_v46 = vadd.f32 %v2955_v61, %v2407_v60 }
 0x1a5   :  { %v2486_v13 = vpop.f32.mrb[24].mxu0 }
 0x1a6   :  { %v2487_v63 = vadd.f32 %v2486_v13, %v2447_v46  ;;  %v2974_v0 = vpop.f32.mrb[25].mxu0 }
 0x1a7   :  { %v2489_v1 = vpop.f32.mrb[26].mxu0 }
 0x1a8   :  { %2493 = vst.msk [vmem:[%s3952_s3] sm:$0x3] %vm2492_vm5, %v2487_v63  ;;  %v2975_v2 = vpop.f32.mrb[27].mxu0 }

</bundles_post_ra>
